<compile_context>
chip_gen: v6e
topology: v6e:2x2x1
jax: 0.10.0
libtpu: 0.0.40
codegen_flags: <defaults>
</compile_context>

<pallas_src>
import functools

import jax
import jax.numpy as jnp
from jax import lax
from jax.experimental import pallas as pl
from jax.experimental.pallas import tpu as pltpu

LANE = 128
SUBLANE = 8


def _round_up(n, m):
    return (n + m - 1) // m * m


def _pick_tile_h(h):
    for cand in (32, 28, 24, 20, 16, 12, 8, 4, 2, 1):
        if cand <= h and h % cand == 0:
            return cand
    return h


def _bottleneck_kernel(x_hbm, w1_ref, b1_ref, w2_ref, b2_ref, w3_ref, b3_ref,
                       out_ref, xbuf, sem, *, height, width):
    """One (batch, row-tile) grid step of the bottleneck block.

    x_hbm  : (B, H+2, Wp, Cp) zero-padded bf16 input, left in HBM (manual DMA)
    w1_ref : (Cp, Pp)     bf16, BN1 scale folded in
    w2_ref : (9, Pp, Pp)  bf16, w2_ref[3*ky+kx] = folded 3x3 tap (ky, kx)
    w3_ref : (Pp, Cpo)    bf16, BN3 scale folded in
    b*_ref : (1, C)       f32 folded BN biases
    out_ref: (1, TH, W, Cpo) output tile (auto-pipelined by Pallas)
    xbuf   : (2, TH+2, Wp, Cp) bf16 double-buffered input tile (1-row halo each side)
    sem    : (2,) DMA semaphores, one per buffer slot
    """
    _, TH2, Wp, Cp = xbuf.shape
    TH = TH2 - 2
    Pp = w1_ref.shape[1]
    Cpo = w3_ref.shape[1]
    H, W = height, width

    b = pl.program_id(0)
    i = pl.program_id(1)
    n_row_tiles = pl.num_programs(1)
    slot = i % 2
    next_slot = 1 - slot

    def start_fetch(row_tile, dst_slot):
        # rows [row_tile*TH, row_tile*TH + TH + 2) of the padded image `b`
        pltpu.make_async_copy(
            x_hbm.at[b, pl.ds(row_tile * TH, TH2)],
            xbuf.at[dst_slot],
            sem.at[dst_slot],
        ).start()

    # First row-tile of this image: fetch our own tile.  The per-image chain is
    # kept self-contained so the batch axis can be megacore-sharded safely.
    # TODO(synk): when the batch axis is not sharded (v5e/v6e, or B == 1),
    # prefetch row-tile 0 of image b+1 during the last tile of image b instead
    # of leaving this first DMA exposed once per image.
    @pl.when(i == 0)
    def _():
        start_fetch(0, slot)

    # Prefetch the next row-tile of the same image while we compute this one.
    @pl.when(i + 1 < n_row_tiles)
    def _():
        start_fetch(i + 1, next_slot)

    # Wait for the current tile's DMA (descriptor only needs a matching shape).
    pltpu.make_async_copy(
        x_hbm.at[0, pl.ds(0, TH2)], xbuf.at[slot], sem.at[slot]).wait()

    xt = xbuf[slot]                                   # (TH+2, Wp, Cp) bf16

    # ---- conv1 (1x1) + bn1 + relu: one channel matmul over every halo pixel ----
    x2d = xt.reshape(TH2 * Wp, Cp)                    # bf16, no cast needed
    h1 = jnp.dot(x2d, w1_ref[...], preferred_element_type=jnp.float32)
    h1 = jnp.maximum(h1 + b1_ref[...], 0.0).reshape(TH2, Wp, Pp)

    # Zero the pixels that correspond to conv2's zero padding (and alignment pad)
    # so the 3x3 conv sees true zeros, not relu(bias).  NOTE: only the first/last
    # row tiles need the row part of this mask; the column part (cols 0 and W+1)
    # is needed on every tile, so the single fused select is kept unconditional.
    g0 = i * TH                                       # padded-row index of local row 0
    row_id = lax.broadcasted_iota(jnp.int32, (TH2, Wp, 1), 0) + g0
    col_id = lax.broadcasted_iota(jnp.int32, (TH2, Wp, 1), 1)
    valid = (row_id >= 1) & (row_id <= H) & (col_id >= 1) & (col_id <= W)
    h1 = jnp.where(valid, h1, 0.0).astype(jnp.bfloat16)

    # ---- conv2 (3x3, stride 1, pad 1) + bn2 + relu: 9 accumulating dots ----
    # No im2col concat, no (TH*W, 9*Pp) patches buffer — each tap is one K=Pp
    # MXU dot accumulated in f32.
    acc = jnp.zeros((TH * W, Pp), jnp.float32)
    for dy in range(3):
        for dx in range(3):
            piece = h1[dy:dy + TH, dx:dx + W, :].reshape(TH * W, Pp)
            acc = acc + jnp.dot(piece, w2_ref[3 * dy + dx],
                                preferred_element_type=jnp.float32)
    h2 = jnp.maximum(acc + b2_ref[...], 0.0)

    # ---- conv3 (1x1) + bn3 + residual add (f32) + relu ----
    h3 = jnp.dot(h2.astype(jnp.bfloat16), w3_ref[...],
                 preferred_element_type=jnp.float32)  # (TH*W, Cpo)
    # TODO(synk): this residual slice is sublane-unaligned; pltpu.roll (XLU) or a
    # second auto-pipelined residual input would remove the per-step copy.
    res = xt[1:TH + 1, 1:W + 1, :].reshape(TH * W, Cpo).astype(jnp.float32)
    out = jnp.maximum(h3 + b3_ref[...] + res, 0.0)
    out_ref[...] = out.reshape(1, TH, W, Cpo).astype(out_ref.dtype)


def _fold_bn(gamma, beta, mean, var, eps=1e-5):
    scale = gamma / jnp.sqrt(var + eps)
    bias = beta - mean * scale
    return scale.astype(jnp.float32), bias.astype(jnp.float32)


@functools.partial(jax.jit,
                   static_argnames=("tile_h", "out_dtype", "single_buffer_weights"))
def _bottleneck_impl(x, params, tile_h, out_dtype, single_buffer_weights):
    B, H, W, Cin = x.shape
    P = params["w1"].shape[1]
    Cout = params["w3"].shape[1]
    if Cout != Cin:
        raise ValueError("identity residual requires inplanes == planes * expansion")
    if H % tile_h != 0 or W % SUBLANE != 0:
        # TODO(synk): generalize to ragged spatial tiles (masked last tile).
        raise ValueError("H must be divisible by tile_h and W by 8")

    Cp = _round_up(Cin, LANE)
    Pp = _round_up(P, LANE)
    Cpo = _round_up(Cout, LANE)
    Wp = _round_up(W + 2, SUBLANE)

    # Fold BN (eval mode) into the conv weights (scale) and a per-channel bias.
    # Folding is done in f32; the cast to bf16 happens only afterwards.
    s1, b1 = _fold_bn(params["g1"], params["be1"], params["rm1"], params["rv1"])
    s2, b2 = _fold_bn(params["g2"], params["be2"], params["rm2"], params["rv2"])
    s3, b3 = _fold_bn(params["g3"], params["be3"], params["rm3"], params["rv3"])

    w1 = params["w1"] * s1[None, :]
    w2 = params["w2"] * s2[None, None, None, :]
    w3 = params["w3"] * s3[None, :]

    # Zero-pad channels to lane width (128) so every matmul / the output store is
    # lane dense; w2 becomes (9, Pp, Pp), one (Pp, Pp) tap per (ky, kx).
    w1p = jnp.pad(w1, ((0, Cp - Cin), (0, Pp - P))).astype(jnp.bfloat16)
    w2p = jnp.pad(w2, ((0, 0), (0, 0), (0, Pp - P), (0, Pp - P))
                  ).reshape(9, Pp, Pp).astype(jnp.bfloat16)
    w3p = jnp.pad(w3, ((0, Pp - P), (0, Cpo - Cout))).astype(jnp.bfloat16)
    b1p = jnp.pad(b1, (0, Pp - P)).reshape(1, Pp)
    b2p = jnp.pad(b2, (0, Pp - P)).reshape(1, Pp)
    b3p = jnp.pad(b3, (0, Cpo - Cout)).reshape(1, Cpo)

    # 1-pixel spatial halo (+ sublane-alignment columns) and channel pad, zeros.
    # bf16 here halves the per-tile HBM->VMEM DMA and the xbuf footprint.
    x_pad = jnp.pad(x.astype(jnp.bfloat16),
                    ((0, 0), (1, 1), (1, Wp - W - 1), (0, Cp - Cin)))

    # Grid-invariant weights: constant index_map -> never re-DMA'd; a single VMEM
    # buffer is enough (saves one copy of each, w2 being the big one).
    def wspec(shape):
        imap = lambda b, i: (0,) * len(shape)
        if single_buffer_weights:
            return pl.BlockSpec(shape, imap, pipeline_mode=pl.Buffered(1))
        return pl.BlockSpec(shape, imap)

    # Scoped-VMEM budget from the actual per-step working set; capped at 56 MiB so
    # the same kernel also fits v7x's 64 MiB per-TC VMEM (v5e/v6e just get headroom).
    out_bytes = jnp.dtype(out_dtype).itemsize
    wbuf = 1 if single_buffer_weights else 2
    est = (2 * (tile_h + 2) * Wp * Cp * 2                            # xbuf (bf16, x2)
           + wbuf * (Cp * Pp + 9 * Pp * Pp + Pp * Cpo) * 2           # weights (bf16)
           + 2 * tile_h * W * Cpo * out_bytes                        # output (x2)
           + (tile_h + 2) * Wp * Pp * 6                              # h1 f32 + bf16
           + 3 * tile_h * W * max(Pp, Cpo) * 4)                      # acc / h2 / h3
    vmem_limit = int(min(max(32 * 1024 * 1024, 2 * est), 56 * 1024 * 1024))

    grid = (B, H // tile_h)
    kernel = functools.partial(_bottleneck_kernel, height=H, width=W)

    # TODO(synk): for B == 1 on v7x, split the row-tile axis into a (parallel,
    # arbitrary) pair with a self-contained DMA chain per parallel chunk so the
    # second TensorCore is not idle.
    out = pl.pallas_call(
        kernel,
        out_shape=jax.ShapeDtypeStruct((B, H, W, Cpo), out_dtype),
        grid_spec=pltpu.PrefetchScalarGridSpec(
            num_scalar_prefetch=0,
            grid=grid,
            in_specs=[
                pl.BlockSpec(memory_space=pl.ANY),      # x_pad (manual DMA)
                wspec((Cp, Pp)),                        # w1 (folded, bf16)
                wspec((1, Pp)),                         # b1
                wspec((9, Pp, Pp)),                     # w2 (per-tap, bf16)
                wspec((1, Pp)),                         # b2
                wspec((Pp, Cpo)),                       # w3 (folded, bf16)
                wspec((1, Cpo)),                        # b3
            ],
            out_specs=pl.BlockSpec((1, tile_h, W, Cpo),
                                   lambda b, i: (b, i, 0, 0)),
            scratch_shapes=[
                pltpu.VMEM((2, tile_h + 2, Wp, Cp), jnp.bfloat16),   # x tile (x2)
                pltpu.SemaphoreType.DMA((2,)),
            ],
        ),
        compiler_params=pltpu.CompilerParams(
            dimension_semantics=("parallel", "arbitrary"),
            vmem_limit_bytes=vmem_limit,
        ),
    )(x_pad, w1p, b1p, w2p, b2p, w3p, b3p)

    return out[..., :Cout]


def bottleneck_forward_nhwc(x, params, tile_h=None, out_dtype=jnp.float32):
    """Bottleneck forward, NHWC in / NHWC out (channels-last end to end).

    x: (B, H, W, Cin) float32.  stride=1, downsample=None (Cin == 4*planes),
    eval-mode BatchNorm.  Use out_dtype=jnp.bfloat16 when chaining blocks.
    """
    if tile_h is None:
        tile_h = _pick_tile_h(x.shape[1])
    try:
        return jax.block_until_ready(
            _bottleneck_impl(x, params, tile_h=tile_h, out_dtype=out_dtype,
                             single_buffer_weights=True))
    except Exception:
        # pl.Buffered(1) (single-buffered grid-invariant weights) may be rejected
        # by some jax builds — fall back to default double buffering.
        return jax.block_until_ready(
            _bottleneck_impl(x, params, tile_h=tile_h, out_dtype=out_dtype,
                             single_buffer_weights=False))


# ----------------------------- pure-JAX reference -----------------------------
def bottleneck_reference_nhwc(x, params, eps=1e-5):
    dn = ("NHWC", "HWIO", "NHWC")
    Cin, P = params["w1"].shape
    Cout = params["w3"].shape[1]

    def bn(h, g, be, rm, rv):
        return (h - rm) / jnp.sqrt(rv + eps) * g + be

    h = lax.conv_general_dilated(x, params["w1"].reshape(1, 1, Cin, P),
                                 (1, 1), "SAME", dimension_numbers=dn)
    h = jnp.maximum(bn(h, params["g1"], params["be1"], params["rm1"], params["rv1"]), 0.0)
    h = lax.conv_general_dilated(h, params["w2"], (1, 1), "SAME", dimension_numbers=dn)
    h = jnp.maximum(bn(h, params["g2"], params["be2"], params["rm2"], params["rv2"]), 0.0)
    h = lax.conv_general_dilated(h, params["w3"].reshape(1, 1, P, Cout),
                                 (1, 1), "SAME", dimension_numbers=dn)
    h = bn(h, params["g3"], params["be3"], params["rm3"], params["rv3"])
    return jnp.maximum(h + x, 0.0)


if __name__ == "__main__":
    # Small, module-consistent shapes: planes=8 => inplanes = planes*4 = 32
    # (identity residual requires inplanes == 4*planes).
    planes = 8
    inplanes = planes * 4

    key = jax.random.PRNGKey(0)
    ks = jax.random.split(key, 17)

    def nrm(k, shape, scale=0.1):
        return (scale * jax.random.normal(k, shape)).astype(jnp.float32)

    params = {
        # conv weights (bias=False in the module)
        "w1": nrm(ks[0], (inplanes, planes)),          # 1x1: (Cin, P)
        "w2": nrm(ks[1], (3, 3, planes, planes)),      # 3x3: HWIO
        "w3": nrm(ks[2], (planes, inplanes)),          # 1x1: (P, Cout=4P)
        # bn1
        "g1": 1.0 + nrm(ks[3], (planes,)), "be1": nrm(ks[4], (planes,)),
        "rm1": nrm(ks[5], (planes,)),
        "rv1": 0.5 + jax.random.uniform(ks[6], (planes,), jnp.float32),
        # bn2
        "g2": 1.0 + nrm(ks[7], (planes,)), "be2": nrm(ks[8], (planes,)),
        "rm2": nrm(ks[9], (planes,)),
        "rv2": 0.5 + jax.random.uniform(ks[10], (planes,), jnp.float32),
        # bn3
        "g3": 1.0 + nrm(ks[11], (inplanes,)), "be3": nrm(ks[12], (inplanes,)),
        "rm3": nrm(ks[13], (inplanes,)),
        "rv3": 0.5 + jax.random.uniform(ks[14], (inplanes,), jnp.float32),
    }

    # --- config 1: B=2, H=32, W=16, tile_h=16 (two pipelined row tiles/image) ---
    B1, H1, W1 = 2, 32, 16
    x1_nchw = jax.random.normal(ks[15], (B1, inplanes, H1, W1), jnp.float32)
    x1 = jnp.transpose(x1_nchw, (0, 2, 3, 1))          # NCHW -> NHWC exactly once

    out1 = bottleneck_forward_nhwc(x1, params, tile_h=16)
    ref1 = jax.block_until_ready(bottleneck_reference_nhwc(x1, params))
    assert out1.shape == (B1, H1, W1, inplanes)
    err1 = float(jnp.max(jnp.abs(out1.astype(jnp.float32) - ref1)))
    # bf16 inputs / MXU (f32 accumulation, f32 bias + residual math) vs f32 ref.
    assert err1 < 6e-2, f"config1 mismatch vs reference: {err1}"

    # --- config 2: B=1, H=16, W=16, auto tile_h (=H), bf16 output path ---------
    B2, H2, W2 = 1, 16, 16
    x2_nchw = jax.random.normal(ks[16], (B2, inplanes, H2, W2), jnp.float32)
    x2 = jnp.transpose(x2_nchw, (0, 2, 3, 1))

    out2 = bottleneck_forward_nhwc(x2, params, out_dtype=jnp.bfloat16)
    ref2 = jax.block_until_ready(bottleneck_reference_nhwc(x2, params))
    assert out2.shape == (B2, H2, W2, inplanes)
    assert out2.dtype == jnp.bfloat16
    err2 = float(jnp.max(jnp.abs(out2.astype(jnp.float32) - ref2)))
    assert err2 < 1.2e-1, f"config2 mismatch vs reference: {err2}"

    print("KERNEL_OK")
</pallas_src>

<mosaic_0001>
module attributes {stable_mosaic.version = 11 : i64} {
  func.func @_bottleneck_kernel(%arg0: i32, %arg1: i32, %arg2: memref<2x34x24x128xbf16, #tpu.memory_space<any>>, %arg3: memref<128x128xbf16, #tpu.memory_space<vmem>>, %arg4: memref<1x128xf32, #tpu.memory_space<vmem>>, %arg5: memref<9x128x128xbf16, #tpu.memory_space<vmem>>, %arg6: memref<1x128xf32, #tpu.memory_space<vmem>>, %arg7: memref<128x128xbf16, #tpu.memory_space<vmem>>, %arg8: memref<1x128xf32, #tpu.memory_space<vmem>>, %arg9: memref<1x16x16x128xf32, #tpu.memory_space<vmem>>, %arg10: memref<2x18x24x128xbf16, #tpu.memory_space<vmem>>, %arg11: memref<2x!tpu.dma_semaphore, #tpu.memory_space<semaphore_mem>>) attributes {dimension_semantics = [#tpu.dimension_semantics<parallel>, #tpu.dimension_semantics<arbitrary>], iteration_bounds = array<i64: 2, 2>, scalar_prefetch = 0 : i64, scratch_operands = 2 : i64, tpu.core_type = #tpu.core_type<tc>, window_params = [{}, {pipeline_mode = #tpu.pipeline_mode<synchronous>, transform_indices = @transform_1, window_bounds = array<i64: 128, 128>}, {pipeline_mode = #tpu.pipeline_mode<synchronous>, transform_indices = @transform_2, window_bounds = array<i64: 1, 128>}, {pipeline_mode = #tpu.pipeline_mode<synchronous>, transform_indices = @transform_3, window_bounds = array<i64: 9, 128, 128>}, {pipeline_mode = #tpu.pipeline_mode<synchronous>, transform_indices = @transform_4, window_bounds = array<i64: 1, 128>}, {pipeline_mode = #tpu.pipeline_mode<synchronous>, transform_indices = @transform_5, window_bounds = array<i64: 128, 128>}, {pipeline_mode = #tpu.pipeline_mode<synchronous>, transform_indices = @transform_6, window_bounds = array<i64: 1, 128>}, {transform_indices = @transform_7, window_bounds = array<i64: 1, 16, 16, 128>}]} {
    %c2_i32 = arith.constant 2 : i32
    %c0_i32 = arith.constant 0 : i32
    %0 = arith.cmpi eq, %c2_i32, %c0_i32 : i32
    %c1_i32 = arith.constant 1 : i32
    %1 = arith.select %0, %c1_i32, %c2_i32 : i32
    %2 = arith.remsi %arg1, %1 : i32
    %c0_i32_0 = arith.constant 0 : i32
    %3 = arith.cmpi ne, %2, %c0_i32_0 : i32
    %c0_i32_1 = arith.constant 0 : i32
    %4 = arith.cmpi slt, %2, %c0_i32_1 : i32
    %c0_i32_2 = arith.constant 0 : i32
    %5 = arith.cmpi slt, %1, %c0_i32_2 : i32
    %6 = arith.xori %4, %5 : i1
    %7 = arith.andi %6, %3 : i1
    %8 = arith.addi %2, %1 : i32
    %9 = arith.select %7, %8, %2 : i32
    %c1_i32_3 = arith.constant 1 : i32
    %10 = arith.subi %c1_i32_3, %9 : i32
    %c0_i32_4 = arith.constant 0 : i32
    %11 = arith.cmpi eq, %arg1, %c0_i32_4 : i32
    %12 = arith.extui %11 : i1 to i32
    %c0_i32_5 = arith.constant 0 : i32
    %13 = arith.cmpi ne, %12, %c0_i32_5 : i32
    scf.if %13 {
      %c0_i32_69 = arith.constant 0 : i32
      %c0_i32_70 = arith.constant 0 : i32
      %c0_i32_71 = arith.constant 0 : i32
      %131 = tpu.memref_slice %arg2[%arg0, %c0_i32_69, %c0_i32_70, %c0_i32_71] : memref<2x34x24x128xbf16, #tpu.memory_space<any>> -> memref<1x18x24x128xbf16, #tpu.memory_space<any>>
      %132 = tpu.memref_squeeze %131 : memref<1x18x24x128xbf16, #tpu.memory_space<any>> -> memref<18x24x128xbf16, #tpu.memory_space<any>>
      %c0_i32_72 = arith.constant 0 : i32
      %c0_i32_73 = arith.constant 0 : i32
      %c0_i32_74 = arith.constant 0 : i32
      %133 = tpu.memref_slice %arg10[%9, %c0_i32_72, %c0_i32_73, %c0_i32_74] : memref<2x18x24x128xbf16, #tpu.memory_space<vmem>> -> memref<1x18x24x128xbf16, #tpu.memory_space<vmem>>
      %134 = tpu.memref_squeeze %133 : memref<1x18x24x128xbf16, #tpu.memory_space<vmem>> -> memref<18x24x128xbf16, #tpu.memory_space<vmem>>
      %135 = tpu.memref_slice %arg11[%9] : memref<2x!tpu.dma_semaphore, #tpu.memory_space<semaphore_mem>> -> memref<1x!tpu.dma_semaphore, #tpu.memory_space<semaphore_mem>>
      %136 = tpu.memref_squeeze %135 : memref<1x!tpu.dma_semaphore, #tpu.memory_space<semaphore_mem>> -> memref<!tpu.dma_semaphore, #tpu.memory_space<semaphore_mem>>
      tpu.enqueue_dma source(%132 : memref<18x24x128xbf16, #tpu.memory_space<any>>) target(%134 : memref<18x24x128xbf16, #tpu.memory_space<vmem>>) target_semaphore(%136 : memref<!tpu.dma_semaphore, #tpu.memory_space<semaphore_mem>>)
    } else {
    }
    %c1_i32_6 = arith.constant 1 : i32
    %14 = arith.addi %arg1, %c1_i32_6 : i32
    %c2_i32_7 = arith.constant 2 : i32
    %15 = arith.cmpi slt, %14, %c2_i32_7 : i32
    %16 = arith.extui %15 : i1 to i32
    %c0_i32_8 = arith.constant 0 : i32
    %17 = arith.cmpi ne, %16, %c0_i32_8 : i32
    scf.if %17 {
      %c1_i32_69 = arith.constant 1 : i32
      %131 = arith.addi %arg1, %c1_i32_69 : i32
      %c16_i32_70 = arith.constant 16 : i32
      %132 = arith.muli %131, %c16_i32_70 : i32
      %c0_i32_71 = arith.constant 0 : i32
      %c0_i32_72 = arith.constant 0 : i32
      %133 = tpu.memref_slice %arg2[%arg0, %132, %c0_i32_71, %c0_i32_72] : memref<2x34x24x128xbf16, #tpu.memory_space<any>> -> memref<1x18x24x128xbf16, #tpu.memory_space<any>>
      %134 = tpu.memref_squeeze %133 : memref<1x18x24x128xbf16, #tpu.memory_space<any>> -> memref<18x24x128xbf16, #tpu.memory_space<any>>
      %c0_i32_73 = arith.constant 0 : i32
      %c0_i32_74 = arith.constant 0 : i32
      %c0_i32_75 = arith.constant 0 : i32
      %135 = tpu.memref_slice %arg10[%10, %c0_i32_73, %c0_i32_74, %c0_i32_75] : memref<2x18x24x128xbf16, #tpu.memory_space<vmem>> -> memref<1x18x24x128xbf16, #tpu.memory_space<vmem>>
      %136 = tpu.memref_squeeze %135 : memref<1x18x24x128xbf16, #tpu.memory_space<vmem>> -> memref<18x24x128xbf16, #tpu.memory_space<vmem>>
      %137 = tpu.memref_slice %arg11[%10] : memref<2x!tpu.dma_semaphore, #tpu.memory_space<semaphore_mem>> -> memref<1x!tpu.dma_semaphore, #tpu.memory_space<semaphore_mem>>
      %138 = tpu.memref_squeeze %137 : memref<1x!tpu.dma_semaphore, #tpu.memory_space<semaphore_mem>> -> memref<!tpu.dma_semaphore, #tpu.memory_space<semaphore_mem>>
      tpu.enqueue_dma source(%134 : memref<18x24x128xbf16, #tpu.memory_space<any>>) target(%136 : memref<18x24x128xbf16, #tpu.memory_space<vmem>>) target_semaphore(%138 : memref<!tpu.dma_semaphore, #tpu.memory_space<semaphore_mem>>)
    } else {
    }
    %c0_i32_9 = arith.constant 0 : i32
    %c0_i32_10 = arith.constant 0 : i32
    %c0_i32_11 = arith.constant 0 : i32
    %c0_i32_12 = arith.constant 0 : i32
    %18 = tpu.memref_slice %arg2[%c0_i32_9, %c0_i32_10, %c0_i32_11, %c0_i32_12] : memref<2x34x24x128xbf16, #tpu.memory_space<any>> -> memref<1x18x24x128xbf16, #tpu.memory_space<any>>
    %19 = tpu.memref_squeeze %18 : memref<1x18x24x128xbf16, #tpu.memory_space<any>> -> memref<18x24x128xbf16, #tpu.memory_space<any>>
    %c0_i32_13 = arith.constant 0 : i32
    %c0_i32_14 = arith.constant 0 : i32
    %c0_i32_15 = arith.constant 0 : i32
    %20 = tpu.memref_slice %arg10[%9, %c0_i32_13, %c0_i32_14, %c0_i32_15] : memref<2x18x24x128xbf16, #tpu.memory_space<vmem>> -> memref<1x18x24x128xbf16, #tpu.memory_space<vmem>>
    %21 = tpu.memref_squeeze %20 : memref<1x18x24x128xbf16, #tpu.memory_space<vmem>> -> memref<18x24x128xbf16, #tpu.memory_space<vmem>>
    %22 = tpu.memref_slice %arg11[%9] : memref<2x!tpu.dma_semaphore, #tpu.memory_space<semaphore_mem>> -> memref<1x!tpu.dma_semaphore, #tpu.memory_space<semaphore_mem>>
    %23 = tpu.memref_squeeze %22 : memref<1x!tpu.dma_semaphore, #tpu.memory_space<semaphore_mem>> -> memref<!tpu.dma_semaphore, #tpu.memory_space<semaphore_mem>>
    tpu.wait_dma2 semaphore(%23 : memref<!tpu.dma_semaphore, #tpu.memory_space<semaphore_mem>>) src(%19 : memref<18x24x128xbf16, #tpu.memory_space<any>>) dst(%21 : memref<18x24x128xbf16, #tpu.memory_space<vmem>>)
    %24 = arith.index_cast %9 : i32 to index
    %c0 = arith.constant 0 : index
    %c0_16 = arith.constant 0 : index
    %c0_17 = arith.constant 0 : index
    %25 = vector.load %arg10[%24, %c0, %c0_16, %c0_17] : memref<2x18x24x128xbf16, #tpu.memory_space<vmem>>, vector<1x18x24x128xbf16>
    %26 = vector.shape_cast %25 : vector<1x18x24x128xbf16> to vector<18x24x128xbf16>
    %27 = vector.shape_cast %26 : vector<18x24x128xbf16> to vector<432x128xbf16>
    %c0_18 = arith.constant 0 : index
    %c0_19 = arith.constant 0 : index
    %28 = vector.load %arg3[%c0_18, %c0_19] : memref<128x128xbf16, #tpu.memory_space<vmem>>, vector<128x128xbf16>
    %cst = arith.constant dense<0.000000e+00> : vector<432x128xf32>
    %29 = tpu.matmul %27, %28, %cst {dimension_numbers = #tpu.dot_dimension_numbers<[1], [0], [0], [1], [0, 0, 1, 1], [], []>} : vector<432x128xbf16>, vector<128x128xbf16>, vector<432x128xf32> -> vector<432x128xf32>
    %c0_20 = arith.constant 0 : index
    %c0_21 = arith.constant 0 : index
    %30 = vector.load %arg4[%c0_20, %c0_21] : memref<1x128xf32, #tpu.memory_space<vmem>>, vector<1x128xf32>
    %31 = vector.broadcast %30 : vector<1x128xf32> to vector<432x128xf32>
    %32 = arith.addf %29, %31 : vector<432x128xf32>
    %cst_22 = arith.constant 0.000000e+00 : f32
    %33 = vector.broadcast %cst_22 : f32 to vector<432x128xf32>
    %34 = arith.maximumf %32, %33 : vector<432x128xf32>
    %35 = vector.shape_cast %34 : vector<432x128xf32> to vector<18x24x128xf32>
    %c16_i32 = arith.constant 16 : i32
    %36 = arith.muli %arg1, %c16_i32 : i32
    %37 = tpu.iota {dimensions = array<i32: 0>} : vector<18x24x1xi32>
    %38 = vector.broadcast %36 : i32 to vector<18x24x1xi32>
    %39 = arith.addi %37, %38 : vector<18x24x1xi32>
    %40 = tpu.iota {dimensions = array<i32: 1>} : vector<18x24x1xi32>
    %c1_i32_23 = arith.constant 1 : i32
    %41 = vector.broadcast %c1_i32_23 : i32 to vector<18x24x1xi32>
    %42 = arith.cmpi sge, %39, %41 : vector<18x24x1xi32>
    %c32_i32 = arith.constant 32 : i32
    %43 = vector.broadcast %c32_i32 : i32 to vector<18x24x1xi32>
    %44 = arith.cmpi sle, %39, %43 : vector<18x24x1xi32>
    %45 = arith.andi %42, %44 : vector<18x24x1xi1>
    %c1_i32_24 = arith.constant 1 : i32
    %46 = vector.broadcast %c1_i32_24 : i32 to vector<18x24x1xi32>
    %47 = arith.cmpi sge, %40, %46 : vector<18x24x1xi32>
    %48 = arith.andi %45, %47 : vector<18x24x1xi1>
    %c16_i32_25 = arith.constant 16 : i32
    %49 = vector.broadcast %c16_i32_25 : i32 to vector<18x24x1xi32>
    %50 = arith.cmpi sle, %40, %49 : vector<18x24x1xi32>
    %51 = arith.andi %48, %50 : vector<18x24x1xi1>
    %cst_26 = arith.constant 0.000000e+00 : f32
    %52 = vector.shape_cast %51 : vector<18x24x1xi1> to vector<18x24x1xi1>
    %53 = vector.broadcast %52 : vector<18x24x1xi1> to vector<18x24x128xi1>
    %54 = vector.broadcast %cst_26 : f32 to vector<18x24x128xf32>
    %55 = arith.select %53, %35, %54 : vector<18x24x128xi1>, vector<18x24x128xf32>
    %56 = arith.truncf %55 : vector<18x24x128xf32> to vector<18x24x128xbf16>
    %cst_27 = arith.constant 0.000000e+00 : f32
    %57 = vector.broadcast %cst_27 : f32 to vector<256x128xf32>
    %58 = vector.extract_strided_slice %56 {offsets = [0, 0, 0], sizes = [16, 16, 128], strides = [1, 1, 1]} : vector<18x24x128xbf16> to vector<16x16x128xbf16>
    %59 = vector.shape_cast %58 : vector<16x16x128xbf16> to vector<256x128xbf16>
    %c0_28 = arith.constant 0 : index
    %c0_29 = arith.constant 0 : index
    %c0_30 = arith.constant 0 : index
    %60 = vector.load %arg5[%c0_28, %c0_29, %c0_30] : memref<9x128x128xbf16, #tpu.memory_space<vmem>>, vector<1x128x128xbf16>
    %61 = vector.shape_cast %60 : vector<1x128x128xbf16> to vector<128x128xbf16>
    %cst_31 = arith.constant dense<0.000000e+00> : vector<256x128xf32>
    %62 = tpu.matmul %59, %61, %cst_31 {dimension_numbers = #tpu.dot_dimension_numbers<[1], [0], [0], [1], [0, 0, 1, 1], [], []>} : vector<256x128xbf16>, vector<128x128xbf16>, vector<256x128xf32> -> vector<256x128xf32>
    %63 = arith.addf %57, %62 : vector<256x128xf32>
    %64 = vector.extract_strided_slice %56 {offsets = [0, 1, 0], sizes = [16, 16, 128], strides = [1, 1, 1]} : vector<18x24x128xbf16> to vector<16x16x128xbf16>
    %65 = vector.shape_cast %64 : vector<16x16x128xbf16> to vector<256x128xbf16>
    %c1 = arith.constant 1 : index
    %c0_32 = arith.constant 0 : index
    %c0_33 = arith.constant 0 : index
    %66 = vector.load %arg5[%c1, %c0_32, %c0_33] : memref<9x128x128xbf16, #tpu.memory_space<vmem>>, vector<1x128x128xbf16>
    %67 = vector.shape_cast %66 : vector<1x128x128xbf16> to vector<128x128xbf16>
    %cst_34 = arith.constant dense<0.000000e+00> : vector<256x128xf32>
    %68 = tpu.matmul %65, %67, %cst_34 {dimension_numbers = #tpu.dot_dimension_numbers<[1], [0], [0], [1], [0, 0, 1, 1], [], []>} : vector<256x128xbf16>, vector<128x128xbf16>, vector<256x128xf32> -> vector<256x128xf32>
    %69 = arith.addf %63, %68 : vector<256x128xf32>
    %70 = vector.extract_strided_slice %56 {offsets = [0, 2, 0], sizes = [16, 16, 128], strides = [1, 1, 1]} : vector<18x24x128xbf16> to vector<16x16x128xbf16>
    %71 = vector.shape_cast %70 : vector<16x16x128xbf16> to vector<256x128xbf16>
    %c2 = arith.constant 2 : index
    %c0_35 = arith.constant 0 : index
    %c0_36 = arith.constant 0 : index
    %72 = vector.load %arg5[%c2, %c0_35, %c0_36] : memref<9x128x128xbf16, #tpu.memory_space<vmem>>, vector<1x128x128xbf16>
    %73 = vector.shape_cast %72 : vector<1x128x128xbf16> to vector<128x128xbf16>
    %cst_37 = arith.constant dense<0.000000e+00> : vector<256x128xf32>
    %74 = tpu.matmul %71, %73, %cst_37 {dimension_numbers = #tpu.dot_dimension_numbers<[1], [0], [0], [1], [0, 0, 1, 1], [], []>} : vector<256x128xbf16>, vector<128x128xbf16>, vector<256x128xf32> -> vector<256x128xf32>
    %75 = arith.addf %69, %74 : vector<256x128xf32>
    %76 = vector.extract_strided_slice %56 {offsets = [1, 0, 0], sizes = [16, 16, 128], strides = [1, 1, 1]} : vector<18x24x128xbf16> to vector<16x16x128xbf16>
    %77 = vector.shape_cast %76 : vector<16x16x128xbf16> to vector<256x128xbf16>
    %c3 = arith.constant 3 : index
    %c0_38 = arith.constant 0 : index
    %c0_39 = arith.constant 0 : index
    %78 = vector.load %arg5[%c3, %c0_38, %c0_39] : memref<9x128x128xbf16, #tpu.memory_space<vmem>>, vector<1x128x128xbf16>
    %79 = vector.shape_cast %78 : vector<1x128x128xbf16> to vector<128x128xbf16>
    %cst_40 = arith.constant dense<0.000000e+00> : vector<256x128xf32>
    %80 = tpu.matmul %77, %79, %cst_40 {dimension_numbers = #tpu.dot_dimension_numbers<[1], [0], [0], [1], [0, 0, 1, 1], [], []>} : vector<256x128xbf16>, vector<128x128xbf16>, vector<256x128xf32> -> vector<256x128xf32>
    %81 = arith.addf %75, %80 : vector<256x128xf32>
    %82 = vector.extract_strided_slice %56 {offsets = [1, 1, 0], sizes = [16, 16, 128], strides = [1, 1, 1]} : vector<18x24x128xbf16> to vector<16x16x128xbf16>
    %83 = vector.shape_cast %82 : vector<16x16x128xbf16> to vector<256x128xbf16>
    %c4 = arith.constant 4 : index
    %c0_41 = arith.constant 0 : index
    %c0_42 = arith.constant 0 : index
    %84 = vector.load %arg5[%c4, %c0_41, %c0_42] : memref<9x128x128xbf16, #tpu.memory_space<vmem>>, vector<1x128x128xbf16>
    %85 = vector.shape_cast %84 : vector<1x128x128xbf16> to vector<128x128xbf16>
    %cst_43 = arith.constant dense<0.000000e+00> : vector<256x128xf32>
    %86 = tpu.matmul %83, %85, %cst_43 {dimension_numbers = #tpu.dot_dimension_numbers<[1], [0], [0], [1], [0, 0, 1, 1], [], []>} : vector<256x128xbf16>, vector<128x128xbf16>, vector<256x128xf32> -> vector<256x128xf32>
    %87 = arith.addf %81, %86 : vector<256x128xf32>
    %88 = vector.extract_strided_slice %56 {offsets = [1, 2, 0], sizes = [16, 16, 128], strides = [1, 1, 1]} : vector<18x24x128xbf16> to vector<16x16x128xbf16>
    %89 = vector.shape_cast %88 : vector<16x16x128xbf16> to vector<256x128xbf16>
    %c5 = arith.constant 5 : index
    %c0_44 = arith.constant 0 : index
    %c0_45 = arith.constant 0 : index
    %90 = vector.load %arg5[%c5, %c0_44, %c0_45] : memref<9x128x128xbf16, #tpu.memory_space<vmem>>, vector<1x128x128xbf16>
    %91 = vector.shape_cast %90 : vector<1x128x128xbf16> to vector<128x128xbf16>
    %cst_46 = arith.constant dense<0.000000e+00> : vector<256x128xf32>
    %92 = tpu.matmul %89, %91, %cst_46 {dimension_numbers = #tpu.dot_dimension_numbers<[1], [0], [0], [1], [0, 0, 1, 1], [], []>} : vector<256x128xbf16>, vector<128x128xbf16>, vector<256x128xf32> -> vector<256x128xf32>
    %93 = arith.addf %87, %92 : vector<256x128xf32>
    %94 = vector.extract_strided_slice %56 {offsets = [2, 0, 0], sizes = [16, 16, 128], strides = [1, 1, 1]} : vector<18x24x128xbf16> to vector<16x16x128xbf16>
    %95 = vector.shape_cast %94 : vector<16x16x128xbf16> to vector<256x128xbf16>
    %c6 = arith.constant 6 : index
    %c0_47 = arith.constant 0 : index
    %c0_48 = arith.constant 0 : index
    %96 = vector.load %arg5[%c6, %c0_47, %c0_48] : memref<9x128x128xbf16, #tpu.memory_space<vmem>>, vector<1x128x128xbf16>
    %97 = vector.shape_cast %96 : vector<1x128x128xbf16> to vector<128x128xbf16>
    %cst_49 = arith.constant dense<0.000000e+00> : vector<256x128xf32>
    %98 = tpu.matmul %95, %97, %cst_49 {dimension_numbers = #tpu.dot_dimension_numbers<[1], [0], [0], [1], [0, 0, 1, 1], [], []>} : vector<256x128xbf16>, vector<128x128xbf16>, vector<256x128xf32> -> vector<256x128xf32>
    %99 = arith.addf %93, %98 : vector<256x128xf32>
    %100 = vector.extract_strided_slice %56 {offsets = [2, 1, 0], sizes = [16, 16, 128], strides = [1, 1, 1]} : vector<18x24x128xbf16> to vector<16x16x128xbf16>
    %101 = vector.shape_cast %100 : vector<16x16x128xbf16> to vector<256x128xbf16>
    %c7 = arith.constant 7 : index
    %c0_50 = arith.constant 0 : index
    %c0_51 = arith.constant 0 : index
    %102 = vector.load %arg5[%c7, %c0_50, %c0_51] : memref<9x128x128xbf16, #tpu.memory_space<vmem>>, vector<1x128x128xbf16>
    %103 = vector.shape_cast %102 : vector<1x128x128xbf16> to vector<128x128xbf16>
    %cst_52 = arith.constant dense<0.000000e+00> : vector<256x128xf32>
    %104 = tpu.matmul %101, %103, %cst_52 {dimension_numbers = #tpu.dot_dimension_numbers<[1], [0], [0], [1], [0, 0, 1, 1], [], []>} : vector<256x128xbf16>, vector<128x128xbf16>, vector<256x128xf32> -> vector<256x128xf32>
    %105 = arith.addf %99, %104 : vector<256x128xf32>
    %106 = vector.extract_strided_slice %56 {offsets = [2, 2, 0], sizes = [16, 16, 128], strides = [1, 1, 1]} : vector<18x24x128xbf16> to vector<16x16x128xbf16>
    %107 = vector.shape_cast %106 : vector<16x16x128xbf16> to vector<256x128xbf16>
    %c8 = arith.constant 8 : index
    %c0_53 = arith.constant 0 : index
    %c0_54 = arith.constant 0 : index
    %108 = vector.load %arg5[%c8, %c0_53, %c0_54] : memref<9x128x128xbf16, #tpu.memory_space<vmem>>, vector<1x128x128xbf16>
    %109 = vector.shape_cast %108 : vector<1x128x128xbf16> to vector<128x128xbf16>
    %cst_55 = arith.constant dense<0.000000e+00> : vector<256x128xf32>
    %110 = tpu.matmul %107, %109, %cst_55 {dimension_numbers = #tpu.dot_dimension_numbers<[1], [0], [0], [1], [0, 0, 1, 1], [], []>} : vector<256x128xbf16>, vector<128x128xbf16>, vector<256x128xf32> -> vector<256x128xf32>
    %111 = arith.addf %105, %110 : vector<256x128xf32>
    %c0_56 = arith.constant 0 : index
    %c0_57 = arith.constant 0 : index
    %112 = vector.load %arg6[%c0_56, %c0_57] : memref<1x128xf32, #tpu.memory_space<vmem>>, vector<1x128xf32>
    %113 = vector.broadcast %112 : vector<1x128xf32> to vector<256x128xf32>
    %114 = arith.addf %111, %113 : vector<256x128xf32>
    %cst_58 = arith.constant 0.000000e+00 : f32
    %115 = vector.broadcast %cst_58 : f32 to vector<256x128xf32>
    %116 = arith.maximumf %114, %115 : vector<256x128xf32>
    %117 = arith.truncf %116 : vector<256x128xf32> to vector<256x128xbf16>
    %c0_59 = arith.constant 0 : index
    %c0_60 = arith.constant 0 : index
    %118 = vector.load %arg7[%c0_59, %c0_60] : memref<128x128xbf16, #tpu.memory_space<vmem>>, vector<128x128xbf16>
    %cst_61 = arith.constant dense<0.000000e+00> : vector<256x128xf32>
    %119 = tpu.matmul %117, %118, %cst_61 {dimension_numbers = #tpu.dot_dimension_numbers<[1], [0], [0], [1], [0, 0, 1, 1], [], []>} : vector<256x128xbf16>, vector<128x128xbf16>, vector<256x128xf32> -> vector<256x128xf32>
    %120 = vector.extract_strided_slice %26 {offsets = [1, 1, 0], sizes = [16, 16, 128], strides = [1, 1, 1]} : vector<18x24x128xbf16> to vector<16x16x128xbf16>
    %121 = vector.shape_cast %120 : vector<16x16x128xbf16> to vector<256x128xbf16>
    %122 = arith.extf %121 : vector<256x128xbf16> to vector<256x128xf32>
    %c0_62 = arith.constant 0 : index
    %c0_63 = arith.constant 0 : index
    %123 = vector.load %arg8[%c0_62, %c0_63] : memref<1x128xf32, #tpu.memory_space<vmem>>, vector<1x128xf32>
    %124 = vector.broadcast %123 : vector<1x128xf32> to vector<256x128xf32>
    %125 = arith.addf %119, %124 : vector<256x128xf32>
    %126 = arith.addf %125, %122 : vector<256x128xf32>
    %cst_64 = arith.constant 0.000000e+00 : f32
    %127 = vector.broadcast %cst_64 : f32 to vector<256x128xf32>
    %128 = arith.maximumf %126, %127 : vector<256x128xf32>
    %129 = vector.shape_cast %128 : vector<256x128xf32> to vector<1x16x16x128xf32>
    %c0_65 = arith.constant 0 : index
    %c0_66 = arith.constant 0 : index
    %c0_67 = arith.constant 0 : index
    %c0_68 = arith.constant 0 : index
    %130 = vector.load %arg9[%c0_65, %c0_66, %c0_67, %c0_68] : memref<1x16x16x128xf32, #tpu.memory_space<vmem>>, vector<1x16x16x128xf32>
    tpu.vector_store %arg9[%c0_65, %c0_66, %c0_67, %c0_68], %129 {strides = array<i32>} : memref<1x16x16x128xf32, #tpu.memory_space<vmem>>, vector<1x16x16x128xf32>,
    return
  }
  func.func @transform_1(%arg0: i32, %arg1: i32) -> (i32, i32) {
    %c0_i32 = arith.constant 0 : i32
    %c0_i32_0 = arith.constant 0 : i32
    %c0_i32_1 = arith.constant 0 : i32
    return %c0_i32, %c0_i32_0 : i32, i32
  }
  func.func @transform_2(%arg0: i32, %arg1: i32) -> (i32, i32) {
    %c0_i32 = arith.constant 0 : i32
    %c0_i32_0 = arith.constant 0 : i32
    %c0_i32_1 = arith.constant 0 : i32
    return %c0_i32, %c0_i32_0 : i32, i32
  }
  func.func @transform_3(%arg0: i32, %arg1: i32) -> (i32, i32, i32) {
    %c0_i32 = arith.constant 0 : i32
    %c0_i32_0 = arith.constant 0 : i32
    %c0_i32_1 = arith.constant 0 : i32
    %c0_i32_2 = arith.constant 0 : i32
    return %c0_i32, %c0_i32_0, %c0_i32_1 : i32, i32, i32
  }
  func.func @transform_4(%arg0: i32, %arg1: i32) -> (i32, i32) {
    %c0_i32 = arith.constant 0 : i32
    %c0_i32_0 = arith.constant 0 : i32
    %c0_i32_1 = arith.constant 0 : i32
    return %c0_i32, %c0_i32_0 : i32, i32
  }
  func.func @transform_5(%arg0: i32, %arg1: i32) -> (i32, i32) {
    %c0_i32 = arith.constant 0 : i32
    %c0_i32_0 = arith.constant 0 : i32
    %c0_i32_1 = arith.constant 0 : i32
    return %c0_i32, %c0_i32_0 : i32, i32
  }
  func.func @transform_6(%arg0: i32, %arg1: i32) -> (i32, i32) {
    %c0_i32 = arith.constant 0 : i32
    %c0_i32_0 = arith.constant 0 : i32
    %c0_i32_1 = arith.constant 0 : i32
    return %c0_i32, %c0_i32_0 : i32, i32
  }
  func.func @transform_7(%arg0: i32, %arg1: i32) -> (i32, i32, i32, i32) {
    %c0_i32 = arith.constant 0 : i32
    %c0_i32_0 = arith.constant 0 : i32
    %c0_i32_1 = arith.constant 0 : i32
    return %arg0, %arg1, %c0_i32, %c0_i32_0 : i32, i32, i32, i32
  }
}

module attributes {stable_mosaic.version = 11 : i64} {
  func.func @_bottleneck_kernel(%arg0: i32, %arg1: i32, %arg2: memref<2x34x24x128xbf16, #tpu.memory_space<any>>, %arg3: memref<128x128xbf16, #tpu.memory_space<vmem>>, %arg4: memref<1x128xf32, #tpu.memory_space<vmem>>, %arg5: memref<9x128x128xbf16, #tpu.memory_space<vmem>>, %arg6: memref<1x128xf32, #tpu.memory_space<vmem>>, %arg7: memref<128x128xbf16, #tpu.memory_space<vmem>>, %arg8: memref<1x128xf32, #tpu.memory_space<vmem>>, %arg9: memref<1x16x16x128xf32, #tpu.memory_space<vmem>>, %arg10: memref<2x18x24x128xbf16, #tpu.memory_space<vmem>>, %arg11: memref<2x!tpu.dma_semaphore, #tpu.memory_space<semaphore_mem>>) attributes {dimension_semantics = [#tpu.dimension_semantics<parallel>, #tpu.dimension_semantics<arbitrary>], iteration_bounds = array<i64: 2, 2>, scalar_prefetch = 0 : i64, scratch_operands = 2 : i64, tpu.core_type = #tpu.core_type<tc>, window_params = [{}, {pipeline_mode = #tpu.pipeline_mode<synchronous>, transform_indices = @transform_1, window_bounds = array<i64: 128, 128>}, {pipeline_mode = #tpu.pipeline_mode<synchronous>, transform_indices = @transform_2, window_bounds = array<i64: 1, 128>}, {pipeline_mode = #tpu.pipeline_mode<synchronous>, transform_indices = @transform_3, window_bounds = array<i64: 9, 128, 128>}, {pipeline_mode = #tpu.pipeline_mode<synchronous>, transform_indices = @transform_4, window_bounds = array<i64: 1, 128>}, {pipeline_mode = #tpu.pipeline_mode<synchronous>, transform_indices = @transform_5, window_bounds = array<i64: 128, 128>}, {pipeline_mode = #tpu.pipeline_mode<synchronous>, transform_indices = @transform_6, window_bounds = array<i64: 1, 128>}, {transform_indices = @transform_7, window_bounds = array<i64: 1, 16, 16, 128>}]} {
    %c2_i32 = arith.constant 2 : i32
    %c0_i32 = arith.constant 0 : i32
    %0 = arith.cmpi eq, %c2_i32, %c0_i32 : i32
    %c1_i32 = arith.constant 1 : i32
    %1 = arith.select %0, %c1_i32, %c2_i32 : i32
    %2 = arith.remsi %arg1, %1 : i32
    %c0_i32_0 = arith.constant 0 : i32
    %3 = arith.cmpi ne, %2, %c0_i32_0 : i32
    %c0_i32_1 = arith.constant 0 : i32
    %4 = arith.cmpi slt, %2, %c0_i32_1 : i32
    %c0_i32_2 = arith.constant 0 : i32
    %5 = arith.cmpi slt, %1, %c0_i32_2 : i32
    %6 = arith.xori %4, %5 : i1
    %7 = arith.andi %6, %3 : i1
    %8 = arith.addi %2, %1 : i32
    %9 = arith.select %7, %8, %2 : i32
    %c1_i32_3 = arith.constant 1 : i32
    %10 = arith.subi %c1_i32_3, %9 : i32
    %c0_i32_4 = arith.constant 0 : i32
    %11 = arith.cmpi eq, %arg1, %c0_i32_4 : i32
    %12 = arith.extui %11 : i1 to i32
    %c0_i32_5 = arith.constant 0 : i32
    %13 = arith.cmpi ne, %12, %c0_i32_5 : i32
    scf.if %13 {
      %c0_i32_69 = arith.constant 0 : i32
      %c0_i32_70 = arith.constant 0 : i32
      %c0_i32_71 = arith.constant 0 : i32
      %131 = tpu.memref_slice %arg2[%arg0, %c0_i32_69, %c0_i32_70, %c0_i32_71] : memref<2x34x24x128xbf16, #tpu.memory_space<any>> -> memref<1x18x24x128xbf16, #tpu.memory_space<any>>
      %132 = tpu.memref_squeeze %131 : memref<1x18x24x128xbf16, #tpu.memory_space<any>> -> memref<18x24x128xbf16, #tpu.memory_space<any>>
      %c0_i32_72 = arith.constant 0 : i32
      %c0_i32_73 = arith.constant 0 : i32
      %c0_i32_74 = arith.constant 0 : i32
      %133 = tpu.memref_slice %arg10[%9, %c0_i32_72, %c0_i32_73, %c0_i32_74] : memref<2x18x24x128xbf16, #tpu.memory_space<vmem>> -> memref<1x18x24x128xbf16, #tpu.memory_space<vmem>>
      %134 = tpu.memref_squeeze %133 : memref<1x18x24x128xbf16, #tpu.memory_space<vmem>> -> memref<18x24x128xbf16, #tpu.memory_space<vmem>>
      %135 = tpu.memref_slice %arg11[%9] : memref<2x!tpu.dma_semaphore, #tpu.memory_space<semaphore_mem>> -> memref<1x!tpu.dma_semaphore, #tpu.memory_space<semaphore_mem>>
      %136 = tpu.memref_squeeze %135 : memref<1x!tpu.dma_semaphore, #tpu.memory_space<semaphore_mem>> -> memref<!tpu.dma_semaphore, #tpu.memory_space<semaphore_mem>>
      tpu.enqueue_dma source(%132 : memref<18x24x128xbf16, #tpu.memory_space<any>>) target(%134 : memref<18x24x128xbf16, #tpu.memory_space<vmem>>) target_semaphore(%136 : memref<!tpu.dma_semaphore, #tpu.memory_space<semaphore_mem>>)
    } else {
    }
    %c1_i32_6 = arith.constant 1 : i32
    %14 = arith.addi %arg1, %c1_i32_6 : i32
    %c2_i32_7 = arith.constant 2 : i32
    %15 = arith.cmpi slt, %14, %c2_i32_7 : i32
    %16 = arith.extui %15 : i1 to i32
    %c0_i32_8 = arith.constant 0 : i32
    %17 = arith.cmpi ne, %16, %c0_i32_8 : i32
    scf.if %17 {
      %c1_i32_69 = arith.constant 1 : i32
      %131 = arith.addi %arg1, %c1_i32_69 : i32
      %c16_i32_70 = arith.constant 16 : i32
      %132 = arith.muli %131, %c16_i32_70 : i32
      %c0_i32_71 = arith.constant 0 : i32
      %c0_i32_72 = arith.constant 0 : i32
      %133 = tpu.memref_slice %arg2[%arg0, %132, %c0_i32_71, %c0_i32_72] : memref<2x34x24x128xbf16, #tpu.memory_space<any>> -> memref<1x18x24x128xbf16, #tpu.memory_space<any>>
      %134 = tpu.memref_squeeze %133 : memref<1x18x24x128xbf16, #tpu.memory_space<any>> -> memref<18x24x128xbf16, #tpu.memory_space<any>>
      %c0_i32_73 = arith.constant 0 : i32
      %c0_i32_74 = arith.constant 0 : i32
      %c0_i32_75 = arith.constant 0 : i32
      %135 = tpu.memref_slice %arg10[%10, %c0_i32_73, %c0_i32_74, %c0_i32_75] : memref<2x18x24x128xbf16, #tpu.memory_space<vmem>> -> memref<1x18x24x128xbf16, #tpu.memory_space<vmem>>
      %136 = tpu.memref_squeeze %135 : memref<1x18x24x128xbf16, #tpu.memory_space<vmem>> -> memref<18x24x128xbf16, #tpu.memory_space<vmem>>
      %137 = tpu.memref_slice %arg11[%10] : memref<2x!tpu.dma_semaphore, #tpu.memory_space<semaphore_mem>> -> memref<1x!tpu.dma_semaphore, #tpu.memory_space<semaphore_mem>>
      %138 = tpu.memref_squeeze %137 : memref<1x!tpu.dma_semaphore, #tpu.memory_space<semaphore_mem>> -> memref<!tpu.dma_semaphore, #tpu.memory_space<semaphore_mem>>
      tpu.enqueue_dma source(%134 : memref<18x24x128xbf16, #tpu.memory_space<any>>) target(%136 : memref<18x24x128xbf16, #tpu.memory_space<vmem>>) target_semaphore(%138 : memref<!tpu.dma_semaphore, #tpu.memory_space<semaphore_mem>>)
    } else {
    }
    %c0_i32_9 = arith.constant 0 : i32
    %c0_i32_10 = arith.constant 0 : i32
    %c0_i32_11 = arith.constant 0 : i32
    %c0_i32_12 = arith.constant 0 : i32
    %18 = tpu.memref_slice %arg2[%c0_i32_9, %c0_i32_10, %c0_i32_11, %c0_i32_12] : memref<2x34x24x128xbf16, #tpu.memory_space<any>> -> memref<1x18x24x128xbf16, #tpu.memory_space<any>>
    %19 = tpu.memref_squeeze %18 : memref<1x18x24x128xbf16, #tpu.memory_space<any>> -> memref<18x24x128xbf16, #tpu.memory_space<any>>
    %c0_i32_13 = arith.constant 0 : i32
    %c0_i32_14 = arith.constant 0 : i32
    %c0_i32_15 = arith.constant 0 : i32
    %20 = tpu.memref_slice %arg10[%9, %c0_i32_13, %c0_i32_14, %c0_i32_15] : memref<2x18x24x128xbf16, #tpu.memory_space<vmem>> -> memref<1x18x24x128xbf16, #tpu.memory_space<vmem>>
    %21 = tpu.memref_squeeze %20 : memref<1x18x24x128xbf16, #tpu.memory_space<vmem>> -> memref<18x24x128xbf16, #tpu.memory_space<vmem>>
    %22 = tpu.memref_slice %arg11[%9] : memref<2x!tpu.dma_semaphore, #tpu.memory_space<semaphore_mem>> -> memref<1x!tpu.dma_semaphore, #tpu.memory_space<semaphore_mem>>
    %23 = tpu.memref_squeeze %22 : memref<1x!tpu.dma_semaphore, #tpu.memory_space<semaphore_mem>> -> memref<!tpu.dma_semaphore, #tpu.memory_space<semaphore_mem>>
    tpu.wait_dma2 semaphore(%23 : memref<!tpu.dma_semaphore, #tpu.memory_space<semaphore_mem>>) src(%19 : memref<18x24x128xbf16, #tpu.memory_space<any>>) dst(%21 : memref<18x24x128xbf16, #tpu.memory_space<vmem>>)
    %24 = arith.index_cast %9 : i32 to index
    %c0 = arith.constant 0 : index
    %c0_16 = arith.constant 0 : index
    %c0_17 = arith.constant 0 : index
    %25 = vector.load %arg10[%24, %c0, %c0_16, %c0_17] : memref<2x18x24x128xbf16, #tpu.memory_space<vmem>>, vector<1x18x24x128xbf16>
    %26 = vector.shape_cast %25 : vector<1x18x24x128xbf16> to vector<18x24x128xbf16>
    %27 = vector.shape_cast %26 : vector<18x24x128xbf16> to vector<432x128xbf16>
    %c0_18 = arith.constant 0 : index
    %c0_19 = arith.constant 0 : index
    %28 = vector.load %arg3[%c0_18, %c0_19] : memref<128x128xbf16, #tpu.memory_space<vmem>>, vector<128x128xbf16>
    %cst = arith.constant dense<0.000000e+00> : vector<432x128xf32>
    %29 = tpu.matmul %27, %28, %cst {dimension_numbers = #tpu.dot_dimension_numbers<[1], [0], [0], [1], [0, 0, 1, 1], [], []>} : vector<432x128xbf16>, vector<128x128xbf16>, vector<432x128xf32> -> vector<432x128xf32>
    %c0_20 = arith.constant 0 : index
    %c0_21 = arith.constant 0 : index
    %30 = vector.load %arg4[%c0_20, %c0_21] : memref<1x128xf32, #tpu.memory_space<vmem>>, vector<1x128xf32>
    %31 = vector.broadcast %30 : vector<1x128xf32> to vector<432x128xf32>
    %32 = arith.addf %29, %31 : vector<432x128xf32>
    %cst_22 = arith.constant 0.000000e+00 : f32
    %33 = vector.broadcast %cst_22 : f32 to vector<432x128xf32>
    %34 = arith.maximumf %32, %33 : vector<432x128xf32>
    %35 = vector.shape_cast %34 : vector<432x128xf32> to vector<18x24x128xf32>
    %c16_i32 = arith.constant 16 : i32
    %36 = arith.muli %arg1, %c16_i32 : i32
    %37 = tpu.iota {dimensions = array<i32: 0>} : vector<18x24x1xi32>
    %38 = vector.broadcast %36 : i32 to vector<18x24x1xi32>
    %39 = arith.addi %37, %38 : vector<18x24x1xi32>
    %40 = tpu.iota {dimensions = array<i32: 1>} : vector<18x24x1xi32>
    %c1_i32_23 = arith.constant 1 : i32
    %41 = vector.broadcast %c1_i32_23 : i32 to vector<18x24x1xi32>
    %42 = arith.cmpi sge, %39, %41 : vector<18x24x1xi32>
    %c32_i32 = arith.constant 32 : i32
    %43 = vector.broadcast %c32_i32 : i32 to vector<18x24x1xi32>
    %44 = arith.cmpi sle, %39, %43 : vector<18x24x1xi32>
    %45 = arith.andi %42, %44 : vector<18x24x1xi1>
    %c1_i32_24 = arith.constant 1 : i32
    %46 = vector.broadcast %c1_i32_24 : i32 to vector<18x24x1xi32>
    %47 = arith.cmpi sge, %40, %46 : vector<18x24x1xi32>
    %48 = arith.andi %45, %47 : vector<18x24x1xi1>
    %c16_i32_25 = arith.constant 16 : i32
    %49 = vector.broadcast %c16_i32_25 : i32 to vector<18x24x1xi32>
    %50 = arith.cmpi sle, %40, %49 : vector<18x24x1xi32>
    %51 = arith.andi %48, %50 : vector<18x24x1xi1>
    %cst_26 = arith.constant 0.000000e+00 : f32
    %52 = vector.shape_cast %51 : vector<18x24x1xi1> to vector<18x24x1xi1>
    %53 = vector.broadcast %52 : vector<18x24x1xi1> to vector<18x24x128xi1>
    %54 = vector.broadcast %cst_26 : f32 to vector<18x24x128xf32>
    %55 = arith.select %53, %35, %54 : vector<18x24x128xi1>, vector<18x24x128xf32>
    %56 = arith.truncf %55 : vector<18x24x128xf32> to vector<18x24x128xbf16>
    %cst_27 = arith.constant 0.000000e+00 : f32
    %57 = vector.broadcast %cst_27 : f32 to vector<256x128xf32>
    %58 = vector.extract_strided_slice %56 {offsets = [0, 0, 0], sizes = [16, 16, 128], strides = [1, 1, 1]} : vector<18x24x128xbf16> to vector<16x16x128xbf16>
    %59 = vector.shape_cast %58 : vector<16x16x128xbf16> to vector<256x128xbf16>
    %c0_28 = arith.constant 0 : index
    %c0_29 = arith.constant 0 : index
    %c0_30 = arith.constant 0 : index
    %60 = vector.load %arg5[%c0_28, %c0_29, %c0_30] : memref<9x128x128xbf16, #tpu.memory_space<vmem>>, vector<1x128x128xbf16>
    %61 = vector.shape_cast %60 : vector<1x128x128xbf16> to vector<128x128xbf16>
    %cst_31 = arith.constant dense<0.000000e+00> : vector<256x128xf32>
    %62 = tpu.matmul %59, %61, %cst_31 {dimension_numbers = #tpu.dot_dimension_numbers<[1], [0], [0], [1], [0, 0, 1, 1], [], []>} : vector<256x128xbf16>, vector<128x128xbf16>, vector<256x128xf32> -> vector<256x128xf32>
    %63 = arith.addf %57, %62 : vector<256x128xf32>
    %64 = vector.extract_strided_slice %56 {offsets = [0, 1, 0], sizes = [16, 16, 128], strides = [1, 1, 1]} : vector<18x24x128xbf16> to vector<16x16x128xbf16>
    %65 = vector.shape_cast %64 : vector<16x16x128xbf16> to vector<256x128xbf16>
    %c1 = arith.constant 1 : index
    %c0_32 = arith.constant 0 : index
    %c0_33 = arith.constant 0 : index
    %66 = vector.load %arg5[%c1, %c0_32, %c0_33] : memref<9x128x128xbf16, #tpu.memory_space<vmem>>, vector<1x128x128xbf16>
    %67 = vector.shape_cast %66 : vector<1x128x128xbf16> to vector<128x128xbf16>
    %cst_34 = arith.constant dense<0.000000e+00> : vector<256x128xf32>
    %68 = tpu.matmul %65, %67, %cst_34 {dimension_numbers = #tpu.dot_dimension_numbers<[1], [0], [0], [1], [0, 0, 1, 1], [], []>} : vector<256x128xbf16>, vector<128x128xbf16>, vector<256x128xf32> -> vector<256x128xf32>
    %69 = arith.addf %63, %68 : vector<256x128xf32>
    %70 = vector.extract_strided_slice %56 {offsets = [0, 2, 0], sizes = [16, 16, 128], strides = [1, 1, 1]} : vector<18x24x128xbf16> to vector<16x16x128xbf16>
    %71 = vector.shape_cast %70 : vector<16x16x128xbf16> to vector<256x128xbf16>
    %c2 = arith.constant 2 : index
    %c0_35 = arith.constant 0 : index
    %c0_36 = arith.constant 0 : index
    %72 = vector.load %arg5[%c2, %c0_35, %c0_36] : memref<9x128x128xbf16, #tpu.memory_space<vmem>>, vector<1x128x128xbf16>
    %73 = vector.shape_cast %72 : vector<1x128x128xbf16> to vector<128x128xbf16>
    %cst_37 = arith.constant dense<0.000000e+00> : vector<256x128xf32>
    %74 = tpu.matmul %71, %73, %cst_37 {dimension_numbers = #tpu.dot_dimension_numbers<[1], [0], [0], [1], [0, 0, 1, 1], [], []>} : vector<256x128xbf16>, vector<128x128xbf16>, vector<256x128xf32> -> vector<256x128xf32>
    %75 = arith.addf %69, %74 : vector<256x128xf32>
    %76 = vector.extract_strided_slice %56 {offsets = [1, 0, 0], sizes = [16, 16, 128], strides = [1, 1, 1]} : vector<18x24x128xbf16> to vector<16x16x128xbf16>
    %77 = vector.shape_cast %76 : vector<16x16x128xbf16> to vector<256x128xbf16>
    %c3 = arith.constant 3 : index
    %c0_38 = arith.constant 0 : index
    %c0_39 = arith.constant 0 : index
    %78 = vector.load %arg5[%c3, %c0_38, %c0_39] : memref<9x128x128xbf16, #tpu.memory_space<vmem>>, vector<1x128x128xbf16>
    %79 = vector.shape_cast %78 : vector<1x128x128xbf16> to vector<128x128xbf16>
    %cst_40 = arith.constant dense<0.000000e+00> : vector<256x128xf32>
    %80 = tpu.matmul %77, %79, %cst_40 {dimension_numbers = #tpu.dot_dimension_numbers<[1], [0], [0], [1], [0, 0, 1, 1], [], []>} : vector<256x128xbf16>, vector<128x128xbf16>, vector<256x128xf32> -> vector<256x128xf32>
    %81 = arith.addf %75, %80 : vector<256x128xf32>
    %82 = vector.extract_strided_slice %56 {offsets = [1, 1, 0], sizes = [16, 16, 128], strides = [1, 1, 1]} : vector<18x24x128xbf16> to vector<16x16x128xbf16>
    %83 = vector.shape_cast %82 : vector<16x16x128xbf16> to vector<256x128xbf16>
    %c4 = arith.constant 4 : index
    %c0_41 = arith.constant 0 : index
    %c0_42 = arith.constant 0 : index
    %84 = vector.load %arg5[%c4, %c0_41, %c0_42] : memref<9x128x128xbf16, #tpu.memory_space<vmem>>, vector<1x128x128xbf16>
    %85 = vector.shape_cast %84 : vector<1x128x128xbf16> to vector<128x128xbf16>
    %cst_43 = arith.constant dense<0.000000e+00> : vector<256x128xf32>
    %86 = tpu.matmul %83, %85, %cst_43 {dimension_numbers = #tpu.dot_dimension_numbers<[1], [0], [0], [1], [0, 0, 1, 1], [], []>} : vector<256x128xbf16>, vector<128x128xbf16>, vector<256x128xf32> -> vector<256x128xf32>
    %87 = arith.addf %81, %86 : vector<256x128xf32>
    %88 = vector.extract_strided_slice %56 {offsets = [1, 2, 0], sizes = [16, 16, 128], strides = [1, 1, 1]} : vector<18x24x128xbf16> to vector<16x16x128xbf16>
    %89 = vector.shape_cast %88 : vector<16x16x128xbf16> to vector<256x128xbf16>
    %c5 = arith.constant 5 : index
    %c0_44 = arith.constant 0 : index
    %c0_45 = arith.constant 0 : index
    %90 = vector.load %arg5[%c5, %c0_44, %c0_45] : memref<9x128x128xbf16, #tpu.memory_space<vmem>>, vector<1x128x128xbf16>
    %91 = vector.shape_cast %90 : vector<1x128x128xbf16> to vector<128x128xbf16>
    %cst_46 = arith.constant dense<0.000000e+00> : vector<256x128xf32>
    %92 = tpu.matmul %89, %91, %cst_46 {dimension_numbers = #tpu.dot_dimension_numbers<[1], [0], [0], [1], [0, 0, 1, 1], [], []>} : vector<256x128xbf16>, vector<128x128xbf16>, vector<256x128xf32> -> vector<256x128xf32>
    %93 = arith.addf %87, %92 : vector<256x128xf32>
    %94 = vector.extract_strided_slice %56 {offsets = [2, 0, 0], sizes = [16, 16, 128], strides = [1, 1, 1]} : vector<18x24x128xbf16> to vector<16x16x128xbf16>
    %95 = vector.shape_cast %94 : vector<16x16x128xbf16> to vector<256x128xbf16>
    %c6 = arith.constant 6 : index
    %c0_47 = arith.constant 0 : index
    %c0_48 = arith.constant 0 : index
    %96 = vector.load %arg5[%c6, %c0_47, %c0_48] : memref<9x128x128xbf16, #tpu.memory_space<vmem>>, vector<1x128x128xbf16>
    %97 = vector.shape_cast %96 : vector<1x128x128xbf16> to vector<128x128xbf16>
    %cst_49 = arith.constant dense<0.000000e+00> : vector<256x128xf32>
    %98 = tpu.matmul %95, %97, %cst_49 {dimension_numbers = #tpu.dot_dimension_numbers<[1], [0], [0], [1], [0, 0, 1, 1], [], []>} : vector<256x128xbf16>, vector<128x128xbf16>, vector<256x128xf32> -> vector<256x128xf32>
    %99 = arith.addf %93, %98 : vector<256x128xf32>
    %100 = vector.extract_strided_slice %56 {offsets = [2, 1, 0], sizes = [16, 16, 128], strides = [1, 1, 1]} : vector<18x24x128xbf16> to vector<16x16x128xbf16>
    %101 = vector.shape_cast %100 : vector<16x16x128xbf16> to vector<256x128xbf16>
    %c7 = arith.constant 7 : index
    %c0_50 = arith.constant 0 : index
    %c0_51 = arith.constant 0 : index
    %102 = vector.load %arg5[%c7, %c0_50, %c0_51] : memref<9x128x128xbf16, #tpu.memory_space<vmem>>, vector<1x128x128xbf16>
    %103 = vector.shape_cast %102 : vector<1x128x128xbf16> to vector<128x128xbf16>
    %cst_52 = arith.constant dense<0.000000e+00> : vector<256x128xf32>
    %104 = tpu.matmul %101, %103, %cst_52 {dimension_numbers = #tpu.dot_dimension_numbers<[1], [0], [0], [1], [0, 0, 1, 1], [], []>} : vector<256x128xbf16>, vector<128x128xbf16>, vector<256x128xf32> -> vector<256x128xf32>
    %105 = arith.addf %99, %104 : vector<256x128xf32>
    %106 = vector.extract_strided_slice %56 {offsets = [2, 2, 0], sizes = [16, 16, 128], strides = [1, 1, 1]} : vector<18x24x128xbf16> to vector<16x16x128xbf16>
    %107 = vector.shape_cast %106 : vector<16x16x128xbf16> to vector<256x128xbf16>
    %c8 = arith.constant 8 : index
    %c0_53 = arith.constant 0 : index
    %c0_54 = arith.constant 0 : index
    %108 = vector.load %arg5[%c8, %c0_53, %c0_54] : memref<9x128x128xbf16, #tpu.memory_space<vmem>>, vector<1x128x128xbf16>
    %109 = vector.shape_cast %108 : vector<1x128x128xbf16> to vector<128x128xbf16>
    %cst_55 = arith.constant dense<0.000000e+00> : vector<256x128xf32>
    %110 = tpu.matmul %107, %109, %cst_55 {dimension_numbers = #tpu.dot_dimension_numbers<[1], [0], [0], [1], [0, 0, 1, 1], [], []>} : vector<256x128xbf16>, vector<128x128xbf16>, vector<256x128xf32> -> vector<256x128xf32>
    %111 = arith.addf %105, %110 : vector<256x128xf32>
    %c0_56 = arith.constant 0 : index
    %c0_57 = arith.constant 0 : index
    %112 = vector.load %arg6[%c0_56, %c0_57] : memref<1x128xf32, #tpu.memory_space<vmem>>, vector<1x128xf32>
    %113 = vector.broadcast %112 : vector<1x128xf32> to vector<256x128xf32>
    %114 = arith.addf %111, %113 : vector<256x128xf32>
    %cst_58 = arith.constant 0.000000e+00 : f32
    %115 = vector.broadcast %cst_58 : f32 to vector<256x128xf32>
    %116 = arith.maximumf %114, %115 : vector<256x128xf32>
    %117 = arith.truncf %116 : vector<256x128xf32> to vector<256x128xbf16>
    %c0_59 = arith.constant 0 : index
    %c0_60 = arith.constant 0 : index
    %118 = vector.load %arg7[%c0_59, %c0_60] : memref<128x128xbf16, #tpu.memory_space<vmem>>, vector<128x128xbf16>
    %cst_61 = arith.constant dense<0.000000e+00> : vector<256x128xf32>
    %119 = tpu.matmul %117, %118, %cst_61 {dimension_numbers = #tpu.dot_dimension_numbers<[1], [0], [0], [1], [0, 0, 1, 1], [], []>} : vector<256x128xbf16>, vector<128x128xbf16>, vector<256x128xf32> -> vector<256x128xf32>
    %120 = vector.extract_strided_slice %26 {offsets = [1, 1, 0], sizes = [16, 16, 128], strides = [1, 1, 1]} : vector<18x24x128xbf16> to vector<16x16x128xbf16>
    %121 = vector.shape_cast %120 : vector<16x16x128xbf16> to vector<256x128xbf16>
    %122 = arith.extf %121 : vector<256x128xbf16> to vector<256x128xf32>
    %c0_62 = arith.constant 0 : index
    %c0_63 = arith.constant 0 : index
    %123 = vector.load %arg8[%c0_62, %c0_63] : memref<1x128xf32, #tpu.memory_space<vmem>>, vector<1x128xf32>
    %124 = vector.broadcast %123 : vector<1x128xf32> to vector<256x128xf32>
    %125 = arith.addf %119, %124 : vector<256x128xf32>
    %126 = arith.addf %125, %122 : vector<256x128xf32>
    %cst_64 = arith.constant 0.000000e+00 : f32
    %127 = vector.broadcast %cst_64 : f32 to vector<256x128xf32>
    %128 = arith.maximumf %126, %127 : vector<256x128xf32>
    %129 = vector.shape_cast %128 : vector<256x128xf32> to vector<1x16x16x128xf32>
    %c0_65 = arith.constant 0 : index
    %c0_66 = arith.constant 0 : index
    %c0_67 = arith.constant 0 : index
    %c0_68 = arith.constant 0 : index
    %130 = vector.load %arg9[%c0_65, %c0_66, %c0_67, %c0_68] : memref<1x16x16x128xf32, #tpu.memory_space<vmem>>, vector<1x16x16x128xf32>
    tpu.vector_store %arg9[%c0_65, %c0_66, %c0_67, %c0_68], %129 {strides = array<i32>} : memref<1x16x16x128xf32, #tpu.memory_space<vmem>>, vector<1x16x16x128xf32>,
    return
  }
  func.func @transform_1(%arg0: i32, %arg1: i32) -> (i32, i32) {
    %c0_i32 = arith.constant 0 : i32
    %c0_i32_0 = arith.constant 0 : i32
    %c0_i32_1 = arith.constant 0 : i32
    return %c0_i32, %c0_i32_0 : i32, i32
  }
  func.func @transform_2(%arg0: i32, %arg1: i32) -> (i32, i32) {
    %c0_i32 = arith.constant 0 : i32
    %c0_i32_0 = arith.constant 0 : i32
    %c0_i32_1 = arith.constant 0 : i32
    return %c0_i32, %c0_i32_0 : i32, i32
  }
  func.func @transform_3(%arg0: i32, %arg1: i32) -> (i32, i32, i32) {
    %c0_i32 = arith.constant 0 : i32
    %c0_i32_0 = arith.constant 0 : i32
    %c0_i32_1 = arith.constant 0 : i32
    %c0_i32_2 = arith.constant 0 : i32
    return %c0_i32, %c0_i32_0, %c0_i32_1 : i32, i32, i32
  }
  func.func @transform_4(%arg0: i32, %arg1: i32) -> (i32, i32) {
    %c0_i32 = arith.constant 0 : i32
    %c0_i32_0 = arith.constant 0 : i32
    %c0_i32_1 = arith.constant 0 : i32
    return %c0_i32, %c0_i32_0 : i32, i32
  }
  func.func @transform_5(%arg0: i32, %arg1: i32) -> (i32, i32) {
    %c0_i32 = arith.constant 0 : i32
    %c0_i32_0 = arith.constant 0 : i32
    %c0_i32_1 = arith.constant 0 : i32
    return %c0_i32, %c0_i32_0 : i32, i32
  }
  func.func @transform_6(%arg0: i32, %arg1: i32) -> (i32, i32) {
    %c0_i32 = arith.constant 0 : i32
    %c0_i32_0 = arith.constant 0 : i32
    %c0_i32_1 = arith.constant 0 : i32
    return %c0_i32, %c0_i32_0 : i32, i32
  }
  func.func @transform_7(%arg0: i32, %arg1: i32) -> (i32, i32, i32, i32) {
    %c0_i32 = arith.constant 0 : i32
    %c0_i32_0 = arith.constant 0 : i32
    %c0_i32_1 = arith.constant 0 : i32
    return %arg0, %arg1, %c0_i32, %c0_i32_0 : i32, i32, i32, i32
  }
}

</mosaic_0001>

<bundles_post_ra>
// kernel: _bottleneck_impl.1
= control target key start
LH: loop header
LB: loop body
LE: loop exit
PB: predicated region body
PF: predicated region fallthrough
CT: control target
= control target key end

     0   :  { %12 = vsyncpa [#allocation5], 0  ;;  %s9766_s0 = inlined_call_operand.vmem [shape: bf16[2,34,24,128], index: 0, kind: input, shape index: {}]   ;;  %s9767_s1 = inlined_call_operand.vmem [shape: bf16[128,128], index: 1, kind: input, shape index: {}]   ;;  %s9768_s2 = inlined_call_operand.vmem [shape: f32[1,128], index: 2, kind: input, shape index: {}]   ;;  %s9769_s3 = inlined_call_operand.vmem [shape: bf16[9,128,128], index: 3, kind: input, shape index: {}]   ;;  %s9770_s4 = inlined_call_operand.vmem [shape: f32[1,128], index: 4, kind: input, shape index: {}]   ;;  %s9771_s5 = inlined_call_operand.vmem [shape: bf16[128,128], index: 5, kind: input, shape index: {}]   ;;  %s9772_s6 = inlined_call_operand.vmem [shape: f32[1,128], index: 6, kind: input, shape index: {}]   ;;  %s9773_s7 = inlined_call_operand.hbm [shape: f32[2,32,16,128], index: 7, kind: output, shape index: {}]  }
   0x1   :  { %14 = vsyncpa [#allocation5 + $0x1], 0  ;;  %s6781_s24 = smov 0   ;;  %s6783_s25 = smov 0  }
   0x2   :  { %s6785_s26 = smov 0   ;;  %s6787_s27 = smov 0  }
   0x3   :  { %s6789_s28 = smov 0   ;;  %s6791_s29 = smov 0  }
   0x4   :  { %s6793_s30 = smov 0   ;;  %s6795_s8 = smov 0  }
   0x5 LB: > { %9869 = sst [smem:[#allocation10_spill]] %s6730_s30  ;;  %s5058_s9 = sadd.s32 4294967295, %s6734_s8   ;;  %s6734_s8 = sphi %s6795_s8, %s20_s8   ;;  %s6730_s30 = sphi %s6793_s30, %s10336_s30   ;;  %s6726_s29 = sphi %s6791_s29, %s10341_s29   ;;  %s6722_s28 = sphi %s6789_s28, %s10334_s28   ;;  %s6718_s27 = sphi %s6787_s27, %s10340_s27   ;;  %s6714_s26 = sphi %s6785_s26, %s10339_s26   ;;  %s6710_s25 = sphi %s6783_s25, %s10338_s25   ;;  %s6706_s24 = sphi %s6781_s24, %s10337_s24  }
   0x6   : > { %s5059_s10 = sadd.s32 4294967294, %s6734_s8   ;;  %s29_s11 = sadd.s32 1, %s6726_s29 }
   0x7   : > { %p30_p0 = scmp.ge.s32.totalorder %s29_s11, 2  ;;  %s32_s12 = sadd.s32 1, %s6730_s30 }
   0x8   : > { %p177_p1 = scmp.ne.s32.totalorder %s6714_s26, %s6710_s25  ;;  %p178_p2 = scmp.eq.s32.totalorder %s5058_s9, 3 }
   0x9   : > { %s10343_s11 = smov (%p30_p0, %s29_s11), 0  ;;  %s10345_s12 = smov (!%p30_p0, %s32_s12), %s6730_s30 }
   0xa   : > { %9870 = sst [smem:[#allocation11_spill]] %s10343_s11  ;;  %s163_s13 = ssub.s32 %s6726_s29, %s10343_s11 }
   0xb   : > { %p6832_p3 = por %p178_p2, %p177_p1  ;;  %p34_p4 = scmp.ge.s32.totalorder %s10345_s12, 2 }
   0xc   : > { %p183_p5 = scmp.ne.s32.totalorder %s6710_s25, %s6706_s24  ;;  %p184_p6 = scmp.eq.s32.totalorder %s5059_s10, 3 }
   0xd   : > { %p5061_p7 = scmp.ge.s32.totalorder %s6734_s8, 1  ;;  %s10347_s12 = smov (%p34_p4, %s10345_s12), 0 }
   0xe   : > { %9872 = sst [smem:[#allocation12_spill]] %s10347_s12  ;;  %p6841_p8 = por %p184_p6, %p183_p5 }
   0xf   : > { %p220_p9 = scmp.lt.s32.totalorder %s6734_s8, 5  ;;  %s162_s16 = ssub.s32 %s6730_s30, %s10347_s12 }
  0x10   : > { %s167_s17 = sadd.s32 1, %s6714_s26  ;;  %s164_s18 = sor.u32 %s163_s13, %s162_s16 }
  0x11   : > { %p221_p10 = pnand %p5061_p7, %p220_p9  ;;  %p165_p11 = scmp.eq.s32.totalorder %s164_s18, 0 }
  0x13   : > { %s6850_s19 = scalar_select %p165_p11, %s6714_s26, %s167_s17  }
  0x14   : > { %224 = sbr.rel (%p221_p10) target bundleno = 1256 (0x4e8), region = 44 }
  0x19   : > { %s9774_s20 = sand.u32 1, %s6710_s25   ;;  %p247_p12 = scmp.lt.s32.totalorder %s6718_s27, 0 }
  0x1a   : > { %s5062_s21 = sshll.u32 %s9774_s20, 8  ;;  %s248_s22 = ssub.s32 0, %s6718_s27 }
  0x1b   : > { %s5063_s23 = smin.u32 %s6718_s27, %s248_s22  ;;  %s6861_s17 = scalar_lea.vmem [#allocation4], %s5062_s21 }
  0x1c   : > { %s250_s9 = sand.u32 1, %s5063_s23   ;;  %p5066_p0 = scmp.ne.s32.totalorder %s6718_s27, 0 }
  0x1d   : > { %s251_s10 = ssub.s32 0, %s250_s9  ;;  %s5501_s18 = smul.u32 (!%p5066_p0), 408, %s6722_s28 }
  0x1e   : > { %s10349_s10 = smov (!%p247_p12, %s251_s10), %s250_s9  ;;  %263 = sbr.rel (%p5066_p0) target bundleno = 52 (0x34), region = 48 }
  0x1f   : > { %p5065_p13 = scmp.lt.s32.totalorder %s10349_s10, 0  ;;  %s257_s13 = sadd.s32 2, %s10349_s10 }
  0x20   : > { %s6869_s23 = scalar_lea.vmem (!%p5066_p0), %s9766_s0, %s5501_s18 }
  0x21   : > { %s10351_s13 = smov (!%p5065_p13, %s257_s13), %s10349_s10 }
  0x22   : > { %s259_s16 = ssub.s32 1, %s10351_s13  ;;  %s5502_s20 = smul.u32 (!%p5066_p0), 216, %s10351_s13 }
  0x23   : > { %v304_v0 = vld [vmem:[%s6869_s23] sm:$0xff]  ;;  %v306_v1 = vld [vmem:[%s6869_s23 + $0x8] sm:$0xff]  ;;  %v308_v2 = vld [vmem:[%s6869_s23 + $0x10] sm:$0xff]  ;;  %s270_s12 = scalar_lea.sflag [#allocation3], %s10351_s13 }
  0x24   : > { %s6874_s21 = scalar_lea.vmem [#allocation2], %s5502_s20  ;;  %v310_v3 = vld [vmem:[%s6869_s23 + $0x18] sm:$0xff]  ;;  %v312_v4 = vld [vmem:[%s6869_s23 + $0x20] sm:$0xff]  ;;  %v314_v5 = vld [vmem:[%s6869_s23 + $0x28] sm:$0xff] }
  0x25   : > { %305 = vst [vmem:[%s6874_s21] sm:$0xff] %v304_v0  ;;  %307 = vst [vmem:[%s6874_s21 + $0x8] sm:$0xff] %v306_v1  ;;  %v316_v6 = vld [vmem:[%s6869_s23 + $0x30] sm:$0xff]  ;;  %v318_v7 = vld [vmem:[%s6869_s23 + $0x38] sm:$0xff] }
  0x26   : > { %309 = vst [vmem:[%s6874_s21 + $0x10] sm:$0xff] %v308_v2  ;;  %311 = vst [vmem:[%s6874_s21 + $0x18] sm:$0xff] %v310_v3  ;;  %v320_v8 = vld [vmem:[%s6869_s23 + $0x40] sm:$0xff]  ;;  %v322_v9 = vld [vmem:[%s6869_s23 + $0x48] sm:$0xff] }
  0x27   : > { %313 = vst [vmem:[%s6874_s21 + $0x20] sm:$0xff] %v312_v4  ;;  %315 = vst [vmem:[%s6874_s21 + $0x28] sm:$0xff] %v314_v5  ;;  %v324_v10 = vld [vmem:[%s6869_s23 + $0x50] sm:$0xff]  ;;  %v326_v11 = vld [vmem:[%s6869_s23 + $0x58] sm:$0xff] }
  0x28   : > { %317 = vst [vmem:[%s6874_s21 + $0x30] sm:$0xff] %v316_v6  ;;  %319 = vst [vmem:[%s6874_s21 + $0x38] sm:$0xff] %v318_v7  ;;  %v328_v12 = vld [vmem:[%s6869_s23 + $0x60] sm:$0xff]  ;;  %v330_v13 = vld [vmem:[%s6869_s23 + $0x68] sm:$0xff] }
  0x29   : > { %321 = vst [vmem:[%s6874_s21 + $0x40] sm:$0xff] %v320_v8  ;;  %323 = vst [vmem:[%s6874_s21 + $0x48] sm:$0xff] %v322_v9  ;;  %v332_v14 = vld [vmem:[%s6869_s23 + $0x70] sm:$0xff]  ;;  %v334_v15 = vld [vmem:[%s6869_s23 + $0x78] sm:$0xff] }
  0x2a   : > { %325 = vst [vmem:[%s6874_s21 + $0x50] sm:$0xff] %v324_v10  ;;  %327 = vst [vmem:[%s6874_s21 + $0x58] sm:$0xff] %v326_v11  ;;  %v336_v16 = vld [vmem:[%s6869_s23 + $0x80] sm:$0xff]  ;;  %v338_v17 = vld [vmem:[%s6869_s23 + $0x88] sm:$0xff] }
  0x2b   : > { %329 = vst [vmem:[%s6874_s21 + $0x60] sm:$0xff] %v328_v12  ;;  %331 = vst [vmem:[%s6874_s21 + $0x68] sm:$0xff] %v330_v13  ;;  %v340_v18 = vld [vmem:[%s6869_s23 + $0x90] sm:$0xff]  ;;  %v342_v19 = vld [vmem:[%s6869_s23 + $0x98] sm:$0xff] }
  0x2c   : > { %333 = vst [vmem:[%s6874_s21 + $0x70] sm:$0xff] %v332_v14  ;;  %335 = vst [vmem:[%s6874_s21 + $0x78] sm:$0xff] %v334_v15  ;;  %v344_v20 = vld [vmem:[%s6869_s23 + $0xa0] sm:$0xff]  ;;  %v346_v21 = vld [vmem:[%s6869_s23 + $0xa8] sm:$0xff] }
  0x2d   : > { %337 = vst [vmem:[%s6874_s21 + $0x80] sm:$0xff] %v336_v16  ;;  %339 = vst [vmem:[%s6874_s21 + $0x88] sm:$0xff] %v338_v17  ;;  %v348_v22 = vld [vmem:[%s6869_s23 + $0xb0] sm:$0xff]  ;;  %v350_v23 = vld [vmem:[%s6869_s23 + $0xb8] sm:$0xff] }
  0x2e   : > { %341 = vst [vmem:[%s6874_s21 + $0x90] sm:$0xff] %v340_v18  ;;  %343 = vst [vmem:[%s6874_s21 + $0x98] sm:$0xff] %v342_v19  ;;  %v352_v24 = vld [vmem:[%s6869_s23 + $0xc0] sm:$0xff]  ;;  %v354_v25 = vld [vmem:[%s6869_s23 + $0xc8] sm:$0xff] }
  0x2f   : > { %345 = vst [vmem:[%s6874_s21 + $0xa0] sm:$0xff] %v344_v20  ;;  %347 = vst [vmem:[%s6874_s21 + $0xa8] sm:$0xff] %v346_v21  ;;  %v356_v26 = vld [vmem:[%s6869_s23 + $0xd0] sm:$0xff] }
  0x30   : > { %349 = vst [vmem:[%s6874_s21 + $0xb0] sm:$0xff] %v348_v22  ;;  %351 = vst [vmem:[%s6874_s21 + $0xb8] sm:$0xff] %v350_v23 }
  0x31   : > { %353 = vst [vmem:[%s6874_s21 + $0xc0] sm:$0xff] %v352_v24  ;;  %355 = vst [vmem:[%s6874_s21 + $0xc8] sm:$0xff] %v354_v25 }
  0x32   : > { %357 = vst [vmem:[%s6874_s21 + $0xd0] sm:$0xff] %v356_v26 }
  0x33   : > { %365 = vsyncadd %s270_s12, 3456 }
  0x34 PF: > { %s366_s20 = sadd.s32 1, %s6718_s27 }
  0x35   : > { %p5069_p1 = scmp.ge.s32.totalorder %s366_s20, 2 }
  0x36   : > { %s4993_s9 = smul.u32 (!%p5069_p1), 48, %s6718_s27  ;;  %s380_s30 = scalar_lea.sflag (!%p5069_p1), [#allocation3], %s259_s16 }
  0x37   : > { %370 = sbr.rel (%p5069_p1) target bundleno = 77 (0x4d), region = 86 }
  0x38   : > { %s4994_s10 = smul.u32 (!%p5069_p1), 102, %s6722_s28 }
  0x39   : > { %s5503_s18 = smul.u32 (!%p5069_p1), 216, %s259_s16 }
  0x3a   : > { %s4995_s22 = sadd.s32 (!%p5069_p1), %s4994_s10, %s4993_s9 }
  0x3b   : > { %s5070_s11 = sshll.u32 (!%p5069_p1), %s4995_s22, 2  ;;  %s6941_s12 = scalar_lea.vmem (!%p5069_p1), [#allocation2], %s5503_s18 }
  0x3c   : > { %s6936_s21 = scalar_lea.vmem %s9766_s0, %s5070_s11 }
  0x3d   : > { %v5072_v27 = vld [vmem:[%s6936_s21 + $0xc0] sm:$0xff]  ;;  %v5073_v28 = vld [vmem:[%s6936_s21 + $0xc8] sm:$0xff]  ;;  %v5074_v29 = vld [vmem:[%s6936_s21 + $0xd0] sm:$0xff] }
  0x3e   : > { %415 = vst [vmem:[%s6941_s12] sm:$0xff] %v5072_v27  ;;  %417 = vst [vmem:[%s6941_s12 + $0x8] sm:$0xff] %v5073_v28  ;;  %v5075_v30 = vld [vmem:[%s6936_s21 + $0xd8] sm:$0xff]  ;;  %v5076_v31 = vld [vmem:[%s6936_s21 + $0xe0] sm:$0xff] }
  0x3f   : > { %419 = vst [vmem:[%s6941_s12 + $0x10] sm:$0xff] %v5074_v29  ;;  %v5077_v32 = vld [vmem:[%s6936_s21 + $0xe8] sm:$0xff]  ;;  %421 = vst [vmem:[%s6941_s12 + $0x18] sm:$0xff] %v5075_v30  ;;  %v5078_v33 = vld [vmem:[%s6936_s21 + $0xf0] sm:$0xff] }
  0x40   : > { %423 = vst [vmem:[%s6941_s12 + $0x20] sm:$0xff] %v5076_v31  ;;  %425 = vst [vmem:[%s6941_s12 + $0x28] sm:$0xff] %v5077_v32  ;;  %v5079_v34 = vld [vmem:[%s6936_s21 + $0xf8] sm:$0xff]  ;;  %v5080_v35 = vld [vmem:[%s6936_s21 + $0x100] sm:$0xff] }
  0x41   : > { %427 = vst [vmem:[%s6941_s12 + $0x30] sm:$0xff] %v5078_v33  ;;  %429 = vst [vmem:[%s6941_s12 + $0x38] sm:$0xff] %v5079_v34  ;;  %v5081_v36 = vld [vmem:[%s6936_s21 + $0x108] sm:$0xff]  ;;  %v5082_v37 = vld [vmem:[%s6936_s21 + $0x110] sm:$0xff] }
  0x42   : > { %431 = vst [vmem:[%s6941_s12 + $0x40] sm:$0xff] %v5080_v35  ;;  %v5083_v38 = vld [vmem:[%s6936_s21 + $0x118] sm:$0xff]  ;;  %433 = vst [vmem:[%s6941_s12 + $0x48] sm:$0xff] %v5081_v36  ;;  %v5084_v39 = vld [vmem:[%s6936_s21 + $0x120] sm:$0xff] }
  0x43   : > { %435 = vst [vmem:[%s6941_s12 + $0x50] sm:$0xff] %v5082_v37  ;;  %437 = vst [vmem:[%s6941_s12 + $0x58] sm:$0xff] %v5083_v38  ;;  %v5085_v40 = vld [vmem:[%s6936_s21 + $0x128] sm:$0xff]  ;;  %v5086_v41 = vld [vmem:[%s6936_s21 + $0x130] sm:$0xff] }
  0x44   : > { %439 = vst [vmem:[%s6941_s12 + $0x60] sm:$0xff] %v5084_v39  ;;  %441 = vst [vmem:[%s6941_s12 + $0x68] sm:$0xff] %v5085_v40  ;;  %v5087_v42 = vld [vmem:[%s6936_s21 + $0x138] sm:$0xff]  ;;  %v5088_v43 = vld [vmem:[%s6936_s21 + $0x140] sm:$0xff] }
  0x45   : > { %443 = vst [vmem:[%s6941_s12 + $0x70] sm:$0xff] %v5086_v41  ;;  %v5089_v44 = vld [vmem:[%s6936_s21 + $0x148] sm:$0xff]  ;;  %445 = vst [vmem:[%s6941_s12 + $0x78] sm:$0xff] %v5087_v42  ;;  %v5090_v45 = vld [vmem:[%s6936_s21 + $0x150] sm:$0xff] }
  0x46   : > { %447 = vst [vmem:[%s6941_s12 + $0x80] sm:$0xff] %v5088_v43  ;;  %449 = vst [vmem:[%s6941_s12 + $0x88] sm:$0xff] %v5089_v44  ;;  %v5091_v46 = vld [vmem:[%s6936_s21 + $0x158] sm:$0xff]  ;;  %v5092_v47 = vld [vmem:[%s6936_s21 + $0x160] sm:$0xff] }
  0x47   : > { %451 = vst [vmem:[%s6941_s12 + $0x90] sm:$0xff] %v5090_v45  ;;  %453 = vst [vmem:[%s6941_s12 + $0x98] sm:$0xff] %v5091_v46  ;;  %v5093_v48 = vld [vmem:[%s6936_s21 + $0x168] sm:$0xff]  ;;  %v5094_v49 = vld [vmem:[%s6936_s21 + $0x170] sm:$0xff] }
  0x48   : > { %455 = vst [vmem:[%s6941_s12 + $0xa0] sm:$0xff] %v5092_v47  ;;  %v5095_v50 = vld [vmem:[%s6936_s21 + $0x178] sm:$0xff]  ;;  %457 = vst [vmem:[%s6941_s12 + $0xa8] sm:$0xff] %v5093_v48  ;;  %v5096_v51 = vld [vmem:[%s6936_s21 + $0x180] sm:$0xff] }
  0x49   : > { %459 = vst [vmem:[%s6941_s12 + $0xb0] sm:$0xff] %v5094_v49  ;;  %461 = vst [vmem:[%s6941_s12 + $0xb8] sm:$0xff] %v5095_v50  ;;  %v5097_v52 = vld [vmem:[%s6936_s21 + $0x188] sm:$0xff]  ;;  %v5098_v53 = vld [vmem:[%s6936_s21 + $0x190] sm:$0xff] }
  0x4a   : > { %463 = vst [vmem:[%s6941_s12 + $0xc0] sm:$0xff] %v5096_v51  ;;  %465 = vst [vmem:[%s6941_s12 + $0xc8] sm:$0xff] %v5097_v52 }
  0x4b   : > { %467 = vst [vmem:[%s6941_s12 + $0xd0] sm:$0xff] %v5098_v53 }
  0x4c   : > { %475 = vsyncadd %s380_s30, 3456 }
  0x4d PF: > { %s5504_s11 = smul.u32 216, %s10351_s13  ;;  %s479_s9 = scalar_lea.sflag [#allocation3], %s10351_s13 }
  0x4f   : > { %s6997_s20 = scalar_lea.vmem [#allocation2], %s5504_s11 }
  0x50   : > { %6698 = dma.done.wait %s479_s9, 3456 }
  0x51   : > { %6699 = vsyncadd %s479_s9, 4294963840  ;;  %v6736_v54 = vmov 0.0   ;;  %vm6737_vm0 = vmmov 0   ;;  %v6476_v55 = vld [vmem:[%s9767_s1 + $0x38] sm:$0xff]   ;;  %v6477_v56 = vld [vmem:[%s9767_s1 + $0x30] sm:$0xff]   ;;  %s5137_s13 = sshll.u32 %s6718_s27, 4 }
  0x52   : > { %5781 = vmatprep.subr.bf16.mxu0 %v6736_v54  ;;  %5797 = vmatprep.mubr.msk.bf16.mxu0 %vm6737_vm0, %v6736_v54  ;;  %v6478_v57 = vld [vmem:[%s9767_s1 + $0x28] sm:$0xff]   ;;  %v6479_v58 = vld [vmem:[%s9767_s1 + $0x20] sm:$0xff]   ;;  %v6480_v59 = vld [vmem:[%s9767_s1 + $0x18] sm:$0xff]   ;;  %vm9780_vm11 = vcmask 1046528   ;;  %vm9778_vm12 = vsmask.f32 7424 }
  0x53   : > { %5782 = vmatpush3.bf16.msra.mxu0 %v6476_v55  ;;  %v6481_v60 = vld [vmem:[%s9767_s1 + $0x10] sm:$0xff]   ;;  %v6482_v61 = vld [vmem:[%s9767_s1 + $0x8] sm:$0xff]   ;;  %v6483_v62 = vld [vmem:[%s9767_s1] sm:$0xff]   ;;  %s5505_s30 = sshll.u32 %s6718_s27, 5  ;;  %s5495_s11 = sshll.u32 %s6722_s28, 6 }
  0x54   : > { %5783 = vmatprep.subr.bf16.mxu0 %v6736_v54  ;;  %v6484_v63 = vld [vmem:[%s6997_s20] sm:$0xff]   ;;  %v487_v0 = vld [vmem:[%s6997_s20 + $0x8] sm:$0xf]  ;;  %v488_v1 = vld [vmem:[%s6997_s20 + $0xc] sm:$0xf]  ;;  %s4945_s9 = sadd.s32 %s5505_s30, %s5495_s11  ;;  %s4948_s28 = sshll.u32 %s6861_s17, 4  ;;  %s9709_s28 = int_to_ptr.vmem [resolvable:$true] %s4948_s28 }
  0x55   : > { %v5103_v2 = vcombine.low %v487_v0, %v488_v1  ;;  %v489_v3 = vld [vmem:[%s6997_s20 + $0x10] sm:$0xf]  ;;  %v490_v4 = vld [vmem:[%s6997_s20 + $0x14] sm:$0xf]  ;;  %v491_v6 = vld [vmem:[%s6997_s20 + $0x18] sm:$0xf] }
  0x56   : > { %v5104_v5 = vcombine.low %v489_v3, %v490_v4  ;;  %v492_v7 = vld [vmem:[%s6997_s20 + $0x1c] sm:$0xf]  ;;  %v493_v9 = vld [vmem:[%s6997_s20 + $0x20] sm:$0xf]  ;;  %v494_v10 = vld [vmem:[%s6997_s20 + $0x24] sm:$0xf] }
  0x57   : > { %5784 = vmatpush3.bf16.msra.mxu0 %v6477_v56  ;;  %v5105_v8 = vcombine.low %v491_v6, %v492_v7  ;;  %v5106_v11 = vcombine.low %v493_v9, %v494_v10  ;;  %v495_v12 = vld [vmem:[%s6997_s20 + $0x28] sm:$0xf]  ;;  %v496_v13 = vld [vmem:[%s6997_s20 + $0x2c] sm:$0xf]  ;;  %v497_v15 = vld [vmem:[%s6997_s20 + $0x30] sm:$0xf] }
  0x58   : > { %5785 = vmatprep.subr.bf16.mxu0 %v6736_v54  ;;  %v5107_v14 = vcombine.low %v495_v12, %v496_v13  ;;  %v498_v16 = vld [vmem:[%s6997_s20 + $0x34] sm:$0xf]  ;;  %v499_v18 = vld [vmem:[%s6997_s20 + $0x38] sm:$0xf]  ;;  %v500_v19 = vld [vmem:[%s6997_s20 + $0x3c] sm:$0xf] }
  0x59   : > { %v5108_v17 = vcombine.low %v497_v15, %v498_v16  ;;  %v5109_v20 = vcombine.low %v499_v18, %v500_v19  ;;  %v501_v21 = vld [vmem:[%s6997_s20 + $0x40] sm:$0xf]  ;;  %v502_v22 = vld [vmem:[%s6997_s20 + $0x44] sm:$0xf]  ;;  %v503_v25 = vld [vmem:[%s6997_s20 + $0x48] sm:$0xf] }
  0x5a   : > { %v5110_v23 = vcombine.low %v501_v21, %v502_v22  ;;  %v6509_v24 = vld [vmem:[%s9769_s3 + $0x78] sm:$0xff]   ;;  %v504_v26 = vld [vmem:[%s6997_s20 + $0x4c] sm:$0xf]  ;;  %v6510_v27 = vld [vmem:[%s9769_s3 + $0x70] sm:$0xff]   ;;  %s5496_s27 = sshll.u32 %s4945_s9, 7  ;;  %s10333_s22 = sand.u32 1, %s6710_s25  }
  0x5b   : > { %5786 = vmatpush3.bf16.msra.mxu0 %v6478_v57  ;;  %5905 = vmatprep.subr.bf16.mxu1 %v6509_v24  ;;  %v5111_v28 = vcombine.low %v503_v25, %v504_v26  ;;  %v505_v29 = vld [vmem:[%s6997_s20 + $0x50] sm:$0xf]  ;;  %v506_v31 = vld [vmem:[%s6997_s20 + $0x54] sm:$0xf]  ;;  %v6513_v32 = vld [vmem:[%s9769_s3 + $0x60] sm:$0xff]   ;;  %v7180_v26 = vstv %s5137_s13  ;;  %s9707_s16 = scalar_lea.hbm %s9773_s7, %s5496_s27  ;;  %s9715_s13 = scalar_lea.sflag [#allocation5], %s10333_s22 }
  0x5c   : > { %5787 = vmatprep.subr.bf16.mxu0 %v6736_v54  ;;  %5906 = vmatpush3.bf16.msra.mxu1 %v6509_v24  ;;  %v6512_v30 = vld [vmem:[%s9769_s3 + $0x68] sm:$0xff]   ;;  %v6514_v33 = vld [vmem:[%s9769_s3 + $0x138] sm:$0xff]   ;;  %v5112_v34 = vcombine.low %v505_v29, %v506_v31  ;;  %v6516_v36 = vld [vmem:[%s9769_s3 + $0x130] sm:$0xff]   ;;  %v1094_v24 = vlaneseq  ;;  %vm1098_vm1 = vcmp.ge.s32.totalorder %v7180_v26, 1  ;;  %vm1116_vm2 = vcmp.le.s32.totalorder %v7180_v26, 32  ;;  %s6640_s23 = scalar_lea.vmem %s9709_s28, 4096 }
  0x5d   : > { %5907 = vmatprep.subr.bf16.mxu1 %v6510_v27  ;;  %v6515_v35 = vld [vmem:[%s9769_s3 + $0x58] sm:$0xff]   ;;  %v6517_v39 = vld [vmem:[%s9769_s3 + $0x50] sm:$0xff]   ;;  %v6518_v40 = vld [vmem:[%s9769_s3 + $0x128] sm:$0xff]   ;;  %p6641_p2 = scmp.ne.s32.totalorder %s9709_s28, %s6640_s23  ;;  %s6738_s21 = smov [#allocation4]  }
  0x5e   : > { %v507_v37 = vld [vmem:[%s6997_s20 + $0x58] sm:$0xf]  ;;  %v508_v38 = vld [vmem:[%s6997_s20 + $0x5c] sm:$0xf]  ;;  %v6519_v42 = vld [vmem:[%s9769_s3 + $0x48] sm:$0xff]  }
  0x5f   : > { %5788 = vmatpush3.bf16.msra.mxu0 %v6479_v58  ;;  %v5113_v41 = vcombine.low %v507_v37, %v508_v38  ;;  %v6520_v43 = vld [vmem:[%s9769_s3 + $0x120] sm:$0xff]   ;;  %v6522_v47 = vld [vmem:[%s9769_s3 + $0x118] sm:$0xff]   ;;  %v6524_v49 = vld [vmem:[%s9769_s3 + $0x110] sm:$0xff]   ;;  %p6642_p4 = pnand %p6641_p2, %p6832_p3 }
  0x60   : > { %5789 = vmatprep.subr.bf16.mxu0 %v6736_v54  ;;  %5908 = vmatpush3.bf16.msra.mxu1 %v6510_v27  ;;  %v509_v44 = vld [vmem:[%s6997_s20 + $0x60] sm:$0xf]  ;;  %v510_v45 = vld [vmem:[%s6997_s20 + $0x64] sm:$0xf]  ;;  %v511_v50 = vld [vmem:[%s6997_s20 + $0x68] sm:$0xf] }
  0x61   : > { %5909 = vmatprep.subr.bf16.mxu1 %v6512_v30  ;;  %v6521_v46 = vld [vmem:[%s9769_s3 + $0x40] sm:$0xff]   ;;  %v5114_v48 = vcombine.low %v509_v44, %v510_v45  ;;  %v6525_v52 = vld [vmem:[%s9769_s3 + $0x108] sm:$0xff]   ;;  %v523_v7 = vld [vmem:[%s6997_s20 + $0x98] sm:$0xf]  ;;  %v1077_v44 = vadd.s32 1, %v7180_v26  ;;  %p6643_p5 = pneg %p6642_p4 }
  0x62   : > { %v512_v51 = vld [vmem:[%s6997_s20 + $0x6c] sm:$0xf]  ;;  %v513_v56 = vld [vmem:[%s6997_s20 + $0x70] sm:$0xf]  ;;  %v514_v57 = vld [vmem:[%s6997_s20 + $0x74] sm:$0xf] }
  0x63   : > { %5790 = vmatpush3.bf16.msra.mxu0 %v6480_v59  ;;  %v5115_v53 = vcombine.low %v511_v50, %v512_v51  ;;  %v6526_v55 = vld [vmem:[%s9769_s3 + $0x100] sm:$0xff]   ;;  %v5116_v58 = vcombine.low %v513_v56, %v514_v57  ;;  %v515_v59 = vld [vmem:[%s6997_s20 + $0x78] sm:$0xf]  ;;  %v521_v4 = vld [vmem:[%s6997_s20 + $0x90] sm:$0xf]  ;;  %vm1099_vm8 = vcmp.ge.s32.totalorder %v1077_v44, 1 }
  0x64   : > { %5791 = vmatprep.subr.bf16.mxu0 %v6736_v54  ;;  %5910 = vmatpush3.bf16.msra.mxu1 %v6512_v30  ;;  %v519_v1 = vld [vmem:[%s6997_s20 + $0x88] sm:$0xf]  ;;  %v525_v10 = vld [vmem:[%s6997_s20 + $0xa0] sm:$0xf]  ;;  %v529_v16 = vld [vmem:[%s6997_s20 + $0xb0] sm:$0xf] }
  0x65   : > { %5911 = vmatprep.subr.bf16.mxu1 %v6513_v32  ;;  %v527_v13 = vld [vmem:[%s6997_s20 + $0xa8] sm:$0xf]  ;;  %v531_v19 = vld [vmem:[%s6997_s20 + $0xb8] sm:$0xf]  ;;  %v533_v22 = vld [vmem:[%s6997_s20 + $0xc0] sm:$0xf] }
  0x66   : > { %v7185_v27 = vld [vmem:[%s9768_s2] ss:$0 sm:$0xff]  ;;  %vm7196_vm3 = vmand %vm1098_vm1, %vm1116_vm2  ;;  %vm1117_vm9 = vcmp.le.s32.totalorder %v1077_v44, 32 }
  0x67   : > { %5792 = vmatpush3.bf16.msra.mxu0 %v6481_v60  ;;  %v516_v60 = vld [vmem:[%s6997_s20 + $0x7c] sm:$0xf]  ;;  %v535_v31 = vld [vmem:[%s6997_s20 + $0xc8] sm:$0xf]  ;;  %vm7230_vm10 = vmand %vm1099_vm8, %vm1117_vm9 }
  0x68   : > { %5793 = vmatprep.subr.bf16.mxu0 %v6736_v54  ;;  %5912 = vmatpush3.bf16.msra.mxu1 %v6513_v32  ;;  %v536_v32 = vld [vmem:[%s6997_s20 + $0xcc] sm:$0xf] }
  0x69   : > { %5913 = vmatprep.subr.bf16.mxu1 %v6515_v35  ;;  %v5127_v37 = vcombine.low %v535_v31, %v536_v32 }
  0x6b   : > { %5794 = vmatpush3.bf16.msra.mxu0 %v6482_v61  ;;  %v5117_v61 = vcombine.low %v515_v59, %v516_v60 }
  0x6c   : > { %5795 = vmatprep.subr.bf16.mxu0 %v6736_v54  ;;  %5914 = vmatpush3.bf16.msra.mxu1 %v6515_v35 }
  0x6d   : > { %5915 = vmatprep.subr.bf16.mxu1 %v6517_v39 }
  0x6f   : > { %5796 = vmatpush3.bf16.msra.mxu0 %v6483_v62  ;;  %v517_v62 = vld [vmem:[%s6997_s20 + $0x80] sm:$0xf] }
  0x70   : > { %6097 = vmatprep.subr.bf16.mxu0 %v6514_v33  ;;  %5916 = vmatpush3.bf16.msra.mxu1 %v6517_v39 }
  0x71   : > { %5917 = vmatprep.subr.bf16.mxu1 %v6519_v42 }
  0x72   : > { %5798 = vmatmul.mubr.bf16.vlgmr.msra.gmra.mxu0 %v6484_v63  ;;  %v518_v63 = vld [vmem:[%s6997_s20 + $0x84] sm:$0xf] }
  0x73   : > { %5801 = vmatprep.mubr.msk.bf16.mxu0 %vm6737_vm0, %v6736_v54  ;;  %6098 = vmatpush3.bf16.msra.mxu0 %v6514_v33  ;;  %v5118_v0 = vcombine.low %v517_v62, %v518_v63 }
  0x74   : > { %6099 = vmatprep.subr.bf16.mxu0 %v6516_v36  ;;  %5918 = vmatpush3.bf16.msra.mxu1 %v6519_v42 }
  0x75   : > { %5919 = vmatprep.subr.bf16.mxu1 %v6521_v46 }
  0x77   : > { %6100 = vmatpush3.bf16.msra.mxu0 %v6516_v36 }
  0x78   : > { %6101 = vmatprep.subr.bf16.mxu0 %v6518_v40  ;;  %5920 = vmatpush3.bf16.msra.mxu1 %v6521_v46 }
  0x7a   : > { %5802 = vmatmul.mubr.bf16.gmra.mxu0 %v5103_v2  ;;  %v520_v2 = vld [vmem:[%s6997_s20 + $0x8c] sm:$0xf] }
  0x7b   : > { %5805 = vmatprep.mubr.msk.bf16.mxu0 %vm6737_vm0, %v6736_v54  ;;  %6102 = vmatpush3.bf16.msra.mxu0 %v6518_v40  ;;  %v5119_v3 = vcombine.low %v519_v1, %v520_v2 }
  0x7c   : > { %6103 = vmatprep.subr.bf16.mxu0 %v6520_v43 }
  0x7f   : > { %6104 = vmatpush3.bf16.msra.mxu0 %v6520_v43 }
  0x80   : > { %6105 = vmatprep.subr.bf16.mxu0 %v6522_v47 }
  0x82   : > { %5806 = vmatmul.mubr.bf16.gmra.mxu0 %v5104_v5  ;;  %v522_v5 = vld [vmem:[%s6997_s20 + $0x94] sm:$0xf] }
  0x83   : > { %5809 = vmatprep.mubr.msk.bf16.mxu0 %vm6737_vm0, %v6736_v54  ;;  %6106 = vmatpush3.bf16.msra.mxu0 %v6522_v47  ;;  %v5120_v6 = vcombine.low %v521_v4, %v522_v5 }
  0x84   : > { %6107 = vmatprep.subr.bf16.mxu0 %v6524_v49 }
  0x87   : > { %6108 = vmatpush3.bf16.msra.mxu0 %v6524_v49 }
  0x88   : > { %6109 = vmatprep.subr.bf16.mxu0 %v6525_v52 }
  0x8a   : > { %5810 = vmatmul.mubr.bf16.gmra.mxu0 %v5105_v8  ;;  %v524_v8 = vld [vmem:[%s6997_s20 + $0x9c] sm:$0xf] }
  0x8b   : > { %5813 = vmatprep.mubr.msk.bf16.mxu0 %vm6737_vm0, %v6736_v54  ;;  %6110 = vmatpush3.bf16.msra.mxu0 %v6525_v52  ;;  %v5121_v9 = vcombine.low %v523_v7, %v524_v8 }
  0x8c   : > { %6111 = vmatprep.subr.bf16.mxu0 %v6526_v55 }
  0x8f   : > { %6112 = vmatpush3.bf16.msra.mxu0 %v6526_v55  ;;  %v6523_v55 = vld [vmem:[%s6997_s20 + $0xd0] sm:$0xff]  }
  0x92   : > { %5814 = vmatmul.mubr.bf16.gmra.mxu0 %v5106_v11  ;;  %v526_v11 = vld [vmem:[%s6997_s20 + $0xa4] sm:$0xf] }
  0x93   : > { %5817 = vmatprep.mubr.msk.bf16.mxu0 %vm6737_vm0, %v6736_v54  ;;  %v5122_v12 = vcombine.low %v525_v10, %v526_v11 }
  0x9a   : > { %5818 = vmatmul.mubr.bf16.gmra.mxu0 %v5107_v14  ;;  %v528_v14 = vld [vmem:[%s6997_s20 + $0xac] sm:$0xf] }
  0x9b   : > { %5821 = vmatprep.mubr.msk.bf16.mxu0 %vm6737_vm0, %v6736_v54  ;;  %v5123_v15 = vcombine.low %v527_v13, %v528_v14 }
  0xa2   : > { %5822 = vmatmul.mubr.bf16.gmra.mxu0 %v5108_v17  ;;  %v530_v17 = vld [vmem:[%s6997_s20 + $0xb4] sm:$0xf] }
  0xa3   : > { %5825 = vmatprep.mubr.msk.bf16.mxu0 %vm6737_vm0, %v6736_v54  ;;  %v5124_v18 = vcombine.low %v529_v16, %v530_v17 }
  0xaa   : > { %5826 = vmatmul.mubr.bf16.gmra.mxu0 %v5109_v20  ;;  %v532_v20 = vld [vmem:[%s6997_s20 + $0xbc] sm:$0xf] }
  0xab   : > { %5829 = vmatprep.mubr.msk.bf16.mxu0 %vm6737_vm0, %v6736_v54  ;;  %v5125_v21 = vcombine.low %v531_v19, %v532_v20  ;;  %v6527_v19 = vld [vmem:[%s9769_s3 + $0x38] sm:$0xff]  }
  0xac   : > { %5953 = vmatprep.subr.bf16.mxu1 %v6527_v19 }
  0xb2   : > { %5830 = vmatmul.mubr.bf16.gmra.mxu0 %v5110_v23  ;;  %v534_v23 = vld [vmem:[%s6997_s20 + $0xc4] sm:$0xf] }
  0xb3   : > { %5833 = vmatprep.mubr.msk.bf16.mxu0 %vm6737_vm0, %v6736_v54  ;;  %v5126_v25 = vcombine.low %v533_v22, %v534_v23 }
  0xba   : > { %5834 = vmatmul.mubr.bf16.gmra.mxu0 %v5111_v28  ;;  %v7187_v28 = vshrl.u32 %v1094_v24, 7 }
  0xbb   : > { %5837 = vmatprep.mubr.msk.bf16.mxu0 %vm6737_vm0, %v6736_v54 }
  0xbc   : > { %vm9781_vm4 = vcmp.ge.s32.totalorder %v7187_v28, 1  ;;  %v7202_v35 = vadd.s32 16, %v7187_v28 }
  0xbd   : > { %vm7209_vm5 = vmand %vm7196_vm3, %vm9781_vm4 }
  0xbe   : > { %vm9779_vm6 = vcmp.le.s32.totalorder %v7202_v35, 16  ;;  %vm7239_vm13 = vmand %vm7230_vm10, %vm9781_vm4 }
  0xbf   : > { %vm1214_vm7 = vmand %vm7196_vm3, %vm9779_vm6 }
  0xc0   : > { %vm1217_vm14 = vmand %vm7230_vm10, %vm9779_vm6 }
  0xc2   : > { %5838 = vmatmul.mubr.bf16.gmra.mxu0 %v5112_v34 }
  0xc3   : > { %5841 = vmatprep.mubr.msk.bf16.mxu0 %vm6737_vm0, %v6736_v54 }
  0xca   : > { %5842 = vmatmul.mubr.bf16.gmra.mxu0 %v5113_v41 }
  0xcb   : > { %5845 = vmatprep.mubr.msk.bf16.mxu0 %vm6737_vm0, %v6736_v54 }
  0xd2   : > { %5846 = vmatmul.mubr.bf16.gmra.mxu0 %v5114_v48 }
  0xd3   : > { %5849 = vmatprep.mubr.msk.bf16.mxu0 %vm6737_vm0, %v6736_v54 }
  0xda   : > { %5850 = vmatmul.mubr.bf16.gmra.mxu0 %v5115_v53 }
  0xdb   : > { %5853 = vmatprep.mubr.msk.bf16.mxu0 %vm6737_vm0, %v6736_v54 }
  0xe2   : > { %5854 = vmatmul.mubr.bf16.gmra.mxu0 %v5116_v58 }
  0xe3   : > { %5857 = vmatprep.mubr.msk.bf16.mxu0 %vm6737_vm0, %v6736_v54 }
  0xea   : > { %5858 = vmatmul.mubr.bf16.gmra.mxu0 %v5117_v61 }
  0xeb   : > { %5861 = vmatprep.mubr.msk.bf16.mxu0 %vm6737_vm0, %v6736_v54 }
  0xf2   : > { %5862 = vmatmul.mubr.bf16.gmra.mxu0 %v5118_v0 }
  0xf3   : > { %5865 = vmatprep.mubr.msk.bf16.mxu0 %vm6737_vm0, %v6736_v54 }
  0xfa   : > { %5866 = vmatmul.mubr.bf16.gmra.mxu0 %v5119_v3 }
  0xfb   : > { %5869 = vmatprep.mubr.msk.bf16.mxu0 %vm6737_vm0, %v6736_v54 }
 0x102   : > { %5870 = vmatmul.mubr.bf16.gmra.mxu0 %v5120_v6 }
 0x103   : > { %5873 = vmatprep.mubr.msk.bf16.mxu0 %vm6737_vm0, %v6736_v54 }
 0x10a   : > { %5874 = vmatmul.mubr.bf16.gmra.mxu0 %v5121_v9 }
 0x10b   : > { %5877 = vmatprep.mubr.msk.bf16.mxu0 %vm6737_vm0, %v6736_v54 }
 0x112   : > { %5878 = vmatmul.mubr.bf16.gmra.mxu0 %v5122_v12  ;;  %v1078_v12 = vadd.s32 2, %v7180_v26 }
 0x113   : > { %5881 = vmatprep.mubr.msk.bf16.mxu0 %vm6737_vm0, %v6736_v54 }
 0x114   : > { %vm1100_vm15 = vcmp.ge.s32.totalorder %v1078_v12, 1 }
 0x11a   : > { %5882 = vmatmul.mubr.bf16.gmra.mxu0 %v5123_v15 }
 0x11b   : > { %5885 = vmatprep.mubr.msk.bf16.mxu0 %vm6737_vm0, %v6736_v54 }
 0x122   : > { %5886 = vmatmul.mubr.bf16.gmra.mxu0 %v5124_v18 }
 0x123   : > { %5889 = vmatprep.mubr.msk.bf16.mxu0 %vm6737_vm0, %v6736_v54 }
 0x12a   : > { %5890 = vmatmul.mubr.bf16.gmra.mxu0 %v5125_v21 }
 0x12b   : > { %5893 = vmatprep.mubr.msk.bf16.mxu0 %vm6737_vm0, %v6736_v54 }
 0x132   : > { %v806_v29 = vpop.f32.mrf.mxu0  ;;  %5894 = vmatmul.mubr.bf16.gmra.mxu0 %v5126_v25 }
 0x133   : > { %v807_v30 = vadd.f32 %v7185_v27, %v806_v29  ;;  %5897 = vmatprep.mubr.msk.bf16.mxu0 %vm6737_vm0, %v6736_v54 }
 0x134   : > { %v5799_v33 = vpop.f32.mrf.mxu0 }
 0x135   : > { %v1021_v38 = vmax.f32 %v807_v30, 0.0 }
 0x136   : > { %v809_v36 = vpop.f32.mrf.mxu0 }
 0x137   : > { %v810_v39 = vadd.f32 %v7185_v27, %v809_v36  ;;  %v1374_v45 = vsel %vm7209_vm5, %v1021_v38, 0.0 }
 0x138   : > { %v5800_v41 = vpop.f32.mrf.mxu0 }
 0x139   : > { %v1022_v42 = vmax.f32 %v810_v39, 0.0 }
 0x13a   : > { %v814_v43 = vpop.f32.mrf.mxu0  ;;  %5898 = vmatmul.mubr.bf16.gmra.mxu0 %v5127_v37 }
 0x13b   : > { %v1375_v46 = vsel %vm7196_vm3, %v1022_v42, 0.0  ;;  %v7219_v47 = vpack.c.bf16 %v1022_v42, %v1021_v38  ;;  %v815_v48 = vadd.f32 %v7185_v27, %v814_v43  ;;  %5901 = vmatprep.mubr.msk.bf16.mxu0 %vm6737_vm0, %v6736_v54  ;;  %vm1118_vm0 = vcmp.le.s32.totalorder %v1078_v12, 32  ;;  %v6569_v54 = vld [vmem:[%s9769_s3 + $0x168] sm:$0xff]  }
 0x13c   : > { %v1428_v49 = vpack.c.bf16 %v1375_v46, %v1374_v45  ;;  %v5803_v50 = vpop.f32.mrf.mxu0  ;;  %vm7263_vm1 = vmand %vm1100_vm15, %vm1118_vm0 }
 0x13d   : > { %v1023_v51 = vmax.f32 %v815_v48, 0.0  ;;  %vm7272_vm2 = vmand %vm7263_vm1, %vm9781_vm4 }
 0x13e   : > { %v817_v52 = vpop.f32.mrf.mxu0  ;;  %v1484_v53 = vshll.u32 %v1428_v49, 16  ;;  %v1482_v63 = vshrl.u32 %v1428_v49, 16  ;;  %v2157_v1 = vrot.slane %v1428_v49, 1 }
 0x13f   : > { %v1376_v56 = vsel %vm1214_vm7, %v1023_v51, 0.0  ;;  %v818_v57 = vadd.f32 %v7185_v27, %v817_v52  ;;  %v1079_v51 = vadd.s32 3, %v7180_v26  ;;  %vm1220_vm7 = vmand %vm7263_vm1, %vm9779_vm6 }
 0x140   : > { %v1429_v58 = vpack.c.bf16 %v1376_v56, %v1376_v56  ;;  %v5804_v59 = vpop.f32.mrf.mxu0  ;;  %v1486_v60 = vrot.slane %v1484_v53, 1 }
 0x141   : > { %v1024_v2 = vmax.f32 %v818_v57, 0.0  ;;  %v6528_v59 = vld [vmem:[%s9769_s3 + $0x30] sm:$0xff]   ;;  %vm1101_vm8 = vcmp.ge.s32.totalorder %v1079_v51, 1  ;;  %vm1119_vm9 = vcmp.le.s32.totalorder %v1079_v51, 32 }
 0x142   : > { %v2158_v61 = vrot.slane %v1429_v58, 1  ;;  %v822_v62 = vpop.f32.mrf.mxu0  ;;  %v1489_v0 = vshll.u32 %v1429_v58, 16  ;;  %5902 = vmatmul.mubr.bf16.gmra.mxu0 %v6523_v55  ;;  %v1487_v6 = vor.u32 %v1486_v60, %v1482_v63 }
 0x143   : > { %v823_v3 = vadd.f32 %v7185_v27, %v822_v62  ;;  %v1377_v13 = vsel %vm7239_vm13, %v1024_v2, 0.0 }
 0x144   : > { %v5807_v5 = vpop.f32.mrf.mxu0  ;;  %v1491_v7 = vrot.slane %v1489_v0, 1  ;;  %v7244_v8 = vsel %vm9780_vm11, %v2157_v1, %v2158_v61 }
 0x145   : > { %9882 = vst [vmem:[#allocation13_spill] sm:$0xff] %v7244_v8  ;;  %v1025_v9 = vmax.f32 %v823_v3, 0.0  ;;  %v6547_v5 = vld [vmem:[%s9769_s3 + $0x98] sm:$0xff]  }
 0x146   : > { %v825_v10 = vpop.f32.mrf.mxu0  ;;  %v1492_v11 = vsel %vm9778_vm12, %v1487_v6, %v1491_v7 }
 0x147   : > { %v1378_v14 = vsel %vm7230_vm10, %v1025_v9, 0.0  ;;  %v7252_v15 = vpack.c.bf16 %v1025_v9, %v1024_v2  ;;  %v826_v16 = vadd.f32 %v7185_v27, %v825_v10  ;;  %5921 = vmatprep.mubr.bf16.mxu1 %v1492_v11  ;;  %v6529_v11 = vld [vmem:[%s9769_s3 + $0x28] sm:$0xff]  }
 0x148   : > { %v1430_v17 = vpack.c.bf16 %v1378_v14, %v1377_v13  ;;  %v5808_v18 = vpop.f32.mrf.mxu0 }
 0x149   : > { %v1026_v20 = vmax.f32 %v826_v16, 0.0 }
 0x14a   : > { %v1496_v21 = vshll.u32 %v1430_v17, 16  ;;  %v830_v22 = vpop.f32.mrf.mxu0  ;;  %v2160_v32 = vrot.slane %v1430_v17, 1  ;;  %v1494_v38 = vshrl.u32 %v1430_v17, 16  ;;  %v6546_v17 = vld [vmem:[%s9769_s3 + $0xa0] sm:$0xff]  }
 0x14b   : > { %v1379_v23 = vsel %vm1217_vm14, %v1026_v20, 0.0  ;;  %v831_v24 = vadd.f32 %v7185_v27, %v830_v22  ;;  %vm7296_vm14 = vmand %vm1101_vm8, %vm1119_vm9 }
 0x14c   : > { %v1431_v25 = vpack.c.bf16 %v1379_v23, %v1379_v23  ;;  %v5811_v29 = vpop.f32.mrf.mxu0  ;;  %v1498_v30 = vrot.slane %v1496_v21, 1  ;;  %vm7308_vm15 = vmand %vm7296_vm14, %vm9781_vm4 }
 0x14d   : > { %v1027_v39 = vmax.f32 %v831_v24, 0.0  ;;  %v1080_v24 = vadd.s32 4, %v7180_v26  ;;  %vm1223_vm0 = vmand %vm7296_vm14, %vm9779_vm6 }
 0x14e   : > { %v1501_v33 = vshll.u32 %v1431_v25, 16  ;;  %v2161_v36 = vrot.slane %v1431_v25, 1  ;;  %v833_v37 = vpop.f32.mrf.mxu0  ;;  %v1499_v45 = vor.u32 %v1498_v30, %v1494_v38 }
 0x14f   : > { %v834_v41 = vadd.f32 %v7185_v27, %v833_v37  ;;  %v1380_v52 = vsel %vm7272_vm2, %v1027_v39, 0.0  ;;  %v6530_v37 = vld [vmem:[%s9769_s3 + $0x20] sm:$0xff]   ;;  %vm1120_vm8 = vcmp.le.s32.totalorder %v1080_v24, 32 }
 0x150   : > { %v1503_v42 = vrot.slane %v1501_v33, 1  ;;  %v5812_v44 = vpop.f32.mrf.mxu0  ;;  %v7277_v46 = vsel %vm9780_vm11, %v2160_v32, %v2161_v36 }
 0x151   : > { %9887 = vst [vmem:[#allocation14_spill] sm:$0xff] %v7277_v46  ;;  %v1028_v48 = vmax.f32 %v834_v41, 0.0 }
 0x152   : > { %v838_v49 = vpop.f32.mrf.mxu0  ;;  %v1504_v50 = vsel %vm9778_vm12, %v1499_v45, %v1503_v42 }
 0x153   : > { %v1381_v53 = vsel %vm7263_vm1, %v1028_v48, 0.0  ;;  %v7285_v55 = vpack.c.bf16 %v1028_v48, %v1027_v39  ;;  %v839_v56 = vadd.f32 %v7185_v27, %v838_v49  ;;  %5922 = vmatmul.mubr.bf16.vlgmr.msra.gmra.mxu1 %v1504_v50  ;;  %6113 = vmatprep.mubr.bf16.mxu0 %v1504_v50  ;;  %v6551_v50 = vld [vmem:[%s9769_s3 + $0x230] sm:$0xff]  }
 0x154   : > { %v1432_v57 = vpack.c.bf16 %v1381_v53, %v1380_v52  ;;  %v5815_v58 = vpop.f32.mrf.mxu0  ;;  %5954 = vmatpush3.bf16.msra.mxu1 %v6527_v19 }
 0x155   : > { %v1029_v60 = vmax.f32 %v839_v56, 0.0  ;;  %5955 = vmatprep.subr.bf16.mxu1 %v6528_v59 }
 0x156   : > { %v1508_v61 = vshll.u32 %v1432_v57, 16  ;;  %v841_v62 = vpop.f32.mrf.mxu0  ;;  %v1506_v10 = vshrl.u32 %v1432_v57, 16  ;;  %v2163_v12 = vrot.slane %v1432_v57, 1 }
 0x157   : > { %v1382_v63 = vsel %vm1220_vm7, %v1029_v60, 0.0  ;;  %v842_v0 = vadd.f32 %v7185_v27, %v841_v62  ;;  %vm1102_vm7 = vcmp.ge.s32.totalorder %v1080_v24, 1 }
 0x158   : > { %v1433_v1 = vpack.c.bf16 %v1382_v63, %v1382_v63  ;;  %v5816_v2 = vpop.f32.mrf.mxu0  ;;  %v1510_v3 = vrot.slane %v1508_v61, 1  ;;  %5956 = vmatpush3.bf16.msra.mxu1 %v6528_v59  ;;  %vm7336_vm9 = vmand %vm1102_vm7, %vm1120_vm8  ;;  %v10035_v61 = vmov 0 }
 0x159   : > { %v1030_v13 = vmax.f32 %v842_v0, 0.0  ;;  %5957 = vmatprep.subr.bf16.mxu1 %v6529_v11  ;;  %vm1226_vm7 = vmand %vm7336_vm9, %vm9779_vm6 }
 0x15a   : > { %v1513_v6 = vshll.u32 %v1433_v1, 16  ;;  %v2164_v7 = vrot.slane %v1433_v1, 1  ;;  %v846_v9 = vpop.f32.mrf.mxu0  ;;  %v1511_v19 = vor.u32 %v1510_v3, %v1506_v10 }
 0x15b   : > { %v847_v14 = vadd.f32 %v7185_v27, %v846_v9  ;;  %v1383_v25 = vsel %vm7308_vm15, %v1030_v13, 0.0 }
 0x15c   : > { %v1515_v16 = vrot.slane %v1513_v6, 1  ;;  %v5819_v18 = vpop.f32.mrf.mxu0  ;;  %v7313_v20 = vsel %vm9780_vm11, %v2163_v12, %v2164_v7  ;;  %5958 = vmatpush3.bf16.msra.mxu1 %v6529_v11  ;;  %v1081_v6 = vadd.s32 5, %v7180_v26 }
 0x15d   : > { %9892 = vst [vmem:[#allocation15_spill] sm:$0xff] %v7313_v20  ;;  %v1031_v21 = vmax.f32 %v847_v14, 0.0  ;;  %5959 = vmatprep.subr.bf16.mxu1 %v6530_v37  ;;  %v6531_v14 = vld [vmem:[%s9769_s3 + $0x18] sm:$0xff]  }
 0x15e   : > { %v849_v22 = vpop.f32.mrf.mxu0  ;;  %v7316_v23 = vsel %vm9778_vm12, %v1511_v19, %v1515_v16  ;;  %v6533_v18 = vld [vmem:[%s9769_s3 + $0x1b8] sm:$0xff]   ;;  %vm1103_vm8 = vcmp.ge.s32.totalorder %v1081_v6, 1 }
 0x15f   : > { %9893 = vst [vmem:[#allocation16_spill] sm:$0xff] %v7316_v23  ;;  %v1384_v29 = vsel %vm7296_vm14, %v1031_v21, 0.0  ;;  %v7323_v30 = vpack.c.bf16 %v1031_v21, %v1030_v13  ;;  %v850_v32 = vadd.f32 %v7185_v27, %v849_v22  ;;  %5925 = vmatprep.mubr.bf16.mxu1 %v7316_v23  ;;  %6114 = vmatmul.mubr.bf16.vlgmr.msra.gmra.mxu0 %v7316_v23 }
 0x160   : > { %v1434_v33 = vpack.c.bf16 %v1384_v29, %v1383_v25  ;;  %v5820_v36 = vpop.f32.mrf.mxu0  ;;  %5960 = vmatpush3.bf16.msra.mxu1 %v6530_v37  ;;  %6193 = vmatprep.subr.bf16.mxu0 %v6533_v18 }
 0x161   : > { %v1032_v38 = vmax.f32 %v850_v32, 0.0  ;;  %5961 = vmatprep.subr.bf16.mxu1 %v6531_v14  ;;  %6194 = vmatpush3.bf16.msra.mxu0 %v6533_v18  ;;  %v6535_v36 = vld [vmem:[%s9769_s3 + $0x1b0] sm:$0xff]  }
 0x162   : > { %v1520_v39 = vshll.u32 %v1434_v33, 16  ;;  %v854_v41 = vpop.f32.mrf.mxu0  ;;  %v1518_v56 = vshrl.u32 %v1434_v33, 16  ;;  %v2166_v57 = vrot.slane %v1434_v33, 1  ;;  %v9900_v33 = vmov 0  ;;  %6195 = vmatprep.subr.bf16.mxu0 %v6535_v36 }
 0x163   : > { %v1385_v42 = vsel %vm1223_vm0, %v1032_v38, 0.0  ;;  %v855_v44 = vadd.f32 %v7185_v27, %v854_v41  ;;  %vm7345_vm0 = vmand %vm7336_vm9, %vm9781_vm4 }
 0x164   : > { %v1435_v45 = vpack.c.bf16 %v1385_v42, %v1385_v42  ;;  %v5823_v48 = vpop.f32.mrf.mxu0  ;;  %v1522_v49 = vrot.slane %v1520_v39, 1  ;;  %5962 = vmatpush3.bf16.msra.mxu1 %v6531_v14  ;;  %v6532_v42 = vld [vmem:[%s9769_s3 + $0x10] sm:$0xff]  }
 0x165   : > { %v1033_v58 = vmax.f32 %v855_v44, 0.0  ;;  %5963 = vmatprep.subr.bf16.mxu1 %v6532_v42  ;;  %6196 = vmatpush3.bf16.msra.mxu0 %v6535_v36 }
 0x166   : > { %v1525_v51 = vshll.u32 %v1435_v45, 16  ;;  %v2167_v52 = vrot.slane %v1435_v45, 1  ;;  %v857_v53 = vpop.f32.mrf.mxu0  ;;  %v1523_v63 = vor.u32 %v1522_v49, %v1518_v56 }
 0x167   : > { %v858_v59 = vadd.f32 %v7185_v27, %v857_v53  ;;  %v1386_v7 = vsel %vm7345_vm0, %v1033_v58, 0.0 }
 0x168   : > { %v1527_v60 = vrot.slane %v1525_v51, 1  ;;  %v5824_v62 = vpop.f32.mrf.mxu0  ;;  %v7350_v0 = vsel %vm9780_vm11, %v2166_v57, %v2167_v52  ;;  %v9902_v51 = vmov 0  ;;  %5964 = vmatpush3.bf16.msra.mxu1 %v6532_v42 }
 0x169   : > { %9898 = vst [vmem:[#allocation17_spill] sm:$0xff] %v7350_v0  ;;  %v1034_v1 = vmax.f32 %v858_v59, 0.0  ;;  %v1082_v62 = vadd.s32 6, %v7180_v26 }
 0x16a   : > { %v862_v2 = vpop.f32.mrf.mxu0  ;;  %v7353_v3 = vsel %vm9778_vm12, %v1523_v63, %v1527_v60  ;;  %vm1121_vm12 = vcmp.le.s32.totalorder %v1081_v6, 32 }
 0x16b   : > { %9899 = vst [vmem:[#allocation18_spill] sm:$0xff] %v7353_v3  ;;  %v1387_v9 = vsel %vm7336_vm9, %v1034_v1, 0.0  ;;  %v7360_v10 = vpack.c.bf16 %v1034_v1, %v1033_v58  ;;  %v863_v11 = vadd.f32 %v7185_v27, %v862_v2  ;;  %5926 = vmatmul.mubr.bf16.gmra.mxu1 %v7353_v3  ;;  %6117 = vmatprep.mubr.bf16.mxu0 %v7353_v3  ;;  %vm7376_vm6 = vmand %vm1103_vm8, %vm1121_vm12  ;;  %v6536_v58 = vld [vmem:[%s9769_s3 + $0x1a8] sm:$0xff]   ;;  %vm9907_vm8 = vcmp.le.s32.totalorder %v7202_v35, 16 }
 0x16c   : > { %v1436_v12 = vpack.c.bf16 %v1387_v9, %v1386_v7  ;;  %v5827_v13 = vpop.f32.mrf.mxu0  ;;  %v9901_v33 = vsel %vm7376_vm6, 4294967295, %v9900_v33  ;;  %vm7391_vm12 = vmand %vm7376_vm6, %vm9781_vm4  ;;  %6197 = vmatprep.subr.bf16.mxu0 %v6536_v58  ;;  %vm1122_vm4 = vcmp.le.s32.totalorder %v1082_v62, 32 }
 0x16d   : > { %v1035_v16 = vmax.f32 %v863_v11, 0.0  ;;  %v9903_v51 = vsel %vm7391_vm12, 4294967295, %v9902_v51  ;;  %v6534_v11 = vld [vmem:[%s9769_s3 + $0x8] sm:$0xff]   ;;  %6198 = vmatpush3.bf16.msra.mxu0 %v6536_v58  ;;  %v6538_v13 = vld [vmem:[%s9769_s3 + $0x1a0] sm:$0xff]   ;;  %v6541_v58 = vld [vmem:[%s9769_s3 + $0x190] sm:$0xff]  }
 0x16e   : > { %v1532_v19 = vshll.u32 %v1436_v12, 16  ;;  %v865_v21 = vpop.f32.mrf.mxu0  ;;  %v1530_v41 = vshrl.u32 %v1436_v12, 16  ;;  %v2169_v44 = vrot.slane %v1436_v12, 1  ;;  %5965 = vmatprep.subr.bf16.mxu1 %v6534_v11  ;;  %6199 = vmatprep.subr.bf16.mxu0 %v6538_v13 }
 0x16f   : > { %v1388_v22 = vsel %vm1226_vm7, %v1035_v16, 0.0  ;;  %v866_v24 = vadd.f32 %v7185_v27, %v865_v21  ;;  %vm9905_vm7 = vsmask.f32 7424  ;;  %5966 = vmatpush3.bf16.msra.mxu1 %v6534_v11 }
 0x170   : > { %v1437_v25 = vpack.c.bf16 %v1388_v22, %v1388_v22  ;;  %v5828_v29 = vpop.f32.mrf.mxu0  ;;  %v1534_v32 = vrot.slane %v1532_v19, 1 }
 0x171   : > { %v1036_v45 = vmax.f32 %v866_v24, 0.0  ;;  %v6537_v29 = vld [vmem:[%s9769_s3] sm:$0xff]   ;;  %6200 = vmatpush3.bf16.msra.mxu0 %v6538_v13  ;;  %v7470_v13 = vld [vmem:[%s9769_s3 + $0xb8] sm:$0xff]  }
 0x172   : > { %v1537_v37 = vshll.u32 %v1437_v25, 16  ;;  %v2170_v38 = vrot.slane %v1437_v25, 1  ;;  %v870_v39 = vpop.f32.mrf.mxu0  ;;  %v1535_v53 = vor.u32 %v1534_v32, %v1530_v41  ;;  %v9908_v25 = vmov 0  ;;  %v6539_v32 = vld [vmem:[%s9769_s3 + $0x198] sm:$0xff]   ;;  %5967 = vmatprep.subr.bf16.mxu1 %v6537_v29 }
 0x173   : > { %v871_v48 = vadd.f32 %v7185_v27, %v870_v39  ;;  %v1389_v63 = vsel %vm7391_vm12, %v1036_v45, 0.0  ;;  %6201 = vmatprep.subr.bf16.mxu0 %v6539_v32  ;;  %5968 = vmatpush3.bf16.msra.mxu1 %v6537_v29 }
 0x174   : > { %v1539_v49 = vrot.slane %v1537_v37, 1  ;;  %v5831_v52 = vpop.f32.mrf.mxu0  ;;  %v7396_v56 = vsel %vm9780_vm11, %v2169_v44, %v2170_v38  ;;  %vm1104_vm11 = vcmp.ge.s32.totalorder %v1082_v62, 1  ;;  %6001 = vmatprep.subr.bf16.mxu1 %v7470_v13 }
 0x175   : > { %9904 = vst [vmem:[#allocation19_spill] sm:$0xff] %v7396_v56  ;;  %v1037_v57 = vmax.f32 %v871_v48, 0.0  ;;  %v9911_v48 = vmov 0  ;;  %6202 = vmatpush3.bf16.msra.mxu0 %v6539_v32 }
 0x176   : > { %v873_v59 = vpop.f32.mrf.mxu0  ;;  %v7402_v60 = vsel %vm9905_vm7, %v1535_v53, %v1539_v49  ;;  %vm1229_vm7 = vmand %vm7376_vm6, %vm9907_vm8  ;;  %6203 = vmatprep.subr.bf16.mxu0 %v6541_v58 }
 0x177   : > { %9906 = vst [vmem:[#allocation20_spill] sm:$0xff] %v7402_v60  ;;  %v1390_v1 = vsel %vm7376_vm6, %v1037_v57, 0.0  ;;  %v7409_v2 = vpack.c.bf16 %v1037_v57, %v1036_v45  ;;  %v874_v6 = vadd.f32 %v7185_v27, %v873_v59  ;;  %5929 = vmatprep.mubr.bf16.mxu1 %v7402_v60  ;;  %6118 = vmatmul.mubr.bf16.gmra.mxu0 %v7402_v60  ;;  %vm7425_vm8 = vmand %vm1104_vm11, %vm1122_vm4  ;;  %vm9910_vm4 = vcmp.ge.s32.totalorder %v7187_v28, 1 }
 0x178   : > { %v1438_v7 = vpack.c.bf16 %v1390_v1, %v1389_v63  ;;  %v5832_v9 = vpop.f32.mrf.mxu0  ;;  %v9909_v25 = vsel %vm7425_vm8, 4294967295, %v9908_v25  ;;  %vm7440_vm11 = vmand %vm7425_vm8, %vm9910_vm4  ;;  %vm9915_vm6 = vsmask.f32 7424  ;;  %v1083_v63 = vadd.s32 7, %v7180_v26 }
 0x179   : > { %v1038_v12 = vmax.f32 %v874_v6, 0.0  ;;  %v9912_v48 = vsel %vm7440_vm11, 4294967295, %v9911_v48  ;;  %6204 = vmatpush3.bf16.msra.mxu0 %v6541_v58 }
 0x17a   : > { %v1544_v14 = vshll.u32 %v1438_v7, 16  ;;  %v878_v16 = vpop.f32.mrf.mxu0  ;;  %v1542_v39 = vshrl.u32 %v1438_v7, 16  ;;  %v2172_v41 = vrot.slane %v1438_v7, 1 }
 0x17b   : > { %v1391_v18 = vsel %vm1229_vm7, %v1038_v12, 0.0  ;;  %v879_v19 = vadd.f32 %v7185_v27, %v878_v16  ;;  %vm9913_vm7 = vcmask 1046528   ;;  %v6542_v16 = vld [vmem:[%s9769_s3 + $0x188] sm:$0xff]  }
 0x17c   : > { %v1439_v21 = vpack.c.bf16 %v1391_v18, %v1391_v18  ;;  %v5835_v22 = vpop.f32.mrf.mxu0  ;;  %v1546_v24 = vrot.slane %v1544_v14, 1  ;;  %6205 = vmatprep.subr.bf16.mxu0 %v6542_v16 }
 0x17d   : > { %v1039_v42 = vmax.f32 %v879_v19, 0.0  ;;  %6206 = vmatpush3.bf16.msra.mxu0 %v6542_v16 }
 0x17e   : > { %v1549_v36 = vshll.u32 %v1439_v21, 16  ;;  %v2173_v37 = vrot.slane %v1439_v21, 1  ;;  %v881_v38 = vpop.f32.mrf.mxu0  ;;  %v1547_v52 = vor.u32 %v1546_v24, %v1542_v39 }
 0x17f   : > { %v882_v44 = vadd.f32 %v7185_v27, %v881_v38  ;;  %v1392_v1 = vsel %vm7440_vm11, %v1039_v42, 0.0  ;;  %vm1123_vm11 = vcmp.le.s32.totalorder %v1083_v63, 32 }
 0x180   : > { %v1551_v45 = vrot.slane %v1549_v36, 1  ;;  %v5836_v49 = vpop.f32.mrf.mxu0  ;;  %v7445_v53 = vsel %vm9913_vm7, %v2172_v41, %v2173_v37  ;;  %vm1105_vm7 = vcmp.ge.s32.totalorder %v1083_v63, 1  ;;  %v9918_v36 = vmov 0  ;;  %v6544_v37 = vld [vmem:[%s9769_s3 + $0x180] sm:$0xff]  }
 0x181   : > { %9914 = vst [vmem:[#allocation21_spill] sm:$0xff] %v7445_v53  ;;  %v1040_v57 = vmax.f32 %v882_v44, 0.0  ;;  %6207 = vmatprep.subr.bf16.mxu0 %v6544_v37 }
 0x182   : > { %v886_v59 = vpop.f32.mrf.mxu0  ;;  %v7451_v62 = vsel %vm9915_vm6, %v1547_v52, %v1551_v45  ;;  %vm9917_vm6 = vcmp.le.s32.totalorder %v7202_v35, 16  ;;  %6208 = vmatpush3.bf16.msra.mxu0 %v6544_v37 }
 0x183   : > { %9916 = vst [vmem:[#allocation22_spill] sm:$0xff] %v7451_v62  ;;  %v1393_v6 = vsel %vm7425_vm8, %v1040_v57, 0.0  ;;  %v7458_v7 = vpack.c.bf16 %v1040_v57, %v1039_v42  ;;  %v887_v9 = vadd.f32 %v7185_v27, %v886_v59  ;;  %5930 = vmatmul.mubr.bf16.gmra.mxu1 %v7451_v62  ;;  %6121 = vmatprep.mubr.bf16.mxu0 %v7451_v62  ;;  %vm1232_vm4 = vmand %vm7425_vm8, %vm9917_vm6  ;;  %v9921_v57 = vmov 0 }
 0x184   : > { %v1440_v11 = vpack.c.bf16 %v1393_v6, %v1392_v1  ;;  %v5839_v12 = vpop.f32.mrf.mxu0  ;;  %vm7477_vm6 = vmand %vm1105_vm7, %vm1123_vm11  ;;  %vm9920_vm11 = vcmp.ge.s32.totalorder %v7187_v28, 1  ;;  %vm9923_vm7 = vcmask 1046528   ;;  %vm9925_vm8 = vsmask.f32 7424 }
 0x185   : > { %v1041_v14 = vmax.f32 %v887_v9, 0.0  ;;  %v9919_v36 = vsel %vm7477_vm6, 4294967295, %v9918_v36 }
 0x186   : > { %v1556_v18 = vshll.u32 %v1440_v11, 16  ;;  %v889_v19 = vpop.f32.mrf.mxu0  ;;  %v1554_v42 = vshrl.u32 %v1440_v11, 16  ;;  %v2175_v44 = vrot.slane %v1440_v11, 1  ;;  %v1084_v11 = vadd.s32 8, %v7180_v26 }
 0x187   : > { %v1394_v21 = vsel %vm1232_vm4, %v1041_v14, 0.0  ;;  %v890_v22 = vadd.f32 %v7185_v27, %v889_v19  ;;  %vm7489_vm4 = vmand %vm7477_vm6, %vm9920_vm11 }
 0x188   : > { %v1441_v24 = vpack.c.bf16 %v1394_v21, %v1394_v21  ;;  %v5840_v29 = vpop.f32.mrf.mxu0  ;;  %v1558_v32 = vrot.slane %v1556_v18, 1  ;;  %v9922_v57 = vsel %vm7489_vm4, 4294967295, %v9921_v57 }
 0x189   : > { %v1042_v45 = vmax.f32 %v890_v22, 0.0 }
 0x18a   : > { %v1561_v38 = vshll.u32 %v1441_v24, 16  ;;  %v2176_v39 = vrot.slane %v1441_v24, 1  ;;  %v894_v41 = vpop.f32.mrf.mxu0  ;;  %v1559_v59 = vor.u32 %v1558_v32, %v1554_v42  ;;  %v9928_v42 = vmov 0 }
 0x18b   : > { %v895_v49 = vadd.f32 %v7185_v27, %v894_v41  ;;  %v1395_v12 = vsel %vm7489_vm4, %v1042_v45, 0.0  ;;  %vm1124_vm4 = vcmp.le.s32.totalorder %v1084_v11, 32 }
 0x18c   : > { %v1563_v52 = vrot.slane %v1561_v38, 1  ;;  %v5843_v58 = vpop.f32.mrf.mxu0  ;;  %v7494_v63 = vsel %vm9923_vm7, %v2175_v44, %v2176_v39  ;;  %vm1106_vm7 = vcmp.ge.s32.totalorder %v1084_v11, 1  ;;  %v9931_v11 = vmov 0 }
 0x18d   : > { %9924 = vst [vmem:[#allocation23_spill] sm:$0xff] %v7494_v63  ;;  %v1043_v1 = vmax.f32 %v895_v49, 0.0  ;;  %vm7514_vm12 = vmand %vm1106_vm7, %vm1124_vm4  ;;  %vm9933_vm4 = vcmask 1046528   ;;  %vm9935_vm7 = vsmask.f32 7424 }
 0x18e   : > { %v897_v6 = vpop.f32.mrf.mxu0  ;;  %v7497_v9 = vsel %vm9925_vm8, %v1559_v59, %v1563_v52  ;;  %vm9927_vm8 = vcmp.le.s32.totalorder %v7202_v35, 16  ;;  %v9929_v42 = vsel %vm7514_vm12, 4294967295, %v9928_v42 }
 0x18f   : > { %9926 = vst [vmem:[#allocation24_spill] sm:$0xff] %v7497_v9  ;;  %v1396_v14 = vsel %vm7477_vm6, %v1043_v1, 0.0  ;;  %v7504_v16 = vpack.c.bf16 %v1043_v1, %v1042_v45  ;;  %v898_v18 = vadd.f32 %v7185_v27, %v897_v6  ;;  %5933 = vmatprep.mubr.bf16.mxu1 %v7497_v9  ;;  %6122 = vmatmul.mubr.bf16.gmra.mxu0 %v7497_v9  ;;  %vm1235_vm11 = vmand %vm7477_vm6, %vm9927_vm8  ;;  %vm9930_vm8 = vcmp.ge.s32.totalorder %v7187_v28, 1 }
 0x190   : > { %v1442_v19 = vpack.c.bf16 %v1396_v14, %v1395_v12  ;;  %v5844_v21 = vpop.f32.mrf.mxu0 }
 0x191   : > { %v1044_v22 = vmax.f32 %v898_v18, 0.0 }
 0x192   : > { %v1568_v24 = vshll.u32 %v1442_v19, 16  ;;  %v902_v29 = vpop.f32.mrf.mxu0  ;;  %v1566_v52 = vshrl.u32 %v1442_v19, 16  ;;  %v2178_v58 = vrot.slane %v1442_v19, 1 }
 0x193   : > { %v1397_v32 = vsel %vm1235_vm11, %v1044_v22, 0.0  ;;  %v903_v37 = vadd.f32 %v7185_v27, %v902_v29  ;;  %vm7523_vm11 = vmand %vm7514_vm12, %vm9930_vm8  ;;  %vm9937_vm8 = vcmp.le.s32.totalorder %v7202_v35, 16 }
 0x194   : > { %v1443_v38 = vpack.c.bf16 %v1397_v32, %v1397_v32  ;;  %v5847_v39 = vpop.f32.mrf.mxu0  ;;  %v1570_v41 = vrot.slane %v1568_v24, 1  ;;  %v9932_v11 = vsel %vm7523_vm11, 4294967295, %v9931_v11  ;;  %v1085_v24 = vadd.s32 9, %v7180_v26 }
 0x195   : > { %v1045_v59 = vmax.f32 %v903_v37, 0.0 }
 0x196   : > { %v1573_v44 = vshll.u32 %v1443_v38, 16  ;;  %v2179_v45 = vrot.slane %v1443_v38, 1  ;;  %v905_v49 = vpop.f32.mrf.mxu0  ;;  %v1571_v14 = vor.u32 %v1570_v41, %v1566_v52 }
 0x197   : > { %v906_v1 = vadd.f32 %v7185_v27, %v905_v49  ;;  %v1398_v29 = vsel %vm7523_vm11, %v1045_v59, 0.0  ;;  %vm1125_vm11 = vcmp.le.s32.totalorder %v1085_v24, 32 }
 0x198   : > { %v1575_v6 = vrot.slane %v1573_v44, 1  ;;  %v5848_v12 = vpop.f32.mrf.mxu0  ;;  %v7528_v18 = vsel %vm9933_vm4, %v2178_v58, %v2179_v45  ;;  %vm1238_vm4 = vmand %vm7514_vm12, %vm9937_vm8  ;;  %vm9940_vm8 = vcmp.ge.s32.totalorder %v7187_v28, 1 }
 0x199   : > { %9934 = vst [vmem:[#allocation25_spill] sm:$0xff] %v7528_v18  ;;  %v1046_v21 = vmax.f32 %v906_v1, 0.0  ;;  %v9938_v12 = vmov 0 }
 0x19a   : > { %v910_v22 = vpop.f32.mrf.mxu0  ;;  %v7531_v19 = vsel %vm9935_vm7, %v1571_v14, %v1575_v6  ;;  %vm1107_vm7 = vcmp.ge.s32.totalorder %v1085_v24, 1  ;;  %v9941_v24 = vmov 0 }
 0x19b   : > { %9936 = vst [vmem:[#allocation26_spill] sm:$0xff] %v7531_v19  ;;  %v1399_v32 = vsel %vm7514_vm12, %v1046_v21, 0.0  ;;  %v7538_v37 = vpack.c.bf16 %v1046_v21, %v1045_v59  ;;  %v911_v38 = vadd.f32 %v7185_v27, %v910_v22  ;;  %5934 = vmatmul.mubr.bf16.gmra.mxu1 %v7531_v19  ;;  %6125 = vmatprep.mubr.bf16.mxu0 %v7531_v19  ;;  %vm7548_vm6 = vmand %vm1107_vm7, %vm1125_vm11  ;;  %vm9943_vm11 = vcmask 1046528  }
 0x19c   : > { %v1444_v39 = vpack.c.bf16 %v1399_v32, %v1398_v29  ;;  %v5851_v41 = vpop.f32.mrf.mxu0  ;;  %v9939_v12 = vsel %vm7548_vm6, 4294967295, %v9938_v12  ;;  %vm9945_vm7 = vsmask.f32 7424 }
 0x19d   : > { %v1047_v44 = vmax.f32 %v911_v38, 0.0 }
 0x19e   : > { %v1580_v45 = vshll.u32 %v1444_v39, 16  ;;  %v913_v49 = vpop.f32.mrf.mxu0  ;;  %v1578_v29 = vshrl.u32 %v1444_v39, 16  ;;  %v2181_v32 = vrot.slane %v1444_v39, 1 }
 0x19f   : > { %v1400_v52 = vsel %vm1238_vm4, %v1047_v44, 0.0  ;;  %v914_v58 = vadd.f32 %v7185_v27, %v913_v49  ;;  %vm7557_vm4 = vmand %vm7548_vm6, %vm9940_vm8  ;;  %vm9947_vm8 = vcmp.le.s32.totalorder %v7202_v35, 16 }
 0x1a0   : > { %v1445_v59 = vpack.c.bf16 %v1400_v52, %v1400_v52  ;;  %v5852_v1 = vpop.f32.mrf.mxu0  ;;  %v1582_v6 = vrot.slane %v1580_v45, 1  ;;  %v9942_v24 = vsel %vm7557_vm4, 4294967295, %v9941_v24 }
 0x1a1   : > { %v1048_v38 = vmax.f32 %v914_v58, 0.0  ;;  %v1086_v58 = vadd.s32 10, %v7180_v26 }
 0x1a2   : > { %v1585_v14 = vshll.u32 %v1445_v59, 16  ;;  %v2182_v21 = vrot.slane %v1445_v59, 1  ;;  %v918_v22 = vpop.f32.mrf.mxu0  ;;  %v1583_v45 = vor.u32 %v1582_v6, %v1578_v29 }
 0x1a3   : > { %v919_v41 = vadd.f32 %v7185_v27, %v918_v22  ;;  %v1401_v1 = vsel %vm7557_vm4, %v1048_v38, 0.0  ;;  %vm1126_vm4 = vcmp.le.s32.totalorder %v1086_v58, 32 }
 0x1a4   : > { %v1587_v19 = vrot.slane %v1585_v14, 1  ;;  %v5855_v44 = vpop.f32.mrf.mxu0  ;;  %v7562_v49 = vsel %vm9943_vm11, %v2181_v32, %v2182_v21  ;;  %vm1241_vm11 = vmand %vm7548_vm6, %vm9947_vm8 }
 0x1a5   : > { %9944 = vst [vmem:[#allocation27_spill] sm:$0xff] %v7562_v49  ;;  %v1049_v52 = vmax.f32 %v919_v41, 0.0 }
 0x1a6   : > { %v921_v59 = vpop.f32.mrf.mxu0  ;;  %v7565_v39 = vsel %vm9945_vm7, %v1583_v45, %v1587_v19  ;;  %vm1108_vm7 = vcmp.ge.s32.totalorder %v1086_v58, 1 }
 0x1a7   : > { %9946 = vst [vmem:[#allocation28_spill] sm:$0xff] %v7565_v39  ;;  %v1402_v14 = vsel %vm7548_vm6, %v1049_v52, 0.0  ;;  %v7572_v22 = vpack.c.bf16 %v1049_v52, %v1048_v38  ;;  %v922_v6 = vadd.f32 %v7185_v27, %v921_v59  ;;  %5937 = vmatprep.mubr.bf16.mxu1 %v7565_v39  ;;  %6126 = vmatmul.mubr.bf16.gmra.mxu0 %v7565_v39  ;;  %vm7582_vm12 = vmand %vm1108_vm7, %vm1126_vm4  ;;  %v9948_v39 = vmov 0 }
 0x1a8   : > { %v1446_v21 = vpack.c.bf16 %v1402_v14, %v1401_v1  ;;  %v5856_v19 = vpop.f32.mrf.mxu0  ;;  %v9949_v39 = vsel %vm7582_vm12, 4294967295, %v9948_v39  ;;  %v7589_v1 = vld [vmem:[%s9769_s3 + $0x238] sm:$0xff]   ;;  %vm9950_vm4 = vcmp.ge.s32.totalorder %v7187_v28, 1  ;;  %vm9955_vm7 = vsmask.f32 7424 }
 0x1a9   : > { %v1050_v29 = vmax.f32 %v922_v6, 0.0  ;;  %6289 = vmatprep.subr.bf16.mxu0 %v7589_v1  ;;  %vm7597_vm8 = vmand %vm7582_vm12, %vm9950_vm4  ;;  %vm9957_vm4 = vcmp.le.s32.totalorder %v7202_v35, 16 }
 0x1aa   : > { %v1592_v32 = vshll.u32 %v1446_v21, 16  ;;  %v926_v41 = vpop.f32.mrf.mxu0  ;;  %v1590_v9 = vshrl.u32 %v1446_v21, 16  ;;  %v2184_v58 = vrot.slane %v1446_v21, 1 }
 0x1ab   : > { %v1403_v38 = vsel %vm1241_vm11, %v1050_v29, 0.0  ;;  %v927_v44 = vadd.f32 %v7185_v27, %v926_v41  ;;  %vm9953_vm11 = vcmask 1046528  }
 0x1ac   : > { %v1447_v45 = vpack.c.bf16 %v1403_v38, %v1403_v38  ;;  %v5859_v52 = vpop.f32.mrf.mxu0  ;;  %v1594_v59 = vrot.slane %v1592_v32, 1  ;;  %v9951_v38 = vmov 0 }
 0x1ad   : > { %v1051_v29 = vmax.f32 %v927_v44, 0.0  ;;  %v9952_v38 = vsel %vm7597_vm8, 4294967295, %v9951_v38 }
 0x1ae   : > { %v1597_v14 = vshll.u32 %v1447_v45, 16  ;;  %v2185_v6 = vrot.slane %v1447_v45, 1  ;;  %v929_v19 = vpop.f32.mrf.mxu0  ;;  %v1595_v62 = vor.u32 %v1594_v59, %v1590_v9 }
 0x1af   : > { %v930_v41 = vadd.f32 %v7185_v27, %v929_v19  ;;  %v1404_v60 = vsel %vm7597_vm8, %v1051_v29, 0.0 }
 0x1b0   : > { %v1599_v32 = vrot.slane %v1597_v14, 1  ;;  %v5860_v52 = vpop.f32.mrf.mxu0  ;;  %v7602_v45 = vsel %vm9953_vm11, %v2184_v58, %v2185_v6  ;;  %v1087_v14 = vadd.s32 11, %v7180_v26  ;;  %vm1244_vm11 = vmand %vm7582_vm12, %vm9957_vm4  ;;  %vm9960_vm4 = vcmp.ge.s32.totalorder %v7187_v28, 1 }
 0x1b1   : > { %9954 = vst [vmem:[#allocation29_spill] sm:$0xff] %v7602_v45  ;;  %v1052_v21 = vmax.f32 %v930_v41, 0.0 }
 0x1b2   : > { %v934_v44 = vpop.f32.mrf.mxu0  ;;  %v7605_v19 = vsel %vm9955_vm7, %v1595_v62, %v1599_v32  ;;  %vm1109_vm7 = vcmp.ge.s32.totalorder %v1087_v14, 1  ;;  %vm1127_vm8 = vcmp.le.s32.totalorder %v1087_v14, 32  ;;  %v9961_v14 = vmov 0 }
 0x1b3   : > { %9956 = vst [vmem:[#allocation30_spill] sm:$0xff] %v7605_v19  ;;  %v1405_v3 = vsel %vm7582_vm12, %v1052_v21, 0.0  ;;  %v7612_v23 = vpack.c.bf16 %v1052_v21, %v1051_v29  ;;  %v935_v9 = vadd.f32 %v7185_v27, %v934_v44  ;;  %5938 = vmatmul.mubr.bf16.gmra.mxu1 %v7605_v19  ;;  %6129 = vmatprep.mubr.bf16.mxu0 %v7605_v19  ;;  %vm7622_vm6 = vmand %vm1109_vm7, %vm1127_vm8  ;;  %v9958_v19 = vmov 0 }
 0x1b4   : > { %v1448_v59 = vpack.c.bf16 %v1405_v3, %v1404_v60  ;;  %v5863_v62 = vpop.f32.mrf.mxu0  ;;  %v9959_v19 = vsel %vm7622_vm6, 4294967295, %v9958_v19  ;;  %vm9963_vm8 = vcmask 1046528   ;;  %vm9965_vm7 = vsmask.f32 7424 }
 0x1b5   : > { %v1053_v6 = vmax.f32 %v935_v9, 0.0 }
 0x1b6   : > { %v1604_v58 = vshll.u32 %v1448_v59, 16  ;;  %v937_v41 = vpop.f32.mrf.mxu0  ;;  %v1602_v49 = vshrl.u32 %v1448_v59, 16  ;;  %v2187_v62 = vrot.slane %v1448_v59, 1 }
 0x1b7   : > { %v1406_v29 = vsel %vm1244_vm11, %v1053_v6, 0.0  ;;  %v938_v32 = vadd.f32 %v7185_v27, %v937_v41  ;;  %vm7631_vm11 = vmand %vm7622_vm6, %vm9960_vm4  ;;  %vm9967_vm4 = vcmp.le.s32.totalorder %v7202_v35, 16 }
 0x1b8   : > { %v1449_v52 = vpack.c.bf16 %v1406_v29, %v1406_v29  ;;  %v5864_v21 = vpop.f32.mrf.mxu0  ;;  %v1606_v44 = vrot.slane %v1604_v58, 1  ;;  %v9962_v14 = vsel %vm7631_vm11, 4294967295, %v9961_v14 }
 0x1b9   : > { %v1054_v9 = vmax.f32 %v938_v32, 0.0 }
 0x1ba   : > { %v1609_v3 = vshll.u32 %v1449_v52, 16  ;;  %v2188_v60 = vrot.slane %v1449_v52, 1  ;;  %v942_v45 = vpop.f32.mrf.mxu0  ;;  %v1607_v58 = vor.u32 %v1606_v44, %v1602_v49 }
 0x1bb   : > { %v943_v18 = vadd.f32 %v7185_v27, %v942_v45  ;;  %v1088_v45 = vadd.s32 12, %v7180_v26  ;;  %v1407_v32 = vsel %vm7631_vm11, %v1054_v9, 0.0 }
 0x1bc   : > { %v1611_v63 = vrot.slane %v1609_v3, 1  ;;  %v5867_v6 = vpop.f32.mrf.mxu0  ;;  %v7636_v41 = vsel %vm9963_vm8, %v2187_v62, %v2188_v60  ;;  %vm1247_vm8 = vmand %vm7622_vm6, %vm9967_vm4  ;;  %vm9970_vm4 = vcmp.ge.s32.totalorder %v7187_v28, 1 }
 0x1bd   : > { %9964 = vst [vmem:[#allocation31_spill] sm:$0xff] %v7636_v41  ;;  %v1055_v29 = vmax.f32 %v943_v18, 0.0  ;;  %vm1128_vm11 = vcmp.le.s32.totalorder %v1088_v45, 32 }
 0x1be   : > { %v945_v52 = vpop.f32.mrf.mxu0  ;;  %v7639_v59 = vsel %vm9965_vm7, %v1607_v58, %v1611_v63  ;;  %vm1110_vm7 = vcmp.ge.s32.totalorder %v1088_v45, 1  ;;  %v9971_v45 = vmov 0 }
 0x1bf   : > { %9966 = vst [vmem:[#allocation32_spill] sm:$0xff] %v7639_v59  ;;  %v1408_v21 = vsel %vm7622_vm6, %v1055_v29, 0.0  ;;  %v7646_v3 = vpack.c.bf16 %v1055_v29, %v1054_v9  ;;  %v946_v49 = vadd.f32 %v7185_v27, %v945_v52  ;;  %5941 = vmatprep.mubr.bf16.mxu1 %v7639_v59  ;;  %6130 = vmatmul.mubr.bf16.gmra.mxu0 %v7639_v59  ;;  %vm7656_vm12 = vmand %vm1110_vm7, %vm1128_vm11  ;;  %v9968_v59 = vmov 0 }
 0x1c0   : > { %v1450_v18 = vpack.c.bf16 %v1408_v21, %v1407_v32  ;;  %v5868_v63 = vpop.f32.mrf.mxu0  ;;  %v9969_v59 = vsel %vm7656_vm12, 4294967295, %v9968_v59  ;;  %vm9973_vm11 = vcmask 1046528   ;;  %vm9975_vm7 = vsmask.f32 7424 }
 0x1c1   : > { %v1056_v44 = vmax.f32 %v946_v49, 0.0 }
 0x1c2   : > { %v1616_v60 = vshll.u32 %v1450_v18, 16  ;;  %v950_v62 = vpop.f32.mrf.mxu0  ;;  %v1614_v53 = vshrl.u32 %v1450_v18, 16  ;;  %v2190_v63 = vrot.slane %v1450_v18, 1 }
 0x1c3   : > { %v1409_v9 = vsel %vm1247_vm8, %v1056_v44, 0.0  ;;  %v951_v6 = vadd.f32 %v7185_v27, %v950_v62  ;;  %vm7665_vm8 = vmand %vm7656_vm12, %vm9970_vm4  ;;  %vm9977_vm4 = vcmp.le.s32.totalorder %v7202_v35, 16 }
 0x1c4   : > { %v1451_v58 = vpack.c.bf16 %v1409_v9, %v1409_v9  ;;  %v5871_v29 = vpop.f32.mrf.mxu0  ;;  %v1618_v52 = vrot.slane %v1616_v60, 1  ;;  %v9972_v45 = vsel %vm7665_vm8, 4294967295, %v9971_v45 }
 0x1c5   : > { %v1057_v49 = vmax.f32 %v951_v6, 0.0 }
 0x1c6   : > { %v1621_v32 = vshll.u32 %v1451_v58, 16  ;;  %v2191_v21 = vrot.slane %v1451_v58, 1  ;;  %v953_v41 = vpop.f32.mrf.mxu0  ;;  %v1619_v60 = vor.u32 %v1618_v52, %v1614_v53  ;;  %v7685_v53 = vld [vmem:[%s9768_s2] ss:$0 sm:$0xff] }
 0x1c7   : > { %v954_v56 = vadd.f32 %v7185_v27, %v953_v41  ;;  %v1089_v27 = vadd.s32 13, %v7180_v26  ;;  %v1410_v41 = vsel %vm7665_vm8, %v1057_v49, 0.0 }
 0x1c8   : > { %v1623_v0 = vrot.slane %v1621_v32, 1  ;;  %v5872_v44 = vpop.f32.mrf.mxu0  ;;  %v7670_v62 = vsel %vm9973_vm11, %v2190_v63, %v2191_v21  ;;  %vm1250_vm11 = vmand %vm7656_vm12, %vm9977_vm4  ;;  %vm9981_vm4 = vcmp.ge.s32.totalorder %v7187_v28, 1 }
 0x1c9   : > { %9974 = vst [vmem:[#allocation33_spill] sm:$0xff] %v7670_v62  ;;  %v1058_v9 = vmax.f32 %v954_v56, 0.0  ;;  %vm1129_vm8 = vcmp.le.s32.totalorder %v1089_v27, 32 }
 0x1ca   : > { %v958_v58 = vpop.f32.mrf.mxu0  ;;  %v7673_v18 = vsel %vm9975_vm7, %v1619_v60, %v1623_v0  ;;  %vm1111_vm7 = vcmp.ge.s32.totalorder %v1089_v27, 1  ;;  %v9982_v27 = vmov 0 }
 0x1cb   : > { %9976 = vst [vmem:[#allocation34_spill] sm:$0xff] %v7673_v18  ;;  %v1411_v6 = vsel %vm7656_vm12, %v1058_v9, 0.0  ;;  %v7680_v29 = vpack.c.bf16 %v1058_v9, %v1057_v49  ;;  %v959_v56 = vadd.f32 %v7685_v53, %v958_v58  ;;  %5942 = vmatmul.mubr.bf16.gmra.mxu1 %v7673_v18  ;;  %6133 = vmatprep.mubr.bf16.mxu0 %v7673_v18  ;;  %vm7695_vm6 = vmand %vm1111_vm7, %vm1129_vm8  ;;  %v9978_v18 = vmov 0 }
 0x1cc   : > { %v1452_v0 = vpack.c.bf16 %v1411_v6, %v1410_v41  ;;  %v5875_v52 = vpop.f32.mrf.mxu0  ;;  %v9979_v18 = vsel %vm7695_vm6, 4294967295, %v9978_v18  ;;  %vm9985_vm8 = vcmask 1046528   ;;  %vm9987_vm7 = vsmask.f32 7424 }
 0x1cd   : > { %v1059_v32 = vmax.f32 %v959_v56, 0.0  ;;  %9980 = vst [vmem:[#allocation35_spill] sm:$0xff] %v9979_v18 }
 0x1ce   : > { %v1628_v21 = vshll.u32 %v1452_v0, 16  ;;  %v961_v63 = vpop.f32.mrf.mxu0  ;;  %v1626_v20 = vshrl.u32 %v1452_v0, 16  ;;  %v2193_v52 = vrot.slane %v1452_v0, 1 }
 0x1cf   : > { %v1412_v49 = vsel %vm1250_vm11, %v1059_v32, 0.0  ;;  %v962_v44 = vadd.f32 %v7685_v53, %v961_v63  ;;  %vm7704_vm11 = vmand %vm7695_vm6, %vm9981_vm4  ;;  %vm9990_vm4 = vcmp.le.s32.totalorder %v7202_v35, 16 }
 0x1d0   : > { %v1453_v60 = vpack.c.bf16 %v1412_v49, %v1412_v49  ;;  %v5876_v9 = vpop.f32.mrf.mxu0  ;;  %v1630_v58 = vrot.slane %v1628_v21, 1  ;;  %v9983_v27 = vsel %vm7704_vm11, 4294967295, %v9982_v27 }
 0x1d1   : > { %v1060_v56 = vmax.f32 %v962_v44, 0.0  ;;  %9984 = vst [vmem:[#allocation36_spill] sm:$0xff] %v9983_v27 }
 0x1d2   : > { %v1633_v41 = vshll.u32 %v1453_v60, 16  ;;  %v2194_v6 = vrot.slane %v1453_v60, 1  ;;  %v966_v62 = vpop.f32.mrf.mxu0  ;;  %v1631_v21 = vor.u32 %v1630_v58, %v1626_v20 }
 0x1d3   : > { %v967_v46 = vadd.f32 %v7685_v53, %v966_v62  ;;  %v1090_v62 = vadd.s32 14, %v7180_v26  ;;  %v1413_v44 = vsel %vm7704_vm11, %v1060_v56, 0.0 }
 0x1d4   : > { %v1635_v8 = vrot.slane %v1633_v41, 1  ;;  %v5879_v32 = vpop.f32.mrf.mxu0  ;;  %v7709_v63 = vsel %vm9985_vm8, %v2193_v52, %v2194_v6  ;;  %vm1253_vm8 = vmand %vm7695_vm6, %vm9990_vm4  ;;  %vm9994_vm4 = vcmp.ge.s32.totalorder %v7187_v28, 1 }
 0x1d5   : > { %9986 = vst [vmem:[#allocation37_spill] sm:$0xff] %v7709_v63  ;;  %v1061_v49 = vmax.f32 %v967_v46, 0.0  ;;  %vm1130_vm11 = vcmp.le.s32.totalorder %v1090_v62, 32 }
 0x1d6   : > { %v969_v60 = vpop.f32.mrf.mxu0  ;;  %v7712_v0 = vsel %vm9987_vm7, %v1631_v21, %v1635_v8  ;;  %vm1112_vm7 = vcmp.ge.s32.totalorder %v1090_v62, 1  ;;  %v9995_v62 = vmov 0 }
 0x1d7   : > { %9988 = vst [vmem:[#allocation38_spill] sm:$0xff] %v7712_v0  ;;  %v1414_v9 = vsel %vm7695_vm6, %v1061_v49, 0.0  ;;  %v7719_v41 = vpack.c.bf16 %v1061_v49, %v1060_v56  ;;  %v970_v20 = vadd.f32 %v7685_v53, %v969_v60  ;;  %5945 = vmatprep.mubr.bf16.mxu1 %v7712_v0  ;;  %6134 = vmatmul.mubr.bf16.gmra.mxu0 %v7712_v0  ;;  %vm7729_vm12 = vmand %vm1112_vm7, %vm1130_vm11  ;;  %v9991_v0 = vmov 0 }
 0x1d8   : > { %v1454_v46 = vpack.c.bf16 %v1414_v9, %v1413_v44  ;;  %v5880_v8 = vpop.f32.mrf.mxu0  ;;  %v9992_v0 = vsel %vm7729_vm12, 4294967295, %v9991_v0  ;;  %vm9998_vm11 = vcmask 1046528   ;;  %vm10000_vm7 = vsmask.f32 7424 }
 0x1d9   : > { %9989 = vst [vmem:[#allocation39_spill] sm:$0xff] %v7719_v41  ;;  %v1062_v58 = vmax.f32 %v970_v20, 0.0  ;;  %9993 = vst [vmem:[#allocation40_spill] sm:$0xff] %v9992_v0 }
 0x1da   : > { %v1640_v6 = vshll.u32 %v1454_v46, 16  ;;  %v974_v52 = vpop.f32.mrf.mxu0  ;;  %v1638_v41 = vshrl.u32 %v1454_v46, 16  ;;  %v2196_v8 = vrot.slane %v1454_v46, 1 }
 0x1db   : > { %v1415_v56 = vsel %vm1253_vm8, %v1062_v58, 0.0  ;;  %v975_v32 = vadd.f32 %v7685_v53, %v974_v52  ;;  %vm7738_vm8 = vmand %vm7729_vm12, %vm9994_vm4  ;;  %vm10003_vm4 = vcmp.le.s32.totalorder %v7202_v35, 16 }
 0x1dc   : > { %v1455_v21 = vpack.c.bf16 %v1415_v56, %v1415_v56  ;;  %v5883_v49 = vpop.f32.mrf.mxu0  ;;  %v1642_v60 = vrot.slane %v1640_v6, 1  ;;  %v9996_v62 = vsel %vm7738_vm8, 4294967295, %v9995_v62 }
 0x1dd   : > { %v1063_v20 = vmax.f32 %v975_v32, 0.0  ;;  %9997 = vst [vmem:[#allocation41_spill] sm:$0xff] %v9996_v62 }
 0x1de   : > { %v1645_v44 = vshll.u32 %v1455_v21, 16  ;;  %v2197_v9 = vrot.slane %v1455_v21, 1  ;;  %v977_v63 = vpop.f32.mrf.mxu0  ;;  %v1643_v6 = vor.u32 %v1642_v60, %v1638_v41 }
 0x1df   : > { %v978_v18 = vadd.f32 %v7685_v53, %v977_v63  ;;  %v1091_v63 = vadd.s32 15, %v7180_v26  ;;  %v1416_v32 = vsel %vm7738_vm8, %v1063_v20, 0.0 }
 0x1e0   : > { %v1647_v27 = vrot.slane %v1645_v44, 1  ;;  %v5884_v58 = vpop.f32.mrf.mxu0  ;;  %v7743_v52 = vsel %vm9998_vm11, %v2196_v8, %v2197_v9  ;;  %vm1256_vm11 = vmand %vm7729_vm12, %vm10003_vm4  ;;  %vm10007_vm4 = vcmp.ge.s32.totalorder %v7187_v28, 1 }
 0x1e1   : > { %9999 = vst [vmem:[#allocation42_spill] sm:$0xff] %v7743_v52  ;;  %v1064_v56 = vmax.f32 %v978_v18, 0.0  ;;  %vm1131_vm8 = vcmp.le.s32.totalorder %v1091_v63, 32 }
 0x1e2   : > { %v982_v21 = vpop.f32.mrf.mxu0  ;;  %v7746_v46 = vsel %vm10000_vm7, %v1643_v6, %v1647_v27  ;;  %vm1113_vm7 = vcmp.ge.s32.totalorder %v1091_v63, 1  ;;  %v10008_v63 = vmov 0 }
 0x1e3   : > { %10001 = vst [vmem:[#allocation43_spill] sm:$0xff] %v7746_v46  ;;  %v1417_v49 = vsel %vm7729_vm12, %v1064_v56, 0.0  ;;  %v7753_v44 = vpack.c.bf16 %v1064_v56, %v1063_v20  ;;  %v983_v41 = vadd.f32 %v7685_v53, %v982_v21  ;;  %5946 = vmatmul.mubr.bf16.gmra.mxu1 %v7746_v46  ;;  %6137 = vmatprep.mubr.bf16.mxu0 %v7746_v46  ;;  %vm7763_vm6 = vmand %vm1113_vm7, %vm1131_vm8  ;;  %v10004_v46 = vmov 0 }
 0x1e4   : > { %v1456_v18 = vpack.c.bf16 %v1417_v49, %v1416_v32  ;;  %v5887_v27 = vpop.f32.mrf.mxu0  ;;  %v10005_v46 = vsel %vm7763_vm6, 4294967295, %v10004_v46  ;;  %vm10010_vm8 = vcmask 1046528   ;;  %vm10012_vm7 = vsmask.f32 7424 }
 0x1e5   : > { %10002 = vst [vmem:[#allocation44_spill] sm:$0xff] %v7753_v44  ;;  %v1065_v60 = vmax.f32 %v983_v41, 0.0  ;;  %10006 = vst [vmem:[#allocation45_spill] sm:$0xff] %v10005_v46 }
 0x1e6   : > { %v1652_v9 = vshll.u32 %v1456_v18, 16  ;;  %v985_v8 = vpop.f32.mrf.mxu0  ;;  %v1650_v44 = vshrl.u32 %v1456_v18, 16  ;;  %v2199_v27 = vrot.slane %v1456_v18, 1 }
 0x1e7   : > { %v1418_v20 = vsel %vm1256_vm11, %v1065_v60, 0.0  ;;  %v986_v58 = vadd.f32 %v7685_v53, %v985_v8  ;;  %vm7772_vm11 = vmand %vm7763_vm6, %vm10007_vm4  ;;  %v1092_v8 = vadd.s32 16, %v7180_v26  ;;  %vm10015_vm4 = vcmp.le.s32.totalorder %v7202_v35, 16 }
 0x1e8   : > { %v1457_v6 = vpack.c.bf16 %v1418_v20, %v1418_v20  ;;  %v5888_v56 = vpop.f32.mrf.mxu0  ;;  %v1654_v21 = vrot.slane %v1652_v9, 1  ;;  %v10009_v63 = vsel %vm7772_vm11, 4294967295, %v10008_v63 }
 0x1e9   : > { %v1066_v41 = vmax.f32 %v986_v58, 0.0 }
 0x1ea   : > { %v1657_v32 = vshll.u32 %v1457_v6, 16  ;;  %v2200_v49 = vrot.slane %v1457_v6, 1  ;;  %v990_v52 = vpop.f32.mrf.mxu0  ;;  %v1655_v9 = vor.u32 %v1654_v21, %v1650_v44 }
 0x1eb   : > { %v991_v0 = vadd.f32 %v7685_v53, %v990_v52  ;;  %v1419_v6 = vsel %vm7772_vm11, %v1066_v41, 0.0  ;;  %vm1132_vm11 = vcmp.le.s32.totalorder %v1092_v8, 32 }
 0x1ec   : > { %v1659_v62 = vrot.slane %v1657_v32, 1  ;;  %v5891_v60 = vpop.f32.mrf.mxu0  ;;  %v7778_v20 = vsel %vm10010_vm8, %v2199_v27, %v2200_v49  ;;  %vm1259_vm8 = vmand %vm7763_vm6, %vm10015_vm4  ;;  %vm10018_vm4 = vcmp.ge.s32.totalorder %v7187_v28, 1 }
 0x1ed   : > { %10011 = vst [vmem:[#allocation46_spill] sm:$0xff] %v7778_v20  ;;  %v1067_v18 = vmax.f32 %v991_v0, 0.0 }
 0x1ee   : > { %v993_v58 = vpop.f32.mrf.mxu0  ;;  %v7781_v52 = vsel %vm10012_vm7, %v1655_v9, %v1659_v62  ;;  %vm1114_vm7 = vcmp.ge.s32.totalorder %v1092_v8, 1  ;;  %v6576_v9 = vld [vmem:[%s9769_s3 + $0x1f0] sm:$0xff]  }
 0x1ef   : > { %10013 = vst [vmem:[#allocation47_spill] sm:$0xff] %v7781_v52  ;;  %v1420_v56 = vsel %vm7763_vm6, %v1067_v18, 0.0  ;;  %v7787_v32 = vpack.c.bf16 %v1067_v18, %v1066_v41  ;;  %v994_v44 = vadd.f32 %v7685_v53, %v993_v58  ;;  %5949 = vmatprep.mubr.bf16.mxu1 %v7781_v52  ;;  %6138 = vmatmul.mubr.bf16.gmra.mxu0 %v7781_v52  ;;  %vm7797_vm12 = vmand %vm1114_vm7, %vm1132_vm11  ;;  %vm10021_vm11 = vcmask 1046528  }
 0x1f0   : > { %v1458_v21 = vpack.c.bf16 %v1420_v56, %v1419_v6  ;;  %v5892_v0 = vpop.f32.mrf.mxu0  ;;  %vm7805_vm6 = vmand %vm7797_vm12, %vm10018_vm4  ;;  %vm10022_vm7 = vsmask.f32 7424  ;;  %vm10024_vm4 = vcmp.le.s32.totalorder %v7202_v35, 16 }
 0x1f1   : > { %10014 = vst [vmem:[#allocation48_spill] sm:$0xff] %v7787_v32  ;;  %v1068_v62 = vmax.f32 %v994_v44, 0.0 }
 0x1f2   : > { %v1664_v49 = vshll.u32 %v1458_v21, 16  ;;  %v998_v27 = vpop.f32.mrf.mxu0  ;;  %v1662_v0 = vshrl.u32 %v1458_v21, 16 }
 0x1f3   : > { %v1421_v41 = vsel %vm1259_vm8, %v1068_v62, 0.0  ;;  %v999_v60 = vadd.f32 %v7685_v53, %v998_v27  ;;  %v2202_v62 = vrot.slane %v1458_v21, 1  ;;  %vm5170_vm8 = vmpackc.low %vm7196_vm3, %vm7209_vm5 }
 0x1f4   : > { %v1459_v18 = vpack.c.bf16 %v1421_v41, %v1421_v41  ;;  %v5895_v58 = vpop.f32.mrf.mxu0  ;;  %v1666_v6 = vrot.slane %v1664_v49, 1  ;;  %vm1262_vm3 = vmand %vm7797_vm12, %vm10024_vm4 }
 0x1f5   : > { %v1069_v56 = vmax.f32 %v999_v60, 0.0  ;;  %vm9839_vm5 = vmpackc.low %vm7230_vm10, %vm7239_vm13 }
 0x1f6   : > { %v1669_v52 = vshll.u32 %v1459_v18, 16  ;;  %v2203_v20 = vrot.slane %v1459_v18, 1  ;;  %v1001_v44 = vpop.f32.mrf.mxu0  ;;  %v1667_v58 = vor.u32 %v1666_v6, %v1662_v0 }
 0x1f7   : > { %v1002_v27 = vadd.f32 %v7685_v53, %v1001_v44  ;;  %v1422_v60 = vsel %vm7805_vm6, %v1069_v56, 0.0 }
 0x1f8   : > { %v1671_v32 = vrot.slane %v1669_v52, 1  ;;  %v5896_v41 = vpop.f32.mrf.mxu0  ;;  %v7811_v49 = vsel %vm10021_vm11, %v2202_v62, %v2203_v20  ;;  %vm7850_vm11 = vmpackc.low %vm7263_vm1, %vm7272_vm2 }
 0x1f9   : > { %v1070_v18 = vmax.f32 %v1002_v27, 0.0  ;;  %vm10027_vm1 = vmmov %vm10022_vm7 }
 0x1fa   : > { %v1006_v46 = vpop.f32.mrf.mxu0  ;;  %v7820_v21 = vsel %vm10022_vm7, %v1667_v58, %v1671_v32  ;;  %v6543_v58 = vld [vmem:[%s9769_s3 + $0xb0] sm:$0xff]   ;;  %vm7884_vm2 = vmpackc.low %vm7296_vm14, %vm7308_vm15  ;;  %vm10033_vm14 = vnez %v9903_v51  ;;  %vm10034_vm15 = vnez %v9901_v33  ;;  %vm10038_vm7 = vnez %v9909_v25  ;;  %v6552_v33 = vld [vmem:[%s9769_s3 + $0x228] sm:$0xff]  }
 0x1fb   : > { %10023 = vst [vmem:[#allocation49_spill] sm:$0xff] %v7820_v21  ;;  %v1423_v52 = vsel %vm7797_vm12, %v1070_v18, 0.0  ;;  %v7824_v6 = vpack.c.bf16 %v1070_v18, %v1069_v56  ;;  %v1007_v20 = vadd.f32 %v7685_v53, %v1006_v46  ;;  %5950 = vmatmul.mubr.bf16.gmra.mxu1 %v7820_v21  ;;  %6141 = vmatprep.mubr.bf16.mxu0 %v7820_v21  ;;  %v6548_v51 = vld [vmem:[%s9769_s3 + $0x90] sm:$0xff]   ;;  %v6550_v25 = vld [vmem:[%s9769_s3 + $0x88] sm:$0xff]  }
 0x1fc   : > { %v7829_v44 = vpack.c.bf16 %v1423_v52, %v1422_v60  ;;  %5969 = vmatprep.mubr.msk.bf16.mxu1 %vm5170_vm8, %v7219_v47  ;;  %v5899_v34 = vpop.f32.mrf.mxu0  ;;  %vm7892_vm8 = vmpackc.low %vm7336_vm9, %vm7345_vm0  ;;  %vm10037_vm0 = vnez %v9912_v48  ;;  %v6554_v48 = vld [vmem:[%s9769_s3 + $0x220] sm:$0xff]  }
 0x1fd   : > { %v1071_v40 = vmax.f32 %v1007_v20, 0.0  ;;  %v6545_v20 = vld [vmem:[%s9769_s3 + $0xa8] sm:$0xff]   ;;  %vm7921_vm9 = vmpackc.low %vm10034_vm15, %vm10033_vm14  ;;  %vm10045_vm15 = vnez %v9932_v11  ;;  %v6557_v11 = vld [vmem:[%s9769_s3 + $0x210] sm:$0xff]  }
 0x1fe   : > { %v2738_v32 = vshrl.u32 %v7829_v44, 16  ;;  %v2740_v56 = vshll.u32 %v7829_v44, 16  ;;  %v7838_v46 = vpop.f32.mrf.mxu0  ;;  %v10036_v61 = vsel %vm7921_vm9, 4294967295, %v10035_v61  ;;  %vm7929_vm4 = vmpackc.low %vm10038_vm7, %vm10037_vm0  ;;  %vm10046_vm0 = vnez %v9929_v42  ;;  %v7989_v42 = vld [vmem:[%s9769_s3 + $0xf8] sm:$0xff]  }
 0x1ff   : > { %v1424_v0 = vsel %vm1262_vm3, %v1071_v40, 0.0  ;;  %vm10041_vm3 = vnez %v9922_v57  ;;  %vm7970_vm7 = vmpackc.low %vm10046_vm0, %vm10045_vm15  ;;  %v6553_v57 = vld [vmem:[%s9769_s3 + $0x80] sm:$0xff]   ;;  %vm10053_vm0 = vnez %v9952_v38  ;;  %v10098_v38 = vld [vmem:[#allocation17_spill] sm:$0xff] }
 0x200   : > { %v2742_v62 = vrot.slane %v2740_v56, 1  ;;  %v7844_v27 = vpack.c.bf16 %v1424_v0, %v1424_v0  ;;  %v5900_v41 = vpop.f32.mrf.mxu0  ;;  %v10031_v56 = vmov 0  ;;  %v10039_v0 = vmov 0 }
 0x201   : > { %v10032_v56 = vsel %vm7892_vm8, 4294967295, %v10031_v56  ;;  %v10040_v0 = vsel %vm7929_vm4, 4294967295, %v10039_v0  ;;  %v1093_v41 = vadd.s32 17, %v7180_v26  ;;  %v10055_v26 = vmov 0 }
 0x202   : > { %v2745_v60 = vshll.u32 %v7844_v27, 16  ;;  %v2743_v18 = vor.u32 %v2742_v62, %v2738_v32  ;;  %v7858_v52 = vpop.f32.mrf.mxu0  ;;  %v10047_v62 = vmov 0 }
 0x203   : > { %5970 = vmatmul.mubr.msk.bf16.vlgmr.msra.gmra.mxu1 %vm9839_vm5, %v7252_v15  ;;  %v10048_v62 = vsel %vm7970_vm7, 4294967295, %v10047_v62  ;;  %vm10054_vm5 = vnez %v9949_v39  ;;  %v1010_v39 = vadd.f32 %v7685_v53, %v7838_v46 }
 0x204   : > { %v2747_v31 = vrot.slane %v2745_v60, 1  ;;  %6002 = vmatpush3.bf16.msra.mxu1 %v7470_v13  ;;  %5973 = vmatprep.mubr.msk.bf16.mxu1 %vm7850_vm11, %v7285_v55  ;;  %v5903_v43 = vpop.f32.mrf.mxu0  ;;  %v1015_v60 = vadd.f32 %v7685_v53, %v7858_v52 }
 0x205   : > { %6003 = vmatprep.subr.bf16.mxu1 %v6543_v58  ;;  %v1072_v46 = vmax.f32 %v1010_v39, 0.0 }
 0x206   : > { %v7874_v34 = vsel %vm10027_vm1, %v2743_v18, %v2747_v31  ;;  %v1017_v40 = vpop.f32.mrf.mxu0  ;;  %vm10042_vm1 = vnez %v9919_v36  ;;  %v6555_v36 = vld [vmem:[%s9769_s3 + $0x218] sm:$0xff]   ;;  %v6560_v31 = vld [vmem:[%s9769_s3 + $0x200] sm:$0xff]   ;;  %v1073_v52 = vmax.f32 %v1015_v60, 0.0 }
 0x207   : > { %10028 = vst [vmem:[#allocation50_spill] sm:$0xff] %v7874_v34  ;;  %6142 = vmatmul.mubr.bf16.gmra.mxu0 %v7874_v34  ;;  %vm7962_vm14 = vmpackc.low %vm10042_vm1, %vm10041_vm3  ;;  %vm10049_vm3 = vnez %v9942_v24  ;;  %vm10050_vm1 = vnez %v9939_v12  ;;  %v1018_v24 = vadd.f32 %v7685_v53, %v1017_v40  ;;  %v6558_v12 = vld [vmem:[%s9769_s3 + $0x208] sm:$0xff]  }
 0x208   : > { %6209 = vmatprep.mubr.msk.bf16.mxu0 %vm7850_vm11, %v7285_v55  ;;  %6004 = vmatpush3.bf16.msra.mxu1 %v6543_v58  ;;  %v5904_v32 = vpop.f32.mrf.mxu0  ;;  %vm8005_vm15 = vmpackc.low %vm10050_vm1, %vm10049_vm3  ;;  %v10051_v58 = vmov 0  ;;  %vm1115_vm3 = vcmp.ge.s32.totalorder %v1093_v41, 1  ;;  %vm1133_vm1 = vcmp.le.s32.totalorder %v1093_v41, 32  ;;  %v10071_v40 = vld [vmem:[#allocation36_spill] sm:$0xff] }
 0x209   : > { %6005 = vmatprep.subr.bf16.mxu1 %v6545_v20  ;;  %v10052_v58 = vsel %vm8005_vm15, 4294967295, %v10051_v58  ;;  %v1074_v18 = vmax.f32 %v1018_v24, 0.0  ;;  %v10073_v32 = vld [vmem:[#allocation35_spill] sm:$0xff] }
 0x20b   : > { %5974 = vmatmul.mubr.msk.bf16.gmra.mxu1 %vm7884_vm2, %v7323_v30 }
 0x20c   : > { %5977 = vmatprep.mubr.msk.bf16.mxu1 %vm7892_vm8, %v7360_v10  ;;  %6006 = vmatpush3.bf16.msra.mxu1 %v6545_v20 }
 0x20d   : > { %6007 = vmatprep.subr.bf16.mxu1 %v6546_v17 }
 0x20f   : > { %6210 = vmatmul.mubr.msk.bf16.vlgmr.msra.gmra.mxu0 %vm7884_vm2, %v7323_v30 }
 0x210   : > { %6213 = vmatprep.mubr.msk.bf16.mxu0 %vm7892_vm8, %v7360_v10  ;;  %6008 = vmatpush3.bf16.msra.mxu1 %v6546_v17 }
 0x211   : > { %6009 = vmatprep.subr.bf16.mxu1 %v6547_v5  ;;  %6290 = vmatpush3.bf16.msra.mxu0 %v7589_v1  ;;  %v10043_v1 = vmov 0 }
 0x212   : > { %6291 = vmatprep.subr.bf16.mxu0 %v6551_v50  ;;  %v10044_v1 = vsel %vm7962_vm14, 4294967295, %v10043_v1 }
 0x213   : > { %5978 = vmatmul.mubr.msk.bf16.gmra.mxu1 %vm7921_vm9, %v7409_v2 }
 0x214   : > { %5981 = vmatprep.mubr.msk.bf16.mxu1 %vm7929_vm4, %v7458_v7  ;;  %6010 = vmatpush3.bf16.msra.mxu1 %v6547_v5 }
 0x215   : > { %6011 = vmatprep.subr.bf16.mxu1 %v6548_v51  ;;  %6292 = vmatpush3.bf16.msra.mxu0 %v6551_v50  ;;  %v10077_v50 = vld [vmem:[#allocation41_spill] sm:$0xff] }
 0x216   : > { %6293 = vmatprep.subr.bf16.mxu0 %v6552_v33 }
 0x217   : > { %6214 = vmatmul.mubr.msk.bf16.gmra.mxu0 %vm7921_vm9, %v7409_v2  ;;  %vm10064_vm9 = vnez %v9972_v45  ;;  %v3011_v45 = vrot.slane %v7844_v27, 1  ;;  %v10079_v27 = vld [vmem:[#allocation40_spill] sm:$0xff] }
 0x218   : > { %6217 = vmatprep.mubr.msk.bf16.mxu0 %vm7929_vm4, %v7458_v7  ;;  %6012 = vmatpush3.bf16.msra.mxu1 %v6548_v51  ;;  %vm8013_vm4 = vmpackc.low %vm10054_vm5, %vm10053_vm0  ;;  %vm10059_vm0 = vcmp.le.s32.totalorder %v7202_v35, 16  ;;  %v10081_v51 = vmov 0 }
 0x219   : > { %6013 = vmatprep.subr.bf16.mxu1 %v6550_v25  ;;  %6294 = vmatpush3.bf16.msra.mxu0 %v6552_v33  ;;  %v10056_v26 = vsel %vm8013_vm4, 4294967295, %v10055_v26  ;;  %vm8030_vm5 = vmand %vm1115_vm3, %vm1133_vm1  ;;  %vm10060_vm3 = vnez %v9962_v14  ;;  %vm10061_vm1 = vnez %v9959_v19  ;;  %v3010_v33 = vrot.slane %v7829_v44, 1  ;;  %v10088_v44 = vld [vmem:[#allocation45_spill] sm:$0xff] }
 0x21a   : > { %6295 = vmatprep.subr.bf16.mxu0 %v6554_v48  ;;  %v6564_v19 = vld [vmem:[%s9769_s3 + $0xd0] sm:$0xff]  }
 0x21b   : > { %5982 = vmatmul.mubr.msk.bf16.gmra.mxu1 %vm7962_vm14, %v7504_v16 }
 0x21c   : > { %5985 = vmatprep.mubr.msk.bf16.mxu1 %vm7970_vm7, %v7538_v37  ;;  %6014 = vmatpush3.bf16.msra.mxu1 %v6550_v25 }
 0x21d   : > { %6015 = vmatprep.subr.bf16.mxu1 %v6553_v57  ;;  %6296 = vmatpush3.bf16.msra.mxu0 %v6554_v48  ;;  %v10083_v48 = vld [vmem:[#allocation39_spill] sm:$0xff] }
 0x21e   : > { %6297 = vmatprep.subr.bf16.mxu0 %v6555_v36 }
 0x21f   : > { %6218 = vmatmul.mubr.msk.bf16.gmra.mxu0 %vm7962_vm14, %v7504_v16  ;;  %vm8053_vm14 = vmpackc.low %vm10061_vm1, %vm10060_vm3  ;;  %vm10078_vm1 = vnez %v10077_v50  ;;  %v6565_v50 = vld [vmem:[%s9769_s3 + $0xc8] sm:$0xff]  }
 0x220   : > { %6221 = vmatprep.mubr.msk.bf16.mxu0 %vm7970_vm7, %v7538_v37  ;;  %6016 = vmatpush3.bf16.msra.mxu1 %v6553_v57  ;;  %vm1265_vm7 = vmand %vm8030_vm5, %vm10059_vm0  ;;  %vm10065_vm0 = vnez %v9969_v59  ;;  %v1426_v59 = vsel %vm8030_vm5, %v1073_v52, 0.0 }
 0x221   : > { %6298 = vmatpush3.bf16.msra.mxu0 %v6555_v36  ;;  %6049 = vmatprep.subr.bf16.mxu1 %v7989_v42  ;;  %vm8061_vm8 = vmpackc.low %vm10065_vm0, %vm10064_vm9  ;;  %v1427_v43 = vsel %vm1265_vm7, %v1074_v18, 0.0  ;;  %vm10072_vm9 = vnez %v10071_v40  ;;  %vm10080_vm0 = vnez %v10079_v27  ;;  %v6561_v40 = vld [vmem:[%s9769_s3 + $0xe8] sm:$0xff]   ;;  %v8187_v27 = vpop.f32.mrf.mxu1 }
 0x222   : > { %6299 = vmatprep.subr.bf16.mxu0 %v6557_v11 }
 0x223   : > { %5986 = vmatmul.mubr.msk.bf16.gmra.mxu1 %vm8005_vm15, %v7572_v22 }
 0x224   : > { %5989 = vmatprep.mubr.msk.bf16.mxu1 %vm8013_vm4, %v7612_v23 }
 0x225   : > { %6300 = vmatpush3.bf16.msra.mxu0 %v6557_v11  ;;  %v10085_v11 = vld [vmem:[#allocation44_spill] sm:$0xff] }
 0x226   : > { %6301 = vmatprep.subr.bf16.mxu0 %v6558_v12 }
 0x227   : > { %6222 = vmatmul.mubr.msk.bf16.gmra.mxu0 %vm8005_vm15, %v7572_v22  ;;  %vm8102_vm15 = vmpackc.low %vm10080_vm0, %vm10078_vm1  ;;  %vm10087_vm1 = vnez %v10009_v63  ;;  %vm10089_vm0 = vnez %v10088_v44  ;;  %v10104_v44 = vld [vmem:[#allocation29_spill] sm:$0xff] }
 0x228   : > { %6225 = vmatprep.mubr.msk.bf16.mxu0 %vm8013_vm4, %v7612_v23  ;;  %vm10068_vm4 = vcmp.ge.s32.totalorder %v7187_v28, 1  ;;  %v1463_v28 = vpack.c.bf16 %v1427_v43, %v1427_v43  ;;  %v10082_v51 = vsel %vm8102_vm15, 4294967295, %v10081_v51 }
 0x229   : > { %6302 = vmatpush3.bf16.msra.mxu0 %v6558_v12  ;;  %vm8069_vm3 = vmand %vm8030_vm5, %vm10068_vm4  ;;  %vm10074_vm4 = vnez %v10073_v32  ;;  %v10100_v32 = vld [vmem:[#allocation21_spill] sm:$0xff] }
 0x22a   : > { %6303 = vmatprep.subr.bf16.mxu0 %v6560_v31  ;;  %v1425_v14 = vsel %vm8069_vm3, %v1072_v46, 0.0  ;;  %vm8094_vm7 = vmpackc.low %vm10074_vm4, %vm10072_vm9  ;;  %v3804_v5 = vrot.slane %v1463_v28, 1  ;;  %vm10084_vm9 = vcmask 1046528   ;;  %v3538_v41 = vshll.u32 %v1463_v28, 16 }
 0x22b   : > { %5990 = vmatmul.mubr.msk.bf16.gmra.mxu1 %vm8053_vm14, %v7646_v3  ;;  %v1462_v20 = vpack.c.bf16 %v1426_v59, %v1425_v14  ;;  %v8111_v57 = vsel %vm10084_vm9, %v3010_v33, %v3011_v45  ;;  %vm10086_vm4 = vmmov %vm10084_vm9  ;;  %v10093_v14 = vld [vmem:[#allocation13_spill] sm:$0xff]  ;;  %v5432_v28 = vpack.c.bf16 %v1073_v52, %v1072_v46  ;;  %v10096_v45 = vld [vmem:[#allocation14_spill] sm:$0xff] }
 0x22c   : > { %5993 = vmatprep.mubr.msk.bf16.mxu1 %vm8061_vm8, %v7680_v29  ;;  %vm8129_vm9 = vmpackc.low %vm10089_vm0, %vm10087_vm1  ;;  %v3540_v18 = vrot.slane %v3538_v41, 1  ;;  %v6559_v59 = vld [vmem:[%s9769_s3 + $0xf0] sm:$0xff]   ;;  %v6562_v46 = vld [vmem:[%s9769_s3 + $0xe0] sm:$0xff]   ;;  %v8194_v41 = vpop.f32.mrf.mxu1  ;;  %vm10120_vm1 = vnez %v10052_v58  ;;  %vm10124_vm0 = vnez %v10056_v26 }
 0x22d   : > { %6304 = vmatpush3.bf16.msra.mxu0 %v6560_v31  ;;  %v3533_v25 = vshll.u32 %v1462_v20, 16  ;;  %v3803_v36 = vrot.slane %v1462_v20, 1  ;;  %v3531_v12 = vshrl.u32 %v1462_v20, 16  ;;  %v10092_v31 = vld [vmem:[#allocation48_spill] sm:$0xff]  ;;  %v10097_v20 = vld [vmem:[#allocation15_spill] sm:$0xff] }
 0x22e   : > { %v10099_v52 = vld [vmem:[#allocation19_spill] sm:$0xff] }
 0x22f   : > { %6226 = vmatmul.mubr.msk.bf16.gmra.mxu0 %vm8053_vm14, %v7646_v3  ;;  %v8117_v24 = vsel %vm10086_vm4, %v3803_v36, %v3804_v5  ;;  %v3535_v39 = vrot.slane %v3533_v25, 1  ;;  %vm5311_vm4 = vmpackc.low %vm7797_vm12, %vm7805_vm6  ;;  %v10101_v5 = vld [vmem:[#allocation23_spill] sm:$0xff]  ;;  %v10102_v25 = vld [vmem:[#allocation25_spill] sm:$0xff]  ;;  %vm4168_vm12 = vsmask.f32 3328 }
 0x230   : > { %6229 = vmatprep.mubr.msk.bf16.mxu0 %vm8061_vm8, %v7680_v29  ;;  %v6566_v33 = vld [vmem:[%s9769_s3 + $0xc0] sm:$0xff]   ;;  %vm4169_vm6 = vsmask.f32 7440 }
 0x231   : > { %v3536_v43 = vor.u32 %v3535_v39, %v3531_v12  ;;  %v10103_v36 = vld [vmem:[#allocation27_spill] sm:$0xff]  ;;  %v6567_v12 = vld [vmem:[%s9769_s3 + $0x178] sm:$0xff]   ;;  %v8201_v39 = vpop.f32.mrf.mxu1 }
 0x233   : > { %5994 = vmatmul.mubr.msk.bf16.gmra.mxu1 %vm8094_vm7, %v10083_v48 }
 0x234   : > { %5997 = vmatprep.mubr.msk.bf16.mxu1 %vm8102_vm15, %v10085_v11 }
 0x237   : > { %6230 = vmatmul.mubr.msk.bf16.gmra.mxu0 %vm8094_vm7, %v10083_v48 }
 0x238   : > { %6233 = vmatprep.mubr.msk.bf16.mxu0 %vm8102_vm15, %v10085_v11  ;;  %vm10094_vm15 = vsmask.f32 7424 }
 0x239   : > { %v8142_v63 = vsel %vm10094_vm15, %v3536_v43, %v3540_v18  ;;  %vm5431_vm15 = vmpackc.low %vm8030_vm5, %vm8069_vm3  ;;  %v10105_v18 = vld [vmem:[#allocation31_spill] sm:$0xff]  ;;  %v8205_v43 = vpop.f32.mrf.mxu1  ;;  %vm10119_vm3 = vnez %v10048_v62 }
 0x23a   : > { %10095 = vst [vmem:[#allocation36_spill] sm:$0xff] %v8142_v63  ;;  %vm10112_vm5 = vmpackc.low %vm7230_vm10, %vm7239_vm13  ;;  %vm10113_vm10 = vnez %v10032_v56  ;;  %vm10114_vm13 = vnez %v10036_v61  ;;  %v6573_v56 = vld [vmem:[%s9769_s3 + $0x148] sm:$0xff]   ;;  %v8291_v61 = vpop.f32.mrf.mxu0 }
 0x23b   : > { %5998 = vmatmul.mubr.msk.bf16.gmra.mxu1 %vm8129_vm9, %v10092_v31  ;;  %10117 = vst [vmem:[#allocation40_spill] sm:$0xff] %v8291_v61 }
 0x23c   : > { %6017 = vmatprep.mubr.bf16.mxu1 %v10093_v14  ;;  %v8207_v14 = vpop.f32.mrf.mxu1 }
 0x23f   : > { %6234 = vmatmul.mubr.msk.bf16.gmra.mxu0 %vm8129_vm9, %v10092_v31 }
 0x240   : > { %6237 = vmatprep.mubr.msk.bf16.mxu0 %vm5311_vm4, %v7824_v6 }
 0x243   : > { %6018 = vmatmul.mubr.bf16.vlgmr.msra.gmra.mxu1 %v10096_v45 }
 0x244   : > { %6050 = vmatpush3.bf16.msra.mxu1 %v7989_v42  ;;  %6021 = vmatprep.mubr.bf16.mxu1 %v10097_v20  ;;  %v6563_v42 = vld [vmem:[%s9769_s3 + $0xd8] sm:$0xff]  }
 0x245   : > { %6051 = vmatprep.subr.bf16.mxu1 %v6559_v59 }
 0x247   : > { %6238 = vmatmul.mubr.msk.bf16.gmra.mxu0 %vm5431_vm15, %v5432_v28  ;;  %v10106_v28 = vld [vmem:[#allocation33_spill] sm:$0xff] }
 0x248   : > { %6305 = vmatprep.mubr.bf16.mxu0 %v10097_v20  ;;  %6052 = vmatpush3.bf16.msra.mxu1 %v6559_v59  ;;  %v8211_v59 = vpop.f32.mrf.mxu1 }
 0x249   : > { %6053 = vmatprep.subr.bf16.mxu1 %v6561_v40 }
 0x24b   : > { %6022 = vmatmul.mubr.bf16.gmra.mxu1 %v10098_v38 }
 0x24c   : > { %6025 = vmatprep.mubr.bf16.mxu1 %v10099_v52  ;;  %6054 = vmatpush3.bf16.msra.mxu1 %v6561_v40  ;;  %v10107_v40 = vld [vmem:[#allocation37_spill] sm:$0xff] }
 0x24d   : > { %6055 = vmatprep.subr.bf16.mxu1 %v6562_v46 }
 0x24f   : > { %6306 = vmatmul.mubr.bf16.vlgmr.msra.gmra.mxu0 %v10098_v38 }
 0x250   : > { %6309 = vmatprep.mubr.bf16.mxu0 %v10099_v52  ;;  %6056 = vmatpush3.bf16.msra.mxu1 %v6562_v46  ;;  %v8215_v46 = vpop.f32.mrf.mxu1 }
 0x251   : > { %6057 = vmatprep.subr.bf16.mxu1 %v6563_v42 }
 0x253   : > { %6026 = vmatmul.mubr.bf16.gmra.mxu1 %v10100_v32 }
 0x254   : > { %6029 = vmatprep.mubr.bf16.mxu1 %v10101_v5  ;;  %6058 = vmatpush3.bf16.msra.mxu1 %v6563_v42  ;;  %v8219_v42 = vpop.f32.mrf.mxu1 }
 0x255   : > { %6059 = vmatprep.subr.bf16.mxu1 %v6564_v19 }
 0x257   : > { %6310 = vmatmul.mubr.bf16.gmra.mxu0 %v10100_v32 }
 0x258   : > { %6313 = vmatprep.mubr.bf16.mxu0 %v10101_v5  ;;  %6060 = vmatpush3.bf16.msra.mxu1 %v6564_v19  ;;  %v10108_v19 = vld [vmem:[#allocation42_spill] sm:$0xff] }
 0x259   : > { %6061 = vmatprep.subr.bf16.mxu1 %v6565_v50 }
 0x25b   : > { %6030 = vmatmul.mubr.bf16.gmra.mxu1 %v10102_v25 }
 0x25c   : > { %6033 = vmatprep.mubr.bf16.mxu1 %v10103_v36  ;;  %6062 = vmatpush3.bf16.msra.mxu1 %v6565_v50  ;;  %v10109_v50 = vld [vmem:[#allocation46_spill] sm:$0xff] }
 0x25d   : > { %6063 = vmatprep.subr.bf16.mxu1 %v6566_v33 }
 0x25f   : > { %6314 = vmatmul.mubr.bf16.gmra.mxu0 %v10102_v25 }
 0x260   : > { %6317 = vmatprep.mubr.bf16.mxu0 %v10103_v36  ;;  %6064 = vmatpush3.bf16.msra.mxu1 %v6566_v33  ;;  %v8223_v33 = vpop.f32.mrf.mxu1 }
 0x261   : > { %6145 = vmatprep.subr.bf16.mxu1 %v6567_v12  ;;  %10110 = vst [vmem:[#allocation35_spill] sm:$0xff] %v8223_v33 }
 0x262   : > { %v8227_v63 = vpop.f32.mrf.mxu1 }
 0x263   : > { %6034 = vmatmul.mubr.bf16.gmra.mxu1 %v10104_v44  ;;  %10111 = vst [vmem:[#allocation41_spill] sm:$0xff] %v8227_v63  ;;  %v6568_v63 = vld [vmem:[%s9769_s3 + $0x170] sm:$0xff]  }
 0x264   : > { %6037 = vmatprep.mubr.bf16.mxu1 %v10105_v18  ;;  %v8236_v34 = vpop.f32.mrf.mxu1 }
 0x266   : > { %v8240_v21 = vpop.f32.mrf.mxu1 }
 0x267   : > { %6318 = vmatmul.mubr.bf16.gmra.mxu0 %v10104_v44 }
 0x268   : > { %6321 = vmatprep.mubr.bf16.mxu0 %v10105_v18  ;;  %v8245_v33 = vpop.f32.mrf.mxu1 }
 0x26a   : > { %v8256_v4 = vpop.f32.mrf.mxu1 }
 0x26b   : > { %6038 = vmatmul.mubr.bf16.gmra.mxu1 %v10106_v28 }
 0x26c   : > { %6041 = vmatprep.mubr.bf16.mxu1 %v10107_v40 }
 0x26f   : > { %6322 = vmatmul.mubr.bf16.gmra.mxu0 %v10106_v28 }
 0x270   : > { %6325 = vmatprep.mubr.bf16.mxu0 %v10107_v40 }
 0x273   : > { %6042 = vmatmul.mubr.bf16.gmra.mxu1 %v10108_v19 }
 0x274   : > { %6045 = vmatprep.mubr.bf16.mxu1 %v10109_v50 }
 0x277   : > { %6326 = vmatmul.mubr.bf16.gmra.mxu0 %v10108_v19 }
 0x278   : > { %6329 = vmatprep.mubr.bf16.mxu0 %v10109_v50 }
 0x27b   : > { %6046 = vmatmul.mubr.bf16.gmra.mxu1 %v7811_v49 }
 0x27c   : > { %6065 = vmatprep.mubr.msk.bf16.mxu1 %vm10112_vm5, %v7252_v15  ;;  %v6570_v15 = vld [vmem:[%s9769_s3 + $0x160] sm:$0xff]  }
 0x27f   : > { %6330 = vmatmul.mubr.bf16.gmra.mxu0 %v7811_v49 }
 0x280   : > { %6333 = vmatprep.mubr.bf16.mxu0 %v8111_v57 }
 0x283   : > { %6066 = vmatmul.mubr.msk.bf16.vlgmr.msra.gmra.mxu1 %vm7850_vm11, %v7285_v55  ;;  %v8262_v55 = vpop.f32.mrf.mxu1  ;;  %vm10115_vm11 = vnez %v10040_v0  ;;  %v8298_v0 = vpop.f32.mrf.mxu0 }
 0x284   : > { %6146 = vmatpush3.bf16.msra.mxu1 %v6567_v12  ;;  %6069 = vmatprep.mubr.msk.bf16.mxu1 %vm7884_vm2, %v7323_v30  ;;  %v6571_v30 = vld [vmem:[%s9769_s3 + $0x158] sm:$0xff]   ;;  %vm10116_vm2 = vnez %v10044_v1  ;;  %10118 = vst [vmem:[#allocation39_spill] sm:$0xff] %v8298_v0 }
 0x285   : > { %6147 = vmatprep.subr.bf16.mxu1 %v6568_v63  ;;  %v8273_v47 = vpop.f32.mrf.mxu1  ;;  %v6575_v1 = vld [vmem:[%s9769_s3 + $0x1f8] sm:$0xff]  }
 0x287   : > { %6334 = vmatmul.mubr.bf16.gmra.mxu0 %v8117_v24  ;;  %v8275_v13 = vpop.f32.mrf.mxu1 }
 0x288   : > { %6148 = vmatpush3.bf16.msra.mxu1 %v6568_v63  ;;  %v8311_v63 = vpop.f32.mrf.mxu0 }
 0x289   : > { %6149 = vmatprep.subr.bf16.mxu1 %v6569_v54  ;;  %10122 = vst [vmem:[#allocation45_spill] sm:$0xff] %v8311_v63 }
 0x28a   : > { %v8315_v62 = vpop.f32.mrf.mxu0 }
 0x28b   : > { %6070 = vmatmul.mubr.msk.bf16.gmra.mxu1 %vm10113_vm10, %v7360_v10  ;;  %v6572_v10 = vld [vmem:[%s9769_s3 + $0x150] sm:$0xff]   ;;  %10123 = vst [vmem:[#allocation48_spill] sm:$0xff] %v8315_v62 }
 0x28c   : > { %6073 = vmatprep.mubr.msk.bf16.mxu1 %vm10114_vm13, %v7409_v2  ;;  %6150 = vmatpush3.bf16.msra.mxu1 %v6569_v54  ;;  %v8286_v2 = vpop.f32.mrf.mxu1 }
 0x28d   : > { %6151 = vmatprep.subr.bf16.mxu1 %v6570_v15 }
 0x28e   : > { %v8293_v24 = vpop.f32.mrf.mxu1 }
 0x290   : > { %6152 = vmatpush3.bf16.msra.mxu1 %v6570_v15 }
 0x291   : > { %6153 = vmatprep.subr.bf16.mxu1 %v6571_v30 }
 0x293   : > { %6074 = vmatmul.mubr.msk.bf16.gmra.mxu1 %vm10115_vm11, %v7458_v7  ;;  %v6574_v7 = vld [vmem:[%s9769_s3 + $0x140] sm:$0xff]  }
 0x294   : > { %6077 = vmatprep.mubr.msk.bf16.mxu1 %vm10116_vm2, %v7504_v16  ;;  %6154 = vmatpush3.bf16.msra.mxu1 %v6571_v30  ;;  %v8306_v16 = vpop.f32.mrf.mxu1 }
 0x295   : > { %6155 = vmatprep.subr.bf16.mxu1 %v6572_v10  ;;  %10121 = vst [vmem:[#allocation44_spill] sm:$0xff] %v8306_v16 }
 0x296   : > { %v8313_v12 = vpop.f32.mrf.mxu1 }
 0x298   : > { %6156 = vmatpush3.bf16.msra.mxu1 %v6572_v10 }
 0x299   : > { %6157 = vmatprep.subr.bf16.mxu1 %v6573_v56 }
 0x29b   : > { %6078 = vmatmul.mubr.msk.bf16.gmra.mxu1 %vm10119_vm3, %v7538_v37  ;;  %v8317_v37 = vpop.f32.mrf.mxu1 }
 0x29c   : > { %6081 = vmatprep.mubr.msk.bf16.mxu1 %vm10120_vm1, %v7572_v22  ;;  %6158 = vmatpush3.bf16.msra.mxu1 %v6573_v56  ;;  %v8325_v22 = vpop.f32.mrf.mxu0 }
 0x29d   : > { %6159 = vmatprep.subr.bf16.mxu1 %v6574_v7  ;;  %10125 = vst [vmem:[#allocation13_spill] sm:$0xff] %v8325_v22  ;;  %v8327_v58 = vpop.f32.mrf.mxu1 }
 0x29e   : > { %v8329_v54 = vpop.f32.mrf.mxu0 }
 0x29f   : > { %10126 = vst [vmem:[#allocation14_spill] sm:$0xff] %v8329_v54  ;;  %v8331_v15 = vpop.f32.mrf.mxu1 }
 0x2a0   : > { %6160 = vmatpush3.bf16.msra.mxu1 %v6574_v7  ;;  %10127 = vst [vmem:[#allocation15_spill] sm:$0xff] %v8331_v15 }
 0x2a1   : > { %6241 = vmatprep.subr.bf16.mxu1 %v6575_v1 }
 0x2a3   : > { %6082 = vmatmul.mubr.msk.bf16.gmra.mxu1 %vm10124_vm0, %v7612_v23  ;;  %v8339_v23 = vpop.f32.mrf.mxu0  ;;  %v8341_v26 = vpop.f32.mrf.mxu1 }
 0x2a4   : > { %6085 = vmatprep.mubr.msk.bf16.mxu1 %vm8053_vm14, %v7646_v3  ;;  %10128 = vst [vmem:[#allocation17_spill] sm:$0xff] %v8339_v23  ;;  %vm10131_vm14 = vnez %v10082_v51 }
 0x2a5   : > { %v8343_v3 = vpop.f32.mrf.mxu0  ;;  %v8345_v53 = vpop.f32.mrf.mxu1 }
 0x2a6   : > { %10129 = vst [vmem:[#allocation19_spill] sm:$0xff] %v8343_v3 }
 0x2a7   : > { %v8347_v30 = vpop.f32.mrf.mxu0 }
 0x2a8   : > { %10130 = vst [vmem:[#allocation21_spill] sm:$0xff] %v8347_v30 }
 0x2a9   : > { %v8357_v35 = vpop.f32.mrf.mxu0 }
 0x2aa   : > { %10132 = vst [vmem:[#allocation23_spill] sm:$0xff] %v8357_v35 }
 0x2ab   : > { %6086 = vmatmul.mubr.msk.bf16.gmra.mxu1 %vm8061_vm8, %v7680_v29  ;;  %v8355_v29 = vpop.f32.mrf.mxu1  ;;  %vm8881_vm8 = vmor %vm4168_vm12, %vm4169_vm6 }
 0x2ac   : > { %6089 = vmatprep.mubr.msk.bf16.mxu1 %vm8094_vm7, %v10083_v48  ;;  %v8361_v48 = vpop.f32.mrf.mxu0 }
 0x2ad   : > { %v8359_v17 = vpop.f32.mrf.mxu1  ;;  %10133 = vst [vmem:[#allocation25_spill] sm:$0xff] %v8361_v48 }
 0x2b3   : > { %6090 = vmatmul.mubr.msk.bf16.gmra.mxu1 %vm10131_vm14, %v10085_v11  ;;  %v8374_v11 = vpop.f32.mrf.mxu0 }
 0x2b4   : > { %6093 = vmatprep.mubr.msk.bf16.mxu1 %vm8129_vm9, %v10092_v31  ;;  %10134 = vst [vmem:[#allocation27_spill] sm:$0xff] %v8374_v11 }
 0x2b5   : > { %v8378_v31 = vpop.f32.mrf.mxu0 }
 0x2b6   : > { %10135 = vst [vmem:[#allocation29_spill] sm:$0xff] %v8378_v31 }
 0x2b7   : > { %v8389_v8 = vpop.f32.mrf.mxu0 }
 0x2b8   : > { %10136 = vst [vmem:[#allocation31_spill] sm:$0xff] %v8389_v8 }
 0x2b9   : > { %v8398_v48 = vpop.f32.mrf.mxu0 }
 0x2ba   : > { %10137 = vst [vmem:[#allocation33_spill] sm:$0xff] %v8398_v48 }
 0x2bb   : > { %v8363_v10 = vpop.f32.mrf.mxu1  ;;  %6094 = vmatmul.mubr.msk.bf16.gmra.mxu1 %vm5311_vm4, %v7824_v6 }
 0x2bc   : > { %6161 = vmatprep.mubr.bf16.mxu1 %v10096_v45  ;;  %v6577_v45 = vld [vmem:[%s9769_s3 + $0x1e8] sm:$0xff]  }
 0x2bd   : > { %v8372_v51 = vpop.f32.mrf.mxu1 }
 0x2bf   : > { %v8376_v60 = vpop.f32.mrf.mxu1 }
 0x2c1   : > { %v8380_v56 = vpop.f32.mrf.mxu1 }
 0x2c3   : > { %v8385_v7 = vpop.f32.mrf.mxu1  ;;  %6162 = vmatmul.mubr.bf16.vlgmr.msra.gmra.mxu1 %v10097_v20  ;;  %v6578_v20 = vld [vmem:[%s9769_s3 + $0x1e0] sm:$0xff]  }
 0x2c4   : > { %6242 = vmatpush3.bf16.msra.mxu1 %v6575_v1  ;;  %6165 = vmatprep.mubr.bf16.mxu1 %v10098_v38  ;;  %v8409_v1 = vpop.f32.mrf.mxu0 }
 0x2c5   : > { %v8391_v6 = vpop.f32.mrf.mxu1  ;;  %6243 = vmatprep.subr.bf16.mxu1 %v6576_v9  ;;  %10138 = vst [vmem:[#allocation37_spill] sm:$0xff] %v8409_v1 }
 0x2c6   : > { %v8416_v63 = vpop.f32.mrf.mxu0 }
 0x2c7   : > { %v8396_v11 = vpop.f32.mrf.mxu1  ;;  %10139 = vst [vmem:[#allocation42_spill] sm:$0xff] %v8416_v63 }
 0x2c8   : > { %6244 = vmatpush3.bf16.msra.mxu1 %v6576_v9  ;;  %v6579_v9 = vld [vmem:[%s9769_s3 + $0x1d8] sm:$0xff]  }
 0x2c9   : > { %v8400_v3 = vpop.f32.mrf.mxu1  ;;  %6245 = vmatprep.subr.bf16.mxu1 %v6577_v45 }
 0x2cb   : > { %v8405_v38 = vpop.f32.mrf.mxu1  ;;  %6166 = vmatmul.mubr.bf16.gmra.mxu1 %v10099_v52  ;;  %v6580_v52 = vld [vmem:[%s9769_s3 + $0x1d0] sm:$0xff]  }
 0x2cc   : > { %6169 = vmatprep.mubr.bf16.mxu1 %v10100_v32  ;;  %6246 = vmatpush3.bf16.msra.mxu1 %v6577_v45  ;;  %v8425_v32 = vpop.f32.mrf.mxu0 }
 0x2cd   : > { %v8411_v62 = vpop.f32.mrf.mxu1  ;;  %6247 = vmatprep.subr.bf16.mxu1 %v6578_v20  ;;  %10140 = vst [vmem:[#allocation46_spill] sm:$0xff] %v8425_v32 }
 0x2ce   : > { %v8436_v63 = vpop.f32.mrf.mxu0 }
 0x2cf   : > { %v8418_v48 = vpop.f32.mrf.mxu1  ;;  %10141 = vst [vmem:[#allocation51_spill] sm:$0xff] %v8436_v63 }
 0x2d0   : > { %6248 = vmatpush3.bf16.msra.mxu1 %v6578_v20  ;;  %v6581_v20 = vld [vmem:[%s9769_s3 + $0x1c8] sm:$0xff]  }
 0x2d1   : > { %v8420_v8 = vpop.f32.mrf.mxu1  ;;  %6249 = vmatprep.subr.bf16.mxu1 %v6579_v9 }
 0x2d3   : > { %v8427_v45 = vpop.f32.mrf.mxu1  ;;  %6170 = vmatmul.mubr.bf16.gmra.mxu1 %v10101_v5  ;;  %v6582_v5 = vld [vmem:[%s9769_s3 + $0x1c0] sm:$0xff]  }
 0x2d4   : > { %6173 = vmatprep.mubr.bf16.mxu1 %v10102_v25  ;;  %6250 = vmatpush3.bf16.msra.mxu1 %v6579_v9  ;;  %v8445_v25 = vpop.f32.mrf.mxu0 }
 0x2d5   : > { %v8431_v1 = vpop.f32.mrf.mxu1  ;;  %6251 = vmatprep.subr.bf16.mxu1 %v6580_v52  ;;  %10142 = vst [vmem:[#allocation52_spill] sm:$0xff] %v8445_v25 }
 0x2d6   : > { %v8451_v63 = vpop.f32.mrf.mxu0 }
 0x2d7   : > { %v8438_v31 = vpop.f32.mrf.mxu1  ;;  %10143 = vst [vmem:[#allocation53_spill] sm:$0xff] %v8451_v63 }
 0x2d8   : > { %6252 = vmatpush3.bf16.msra.mxu1 %v6580_v52  ;;  %v8457_v30 = vpop.f32.mrf.mxu0 }
 0x2d9   : > { %v8440_v32 = vpop.f32.mrf.mxu1  ;;  %6253 = vmatprep.subr.bf16.mxu1 %v6581_v20  ;;  %10144 = vst [vmem:[#allocation54_spill] sm:$0xff] %v8457_v30 }
 0x2db   : > { %v8447_v9 = vpop.f32.mrf.mxu1  ;;  %6174 = vmatmul.mubr.bf16.gmra.mxu1 %v10103_v36  ;;  %v8465_v36 = vpop.f32.mrf.mxu0 }
 0x2dc   : > { %6177 = vmatprep.mubr.bf16.mxu1 %v10104_v44  ;;  %6254 = vmatpush3.bf16.msra.mxu1 %v6581_v20  ;;  %10145 = vst [vmem:[#allocation55_spill] sm:$0xff] %v8465_v36 }
 0x2dd   : > { %v8453_v35 = vpop.f32.mrf.mxu1  ;;  %6255 = vmatprep.subr.bf16.mxu1 %v6582_v5  ;;  %v8471_v63 = vpop.f32.mrf.mxu0 }
 0x2de   : > { %10146 = vst [vmem:[#allocation56_spill] sm:$0xff] %v8471_v63 }
 0x2df   : > { %v8455_v52 = vpop.f32.mrf.mxu1 }
 0x2e0   : > { %6256 = vmatpush3.bf16.msra.mxu1 %v6582_v5  ;;  %v8475_v5 = vpop.f32.mrf.mxu0 }
 0x2e1   : > { %v8459_v23 = vpop.f32.mrf.mxu1  ;;  %10148 = vst [vmem:[#allocation58_spill] sm:$0xff] %v8475_v5 }
 0x2e3   : > { %v8461_v25 = vpop.f32.mrf.mxu1  ;;  %6178 = vmatmul.mubr.bf16.gmra.mxu1 %v10105_v18 }
 0x2e4   : > { %6181 = vmatprep.mubr.bf16.mxu1 %v10106_v28  ;;  %v8483_v28 = vpop.f32.mrf.mxu0 }
 0x2e5   : > { %v8467_v44 = vpop.f32.mrf.mxu1  ;;  %10149 = vst [vmem:[#allocation59_spill] sm:$0xff] %v8483_v28 }
 0x2e6   : > { %v8489_v0 = vpop.f32.mrf.mxu0 }
 0x2e7   : > { %v8469_v20 = vpop.f32.mrf.mxu1  ;;  %10151 = vst [vmem:[#allocation61_spill] sm:$0xff] %v8489_v0 }
 0x2e9   : > { %v8473_v54 = vpop.f32.mrf.mxu1 }
 0x2ea   : > { %10147 = vst [vmem:[#allocation57_spill] sm:$0xff] %v8473_v54 }
 0x2eb   : > { %v8477_v30 = vpop.f32.mrf.mxu1  ;;  %6182 = vmatmul.mubr.bf16.gmra.mxu1 %v10107_v40  ;;  %v8497_v40 = vpop.f32.mrf.mxu0 }
 0x2ec   : > { %6185 = vmatprep.mubr.bf16.mxu1 %v10108_v19  ;;  %10152 = vst [vmem:[#allocation62_spill] sm:$0xff] %v8497_v40 }
 0x2ed   : > { %v8481_v18 = vpop.f32.mrf.mxu1  ;;  %v8501_v61 = vpop.f32.mrf.mxu0 }
 0x2ee   : > { %10153 = vst [vmem:[#allocation63_spill] sm:$0xff] %v8501_v61 }
 0x2ef   : > { %v8485_v36 = vpop.f32.mrf.mxu1 }
 0x2f1   : > { %v8487_v22 = vpop.f32.mrf.mxu1 }
 0x2f2   : > { %10150 = vst [vmem:[#allocation60_spill] sm:$0xff] %v8487_v22 }
 0x2f3   : > { %v8491_v63 = vpop.f32.mrf.mxu1  ;;  %6186 = vmatmul.mubr.bf16.gmra.mxu1 %v10109_v50  ;;  %v10154_v50 = vld [vmem:[#allocation16_spill] sm:$0xff] }
 0x2f4   : > { %6189 = vmatprep.mubr.bf16.mxu1 %v7811_v49  ;;  %v8511_v49 = vpop.f32.mrf.mxu0 }
 0x2f5   : > { %v8495_v5 = vpop.f32.mrf.mxu1  ;;  %10155 = vst [vmem:[#allocation16_spill] sm:$0xff] %v8511_v49  ;;  %v10158_v49 = vld [vmem:[#allocation20_spill] sm:$0xff] }
 0x2f7   : > { %v8499_v19 = vpop.f32.mrf.mxu1 }
 0x2f9   : > { %v2096_v28 = vpop.f32.mrf.mxu1 }
 0x2fa   : > { %v8504_v15 = vadd.f32 %v2096_v28, %v8359_v17  ;;  %v8519_v17 = vpop.f32.mrf.mxu0 }
 0x2fb   : > { %v5999_v22 = vpop.f32.mrf.mxu1  ;;  %6190 = vmatmul.mubr.bf16.gmra.mxu1 %v8111_v57  ;;  %10156 = vst [vmem:[#allocation64_spill] sm:$0xff] %v8519_v17  ;;  %v2006_v57 = vadd.f32 %v8385_v7, %v8187_v27  ;;  %v2009_v17 = vadd.f32 %v8396_v11, %v8201_v39  ;;  %v2001_v7 = vadd.f32 %v8400_v3, %v8205_v43 }
 0x2fc   : > { %v8508_v0 = vadd.f32 %v5999_v22, %v8363_v10  ;;  %6257 = vmatprep.mubr.bf16.mxu1 %v10154_v50  ;;  %v10157_v50 = vld [vmem:[#allocation18_spill] sm:$0xff]  ;;  %v2014_v39 = vadd.f32 %v8411_v62, %v8211_v59  ;;  %v10162_v62 = vld [vmem:[#allocation35_spill] sm:$0xff] }
 0x2fd   : > { %v2109_v54 = vpop.f32.mrf.mxu1 }
 0x2fe   : > { %v8514_v40 = vadd.f32 %v2109_v54, %v8372_v51  ;;  %v1998_v54 = vadd.f32 %v8391_v6, %v8194_v41  ;;  %v2022_v6 = vadd.f32 %v8405_v38, %v8207_v14  ;;  %v2017_v38 = vadd.f32 %v8420_v8, %v8219_v42 }
 0x2ff   : > { %v6000_v16 = vpop.f32.mrf.mxu1 }
 0x300   : > { %v8517_v61 = vadd.f32 %v6000_v16, %v8376_v60  ;;  %v8532_v16 = vpop.f32.mrf.mxu0 }
 0x301   : > { %v2112_v28 = vpop.f32.mrf.mxu1  ;;  %10159 = vst [vmem:[#allocation18_spill] sm:$0xff] %v8532_v16 }
 0x302   : > { %v8524_v22 = vadd.f32 %v2112_v28, %v8380_v56 }
 0x303   : > { %v6019_v10 = vpop.f32.mrf.mxu1  ;;  %6258 = vmatmul.mubr.bf16.vlgmr.msra.gmra.mxu1 %v10157_v50  ;;  %v8542_v50 = vpop.f32.mrf.mxu0 }
 0x304   : > { %v8529_v51 = vadd.f32 %v6019_v10, %v2006_v57  ;;  %6261 = vmatprep.mubr.bf16.mxu1 %v10158_v49  ;;  %v10160_v10 = vld [vmem:[#allocation22_spill] sm:$0xff] }
 0x305   : > { %v2320_v60 = vpop.f32.mrf.mxu1  ;;  %v8554_v43 = vpop.f32.mrf.mxu0 }
 0x306   : > { %v8536_v27 = vadd.f32 %v2320_v60, %v1998_v54  ;;  %v10161_v54 = vld [vmem:[#allocation24_spill] sm:$0xff] }
 0x307   : > { %v6020_v56 = vpop.f32.mrf.mxu1 }
 0x308   : > { %v8540_v28 = vadd.f32 %v6020_v56, %v2009_v17  ;;  %v2025_v17 = vadd.f32 %v8418_v48, %v8215_v46  ;;  %v10164_v46 = vld [vmem:[#allocation41_spill] sm:$0xff] }
 0x309   : > { %v2323_v41 = vpop.f32.mrf.mxu1  ;;  %v2030_v48 = vadd.f32 %v8431_v1, %v10164_v46  ;;  %v10167_v46 = vld [vmem:[#allocation32_spill] sm:$0xff] }
 0x30a   : > { %v8546_v49 = vadd.f32 %v2323_v41, %v2001_v7  ;;  %v8564_v7 = vpop.f32.mrf.mxu0  ;;  %v2038_v41 = vadd.f32 %v8427_v45, %v10162_v62  ;;  %v2054_v62 = vadd.f32 %v8447_v9, %v8245_v33  ;;  %v2049_v9 = vadd.f32 %v8459_v23, %v8273_v47  ;;  %v6583_v47 = vld [vmem:[%s9771_s5 + $0x38] sm:$0xff]  }
 0x30b   : > { %v6023_v57 = vpop.f32.mrf.mxu1  ;;  %6262 = vmatmul.mubr.bf16.gmra.mxu1 %v10160_v10  ;;  %v10163_v10 = vld [vmem:[#allocation26_spill] sm:$0xff]  ;;  %6385 = vmatprep.subr.bf16.mxu1 %v6583_v47 }
 0x30c   : > { %v8551_v11 = vadd.f32 %v6023_v57, %v2022_v6  ;;  %6265 = vmatprep.mubr.bf16.mxu1 %v10161_v54  ;;  %v10165_v54 = vld [vmem:[#allocation28_spill] sm:$0xff]  ;;  %v8576_v42 = vpop.f32.mrf.mxu0  ;;  %6337 = vmatprep.subr.bf16.mxu0 %v6583_v47 }
 0x30d   : > { %v2336_v3 = vpop.f32.mrf.mxu1  ;;  %6393 = vmatpush3.bf16.msra.mxu1 %v6583_v47  ;;  %6338 = vmatpush3.bf16.msra.mxu0 %v6583_v47  ;;  %v10175_v47 = vld [vmem:[#allocation49_spill] sm:$0xff] }
 0x30e   : > { %v8558_v60 = vadd.f32 %v2336_v3, %v2014_v39  ;;  %v2041_v3 = vadd.f32 %v8438_v31, %v8236_v34  ;;  %v2046_v34 = vadd.f32 %v8453_v35, %v8256_v4  ;;  %v2070_v35 = vadd.f32 %v8461_v25, %v8275_v13 }
 0x30f   : > { %v6024_v14 = vpop.f32.mrf.mxu1  ;;  %v2073_v13 = vadd.f32 %v8469_v20, %v8293_v24  ;;  %v2078_v24 = vadd.f32 %v8481_v18, %v8317_v37 }
 0x310   : > { %v8562_v56 = vadd.f32 %v6024_v14, %v2025_v17  ;;  %v2033_v14 = vadd.f32 %v8440_v32, %v8240_v21 }
 0x311   : > { %v2339_v59 = vpop.f32.mrf.mxu1 }
 0x312   : > { %v8568_v6 = vadd.f32 %v2339_v59, %v2017_v38  ;;  %v8586_v59 = vpop.f32.mrf.mxu0 }
 0x313   : > { %v6027_v57 = vpop.f32.mrf.mxu1  ;;  %6266 = vmatmul.mubr.bf16.gmra.mxu1 %v10163_v10  ;;  %v10166_v10 = vld [vmem:[#allocation30_spill] sm:$0xff] }
 0x314   : > { %v8573_v39 = vadd.f32 %v6027_v57, %v2038_v41  ;;  %6269 = vmatprep.mubr.bf16.mxu1 %v10165_v54  ;;  %v8598_v21 = vpop.f32.mrf.mxu0 }
 0x315   : > { %v2352_v8 = vpop.f32.mrf.mxu1 }
 0x316   : > { %v8580_v17 = vadd.f32 %v2352_v8, %v2030_v48  ;;  %v2057_v48 = vadd.f32 %v8455_v52, %v8262_v55  ;;  %v2062_v55 = vadd.f32 %v8467_v44, %v8286_v2 }
 0x317   : > { %v6028_v45 = vpop.f32.mrf.mxu1 }
 0x318   : > { %v8584_v38 = vadd.f32 %v6028_v45, %v2041_v3  ;;  %v8608_v3 = vpop.f32.mrf.mxu0 }
 0x319   : > { %v2355_v1 = vpop.f32.mrf.mxu1 }
 0x31a   : > { %v8590_v41 = vadd.f32 %v2355_v1, %v2033_v14  ;;  %v10168_v1 = vld [vmem:[#allocation34_spill] sm:$0xff]  ;;  %v8623_v23 = vpop.f32.mrf.mxu0 }
 0x31b   : > { %v6031_v57 = vpop.f32.mrf.mxu1  ;;  %6270 = vmatmul.mubr.bf16.gmra.mxu1 %v10166_v10  ;;  %10170 = vst [vmem:[#allocation20_spill] sm:$0xff] %v8623_v23  ;;  %v10205_v23 = vld [vmem:[#allocation17_spill] sm:$0xff] }
 0x31c   : > { %v8595_v31 = vadd.f32 %v6031_v57, %v2054_v62  ;;  %6273 = vmatprep.mubr.bf16.mxu1 %v10167_v46  ;;  %v10169_v62 = vld [vmem:[#allocation38_spill] sm:$0xff]  ;;  %v8631_v44 = vpop.f32.mrf.mxu0  ;;  %v2086_v46 = vadd.f32 %v8477_v30, %v8313_v12  ;;  %v2089_v12 = vadd.f32 %v8485_v36, %v8327_v58  ;;  %v2094_v58 = vadd.f32 %v8495_v5, %v8345_v53 }
 0x31d   : > { %v2368_v32 = vpop.f32.mrf.mxu1  ;;  %10171 = vst [vmem:[#allocation22_spill] sm:$0xff] %v8631_v44 }
 0x31e   : > { %v8602_v54 = vadd.f32 %v2368_v32, %v2046_v34 }
 0x31f   : > { %v6032_v33 = vpop.f32.mrf.mxu1 }
 0x320   : > { %v8606_v8 = vadd.f32 %v6032_v33, %v2057_v48  ;;  %v10172_v48 = vld [vmem:[#allocation43_spill] sm:$0xff] }
 0x321   : > { %v2371_v4 = vpop.f32.mrf.mxu1  ;;  %v10173_v33 = vld [vmem:[#allocation47_spill] sm:$0xff] }
 0x322   : > { %v8612_v45 = vadd.f32 %v2371_v4, %v2049_v9  ;;  %v6584_v9 = vld [vmem:[%s9771_s5 + $0x30] sm:$0xff]   ;;  %v8646_v4 = vpop.f32.mrf.mxu0 }
 0x323   : > { %v6035_v14 = vpop.f32.mrf.mxu1  ;;  %6274 = vmatmul.mubr.bf16.gmra.mxu1 %v10168_v1  ;;  %6386 = vmatprep.subr.bf16.mxu1 %v6584_v9 }
 0x324   : > { %v8617_v52 = vadd.f32 %v6035_v14, %v2070_v35  ;;  %6277 = vmatprep.mubr.bf16.mxu1 %v10169_v62  ;;  %6339 = vmatprep.subr.bf16.mxu0 %v6584_v9  ;;  %v8654_v18 = vpop.f32.mrf.mxu0 }
 0x325   : > { %v2384_v57 = vpop.f32.mrf.mxu1  ;;  %6394 = vmatpush3.bf16.msra.mxu1 %v6584_v9  ;;  %6340 = vmatpush3.bf16.msra.mxu0 %v6584_v9  ;;  %10174 = vst [vmem:[#allocation24_spill] sm:$0xff] %v8654_v18 }
 0x326   : > { %v8627_v25 = vadd.f32 %v2384_v57, %v2062_v55  ;;  %v2102_v55 = vadd.f32 %v8491_v63, %v8341_v26  ;;  %v10176_v57 = vld [vmem:[#allocation50_spill] sm:$0xff]  ;;  %v2105_v63 = vadd.f32 %v8499_v19, %v8355_v29  ;;  %v6586_v29 = vld [vmem:[%s9771_s5 + $0x20] sm:$0xff]  }
 0x327   : > { %v6036_v10 = vpop.f32.mrf.mxu1 }
 0x328   : > { %v8629_v2 = vadd.f32 %v6036_v10, %v2073_v13  ;;  %v6585_v13 = vld [vmem:[%s9771_s5 + $0x28] sm:$0xff]   ;;  %v8669_v10 = vpop.f32.mrf.mxu0 }
 0x329   : > { %v8633_v34 = vpop.f32.mrf.mxu1  ;;  %10177 = vst [vmem:[#allocation35_spill] sm:$0xff] %v8669_v10  ;;  %6387 = vmatprep.subr.bf16.mxu1 %v6585_v13  ;;  %6341 = vmatprep.subr.bf16.mxu0 %v6585_v13  ;;  %v10188_v10 = vld [vmem:[#allocation44_spill] sm:$0xff] }
 0x32a   : > { %6395 = vmatpush3.bf16.msra.mxu1 %v6585_v13  ;;  %6342 = vmatpush3.bf16.msra.mxu0 %v6585_v13  ;;  %v8677_v5 = vpop.f32.mrf.mxu0 }
 0x32b   : > { %v6039_v32 = vpop.f32.mrf.mxu1  ;;  %6278 = vmatmul.mubr.bf16.gmra.mxu1 %v10172_v48  ;;  %10178 = vst [vmem:[#allocation26_spill] sm:$0xff] %v8677_v5  ;;  %6388 = vmatprep.subr.bf16.mxu1 %v6586_v29 }
 0x32c   : > { %v8640_v20 = vadd.f32 %v6039_v32, %v2086_v46  ;;  %6281 = vmatprep.mubr.bf16.mxu1 %v10173_v33  ;;  %v10179_v33 = vld [vmem:[#allocation36_spill] sm:$0xff]  ;;  %v8688_v19 = vpop.f32.mrf.mxu0  ;;  %6343 = vmatprep.subr.bf16.mxu0 %v6586_v29 }
 0x32d   : > { %v2400_v35 = vpop.f32.mrf.mxu1 }
 0x32e   : > { %v8650_v30 = vadd.f32 %v2400_v35, %v2078_v24  ;;  %6396 = vmatpush3.bf16.msra.mxu1 %v6586_v29  ;;  %6344 = vmatpush3.bf16.msra.mxu0 %v6586_v29 }
 0x32f   : > { %v6040_v14 = vpop.f32.mrf.mxu1 }
 0x330   : > { %v8652_v37 = vadd.f32 %v6040_v14, %v2089_v12 }
 0x331   : > { %v8656_v1 = vpop.f32.mrf.mxu1 }
 0x333   : > { %v6043_v62 = vpop.f32.mrf.mxu1  ;;  %6282 = vmatmul.mubr.bf16.gmra.mxu1 %v10175_v47 }
 0x334   : > { %v8663_v36 = vadd.f32 %v6043_v62, %v2102_v55  ;;  %6285 = vmatprep.mubr.bf16.mxu1 %v10176_v57 }
 0x335   : > { %v2416_v46 = vpop.f32.mrf.mxu1 }
 0x336   : > { %v8673_v26 = vadd.f32 %v2416_v46, %v2094_v58 }
 0x337   : > { %v6044_v32 = vpop.f32.mrf.mxu1 }
 0x338   : > { %v8675_v53 = vadd.f32 %v6044_v32, %v2105_v63 }
 0x339   : > { %v8679_v48 = vpop.f32.mrf.mxu1 }
 0x33b   : > { %v6047_v24 = vpop.f32.mrf.mxu1  ;;  %6286 = vmatmul.mubr.bf16.gmra.mxu1 %v10179_v33 }
 0x33c   : > { %v8683_v9 = vadd.f32 %v6047_v24, %v8508_v0  ;;  %v8696_v0 = vpop.f32.mrf.mxu0 }
 0x33d   : > { %v2432_v35 = vpop.f32.mrf.mxu1 }
 0x33e   : > { %v8691_v12 = vadd.f32 %v2432_v35, %v8514_v40  ;;  %v6587_v40 = vld [vmem:[%s9771_s5 + $0x18] sm:$0xff]   ;;  %v8706_v57 = vpop.f32.mrf.mxu0 }
 0x33f   : > { %v6048_v14 = vpop.f32.mrf.mxu1  ;;  %10180 = vst [vmem:[#allocation41_spill] sm:$0xff] %v8706_v57  ;;  %6389 = vmatprep.subr.bf16.mxu1 %v6587_v40  ;;  %6345 = vmatprep.subr.bf16.mxu0 %v6587_v40 }
 0x340   : > { %v8694_v55 = vadd.f32 %v6048_v14, %v8517_v61  ;;  %6397 = vmatpush3.bf16.msra.mxu1 %v6587_v40  ;;  %6346 = vmatpush3.bf16.msra.mxu0 %v6587_v40  ;;  %v8717_v32 = vpop.f32.mrf.mxu0 }
 0x341   : > { %v8698_v62 = vpop.f32.mrf.mxu1  ;;  %10181 = vst [vmem:[#allocation28_spill] sm:$0xff] %v8717_v32 }
 0x342   : > { %v8727_v29 = vpop.f32.mrf.mxu0 }
 0x343   : > { %v6067_v47 = vpop.f32.mrf.mxu1 }
 0x344   : > { %v8701_v58 = vadd.f32 %v6067_v47, %v8529_v51  ;;  %v6588_v51 = vld [vmem:[%s9771_s5 + $0x10] sm:$0xff]  }
 0x345   : > { %v2578_v13 = vpop.f32.mrf.mxu1  ;;  %6347 = vmatprep.subr.bf16.mxu0 %v6588_v51  ;;  %6390 = vmatprep.subr.bf16.mxu1 %v6588_v51 }
 0x346   : > { %v8709_v46 = vadd.f32 %v2578_v13, %v8536_v27  ;;  %6348 = vmatpush3.bf16.msra.mxu0 %v6588_v51  ;;  %6398 = vmatpush3.bf16.msra.mxu1 %v6588_v51  ;;  %v8738_v13 = vpop.f32.mrf.mxu0 }
 0x347   : > { %v6068_v61 = vpop.f32.mrf.mxu1 }
 0x348   : > { %v8712_v63 = vadd.f32 %v6068_v61, %v8540_v28  ;;  %v6589_v28 = vld [vmem:[%s9771_s5 + $0x8] sm:$0xff]  }
 0x349   : > { %v8719_v24 = vpop.f32.mrf.mxu1  ;;  %6349 = vmatprep.subr.bf16.mxu0 %v6589_v28  ;;  %6391 = vmatprep.subr.bf16.mxu1 %v6589_v28 }
 0x34a   : > { %6350 = vmatpush3.bf16.msra.mxu0 %v6589_v28  ;;  %6399 = vmatpush3.bf16.msra.mxu1 %v6589_v28 }
 0x34b   : > { %v6071_v27 = vpop.f32.mrf.mxu1 }
 0x34c   : > { %v8722_v33 = vadd.f32 %v6071_v27, %v8551_v11  ;;  %v6590_v11 = vld [vmem:[%s9771_s5] sm:$0xff]   ;;  %v8745_v27 = vpop.f32.mrf.mxu0 }
 0x34d   : > { %v2594_v35 = vpop.f32.mrf.mxu1  ;;  %6351 = vmatprep.subr.bf16.mxu0 %v6590_v11  ;;  %6392 = vmatprep.subr.bf16.mxu1 %v6590_v11  ;;  %10182 = vst [vmem:[#allocation30_spill] sm:$0xff] %v8745_v27 }
 0x34e   : > { %v8730_v14 = vadd.f32 %v2594_v35, %v8558_v60  ;;  %6352 = vmatpush3.bf16.msra.mxu0 %v6590_v11  ;;  %6400 = vmatpush3.bf16.msra.mxu1 %v6590_v11  ;;  %v8753_v16 = vpop.f32.mrf.mxu0 }
 0x34f   : > { %v6072_v47 = vpop.f32.mrf.mxu1  ;;  %10184 = vst [vmem:[#allocation34_spill] sm:$0xff] %v8753_v16 }
 0x350   : > { %v8733_v40 = vadd.f32 %v6072_v47, %v8562_v56 }
 0x351   : > { %v8740_v61 = vpop.f32.mrf.mxu1 }
 0x353   : > { %v6075_v60 = vpop.f32.mrf.mxu1 }
 0x354   : > { %v8743_v51 = vadd.f32 %v6075_v60, %v8573_v39  ;;  %v8761_v60 = vpop.f32.mrf.mxu0 }
 0x355   : > { %v2610_v56 = vpop.f32.mrf.mxu1 }
 0x356   : > { %v8748_v28 = vadd.f32 %v2610_v56, %v8580_v17 }
 0x357   : > { %v6076_v35 = vpop.f32.mrf.mxu1 }
 0x358   : > { %v8751_v47 = vadd.f32 %v6076_v35, %v8584_v38  ;;  %v8769_v35 = vpop.f32.mrf.mxu0 }
 0x359   : > { %v2613_v32 = vpop.f32.mrf.mxu1 }
 0x35a   : > { %10183 = vst [vmem:[#allocation32_spill] sm:$0xff] %v8751_v47  ;;  %v8756_v57 = vadd.f32 %v2613_v32, %v8590_v41  ;;  %v2983_v47 = vadd.f32 %v10205_v23, %v8733_v40  ;;  %v10211_v23 = vld [vmem:[#allocation21_spill] sm:$0xff] }
 0x35b   : > { %v6079_v11 = vpop.f32.mrf.mxu1  ;;  %v2986_v40 = vadd.f32 %v10211_v23, %v8743_v51  ;;  %v10215_v23 = vld [vmem:[#allocation29_spill] sm:$0xff] }
 0x35c   : > { %10185 = vst [vmem:[#allocation38_spill] sm:$0xff] %v8756_v57  ;;  %v8759_v39 = vadd.f32 %v6079_v11, %v8595_v31  ;;  %v8777_v11 = vpop.f32.mrf.mxu0 }
 0x35d   : > { %v2626_v27 = vpop.f32.mrf.mxu1  ;;  %10187 = vst [vmem:[#allocation47_spill] sm:$0xff] %v8777_v11 }
 0x35e   : > { %v8764_v17 = vadd.f32 %v2626_v27, %v8602_v54  ;;  %v10189_v54 = vld [vmem:[#allocation57_spill] sm:$0xff] }
 0x35f   : > { %v6080_v56 = vpop.f32.mrf.mxu1  ;;  %v2065_v27 = vadd.f32 %v10189_v54, %v10188_v10 }
 0x360   : > { %v8767_v38 = vadd.f32 %v6080_v56, %v8606_v8 }
 0x361   : > { %v2629_v16 = vpop.f32.mrf.mxu1  ;;  %v2464_v56 = vadd.f32 %v8633_v34, %v2065_v27 }
 0x362   : > { %v8772_v41 = vadd.f32 %v2629_v16, %v8612_v45  ;;  %v8788_v16 = vpop.f32.mrf.mxu0 }
 0x363   : > { %v6083_v32 = vpop.f32.mrf.mxu1  ;;  %10190 = vst [vmem:[#allocation49_spill] sm:$0xff] %v8788_v16 }
 0x364   : > { %10186 = vst [vmem:[#allocation43_spill] sm:$0xff] %v8772_v41  ;;  %v8775_v31 = vadd.f32 %v6083_v32, %v8617_v52  ;;  %v8795_v41 = vpop.f32.mrf.mxu0 }
 0x365   : > { %v2642_v5 = vpop.f32.mrf.mxu1 }
 0x366   : > { %v8782_v18 = vadd.f32 %v2642_v5, %v8627_v25  ;;  %v10192_v25 = vld [vmem:[#allocation15_spill] sm:$0xff]  ;;  %v10193_v5 = vld [vmem:[#allocation60_spill] sm:$0xff] }
 0x367   : > { %v6084_v8 = vpop.f32.mrf.mxu1  ;;  %v2081_v54 = vadd.f32 %v10193_v5, %v10192_v25 }
 0x368   : > { %v8786_v44 = vadd.f32 %v6084_v8, %v8629_v2 }
 0x369   : > { %v2645_v45 = vpop.f32.mrf.mxu1  ;;  %v2468_v27 = vadd.f32 %v8656_v1, %v2081_v54 }
 0x36a   : > { %v8790_v52 = vadd.f32 %v2645_v45, %v2464_v56  ;;  %v8806_v56 = vpop.f32.mrf.mxu0 }
 0x36b   : > { %v6087_v32 = vpop.f32.mrf.mxu1 }
 0x36c   : > { %10191 = vst [vmem:[#allocation50_spill] sm:$0xff] %v8790_v52  ;;  %v8793_v11 = vadd.f32 %v6087_v32, %v8640_v20  ;;  %v8813_v52 = vpop.f32.mrf.mxu0 }
 0x36d   : > { %v2658_v10 = vpop.f32.mrf.mxu1  ;;  %10195 = vst [vmem:[#allocation44_spill] sm:$0xff] %v8813_v52 }
 0x36e   : > { %v8800_v34 = vadd.f32 %v2658_v10, %v8650_v30  ;;  %v8823_v5 = vpop.f32.mrf.mxu0 }
 0x36f   : > { %v6088_v2 = vpop.f32.mrf.mxu1  ;;  %10196 = vst [vmem:[#allocation57_spill] sm:$0xff] %v8823_v5 }
 0x370   : > { %v8804_v8 = vadd.f32 %v6088_v2, %v8652_v37  ;;  %v2472_v37 = vadd.f32 %v8679_v48, %v8504_v15 }
 0x371   : > { %v2661_v45 = vpop.f32.mrf.mxu1 }
 0x372   : > { %v8808_v20 = vadd.f32 %v2661_v45, %v2468_v27  ;;  %v8830_v45 = vpop.f32.mrf.mxu0 }
 0x373   : > { %v6091_v32 = vpop.f32.mrf.mxu1 }
 0x374   : > { %10194 = vst [vmem:[#allocation36_spill] sm:$0xff] %v8808_v20  ;;  %v8811_v16 = vadd.f32 %v6091_v32, %v8663_v36 }
 0x375   : > { %v2674_v25 = vpop.f32.mrf.mxu1 }
 0x376   : > { %v8816_v30 = vadd.f32 %v2674_v25, %v8673_v26  ;;  %v8840_v25 = vpop.f32.mrf.mxu0 }
 0x377   : > { %v6092_v10 = vpop.f32.mrf.mxu1 }
 0x378   : > { %v8821_v1 = vadd.f32 %v6092_v10, %v8675_v53  ;;  %v2476_v53 = vadd.f32 %v8698_v62, %v8524_v22  ;;  %v8850_v52 = vpop.f32.mrf.mxu0  ;;  %v6592_v62 = vld [vmem:[%s6997_s20 + $0x18] sm:$0xf] }
 0x379   : > { %v2677_v54 = vpop.f32.mrf.mxu1 }
 0x37a   : > { %v8825_v2 = vadd.f32 %v2677_v54, %v2472_v37 }
 0x37b   : > { %v6095_v36 = vpop.f32.mrf.mxu1 }
 0x37c   : > { %10197 = vst [vmem:[#allocation15_spill] sm:$0xff] %v8825_v2  ;;  %v8828_v27 = vadd.f32 %v6095_v36, %v8683_v9  ;;  %v10199_v9 = vld [vmem:[#allocation40_spill] sm:$0xff]  ;;  %v4199_v2 = vshll.u32 %v6592_v62, 16 }
 0x37d   : > { %v2690_v26 = vpop.f32.mrf.mxu1  ;;  %v2978_v54 = vadd.f32 %v10199_v9, %v8701_v58  ;;  %10201 = vst [vmem:[#allocation40_spill] sm:$0xff] %v8850_v52  ;;  %v8858_v58 = vpop.f32.mrf.mxu0  ;;  %v10202_v9 = vld [vmem:[#allocation13_spill] sm:$0xff]  ;;  %v10204_v52 = vld [vmem:[#allocation14_spill] sm:$0xff] }
 0x37e   : > { %v8833_v32 = vadd.f32 %v2690_v26, %v8691_v12  ;;  %v10200_v12 = vld [vmem:[#allocation39_spill] sm:$0xff] }
 0x37f   : > { %v6096_v15 = vpop.f32.mrf.mxu1  ;;  %v2976_v26 = vadd.f32 %v10200_v12, %v8709_v46  ;;  %v8865_v12 = vld [vmem:[%s6997_s20 + $0x1c] sm:$0xf] }
 0x380   : > { %v8838_v48 = vadd.f32 %v6096_v15, %v8694_v55  ;;  %v4196_v15 = vshrl.u32 %v6592_v62, 16  ;;  %10203 = vst [vmem:[#allocation39_spill] sm:$0xff] %v8865_v12 }
 0x381   : > { %v2693_v10 = vpop.f32.mrf.mxu1 }
 0x382   : > { %v8842_v37 = vadd.f32 %v2693_v10, %v2476_v53  ;;  %v4198_v46 = vrot.slane %v4196_v15, 4 }
 0x383   : > { %v6163_v36 = vpop.f32.mrf.mxu1 }
 0x384   : > { %10198 = vst [vmem:[#allocation60_spill] sm:$0xff] %v8842_v37  ;;  %v8846_v5 = vadd.f32 %v6163_v36, %v2978_v54  ;;  %v2982_v54 = vadd.f32 %v10202_v9, %v8722_v33  ;;  %v4201_v36 = vrot.slane %v4199_v2, 5 }
 0x385   : > { %v3113_v22 = vpop.f32.mrf.mxu1 }
 0x386   : > { %v3240_v55 = vadd.f32 %v3113_v22, %v2976_v26  ;;  %v4205_v26 = vshll.u32 %v8865_v12, 16  ;;  %v4202_v15 = vor.u32 %v4201_v36, %v4198_v46  ;;  %v10212_v46 = vld [vmem:[#allocation23_spill] sm:$0xff] }
 0x387   : > { %v8853_v20 = vpop.f32.mrf.mxu1  ;;  %v2984_v36 = vadd.f32 %v10212_v46, %v8748_v28  ;;  %v10216_v28 = vld [vmem:[#allocation31_spill] sm:$0xff] }
 0x388   : > { %v8856_v53 = vadd.f32 %v8554_v43, %v3240_v55  ;;  %v2980_v43 = vadd.f32 %v10204_v52, %v8730_v14  ;;  %v8872_v55 = vpop.f32.mrf.mxu0  ;;  %v8876_v33 = vrot.slane %v4205_v26, 5  ;;  %v2988_v46 = vadd.f32 %v10216_v28, %v8764_v17 }
 0x389   : > { %v8860_v10 = vpop.f32.mrf.mxu1 }
 0x38a   : > { %10206 = vst [vmem:[#allocation13_spill] sm:$0xff] %v8876_v33  ;;  %v8885_v14 = vpop.f32.mrf.mxu0 }
 0x38b   : > { %v6167_v22 = vpop.f32.mrf.mxu1 }
 0x38c   : > { %v8868_v62 = vadd.f32 %v6167_v22, %v2982_v54  ;;  %v10207_v22 = vmov 0 }
 0x38d   : > { %v3129_v37 = vpop.f32.mrf.mxu1  ;;  %v10208_v22 = vsel %vm8881_vm8, 4294967295, %v10207_v22 }
 0x38e   : > { %v3244_v57 = vadd.f32 %v3129_v37, %v2980_v43  ;;  %10209 = vst [vmem:[#allocation14_spill] sm:$0xff] %v10208_v22  ;;  %v8889_v37 = vrot.slane %v4202_v15, 4  ;;  %v8904_v43 = vpop.f32.mrf.mxu0 }
 0x38f   : > { %v6168_v2 = vpop.f32.mrf.mxu1 }
 0x390   : > { %v3247_v9 = vadd.f32 %v6168_v2, %v2983_v47  ;;  %v8879_v54 = vadd.f32 %v8598_v21, %v3244_v57  ;;  %10210 = vst [vmem:[#allocation17_spill] sm:$0xff] %v8889_v37  ;;  %v8911_v51 = vpop.f32.mrf.mxu0 }
 0x391   : > { %v8887_v52 = vpop.f32.mrf.mxu1 }
 0x392   : > { %v8894_v26 = vadd.f32 %v8608_v3, %v3247_v9  ;;  %v8921_v37 = vpop.f32.mrf.mxu0 }
 0x393   : > { %v6171_v47 = vpop.f32.mrf.mxu1 }
 0x394   : > { %v8900_v57 = vadd.f32 %v6171_v47, %v2986_v40  ;;  %v2990_v40 = vadd.f32 %v10215_v23, %v8759_v39  ;;  %v10219_v23 = vld [vmem:[#allocation42_spill] sm:$0xff] }
 0x395   : > { %v3145_v2 = vpop.f32.mrf.mxu1 }
 0x396   : > { %v3248_v15 = vadd.f32 %v3145_v2, %v2984_v36 }
 0x397   : > { %v8906_v12 = vpop.f32.mrf.mxu1 }
 0x398   : > { %v8909_v3 = vadd.f32 %v8646_v4, %v3248_v15  ;;  %v10217_v4 = vld [vmem:[#allocation33_spill] sm:$0xff] }
 0x399   : > { %v8913_v9 = vpop.f32.mrf.mxu1  ;;  %v2991_v15 = vadd.f32 %v10217_v4, %v8767_v38  ;;  %v10220_v38 = vld [vmem:[#allocation46_spill] sm:$0xff] }
 0x39a   : > { %10213 = vst [vmem:[#allocation21_spill] sm:$0xff] %v8909_v3  ;;  %10214 = vst [vmem:[#allocation23_spill] sm:$0xff] %v8913_v9  ;;  %v8928_v9 = vpop.f32.mrf.mxu0 }
 0x39b   : > { %v6175_v47 = vpop.f32.mrf.mxu1 }
 0x39c   : > { %v8917_v21 = vadd.f32 %v6175_v47, %v2990_v40  ;;  %v2994_v40 = vadd.f32 %v10219_v23, %v8775_v31  ;;  %v10223_v23 = vld [vmem:[#allocation53_spill] sm:$0xff] }
 0x39d   : > { %v3161_v36 = vpop.f32.mrf.mxu1 }
 0x39e   : > { %v3252_v2 = vadd.f32 %v3161_v36, %v2988_v46  ;;  %v2992_v46 = vadd.f32 %v10220_v38, %v8782_v18 }
 0x39f   : > { %v6176_v22 = vpop.f32.mrf.mxu1 }
 0x3a0   : > { %v3255_v33 = vadd.f32 %v6176_v22, %v2991_v15  ;;  %v8926_v3 = vadd.f32 %v8688_v19, %v3252_v2  ;;  %v8941_v22 = vpop.f32.mrf.mxu0  ;;  %v10221_v2 = vld [vmem:[#allocation51_spill] sm:$0xff] }
 0x3a1   : > { %v8930_v39 = vpop.f32.mrf.mxu1  ;;  %v2995_v4 = vadd.f32 %v10221_v2, %v8786_v44  ;;  %v10224_v44 = vld [vmem:[#allocation54_spill] sm:$0xff]  ;;  %v10225_v2 = vld [vmem:[#allocation55_spill] sm:$0xff] }
 0x3a2   : > { %10218 = vst [vmem:[#allocation29_spill] sm:$0xff] %v8926_v3  ;;  %v8935_v17 = vadd.f32 %v8696_v0, %v3255_v33  ;;  %v8948_v0 = vpop.f32.mrf.mxu0 }
 0x3a3   : > { %v6179_v47 = vpop.f32.mrf.mxu1 }
 0x3a4   : > { %v8937_v28 = vadd.f32 %v6179_v47, %v2994_v40  ;;  %v2998_v40 = vadd.f32 %v10223_v23, %v8793_v11  ;;  %v10227_v23 = vld [vmem:[#allocation58_spill] sm:$0xff] }
 0x3a5   : > { %v3177_v19 = vpop.f32.mrf.mxu1 }
 0x3a6   : > { %v3256_v36 = vadd.f32 %v3177_v19, %v2992_v46  ;;  %v2996_v46 = vadd.f32 %v10224_v44, %v8800_v34  ;;  %v8961_v19 = vpop.f32.mrf.mxu0 }
 0x3a7   : > { %v6180_v15 = vpop.f32.mrf.mxu1 }
 0x3a8   : > { %v3259_v3 = vadd.f32 %v6180_v15, %v2995_v4  ;;  %v8946_v31 = vadd.f32 %v8727_v29, %v3256_v36  ;;  %v2999_v4 = vadd.f32 %v10225_v2, %v8804_v8  ;;  %v10228_v8 = vld [vmem:[#allocation59_spill] sm:$0xff]  ;;  %v10229_v2 = vld [vmem:[#allocation61_spill] sm:$0xff] }
 0x3a9   : > { %v8950_v33 = vpop.f32.mrf.mxu1 }
 0x3aa   : > { %10222 = vst [vmem:[#allocation31_spill] sm:$0xff] %v8946_v31  ;;  %v8955_v18 = vadd.f32 %v8738_v13, %v3259_v3  ;;  %v8968_v13 = vpop.f32.mrf.mxu0 }
 0x3ab   : > { %v6183_v47 = vpop.f32.mrf.mxu1 }
 0x3ac   : > { %v8957_v38 = vadd.f32 %v6183_v47, %v2998_v40  ;;  %v3002_v40 = vadd.f32 %v10227_v23, %v8811_v16  ;;  %v10230_v23 = vld [vmem:[#allocation63_spill] sm:$0xff] }
 0x3ad   : > { %v3193_v29 = vpop.f32.mrf.mxu1 }
 0x3ae   : > { %v3260_v36 = vadd.f32 %v3193_v29, %v2996_v46  ;;  %v3000_v46 = vadd.f32 %v10228_v8, %v8816_v30  ;;  %v8981_v29 = vpop.f32.mrf.mxu0 }
 0x3af   : > { %v6184_v15 = vpop.f32.mrf.mxu1 }
 0x3b0   : > { %v3263_v31 = vadd.f32 %v6184_v15, %v2999_v4  ;;  %v8966_v11 = vadd.f32 %v8761_v60, %v3260_v36  ;;  %v3003_v4 = vadd.f32 %v10229_v2, %v8821_v1  ;;  %v10232_v1 = vld [vmem:[#allocation16_spill] sm:$0xff] }
 0x3b1   : > { %v8970_v3 = vpop.f32.mrf.mxu1 }
 0x3b2   : > { %10226 = vst [vmem:[#allocation33_spill] sm:$0xff] %v8966_v11  ;;  %v8975_v34 = vadd.f32 %v8769_v35, %v3263_v31  ;;  %v8988_v35 = vpop.f32.mrf.mxu0 }
 0x3b3   : > { %v6187_v47 = vpop.f32.mrf.mxu1 }
 0x3b4   : > { %v8977_v44 = vadd.f32 %v6187_v47, %v3002_v40  ;;  %v3006_v40 = vadd.f32 %v10230_v23, %v8828_v27 }
 0x3b5   : > { %v3209_v60 = vpop.f32.mrf.mxu1 }
 0x3b6   : > { %v3264_v36 = vadd.f32 %v3209_v60, %v3000_v46  ;;  %v3004_v46 = vadd.f32 %v10232_v1, %v8833_v32  ;;  %v9001_v60 = vpop.f32.mrf.mxu0 }
 0x3b7   : > { %v6188_v15 = vpop.f32.mrf.mxu1 }
 0x3b8   : > { %v3267_v11 = vadd.f32 %v6188_v15, %v3003_v4  ;;  %v8986_v16 = vadd.f32 %v8795_v41, %v3264_v36  ;;  %v2706_v36 = vadd.f32 %v8719_v24, %v8546_v49  ;;  %v10233_v4 = vld [vmem:[#allocation64_spill] sm:$0xff]  ;;  %v3500_v24 = vadd.f32 %v8542_v50, %v8846_v5  ;;  %v9034_v50 = vld [vmem:[%s9770_s4] ss:$0 sm:$0xff] }
 0x3b9   : > { %v8990_v31 = vpop.f32.mrf.mxu1  ;;  %v3007_v15 = vadd.f32 %v10233_v4, %v8838_v48 }
 0x3ba   : > { %v8995_v30 = vadd.f32 %v8806_v56, %v3267_v11  ;;  %v10234_v56 = vld [vmem:[#allocation45_spill] sm:$0xff] }
 0x3bb   : > { %v6191_v47 = vpop.f32.mrf.mxu1  ;;  %v2979_v11 = vadd.f32 %v10234_v56, %v8712_v63 }
 0x3bc   : > { %v8997_v8 = vadd.f32 %v6191_v47, %v3006_v40  ;;  %v9012_v47 = vpop.f32.mrf.mxu0 }
 0x3bd   : > { %v3225_v41 = vpop.f32.mrf.mxu1  ;;  %v3243_v1 = vadd.f32 %v8853_v20, %v2979_v11  ;;  %v3504_v11 = vadd.f32 %v8586_v59, %v8868_v62  ;;  %v10237_v59 = vld [vmem:[#allocation32_spill] sm:$0xff]  ;;  %v10238_v62 = vld [vmem:[#allocation25_spill] sm:$0xff] }
 0x3be   : > { %10231 = vst [vmem:[#allocation42_spill] sm:$0xff] %v8997_v8  ;;  %v3268_v2 = vadd.f32 %v3225_v41, %v3004_v46  ;;  %v10235_v8 = vld [vmem:[#allocation48_spill] sm:$0xff] }
 0x3bf   : > { %v6192_v27 = vpop.f32.mrf.mxu1  ;;  %v2977_v49 = vadd.f32 %v10235_v8, %v2706_v36  ;;  %v3501_v36 = vadd.f32 %v8564_v7, %v3243_v1 }
 0x3c0   : > { %v3271_v23 = vadd.f32 %v6192_v27, %v3007_v15  ;;  %v9010_v40 = vadd.f32 %v8830_v45, %v3268_v2  ;;  %v9024_v45 = vpop.f32.mrf.mxu0  ;;  %v2710_v2 = vadd.f32 %v8740_v61, %v8568_v6  ;;  %v10236_v6 = vld [vmem:[#allocation19_spill] sm:$0xff] }
 0x3c1   : > { %v9014_v32 = vpop.f32.mrf.mxu1  ;;  %v3241_v63 = vadd.f32 %v8860_v10, %v2977_v49 }
 0x3c2   : > { %v9021_v48 = vadd.f32 %v8840_v25, %v3271_v23  ;;  %v9038_v27 = vpop.f32.mrf.mxu0  ;;  %v2981_v61 = vadd.f32 %v10236_v6, %v2710_v2  ;;  %v10240_v6 = vld [vmem:[#allocation38_spill] sm:$0xff] }
 0x3c3   : > { %v6259_v46 = vpop.f32.mrf.mxu1  ;;  %v3499_v15 = vadd.f32 %v8576_v42, %v3241_v63 }
 0x3c4   : > { %v3771_v41 = vadd.f32 %v6259_v46, %v3500_v24  ;;  %v3245_v23 = vadd.f32 %v8887_v52, %v2981_v61  ;;  %v9049_v46 = vpop.f32.mrf.mxu0  ;;  %v2987_v52 = vadd.f32 %v10238_v62, %v10237_v59  ;;  %v10241_v61 = vld [vmem:[#allocation27_spill] sm:$0xff]  ;;  %v10245_v62 = vld [vmem:[#allocation24_spill] sm:$0xff] }
 0x3c5   : > { %v3642_v4 = vpop.f32.mrf.mxu1 }
 0x3c6   : > { %v4035_v20 = vadd.f32 %v8858_v58, %v3771_v41  ;;  %v3769_v8 = vadd.f32 %v3642_v4, %v8856_v53 }
 0x3c7   : > { %v6260_v5 = vpop.f32.mrf.mxu1 }
 0x3c8   : > { %v4033_v25 = vadd.f32 %v8872_v55, %v3769_v8  ;;  %v3772_v10 = vadd.f32 %v6260_v5, %v3501_v36  ;;  %v4074_v53 = vadd.f32 %v9034_v50, %v4035_v20 }
 0x3c9   : > { %v3645_v58 = vpop.f32.mrf.mxu1 }
 0x3ca   : > { %v4036_v7 = vadd.f32 %v8885_v14, %v3772_v10  ;;  %v3770_v56 = vadd.f32 %v3645_v58, %v3499_v15  ;;  %v4072_v55 = vadd.f32 %v9034_v50, %v4033_v25  ;;  %v4106_v41 = vmax.f32 %v4074_v53, 0.0  ;;  %v9057_v15 = vpop.f32.mrf.mxu0 }
 0x3cb   : > { %v6263_v1 = vpop.f32.mrf.mxu1  ;;  %v2985_v58 = vadd.f32 %v10241_v61, %v10240_v6 }
 0x3cc   : > { %v4075_v42 = vadd.f32 %v9034_v50, %v4036_v7  ;;  %v4034_v49 = vadd.f32 %v8904_v43, %v3770_v56  ;;  %v3775_v24 = vadd.f32 %v6263_v1, %v3504_v11  ;;  %v4104_v36 = vmax.f32 %v4072_v55, 0.0  ;;  %v10239_v43 = vld [vmem:[#allocation20_spill] sm:$0xff] }
 0x3cd   : > { %v3658_v63 = vpop.f32.mrf.mxu1  ;;  %v3503_v10 = vadd.f32 %v10239_v43, %v3245_v23  ;;  %v3251_v56 = vadd.f32 %v8906_v12, %v2987_v52 }
 0x3ce   : > { %v4107_v2 = vmax.f32 %v4075_v42, 0.0  ;;  %v4073_v14 = vadd.f32 %v9034_v50, %v4034_v49  ;;  %v3773_v4 = vadd.f32 %v3658_v63, %v8879_v54  ;;  %v4039_v20 = vadd.f32 %v8911_v51, %v3775_v24  ;;  %v10242_v51 = vld [vmem:[#allocation22_spill] sm:$0xff]  ;;  %v10243_v24 = vld [vmem:[#allocation23_spill] sm:$0xff] }
 0x3cf   : > { %v6264_v8 = vpop.f32.mrf.mxu1  ;;  %v3508_v1 = vadd.f32 %v10242_v51, %v8900_v57  ;;  %v3249_v63 = vadd.f32 %v10243_v24, %v2985_v58  ;;  %v3509_v52 = vadd.f32 %v10245_v62, %v3251_v56  ;;  %v10248_v58 = vld [vmem:[#allocation37_spill] sm:$0xff] }
 0x3d0   : > { %v4137_v5 = vpack.c.bf16 %v4107_v2, %v4106_v41  ;;  %v4105_v25 = vmax.f32 %v4073_v14, 0.0  ;;  %v4037_v53 = vadd.f32 %v8921_v37, %v3773_v4  ;;  %v3776_v54 = vadd.f32 %v6264_v8, %v8894_v26  ;;  %v9070_v26 = vpop.f32.mrf.mxu0 }
 0x3d1   : > { %v3661_v7 = vpop.f32.mrf.mxu1  ;;  %v4078_v42 = vadd.f32 %v9034_v50, %v4039_v20 }
 0x3d2   : > { %v3774_v11 = vadd.f32 %v3661_v7, %v3503_v10  ;;  %v4136_v55 = vpack.c.bf16 %v4105_v25, %v4104_v36  ;;  %v4040_v23 = vadd.f32 %v8928_v9, %v3776_v54  ;;  %v4076_v12 = vadd.f32 %v9034_v50, %v4037_v53  ;;  %v10244_v9 = vld [vmem:[#allocation21_spill] sm:$0xff]  ;;  %v10246_v10 = vld [vmem:[#allocation35_spill] sm:$0xff]  ;;  %v9080_v61 = vpop.f32.mrf.mxu0 }
 0x3d3   : > { %v6267_v49 = vpop.f32.mrf.mxu1  ;;  %v4110_v20 = vmax.f32 %v4078_v42, 0.0  ;;  %v3507_v6 = vadd.f32 %v10246_v10, %v3249_v63 }
 0x3d4   : > { %v4038_v41 = vadd.f32 %v8941_v22, %v3774_v11  ;;  %v3779_v37 = vadd.f32 %v6267_v49, %v3508_v1  ;;  %6353 = vmatprep.mubr.bf16.mxu0 %v4136_v55  ;;  %v4079_v2 = vadd.f32 %v9034_v50, %v4040_v23  ;;  %v4108_v54 = vmax.f32 %v4076_v12, 0.0  ;;  %v10249_v1 = vld [vmem:[#allocation26_spill] sm:$0xff] }
 0x3d5   : > { %v3674_v14 = vpop.f32.mrf.mxu1  ;;  %6354 = vmatmul.mubr.bf16.vlgmr.msra.gmra.mxu0 %v4137_v5  ;;  %v10247_v5 = vld [vmem:[#allocation43_spill] sm:$0xff]  ;;  %v3512_v55 = vadd.f32 %v10249_v1, %v8917_v21  ;;  %v10250_v21 = vld [vmem:[#allocation29_spill] sm:$0xff] }
 0x3d6   : > { %v4077_v57 = vadd.f32 %v9034_v50, %v4038_v41  ;;  %v4043_v4 = vadd.f32 %v8948_v0, %v3779_v37  ;;  %v3777_v59 = vadd.f32 %v3674_v14, %v10244_v9  ;;  %v4111_v22 = vmax.f32 %v4079_v2, 0.0  ;;  %v9092_v37 = vpop.f32.mrf.mxu0 }
 0x3d7   : > { %v6268_v8 = vpop.f32.mrf.mxu1  ;;  %v2989_v53 = vadd.f32 %v10248_v58, %v10247_v5  ;;  %v10254_v5 = vld [vmem:[#allocation28_spill] sm:$0xff] }
 0x3d8   : > { %v4109_v36 = vmax.f32 %v4077_v57, 0.0  ;;  %v4041_v25 = vadd.f32 %v8961_v19, %v3777_v59  ;;  %v3780_v43 = vadd.f32 %v6268_v8, %v3509_v52  ;;  %v4139_v0 = vpack.c.bf16 %v4111_v22, %v4110_v20  ;;  %v10251_v52 = vld [vmem:[#allocation41_spill] sm:$0xff]  ;;  %v9098_v20 = vpop.f32.mrf.mxu0 }
 0x3d9   : > { %v3677_v7 = vpop.f32.mrf.mxu1  ;;  %v4082_v11 = vadd.f32 %v9034_v50, %v4043_v4  ;;  %v3253_v19 = vadd.f32 %v8930_v39, %v2989_v53 }
 0x3da   : > { %v4044_v56 = vadd.f32 %v8968_v13, %v3780_v43  ;;  %v3778_v51 = vadd.f32 %v3677_v7, %v3507_v6  ;;  %v4138_v23 = vpack.c.bf16 %v4109_v36, %v4108_v54  ;;  %v4080_v49 = vadd.f32 %v9034_v50, %v4041_v25  ;;  %v10252_v25 = vld [vmem:[#allocation50_spill] sm:$0xff]  ;;  %v10253_v43 = vld [vmem:[#allocation52_spill] sm:$0xff] }
 0x3db   : > { %v6271_v42 = vpop.f32.mrf.mxu1  ;;  %v4114_v13 = vmax.f32 %v4082_v11, 0.0  ;;  %v2993_v10 = vadd.f32 %v10253_v43, %v10252_v25 }
 0x3dc   : > { %v4083_v24 = vadd.f32 %v9034_v50, %v4044_v56  ;;  %v4042_v63 = vadd.f32 %v8981_v29, %v3778_v51  ;;  %v3783_v41 = vadd.f32 %v6271_v42, %v3512_v55  ;;  %6357 = vmatprep.mubr.bf16.mxu0 %v4138_v23  ;;  %v4112_v9 = vmax.f32 %v4080_v49, 0.0 }
 0x3dd   : > { %v3690_v12 = vpop.f32.mrf.mxu1  ;;  %6358 = vmatmul.mubr.bf16.gmra.mxu0 %v4139_v0  ;;  %v3511_v29 = vadd.f32 %v10251_v52, %v3253_v19  ;;  %v3257_v7 = vadd.f32 %v8950_v33, %v2993_v10  ;;  %v10255_v19 = vld [vmem:[#allocation31_spill] sm:$0xff] }
 0x3de   : > { %v4115_v2 = vmax.f32 %v4083_v24, 0.0  ;;  %v4081_v14 = vadd.f32 %v9034_v50, %v4042_v63  ;;  %v3781_v57 = vadd.f32 %v3690_v12, %v10250_v21  ;;  %v4047_v39 = vadd.f32 %v8988_v35, %v3783_v41  ;;  %v10256_v63 = vld [vmem:[#allocation30_spill] sm:$0xff] }
 0x3df   : > { %v6272_v4 = vpop.f32.mrf.mxu1  ;;  %v3516_v35 = vadd.f32 %v10254_v5, %v8937_v28  ;;  %v3515_v41 = vadd.f32 %v10256_v63, %v3257_v7  ;;  %v10260_v5 = vld [vmem:[#allocation33_spill] sm:$0xff] }
 0x3e0   : > { %v4141_v59 = vpack.c.bf16 %v4115_v2, %v4114_v13  ;;  %v4113_v62 = vmax.f32 %v4081_v14, 0.0  ;;  %v4045_v22 = vadd.f32 %v9001_v60, %v3781_v57  ;;  %v3784_v8 = vadd.f32 %v6272_v4, %v8935_v17  ;;  %v3989_v17 = vpop.f32.mrf.mxu0  ;;  %v10257_v13 = vld [vmem:[#allocation36_spill] sm:$0xff] }
 0x3e1   : > { %v3693_v36 = vpop.f32.mrf.mxu1  ;;  %v4086_v53 = vadd.f32 %v9034_v50, %v4047_v39  ;;  %v10258_v2 = vld [vmem:[#allocation56_spill] sm:$0xff] }
 0x3e2   : > { %v3782_v6 = vadd.f32 %v3693_v36, %v3511_v29  ;;  %v4140_v58 = vpack.c.bf16 %v4113_v62, %v4112_v9  ;;  %v4048_v54 = vadd.f32 %v9012_v47, %v3784_v8  ;;  %v4084_v56 = vadd.f32 %v9034_v50, %v4045_v22  ;;  %v6331_v12 = vpop.f32.mrf.mxu0 }
 0x3e3   : > { %v6275_v0 = vpop.f32.mrf.mxu1  ;;  %v4118_v42 = vmax.f32 %v4086_v53, 0.0  ;;  %v2997_v14 = vadd.f32 %v10258_v2, %v10257_v13 }
 0x3e4   : > { %v4046_v60 = vadd.f32 %v9024_v45, %v3782_v6  ;;  %v3787_v11 = vadd.f32 %v6275_v0, %v3516_v35  ;;  %6361 = vmatprep.mubr.bf16.mxu1 %v4140_v58  ;;  %v4087_v51 = vadd.f32 %v9034_v50, %v4048_v54  ;;  %v4116_v21 = vmax.f32 %v4084_v56, 0.0  ;;  %v4002_v25 = vpop.f32.mrf.mxu0  ;;  %v10261_v0 = vld [vmem:[#allocation47_spill] sm:$0xff] }
 0x3e5   : > { %v3706_v1 = vpop.f32.mrf.mxu1  ;;  %6362 = vmatmul.mubr.bf16.vlgmr.msra.gmra.mxu1 %v4141_v59  ;;  %v10259_v59 = vld [vmem:[#allocation34_spill] sm:$0xff] }
 0x3e6   : > { %v4085_v28 = vadd.f32 %v9034_v50, %v4046_v60  ;;  %v4051_v55 = vadd.f32 %v9038_v27, %v3787_v11  ;;  %v3785_v47 = vadd.f32 %v3706_v1, %v10255_v19  ;;  %v4119_v23 = vmax.f32 %v4087_v51, 0.0  ;;  %v10262_v51 = vld [vmem:[#allocation15_spill] sm:$0xff]  ;;  %v10263_v1 = vld [vmem:[#allocation62_spill] sm:$0xff]  ;;  %v10264_v19 = vld [vmem:[#allocation49_spill] sm:$0xff] }
 0x3e7   : > { %v6276_v33 = vpop.f32.mrf.mxu1  ;;  %v3520_v62 = vadd.f32 %v10259_v59, %v8957_v38  ;;  %v10267_v59 = vld [vmem:[#allocation18_spill] sm:$0xff] }
 0x3e8   : > { %v4117_v49 = vmax.f32 %v4085_v28, 0.0  ;;  %v4049_v45 = vadd.f32 %v9049_v46, %v3785_v47  ;;  %v3788_v24 = vadd.f32 %v6276_v33, %v8955_v18  ;;  %v4143_v57 = vpack.c.bf16 %v4119_v23, %v4118_v42 }
 0x3e9   : > { %v3709_v39 = vpop.f32.mrf.mxu1  ;;  %v4090_v27 = vadd.f32 %v9034_v50, %v4051_v55  ;;  %v3261_v46 = vadd.f32 %v8970_v3, %v2997_v14  ;;  %v3001_v28 = vadd.f32 %v10263_v1, %v10262_v51  ;;  %v3524_v47 = vadd.f32 %v10264_v19, %v8977_v44 }
 0x3ea   : > { %v4052_v4 = vadd.f32 %v9057_v15, %v3788_v24  ;;  %v3786_v9 = vadd.f32 %v3709_v39, %v3515_v41  ;;  %v4142_v52 = vpack.c.bf16 %v4117_v49, %v4116_v21  ;;  %v4088_v29 = vadd.f32 %v9034_v50, %v4049_v45 }
 0x3eb   : > { %v6279_v18 = vpop.f32.mrf.mxu1  ;;  %v4122_v10 = vmax.f32 %v4090_v27, 0.0  ;;  %v3519_v7 = vadd.f32 %v10261_v0, %v3261_v46  ;;  %v3265_v49 = vadd.f32 %v8990_v31, %v3001_v28  ;;  %v10265_v27 = vld [vmem:[#allocation44_spill] sm:$0xff] }
 0x3ec   : > { %v4091_v22 = vadd.f32 %v9034_v50, %v4052_v4  ;;  %v4050_v8 = vadd.f32 %v9070_v26, %v3786_v9  ;;  %v3791_v36 = vadd.f32 %v6279_v18, %v3520_v62  ;;  %6365 = vmatprep.mubr.bf16.mxu1 %v4142_v52  ;;  %v4120_v58 = vmax.f32 %v4088_v29, 0.0  ;;  %v6332_v26 = vpop.f32.mrf.mxu0  ;;  %v10266_v9 = vld [vmem:[#allocation60_spill] sm:$0xff] }
 0x3ed   : > { %v3722_v43 = vpop.f32.mrf.mxu1  ;;  %6366 = vmatmul.mubr.bf16.gmra.mxu1 %v4143_v57  ;;  %v3523_v4 = vadd.f32 %v10265_v27, %v3265_v49  ;;  %v3005_v62 = vadd.f32 %v10267_v59, %v10266_v9  ;;  %v6597_v9 = vld [vmem:[%s6997_s20 + $0x30] sm:$0xf] }
 0x3ee   : > { %v4123_v15 = vmax.f32 %v4091_v22, 0.0  ;;  %v4089_v6 = vadd.f32 %v9034_v50, %v4050_v8  ;;  %v3789_v38 = vadd.f32 %v3722_v43, %v10260_v5  ;;  %v4055_v3 = vadd.f32 %v9080_v61, %v3791_v36  ;;  %v10268_v22 = vld [vmem:[#allocation42_spill] sm:$0xff]  ;;  %v10269_v8 = vld [vmem:[#allocation57_spill] sm:$0xff] }
 0x3ef   : > { %v6280_v35 = vpop.f32.mrf.mxu1  ;;  %v3528_v36 = vadd.f32 %v10269_v8, %v10268_v22  ;;  %v4244_v59 = vshrl.u32 %v6597_v9, 16 }
 0x3f0   : > { %v4145_v53 = vpack.c.bf16 %v4123_v15, %v4122_v10  ;;  %v4121_v54 = vmax.f32 %v4089_v6, 0.0  ;;  %v4053_v60 = vadd.f32 %v9092_v37, %v3789_v38  ;;  %v3792_v11 = vadd.f32 %v6280_v35, %v8975_v34  ;;  %v4005_v34 = vpop.f32.mrf.mxu0 }
 0x3f1   : > { %v3725_v56 = vpop.f32.mrf.mxu1  ;;  %v4094_v42 = vadd.f32 %v9034_v50, %v4055_v3 }
 0x3f2   : > { %v3790_v55 = vadd.f32 %v3725_v56, %v3519_v7  ;;  %v4144_v61 = vpack.c.bf16 %v4121_v54, %v4120_v58  ;;  %v4056_v23 = vadd.f32 %v9098_v20, %v3792_v11  ;;  %v4092_v24 = vadd.f32 %v9034_v50, %v4053_v60  ;;  %v6335_v14 = vpop.f32.mrf.mxu0 }
 0x3f3   : > { %v6283_v33 = vpop.f32.mrf.mxu1  ;;  %v4126_v20 = vmax.f32 %v4094_v42, 0.0 }
 0x3f4   : > { %v4054_v45 = vadd.f32 %v3989_v17, %v3790_v55  ;;  %v3795_v37 = vadd.f32 %v6283_v33, %v3524_v47  ;;  %6369 = vmatprep.mubr.bf16.mxu1 %v4144_v61  ;;  %v4095_v63 = vadd.f32 %v9034_v50, %v4056_v23  ;;  %v4124_v46 = vmax.f32 %v4092_v24, 0.0  ;;  %v4018_v43 = vpop.f32.mrf.mxu0 }
 0x3f5   : > { %v3738_v41 = vpop.f32.mrf.mxu1  ;;  %6370 = vmatmul.mubr.bf16.gmra.mxu1 %v4145_v53 }
 0x3f6   : > { %v4093_v13 = vadd.f32 %v9034_v50, %v4054_v45  ;;  %v4059_v44 = vadd.f32 %v6331_v12, %v3795_v37  ;;  %v3793_v2 = vadd.f32 %v3738_v41, %v8986_v16  ;;  %v4127_v21 = vmax.f32 %v4095_v63, 0.0  ;;  %v6336_v0 = vpop.f32.mrf.mxu0 }
 0x3f7   : > { %v6284_v57 = vpop.f32.mrf.mxu1 }
 0x3f8   : > { %v4125_v31 = vmax.f32 %v4093_v13, 0.0  ;;  %v4057_v17 = vadd.f32 %v4002_v25, %v3793_v2  ;;  %v3796_v39 = vadd.f32 %v6284_v57, %v8995_v30  ;;  %v4147_v18 = vpack.c.bf16 %v4127_v21, %v4126_v20  ;;  %v4021_v61 = vpop.f32.mrf.mxu0  ;;  %v6594_v13 = vld [vmem:[%s6997_s20 + $0xc] sm:$0xf]  ;;  %v6595_v57 = vld [vmem:[%s6997_s20 + $0x10] sm:$0xf] }
 0x3f9   : > { %v3741_v52 = vpop.f32.mrf.mxu1  ;;  %v4098_v12 = vadd.f32 %v9034_v50, %v4059_v44  ;;  %v3269_v25 = vadd.f32 %v9014_v32, %v3005_v62  ;;  %v4172_v44 = vshrl.u32 %v6594_v13, 16  ;;  %v4175_v2 = vshll.u32 %v6594_v13, 16 }
 0x3fa   : > { %v4060_v16 = vadd.f32 %v6332_v26, %v3796_v39  ;;  %v3794_v29 = vadd.f32 %v3741_v52, %v3523_v4  ;;  %v4146_v30 = vpack.c.bf16 %v4125_v31, %v4124_v46  ;;  %v4096_v15 = vadd.f32 %v9034_v50, %v4057_v17  ;;  %v10270_v26 = vld [vmem:[#allocation40_spill] sm:$0xff]  ;;  %v6596_v39 = vld [vmem:[%s6997_s20 + $0x20] sm:$0xf]  ;;  %v6599_v52 = vld [vmem:[%s6997_s20 + $0x24] sm:$0xf] }
 0x3fb   : > { %v6287_v10 = vpop.f32.mrf.mxu1  ;;  %v4130_v35 = vmax.f32 %v4098_v12, 0.0  ;;  %v3527_v60 = vadd.f32 %v10270_v26, %v3269_v25  ;;  %v4177_v21 = vrot.slane %v4175_v2, 5  ;;  %v4181_v31 = vshll.u32 %v6595_v57, 16  ;;  %v6598_v46 = vld [vmem:[%s6997_s20 + $0x14] sm:$0xf] }
 0x3fc   : > { %v4099_v6 = vadd.f32 %v9034_v50, %v4060_v16  ;;  %v4058_v5 = vadd.f32 %v4005_v34, %v3794_v29  ;;  %v3799_v38 = vadd.f32 %v6287_v10, %v3528_v36  ;;  %6373 = vmatprep.mubr.bf16.mxu1 %v4146_v30  ;;  %v4128_v11 = vmax.f32 %v4096_v15, 0.0 }
 0x3fd   : > { %v3754_v3 = vpop.f32.mrf.mxu1  ;;  %6374 = vmatmul.mubr.bf16.gmra.mxu1 %v4147_v18  ;;  %v4185_v17 = vshrl.u32 %v6595_v57, 16  ;;  %v4215_v27 = vshll.u32 %v6596_v39, 16  ;;  %v4247_v62 = vshll.u32 %v6597_v9, 16  ;;  %v4191_v18 = vshll.u32 %v6598_v46, 16  ;;  %v6607_v39 = vld [vmem:[%s6997_s20 + $0x40] sm:$0xf] }
 0x3fe   : > { %v4131_v58 = vmax.f32 %v4099_v6, 0.0  ;;  %v4097_v53 = vadd.f32 %v9034_v50, %v4058_v5  ;;  %v3797_v54 = vadd.f32 %v3754_v3, %v9010_v40  ;;  %v4063_v7 = vadd.f32 %v6335_v14, %v3799_v38  ;;  %v10271_v14 = vld [vmem:[#allocation39_spill] sm:$0xff]  ;;  %v10272_v5 = vld [vmem:[#allocation13_spill] sm:$0xff] }
 0x3ff   : > { %v6288_v32 = vpop.f32.mrf.mxu1  ;;  %v4209_v20 = vshrl.u32 %v10271_v14, 16  ;;  %v4220_v12 = vshrl.u32 %v6599_v52, 16  ;;  %v9170_v16 = vrot.slane %v4181_v31, 5  ;;  %v4187_v29 = vrot.slane %v4185_v17, 4 }
 0x400   : > { %v4149_v56 = vpack.c.bf16 %v4131_v58, %v4130_v35  ;;  %v4129_v51 = vmax.f32 %v4097_v53, 0.0  ;;  %v4061_v1 = vadd.f32 %v4018_v43, %v3797_v54  ;;  %v3800_v28 = vadd.f32 %v6288_v32, %v9021_v48  ;;  %v6600_v43 = vld [vmem:[%s6997_s20 + $0x34] sm:$0xf]  ;;  %v6601_v58 = vld [vmem:[%s6997_s20 + $0x28] sm:$0xf] }
 0x401   : > { %v3757_v55 = vpop.f32.mrf.mxu1  ;;  %v4102_v42 = vadd.f32 %v9034_v50, %v4063_v7  ;;  %v4211_v4 = vrot.slane %v4209_v20, 4  ;;  %v4223_v22 = vshll.u32 %v6599_v52, 16  ;;  %v9172_v36 = vrot.slane %v4215_v27, 5 }
 0x402   : > { %v3798_v19 = vadd.f32 %v3757_v55, %v3527_v60  ;;  %v4148_v47 = vpack.c.bf16 %v4129_v51, %v4128_v11  ;;  %v4064_v40 = vadd.f32 %v6336_v0, %v3800_v28  ;;  %v4100_v23 = vadd.f32 %v9034_v50, %v4061_v1  ;;  %v6602_v51 = vld [vmem:[%s6997_s20 + $0x38] sm:$0xf]  ;;  %v6603_v28 = vld [vmem:[%s6997_s20 + $0x48] sm:$0xf] }
 0x403   : > { %v4134_v37 = vmax.f32 %v4102_v42, 0.0  ;;  %v4253_v25 = vshll.u32 %v6600_v43, 16  ;;  %v4257_v10 = vshrl.u32 %v6600_v43, 16  ;;  %v4246_v30 = vrot.slane %v4244_v59, 4 }
 0x404   : > { %v4062_v33 = vadd.f32 %v4021_v61, %v3798_v19  ;;  %6377 = vmatprep.mubr.bf16.mxu1 %v4148_v47  ;;  %v4103_v49 = vadd.f32 %v9034_v50, %v4064_v40  ;;  %v4132_v34 = vmax.f32 %v4100_v23, 0.0  ;;  %v4249_v15 = vrot.slane %v4247_v62, 5 }
 0x405   : > { %6378 = vmatmul.mubr.bf16.gmra.mxu1 %v4149_v56  ;;  %v4212_v38 = vor.u32 %v4211_v4, %v10272_v5  ;;  %v9178_v3 = vrot.slane %v4191_v18, 5  ;;  %v4222_v35 = vrot.slane %v4220_v12, 4  ;;  %v4229_v53 = vshll.u32 %v6601_v58, 16  ;;  %v6608_v12 = vld [vmem:[%s6997_s20 + $0x50] sm:$0xf] }
 0x406   : > { %v4101_v45 = vadd.f32 %v9034_v50, %v4062_v33  ;;  %v4135_v48 = vmax.f32 %v4103_v49, 0.0  ;;  %v4174_v50 = vrot.slane %v4172_v44, 4  ;;  %v4233_v54 = vshrl.u32 %v6601_v58, 16  ;;  %v6604_v33 = vld [vmem:[%s6997_s20 + $0x2c] sm:$0xf] }
 0x407   : > { %v4225_v0 = vrot.slane %v4223_v22, 5  ;;  %v9185_v26 = vrot.slane %v4212_v38, 4  ;;  %v4188_v60 = vor.u32 %v4187_v29, %v9170_v16  ;;  %v9188_v11 = vrot.slane %v4253_v25, 5  ;;  %v6606_v44 = vld [vmem:[%s6997_s20 + $0x4c] sm:$0xf] }
 0x408   : > { %v4133_v24 = vmax.f32 %v4101_v45, 0.0  ;;  %v4151_v63 = vpack.c.bf16 %v4135_v48, %v4134_v37  ;;  %v4178_v8 = vor.u32 %v4177_v21, %v4174_v50  ;;  %v4259_v56 = vrot.slane %v4257_v10, 4  ;;  %v6605_v45 = vld [vmem:[%s6997_s20 + $0x3c] sm:$0xf]  ;;  %v6609_v22 = vld [vmem:[%s6997_s20 + $0x60] sm:$0xf] }
 0x409   : > { %v4263_v1 = vshll.u32 %v6602_v51, 16  ;;  %v4292_v55 = vshrl.u32 %v6603_v28, 16  ;;  %v4295_v19 = vshll.u32 %v6603_v28, 16  ;;  %v9196_v61 = vrot.slane %v4188_v60, 4  ;;  %v6629_v50 = vld [vmem:[%s6997_s20 + $0x9c] sm:$0xf] }
 0x40a   : > { %v4150_v41 = vpack.c.bf16 %v4133_v24, %v4132_v34  ;;  %v9175_v6 = vrot.slane %v4178_v8, 4  ;;  %v4250_v42 = vor.u32 %v4249_v15, %v4246_v30  ;;  %v9198_v40 = vrot.slane %v4229_v53, 5  ;;  %v6611_v53 = vld [vmem:[%s6997_s20 + $0x54] sm:$0xf] }
 0x40b   : > { %v4235_v23 = vrot.slane %v4233_v54, 4  ;;  %v4239_v49 = vshll.u32 %v6604_v33, 16  ;;  %v4268_v37 = vshrl.u32 %v6605_v45, 16  ;;  %v4271_v48 = vshll.u32 %v6605_v45, 16 }
 0x40c   : > { %6381 = vmatprep.mubr.bf16.mxu1 %v4150_v41  ;;  %v9206_v24 = vrot.slane %v4250_v42, 4  ;;  %v9208_v41 = vrot.slane %v4263_v1, 5  ;;  %v4294_v13 = vrot.slane %v4292_v55, 4  ;;  %v4301_v2 = vshll.u32 %v6606_v44, 16  ;;  %v6612_v55 = vld [vmem:[%s6997_s20 + $0x64] sm:$0xf] }
 0x40d   : > { %6382 = vmatmul.mubr.bf16.gmra.mxu1 %v4151_v63  ;;  %v4226_v63 = vor.u32 %v4225_v0, %v4222_v35  ;;  %v4305_v14 = vshrl.u32 %v6606_v44, 16  ;;  %v4297_v20 = vrot.slane %v4295_v19, 5  ;;  %v4260_v57 = vor.u32 %v4259_v56, %v9188_v11  ;;  %v6610_v35 = vld [vmem:[%s6997_s20 + $0x44] sm:$0xf] }
 0x40e   : > { %v9218_v31 = vrot.slane %v4239_v49, 5  ;;  %v4270_v17 = vrot.slane %v4268_v37, 4  ;;  %v4277_v27 = vshll.u32 %v6607_v39, 16  ;;  %v4281_v4 = vshrl.u32 %v6607_v39, 16 }
 0x40f   : > { %v9215_v21 = vrot.slane %v4226_v63, 4  ;;  %v4273_v9 = vrot.slane %v4271_v48, 5  ;;  %v9225_v62 = vrot.slane %v4260_v57, 4  ;;  %v4236_v46 = vor.u32 %v4235_v23, %v9198_v40  ;;  %v6613_v63 = vld [vmem:[%s6997_s20 + $0x58] sm:$0xf] }
 0x410   : > { %v9228_v18 = vrot.slane %v4301_v2, 5  ;;  %v4307_v52 = vrot.slane %v4305_v14, 4  ;;  %v4311_v29 = vshll.u32 %v6608_v12, 16  ;;  %v4340_v8 = vshrl.u32 %v6609_v22, 16 }
 0x411   : > { %v4343_v43 = vshll.u32 %v6609_v22, 16  ;;  %v9236_v10 = vrot.slane %v4236_v46, 4  ;;  %v4298_v30 = vor.u32 %v4297_v20, %v4294_v13  ;;  %v9238_v15 = vrot.slane %v4277_v27, 5  ;;  %v6614_v27 = vld [vmem:[%s6997_s20 + $0x68] sm:$0xf] }
 0x412   : > { %v4283_v38 = vrot.slane %v4281_v4, 4  ;;  %v4287_v58 = vshll.u32 %v6610_v35, 16  ;;  %v4316_v54 = vshrl.u32 %v6611_v53, 16  ;;  %v4319_v0 = vshll.u32 %v6611_v53, 16  ;;  %v6617_v35 = vld [vmem:[%s6997_s20 + $0x6c] sm:$0xf] }
 0x413   : > { %v9246_v56 = vrot.slane %v4298_v30, 4  ;;  %v4274_v51 = vor.u32 %v4273_v9, %v4270_v17  ;;  %v9248_v1 = vrot.slane %v4311_v29, 5  ;;  %v4342_v28 = vrot.slane %v4340_v8, 4  ;;  %v6615_v9 = vld [vmem:[%s6997_s20 + $0x78] sm:$0xf] }
 0x414   : > { %v4349_v19 = vshll.u32 %v6612_v55, 16  ;;  %v4353_v42 = vshrl.u32 %v6612_v55, 16  ;;  %v4345_v23 = vrot.slane %v4343_v43, 5  ;;  %v4308_v45 = vor.u32 %v4307_v52, %v9228_v18  ;;  %v6616_v30 = vld [vmem:[%s6997_s20 + $0x5c] sm:$0xf] }
 0x415   : > { %v9255_v49 = vrot.slane %v4274_v51, 4  ;;  %v9258_v37 = vrot.slane %v4287_v58, 5  ;;  %v4318_v48 = vrot.slane %v4316_v54, 4  ;;  %v4325_v13 = vshll.u32 %v6613_v63, 16 }
 0x416   : > { %v4329_v44 = vshrl.u32 %v6613_v63, 16  ;;  %v4321_v2 = vrot.slane %v4319_v0, 5  ;;  %v9265_v20 = vrot.slane %v4308_v45, 4  ;;  %v4284_v57 = vor.u32 %v4283_v38, %v9238_v15  ;;  %v6623_v63 = vld [vmem:[%s6997_s20 + $0x84] sm:$0xf] }
 0x417   : > { %v9268_v17 = vrot.slane %v4349_v19, 5  ;;  %v4355_v39 = vrot.slane %v4353_v42, 4  ;;  %v4359_v4 = vshll.u32 %v6614_v27, 16  ;;  %v4388_v46 = vshrl.u32 %v6615_v9, 16  ;;  %v6618_v19 = vld [vmem:[%s6997_s20 + $0x7c] sm:$0xf] }
 0x418   : > { %v4391_v52 = vshll.u32 %v6615_v9, 16  ;;  %v9276_v29 = vrot.slane %v4284_v57, 4  ;;  %v4346_v22 = vor.u32 %v4345_v23, %v4342_v28  ;;  %v9278_v8 = vrot.slane %v4325_v13, 5 }
 0x419   : > { %v4331_v43 = vrot.slane %v4329_v44, 4  ;;  %v4335_v38 = vshll.u32 %v6616_v30, 16  ;;  %v4364_v58 = vshrl.u32 %v6617_v35, 16  ;;  %v4367_v53 = vshll.u32 %v6617_v35, 16 }
 0x41a   : > { %v9286_v0 = vrot.slane %v4346_v22, 4  ;;  %v4322_v51 = vor.u32 %v4321_v2, %v4318_v48  ;;  %v9288_v55 = vrot.slane %v4359_v4, 5  ;;  %v4390_v28 = vrot.slane %v4388_v46, 4  ;;  %v6619_v2 = vld [vmem:[%s6997_s20 + $0x70] sm:$0xf] }
 0x41b   : > { %v4397_v42 = vshll.u32 %v6618_v19, 16  ;;  %v4401_v23 = vshrl.u32 %v6618_v19, 16  ;;  %v4393_v45 = vrot.slane %v4391_v52, 5  ;;  %v4356_v44 = vor.u32 %v4355_v39, %v9268_v17 }
 0x41c   : > { %v9295_v13 = vrot.slane %v4322_v51, 4  ;;  %v9298_v57 = vrot.slane %v4335_v38, 5  ;;  %v4366_v48 = vrot.slane %v4364_v58, 4  ;;  %v4373_v27 = vshll.u32 %v6619_v2, 16  ;;  %v6620_v38 = vld [vmem:[%s6997_s20 + $0x80] sm:$0xf] }
 0x41d   : > { %v4377_v4 = vshrl.u32 %v6619_v2, 16  ;;  %v4369_v9 = vrot.slane %v4367_v53, 5  ;;  %v9305_v52 = vrot.slane %v4356_v44, 4  ;;  %v4332_v22 = vor.u32 %v4331_v43, %v9278_v8  ;;  %v6621_v58 = vld [vmem:[%s6997_s20 + $0x90] sm:$0xf] }
 0x41e   : > { %v9308_v30 = vrot.slane %v4397_v42, 5  ;;  %v4403_v39 = vrot.slane %v4401_v23, 4  ;;  %v4407_v35 = vshll.u32 %v6620_v38, 16  ;;  %v4436_v51 = vshrl.u32 %v6621_v58, 16  ;;  %v6622_v43 = vld [vmem:[%s6997_s20 + $0x74] sm:$0xf] }
 0x41f   : > { %v4439_v19 = vshll.u32 %v6621_v58, 16  ;;  %v9316_v2 = vrot.slane %v4332_v22, 4  ;;  %v4394_v44 = vor.u32 %v4393_v45, %v4390_v28  ;;  %v9318_v46 = vrot.slane %v4373_v27, 5  ;;  %v6624_v45 = vld [vmem:[%s6997_s20 + $0x94] sm:$0xf] }
 0x420   : > { %v4383_v42 = vshll.u32 %v6622_v43, 16  ;;  %v4412_v23 = vshrl.u32 %v6623_v63, 16  ;;  %v4415_v54 = vshll.u32 %v6623_v63, 16  ;;  %v4379_v38 = vrot.slane %v4377_v4, 4 }
 0x421   : > { %v9326_v12 = vrot.slane %v4394_v44, 4  ;;  %v4370_v53 = vor.u32 %v4369_v9, %v4366_v48  ;;  %v9328_v22 = vrot.slane %v4407_v35, 5  ;;  %v4438_v28 = vrot.slane %v4436_v51, 4  ;;  %v6625_v35 = vld [vmem:[%s6997_s20 + $0x88] sm:$0xf] }
 0x422   : > { %v4445_v27 = vshll.u32 %v6624_v45, 16  ;;  %v4449_v14 = vshrl.u32 %v6624_v45, 16  ;;  %v4441_v43 = vrot.slane %v4439_v19, 5  ;;  %v4404_v44 = vor.u32 %v4403_v39, %v9308_v30 }
 0x423   : > { %10274 = vst [vmem:[#allocation46_spill] sm:$0xff] %v9328_v22  ;;  %v9335_v4 = vrot.slane %v4370_v53, 4  ;;  %v9338_v58 = vrot.slane %v4383_v42, 5  ;;  %v4414_v48 = vrot.slane %v4412_v23, 4  ;;  %v4417_v9 = vrot.slane %v4415_v54, 5 }
 0x424   : > { %v4421_v51 = vshll.u32 %v6625_v35, 16  ;;  %v4425_v45 = vshrl.u32 %v6625_v35, 16  ;;  %v9345_v63 = vrot.slane %v4404_v44, 4  ;;  %v4380_v53 = vor.u32 %v4379_v38, %v9318_v46  ;;  %v6626_v42 = vld [vmem:[%s6997_s20 + $0x98] sm:$0xf] }
 0x425   : > { %10275 = vst [vmem:[#allocation51_spill] sm:$0xff] %v9338_v58  ;;  %v9348_v33 = vrot.slane %v4445_v27, 5  ;;  %v4451_v39 = vrot.slane %v4449_v14, 4  ;;  %v4455_v23 = vshll.u32 %v6626_v42, 16  ;;  %v6627_v54 = vld [vmem:[%s6997_s20 + $0xa8] sm:$0xf]  ;;  %v4442_v44 = vor.u32 %v4441_v43, %v4438_v28 }
 0x426   : > { %v4484_v60 = vshrl.u32 %v6627_v54, 16  ;;  %v4487_v25 = vshll.u32 %v6627_v54, 16  ;;  %v9356_v19 = vrot.slane %v4380_v53, 4  ;;  %v9358_v59 = vrot.slane %v4421_v51, 5  ;;  %v6628_v38 = vld [vmem:[%s6997_s20 + $0x8c] sm:$0xf] }
 0x427   : > { %10276 = vst [vmem:[#allocation53_spill] sm:$0xff] %v9348_v33  ;;  %v4431_v27 = vshll.u32 %v6628_v38, 16  ;;  %v4460_v14 = vshrl.u32 %v6629_v50, 16  ;;  %v4463_v34 = vshll.u32 %v6629_v50, 16  ;;  %v4427_v42 = vrot.slane %v4425_v45, 4 }
 0x428   : > { %10277 = vst [vmem:[#allocation54_spill] sm:$0xff] %v9356_v19  ;;  %10278 = vst [vmem:[#allocation55_spill] sm:$0xff] %v9358_v59  ;;  %v9366_v47 = vrot.slane %v4442_v44, 4  ;;  %v4418_v35 = vor.u32 %v4417_v9, %v4414_v48  ;;  %v9368_v53 = vrot.slane %v4455_v23, 5  ;;  %v4486_v28 = vrot.slane %v4484_v60, 4 }
 0x429   : > { %v6630_v43 = vld [vmem:[%s6997_s20 + $0xac] sm:$0xf]  ;;  %v4489_v38 = vrot.slane %v4487_v25, 5  ;;  %v4452_v44 = vor.u32 %v4451_v39, %v9348_v33  ;;  %v9378_v54 = vrot.slane %v4431_v27, 5  ;;  %v4462_v48 = vrot.slane %v4460_v14, 4 }
 0x42a   : > { %10279 = vst [vmem:[#allocation58_spill] sm:$0xff] %v9366_v47  ;;  %10280 = vst [vmem:[#allocation59_spill] sm:$0xff] %v9368_v53  ;;  %v4493_v51 = vshll.u32 %v6630_v43, 16  ;;  %v4497_v32 = vshrl.u32 %v6630_v43, 16  ;;  %v9375_v45 = vrot.slane %v4418_v35, 4  ;;  %v4465_v9 = vrot.slane %v4463_v34, 5 }
 0x42b   : > { %10282 = vst [vmem:[#allocation63_spill] sm:$0xff] %v9378_v54  ;;  %v6631_v60 = vld [vmem:[%s6997_s20 + $0xa0] sm:$0xf]  ;;  %v9385_v50 = vrot.slane %v4452_v44, 4  ;;  %v4428_v35 = vor.u32 %v4427_v42, %v9358_v59  ;;  %v6632_v27 = vld [vmem:[%s6997_s20 + $0xb0] sm:$0xf]  ;;  %v4490_v44 = vor.u32 %v4489_v38, %v4486_v28 }
 0x42c   : > { %10281 = vst [vmem:[#allocation61_spill] sm:$0xff] %v9375_v45  ;;  %v4469_v23 = vshll.u32 %v6631_v60, 16  ;;  %v4473_v43 = vshrl.u32 %v6631_v60, 16  ;;  %v9388_v47 = vrot.slane %v4493_v51, 5  ;;  %v4499_v39 = vrot.slane %v4497_v32, 4 }
 0x42d   : > { %v4503_v14 = vshll.u32 %v6632_v27, 16  ;;  %v6633_v34 = vld [vmem:[%s6997_s20 + $0xc0] sm:$0xf]  ;;  %v9396_v25 = vrot.slane %v4428_v35, 4  ;;  %v6634_v42 = vld [vmem:[%s6997_s20 + $0xa4] sm:$0xf]  ;;  %v4466_v60 = vor.u32 %v4465_v9, %v4462_v48 }
 0x42e   : > { %10283 = vst [vmem:[#allocation16_spill] sm:$0xff] %v9388_v47  ;;  %v4532_v33 = vshrl.u32 %v6633_v34, 16  ;;  %v4535_v58 = vshll.u32 %v6633_v34, 16  ;;  %v9398_v45 = vrot.slane %v4469_v23, 5  ;;  %v4479_v51 = vshll.u32 %v6634_v42, 16 }
 0x42f   : > { %v6635_v59 = vld [vmem:[%s6997_s20 + $0xb4] sm:$0xf]  ;;  %v4475_v27 = vrot.slane %v4473_v43, 4  ;;  %v9406_v22 = vrot.slane %v4490_v44, 4  ;;  %v9408_v35 = vrot.slane %v4503_v14, 5  ;;  %v9415_v43 = vrot.slane %v4466_v60, 4 }
 0x430   : > { %v4508_v32 = vshrl.u32 %v6635_v59, 16  ;;  %v4511_v19 = vshll.u32 %v6635_v59, 16  ;;  %v4534_v28 = vrot.slane %v4532_v33, 4  ;;  %v6636_v38 = vld [vmem:[%s6997_s20 + $0xc4] sm:$0xf]  ;;  %v4537_v42 = vrot.slane %v4535_v58, 5 }
 0x431   : > { %10284 = vst [vmem:[#allocation64_spill] sm:$0xff] %v9406_v22  ;;  %v4541_v23 = vshll.u32 %v6636_v38, 16  ;;  %v4545_v53 = vshrl.u32 %v6636_v38, 16  ;;  %10285 = vst [vmem:[#allocation45_spill] sm:$0xff] %v9415_v43  ;;  %v4500_v34 = vor.u32 %v4499_v39, %v9388_v47  ;;  %v9418_v44 = vrot.slane %v4479_v51, 5 }
 0x432   : > { %v4510_v48 = vrot.slane %v4508_v32, 4  ;;  %v4513_v9 = vrot.slane %v4511_v19, 5  ;;  %v6637_v33 = vld [vmem:[%s6997_s20 + $0xb8] sm:$0xf]  ;;  %v4476_v60 = vor.u32 %v4475_v27, %v9398_v45  ;;  %v6638_v51 = vld [vmem:[%s6997_s20 + $0xc8] sm:$0xf] }
 0x433   : > { %v4517_v14 = vshll.u32 %v6637_v33, 16  ;;  %v4521_v54 = vshrl.u32 %v6637_v33, 16  ;;  %v9425_v38 = vrot.slane %v4500_v34, 4  ;;  %v9428_v59 = vrot.slane %v4541_v23, 5  ;;  %v6639_v58 = vld [vmem:[%s6997_s20 + $0xbc] sm:$0xf] }
 0x434   : > { %v4547_v39 = vrot.slane %v4545_v53, 4  ;;  %v4551_v47 = vshll.u32 %v6638_v51, 16  ;;  %v9435_v32 = vrot.slane %v4476_v60, 4  ;;  %v4538_v33 = vor.u32 %v4537_v42, %v4534_v28  ;;  %s6644_s20 = sshll.u32 %s6738_s21, 4  ;;  %s6645_s20 = int_to_ptr.vmem [resolvable:$false] %s6644_s20 }
 0x435   : > { %v9437_v22 = vrot.slane %v4517_v14, 5  ;;  %v4527_v34 = vshll.u32 %v6639_v58, 16  ;;  %v4523_v43 = vrot.slane %v4521_v54, 4  ;;  %v4514_v23 = vor.u32 %v4513_v9, %v4510_v48  ;;  %s6646_s12 = scalar_lea.vmem %s6645_s20, 8192  ;;  %p6647_p6 = scmp.lt.s32.totalorder %s9709_s28, %s6645_s20 }
 0x436   : > { %v9444_v27 = vrot.slane %v4538_v33, 4  ;;  %v9446_v51 = vrot.slane %v4551_v47, 5  ;;  %v4548_v14 = vor.u32 %v4547_v39, %v9428_v59  ;;  %v9477_v33 = vld [vmem:[%s9772_s6] ss:$0 sm:$0xff]  ;;  %v10289_v39 = vsel %vm8881_vm8, %v9175_v6, %v9170_v16  ;;  %p6648_p7 = scmp.lt.s32.totalorder %s6646_s12, %s6640_s23 }
 0x437   : > { %v9452_v42 = vrot.slane %v4514_v23, 4  ;;  %v9455_v54 = vrot.slane %v4527_v34, 5  ;;  %v4524_v47 = vor.u32 %v4523_v43, %v9437_v22  ;;  %v10287_v43 = vld [vmem:[#allocation17_spill] sm:$0xff]  ;;  %v4587_v48 = vunpack.c.l.bf16 %v10289_v39 }
 0x438   : > { %v9461_v60 = vrot.slane %v4548_v14, 4  ;;  %v10288_v34 = vsel %vm8881_vm8, %v10287_v43, %v10272_v5  ;;  %v10290_v5 = vsel %vm8881_vm8, %v9185_v26, %v9172_v36  ;;  %v10291_v16 = vsel %vm8881_vm8, %v9196_v61, %v9178_v3  ;;  %p6649_p9 = por %p6648_p7, %p6647_p6 }
 0x439   : > { %10286 = vst [vmem:[#allocation48_spill] sm:$0xff] %v9455_v54  ;;  %v9468_v9 = vrot.slane %v4524_v47, 4  ;;  %v4589_v23 = vunpack.c.l.bf16 %v10288_v34  ;;  %v4590_v43 = vunpack.c.l.bf16 %v10290_v5  ;;  %v4588_v6 = vunpack.c.l.bf16 %v10291_v16 }
 0x43a   : > { %v10292_v26 = vsel %vm8881_vm8, %v9206_v24, %v9188_v11  ;;  %v10293_v61 = vsel %vm8881_vm8, %v9215_v21, %v9198_v40  ;;  %v10294_v24 = vsel %vm8881_vm8, %v9225_v62, %v9208_v41  ;;  %v10295_v21 = vsel %vm8881_vm8, %v9236_v10, %v9218_v31  ;;  %p6650_p10 = pnand %p6649_p9, %p6643_p5 }
 0x43b   : > { %v10296_v41 = vsel %vm8881_vm8, %v9246_v56, %v9228_v18  ;;  %v10297_v31 = vsel %vm8881_vm8, %v9255_v49, %v9238_v15 }
 0x43c   : > { %v4597_v62 = vunpack.c.l.bf16 %v10296_v41  ;;  %v4595_v10 = vunpack.c.l.bf16 %v10297_v31 }
 0x495   : > { %v6355_v14 = vpop.f32.mrf.mxu0 }
 0x496   : > { %v4717_v47 = vadd.f32 %v6355_v14, %v9477_v33 }
 0x497   : > { %v4708_v58 = vpop.f32.mrf.mxu0 }
 0x498   : > { %v4837_v28 = vadd.f32 %v4717_v47, %v4589_v23  ;;  %v4709_v53 = vadd.f32 %v9477_v33, %v4708_v58 }
 0x499   : > { %v6356_v34 = vpop.f32.mrf.mxu0 }
 0x49a   : > { %v4869_v19 = vmax.f32 %v4837_v28, 0.0  ;;  %v4835_v14 = vadd.f32 %v4709_v53, %v4587_v48  ;;  %v4720_v54 = vadd.f32 %v6356_v34, %v9477_v33  ;;  %v4593_v53 = vunpack.c.l.bf16 %v10292_v26 }
 0x49b   : > { %v4711_v39 = vpop.f32.mrf.mxu0  ;;  %v4594_v34 = vunpack.c.l.bf16 %v10294_v24 }
 0x49c   : > { %4901 = vst [vmem:[%s6861_s17 + $0x10] sm:$0xff] %v4869_v19  ;;  %v4867_v58 = vmax.f32 %v4835_v14, 0.0  ;;  %v4838_v23 = vadd.f32 %v4720_v54, %v4590_v43  ;;  %v4712_v36 = vadd.f32 %v9477_v33, %v4711_v39  ;;  %v4591_v19 = vunpack.c.l.bf16 %v10293_v61 }
 0x49d   : > { %v6359_v47 = vpop.f32.mrf.mxu0  ;;  %v4592_v39 = vunpack.c.l.bf16 %v10295_v21  ;;  %v10298_v61 = vsel %vm8881_vm8, %v9265_v20, %v9248_v1 }
 0x49e   : > { %4899 = vst [vmem:[%s6861_s17] sm:$0xff] %v4867_v58  ;;  %v4870_v28 = vmax.f32 %v4838_v23, 0.0  ;;  %v4836_v48 = vadd.f32 %v4712_v36, %v4588_v6  ;;  %v4733_v3 = vadd.f32 %v6359_v47, %v9477_v33 }
 0x49f   : > { %v4724_v5 = vpop.f32.mrf.mxu0 }
 0x4a0   : > { %4902 = vst [vmem:[%s6861_s17 + $0x18] sm:$0xff] %v4870_v28  ;;  %v4868_v54 = vmax.f32 %v4836_v48, 0.0  ;;  %v4841_v43 = vadd.f32 %v4733_v3, %v4593_v53  ;;  %v4725_v11 = vadd.f32 %v9477_v33, %v4724_v5 }
 0x4a1   : > { %v6360_v14 = vpop.f32.mrf.mxu0 }
 0x4a2   : > { %4900 = vst [vmem:[%s6861_s17 + $0x8] sm:$0xff] %v4868_v54  ;;  %v4873_v16 = vmax.f32 %v4841_v43, 0.0  ;;  %v4839_v6 = vadd.f32 %v4725_v11, %v4591_v19  ;;  %v4736_v40 = vadd.f32 %v6360_v14, %v9477_v33  ;;  %v4598_v19 = vunpack.c.l.bf16 %v10298_v61 }
 0x4a3   : > { %v4727_v58 = vpop.f32.mrf.mxu0  ;;  %v10299_v11 = vsel %vm8881_vm8, %v9276_v29, %v9258_v37  ;;  %v10301_v29 = vsel %vm8881_vm8, %v9295_v13, %v9278_v8  ;;  %v10303_v13 = vsel %vm8881_vm8, %v9316_v2, %v9298_v57  ;;  %v10305_v2 = vsel %vm8881_vm8, %v9335_v4, %v9318_v46  ;;  %v10308_v4 = vld [vmem:[#allocation54_spill] sm:$0xff] }
 0x4a4   : > { %4905 = vst [vmem:[%s6861_s17 + $0x30] sm:$0xff] %v4873_v16  ;;  %v4871_v23 = vmax.f32 %v4839_v6, 0.0  ;;  %v4842_v36 = vadd.f32 %v4736_v40, %v4594_v34  ;;  %v4728_v26 = vadd.f32 %v9477_v33, %v4727_v58  ;;  %v4596_v24 = vunpack.c.l.bf16 %v10299_v11 }
 0x4a5   : > { %v6363_v53 = vpop.f32.mrf.mxu1  ;;  %v10300_v16 = vsel %vm8881_vm8, %v9286_v0, %v9268_v17  ;;  %v4599_v58 = vunpack.c.l.bf16 %v10301_v29  ;;  %v10302_v0 = vsel %vm8881_vm8, %v9305_v52, %v9288_v55  ;;  %v4600_v31 = vunpack.c.l.bf16 %v10303_v13 }
 0x4a6   : > { %v4749_v28 = vadd.f32 %v6363_v53, %v9477_v33  ;;  %4903 = vst [vmem:[%s6861_s17 + $0x20] sm:$0xff] %v4871_v23  ;;  %v4874_v18 = vmax.f32 %v4842_v36, 0.0  ;;  %v4840_v56 = vadd.f32 %v4728_v26, %v4592_v39  ;;  %v4601_v6 = vunpack.c.l.bf16 %v10300_v16 }
 0x4a7   : > { %v4740_v48 = vpop.f32.mrf.mxu1  ;;  %v4602_v36 = vunpack.c.l.bf16 %v10302_v0  ;;  %v10304_v52 = vsel %vm8881_vm8, %v9326_v12, %v9308_v30  ;;  %v10306_v30 = vld [vmem:[#allocation46_spill] sm:$0xff]  ;;  %v10315_v0 = vld [vmem:[#allocation55_spill] sm:$0xff] }
 0x4a8   : > { %v4845_v47 = vadd.f32 %v4749_v28, %v4597_v62  ;;  %v4741_v3 = vadd.f32 %v9477_v33, %v4740_v48  ;;  %4906 = vst [vmem:[%s6861_s17 + $0x38] sm:$0xff] %v4874_v18  ;;  %v4872_v54 = vmax.f32 %v4840_v56, 0.0  ;;  %v4605_v48 = vunpack.c.l.bf16 %v10304_v52 }
 0x4a9   : > { %v6364_v15 = vpop.f32.mrf.mxu1 }
 0x4aa   : > { %v4877_v49 = vmax.f32 %v4845_v47, 0.0  ;;  %v4843_v5 = vadd.f32 %v4741_v3, %v4595_v10  ;;  %v4752_v43 = vadd.f32 %v6364_v15, %v9477_v33  ;;  %4904 = vst [vmem:[%s6861_s17 + $0x28] sm:$0xff] %v4872_v54 }
 0x4ab   : > { %v4743_v34 = vpop.f32.mrf.mxu1 }
 0x4ac   : > { %4909 = vst [vmem:[%s6861_s17 + $0x50] sm:$0xff] %v4877_v49  ;;  %v4875_v1 = vmax.f32 %v4843_v5, 0.0  ;;  %v4846_v20 = vadd.f32 %v4752_v43, %v4598_v19  ;;  %v4744_v14 = vadd.f32 %v9477_v33, %v4743_v34  ;;  %v4603_v19 = vunpack.c.l.bf16 %v10305_v2 }
 0x4ad   : > { %v6367_v39 = vpop.f32.mrf.mxu1  ;;  %v10307_v5 = vsel %vm8881_vm8, %v9345_v63, %v10306_v30 }
 0x4ae   : > { %4907 = vst [vmem:[%s6861_s17 + $0x40] sm:$0xff] %v4875_v1  ;;  %v4878_v40 = vmax.f32 %v4846_v20, 0.0  ;;  %v4844_v21 = vadd.f32 %v4744_v14, %v4596_v24  ;;  %v4765_v37 = vadd.f32 %v6367_v39, %v9477_v33  ;;  %v4606_v43 = vunpack.c.l.bf16 %v10307_v5  ;;  %v10309_v1 = vld [vmem:[#allocation51_spill] sm:$0xff]  ;;  %v10312_v39 = vld [vmem:[#allocation53_spill] sm:$0xff] }
 0x4af   : > { %v4756_v62 = vpop.f32.mrf.mxu1  ;;  %v10310_v20 = vsel %vm8881_vm8, %v10308_v4, %v10309_v1 }
 0x4b0   : > { %4910 = vst [vmem:[%s6861_s17 + $0x58] sm:$0xff] %v4878_v40  ;;  %v4876_v41 = vmax.f32 %v4844_v21, 0.0  ;;  %v4849_v23 = vadd.f32 %v4765_v37, %v4601_v6  ;;  %v4757_v17 = vadd.f32 %v9477_v33, %v4756_v62  ;;  %v4604_v14 = vunpack.c.l.bf16 %v10310_v20  ;;  %v10311_v21 = vld [vmem:[#allocation58_spill] sm:$0xff] }
 0x4b1   : > { %v6368_v26 = vpop.f32.mrf.mxu1  ;;  %v10313_v37 = vsel %vm8881_vm8, %v10311_v21, %v10312_v39  ;;  %v10327_v21 = vsel %vm8881_vm8, %v9435_v32, %v9418_v44  ;;  %v10329_v32 = vsel %vm8881_vm8, %v9452_v42, %v9437_v22 }
 0x4b2   : > { %4908 = vst [vmem:[%s6861_s17 + $0x48] sm:$0xff] %v4876_v41  ;;  %v4881_v53 = vmax.f32 %v4849_v23, 0.0  ;;  %v4847_v28 = vadd.f32 %v4757_v17, %v4599_v58  ;;  %v4768_v8 = vadd.f32 %v6368_v26, %v9477_v33  ;;  %v4609_v29 = vunpack.c.l.bf16 %v10313_v37  ;;  %v10314_v17 = vld [vmem:[#allocation61_spill] sm:$0xff] }
 0x4b3   : > { %v4759_v10 = vpop.f32.mrf.mxu1  ;;  %v4612_v39 = vunpack.c.l.bf16 %v10327_v21 }
 0x4b4   : > { %4913 = vst [vmem:[%s6861_s17 + $0x70] sm:$0xff] %v4881_v53  ;;  %v4879_v18 = vmax.f32 %v4847_v28, 0.0  ;;  %v4850_v56 = vadd.f32 %v4768_v8, %v4602_v36  ;;  %v4760_v55 = vadd.f32 %v9477_v33, %v4759_v10  ;;  %v10316_v36 = vsel %vm8881_vm8, %v10314_v17, %v10315_v0 }
 0x4b5   : > { %v6371_v47 = vpop.f32.mrf.mxu1  ;;  %v4607_v26 = vunpack.c.l.bf16 %v10316_v36  ;;  %v4615_v0 = vunpack.c.l.bf16 %v10329_v32 }
 0x4b6   : > { %4911 = vst [vmem:[%s6861_s17 + $0x60] sm:$0xff] %v4879_v18  ;;  %v4882_v3 = vmax.f32 %v4850_v56, 0.0  ;;  %v4848_v61 = vadd.f32 %v4760_v55, %v4600_v31  ;;  %v4781_v57 = vadd.f32 %v6371_v47, %v9477_v33  ;;  %v10317_v31 = vld [vmem:[#allocation59_spill] sm:$0xff] }
 0x4b7   : > { %v4772_v54 = vpop.f32.mrf.mxu1  ;;  %v10318_v10 = vsel %vm8881_vm8, %v9385_v50, %v10317_v31  ;;  %v10319_v47 = vld [vmem:[#allocation63_spill] sm:$0xff]  ;;  %v10331_v31 = vld [vmem:[#allocation48_spill] sm:$0xff] }
 0x4b8   : > { %4914 = vst [vmem:[%s6861_s17 + $0x78] sm:$0xff] %v4882_v3  ;;  %v4880_v15 = vmax.f32 %v4848_v61, 0.0  ;;  %v4853_v49 = vadd.f32 %v4781_v57, %v4605_v48  ;;  %v4773_v12 = vadd.f32 %v9477_v33, %v4772_v54  ;;  %v4610_v18 = vunpack.c.l.bf16 %v10318_v10  ;;  %v10321_v54 = vld [vmem:[#allocation64_spill] sm:$0xff] }
 0x4b9   : > { %v6372_v11 = vpop.f32.mrf.mxu1  ;;  %v10320_v3 = vsel %vm8881_vm8, %v9396_v25, %v10319_v47  ;;  %v10332_v10 = vsel %vm8881_vm8, %v9468_v9, %v10331_v31 }
 0x4ba   : > { %4912 = vst [vmem:[%s6861_s17 + $0x68] sm:$0xff] %v4880_v15  ;;  %v4885_v24 = vmax.f32 %v4853_v49, 0.0  ;;  %v4851_v34 = vadd.f32 %v4773_v12, %v4603_v19  ;;  %v4784_v46 = vadd.f32 %v6372_v11, %v9477_v33  ;;  %v4608_v61 = vunpack.c.l.bf16 %v10320_v3  ;;  %v10322_v15 = vld [vmem:[#allocation16_spill] sm:$0xff]  ;;  %v10324_v11 = vld [vmem:[#allocation45_spill] sm:$0xff] }
 0x4bb   : > { %v4775_v16 = vpop.f32.mrf.mxu1  ;;  %v10323_v49 = vsel %vm8881_vm8, %v10321_v54, %v10322_v15 }
 0x4bc   : > { %4917 = vst [vmem:[%s6861_s17 + $0x90] sm:$0xff] %v4885_v24  ;;  %v4883_v6 = vmax.f32 %v4851_v34, 0.0  ;;  %v4854_v40 = vadd.f32 %v4784_v46, %v4606_v43  ;;  %v4776_v63 = vadd.f32 %v9477_v33, %v4775_v16  ;;  %v4613_v12 = vunpack.c.l.bf16 %v10323_v49 }
 0x4bd   : > { %v6375_v58 = vpop.f32.mrf.mxu1  ;;  %v10325_v24 = vsel %vm8881_vm8, %v10324_v11, %v9398_v45 }
 0x4be   : > { %4915 = vst [vmem:[%s6861_s17 + $0x80] sm:$0xff] %v4883_v6  ;;  %v4886_v41 = vmax.f32 %v4854_v40, 0.0  ;;  %v4852_v62 = vadd.f32 %v4776_v63, %v4604_v14  ;;  %v4797_v23 = vadd.f32 %v6375_v58, %v9477_v33  ;;  %v4611_v34 = vunpack.c.l.bf16 %v10325_v24 }
 0x4bf   : > { %v4788_v53 = vpop.f32.mrf.mxu1  ;;  %v10326_v14 = vsel %vm8881_vm8, %v9425_v38, %v9408_v35  ;;  %v10328_v58 = vsel %vm8881_vm8, %v9444_v27, %v9428_v59 }
 0x4c0   : > { %4918 = vst [vmem:[%s6861_s17 + $0x98] sm:$0xff] %v4886_v41  ;;  %v4884_v28 = vmax.f32 %v4852_v62, 0.0  ;;  %v4857_v8 = vadd.f32 %v4797_v23, %v4609_v29  ;;  %v4789_v13 = vadd.f32 %v9477_v33, %v4788_v53  ;;  %v4614_v16 = vunpack.c.l.bf16 %v10326_v14 }
 0x4c1   : > { %v6376_v56 = vpop.f32.mrf.mxu1  ;;  %v4617_v41 = vunpack.c.l.bf16 %v10328_v58  ;;  %v10330_v53 = vsel %vm8881_vm8, %v9461_v60, %v9446_v51 }
 0x4c2   : > { %4916 = vst [vmem:[%s6861_s17 + $0x88] sm:$0xff] %v4884_v28  ;;  %v4889_v55 = vmax.f32 %v4857_v8, 0.0  ;;  %v4855_v52 = vadd.f32 %v4789_v13, %v4607_v26  ;;  %v4800_v48 = vadd.f32 %v6376_v56, %v9477_v33  ;;  %v4618_v28 = vunpack.c.l.bf16 %v10330_v53 }
 0x4c3   : > { %v4791_v57 = vpop.f32.mrf.mxu1 }
 0x4c4   : > { %4921 = vst [vmem:[%s6861_s17 + $0xb0] sm:$0xff] %v4889_v55  ;;  %v4887_v2 = vmax.f32 %v4855_v52, 0.0  ;;  %v4858_v19 = vadd.f32 %v4800_v48, %v4610_v18  ;;  %v4792_v50 = vadd.f32 %v9477_v33, %v4791_v57  ;;  %v4616_v18 = vunpack.c.l.bf16 %v10332_v10 }
 0x4c5   : > { %v6379_v30 = vpop.f32.mrf.mxu1 }
 0x4c6   : > { %4919 = vst [vmem:[%s6861_s17 + $0xa0] sm:$0xff] %v4887_v2  ;;  %v4890_v5 = vmax.f32 %v4858_v19, 0.0  ;;  %v4856_v43 = vadd.f32 %v4792_v50, %v4608_v61  ;;  %v4813_v25 = vadd.f32 %v6379_v30, %v9477_v33 }
 0x4c7   : > { %v4804_v46 = vpop.f32.mrf.mxu1 }
 0x4c8   : > { %4922 = vst [vmem:[%s6861_s17 + $0xb8] sm:$0xff] %v4890_v5  ;;  %v4888_v4 = vmax.f32 %v4856_v43, 0.0  ;;  %v4861_v1 = vadd.f32 %v4813_v25, %v4613_v12  ;;  %v4805_v20 = vadd.f32 %v9477_v33, %v4804_v46 }
 0x4c9   : > { %v6380_v6 = vpop.f32.mrf.mxu1 }
 0x4ca   : > { %4920 = vst [vmem:[%s6861_s17 + $0xa8] sm:$0xff] %v4888_v4  ;;  %v4893_v40 = vmax.f32 %v4861_v1, 0.0  ;;  %v4859_v63 = vadd.f32 %v4805_v20, %v4611_v34  ;;  %v4816_v45 = vadd.f32 %v6380_v6, %v9477_v33 }
 0x4cb   : > { %v4807_v37 = vpop.f32.mrf.mxu1 }
 0x4cc   : > { %4925 = vst [vmem:[%s6861_s17 + $0xd0] sm:$0xff] %v4893_v40  ;;  %v4891_v29 = vmax.f32 %v4859_v63, 0.0  ;;  %v4862_v35 = vadd.f32 %v4816_v45, %v4614_v16  ;;  %v4808_v38 = vadd.f32 %v9477_v33, %v4807_v37 }
 0x4cd   : > { %v6383_v62 = vpop.f32.mrf.mxu1 }
 0x4ce   : > { %4923 = vst [vmem:[%s6861_s17 + $0xc0] sm:$0xff] %v4891_v29  ;;  %v4894_v23 = vmax.f32 %v4862_v35, 0.0  ;;  %v4860_v17 = vadd.f32 %v4808_v38, %v4612_v39  ;;  %v4829_v44 = vadd.f32 %v6383_v62, %v9477_v33 }
 0x4cf   : > { %v4820_v36 = vpop.f32.mrf.mxu1 }
 0x4d0   : > { %4926 = vst [vmem:[%s6861_s17 + $0xd8] sm:$0xff] %v4894_v23  ;;  %v4892_v59 = vmax.f32 %v4860_v17, 0.0  ;;  %v4865_v27 = vadd.f32 %v4829_v44, %v4617_v41  ;;  %v4821_v26 = vadd.f32 %v9477_v33, %v4820_v36 }
 0x4d1   : > { %v6384_v8 = vpop.f32.mrf.mxu1 }
 0x4d2   : > { %4924 = vst [vmem:[%s6861_s17 + $0xc8] sm:$0xff] %v4892_v59  ;;  %v4897_v22 = vmax.f32 %v4865_v27, 0.0  ;;  %v4863_v42 = vadd.f32 %v4821_v26, %v4615_v0  ;;  %v4832_v13 = vadd.f32 %v6384_v8, %v9477_v33 }
 0x4d3   : > { %v4823_v56 = vpop.f32.mrf.mxu1 }
 0x4d4   : > { %4929 = vst [vmem:[%s6861_s17 + $0xf0] sm:$0xff] %v4897_v22  ;;  %v4895_v51 = vmax.f32 %v4863_v42, 0.0  ;;  %v4866_v60 = vadd.f32 %v4832_v13, %v4618_v28  ;;  %v4824_v55 = vadd.f32 %v9477_v33, %v4823_v56 }
 0x4d6   : > { %4927 = vst [vmem:[%s6861_s17 + $0xe0] sm:$0xff] %v4895_v51  ;;  %v4898_v52 = vmax.f32 %v4866_v60, 0.0  ;;  %v4864_v48 = vadd.f32 %v4824_v55, %v4616_v18 }
 0x4d8   : > { %4930 = vst [vmem:[%s6861_s17 + $0xf8] sm:$0xff] %v4898_v52  ;;  %v4896_v7 = vmax.f32 %v4864_v48, 0.0 }
 0x4da   : > { %4928 = vst [vmem:[%s6861_s17 + $0xe8] sm:$0xff] %v4896_v7 }
 0x4db   : > { %6653 = shalt.err (!%p6650_p10)
}
 0x4dc   : > { %s6654_s17 = scalar_lea.hbm %s9707_s16, 4096  ;;  %s6658_s9 = scalar_lea.hbm %s9773_s7, 16384 }
 0x4dd   : > { %p6655_p11 = scmp.ne.s32.totalorder %s9707_s16, %s6654_s17  ;;  %p6659_p0 = scmp.lt.s32.totalorder %s9707_s16, %s9773_s7 }
 0x4de   : > { %p6660_p1 = scmp.lt.s32.totalorder %s6658_s9, %s6654_s17 }
 0x4df   : > { %p6656_p12 = pnand %p6655_p11, %p6832_p3 }
 0x4e0   : > { %p6661_p2 = por %p6660_p1, %p6659_p0 }
 0x4e1   : > { %p6657_p13 = pneg %p6656_p12 }
 0x4e3   : > { %p6662_p4 = pnand %p6661_p2, %p6657_p13 }
 0x4e5   : > { %6665 = shalt.err (!%p6662_p4)
}
 0x4e6   : > { %s6739_s18 = smov 128   ;;  %s6740_s22 = smov 8  }
 0x4e7   : > { %6401 = dma.vmem_to_hbm [thread:$0]  (%p6832_p3), %s9709_s28, 4096, %s9707_s16, %s9715_s13, %s6739_s18, %s6739_s18, %s6740_s22  }
 0x4e8 PF: > { %p6407_p5 = scmp.ge.s32.totalorder %s6734_s8, 2  ;;  %s4963_s23 = sand.u32 1, %s6706_s24  }
 0x4e9   : > { %s4964_s21 = scalar_lea.sflag [#allocation5], %s4963_s23 }
 0x4ea   : > { %p6404_p6 = pnand %p6407_p5, %p6841_p8 }
 0x4ec   : > { %p6405_p7 = pneg %p6404_p6 }
 0x4ee   : > { %6701 = dma.done.wait (%p6405_p7), %s4964_s21, 4096  }
 0x4ef   : > { %6703 = vsyncadd (%p6405_p7), %s4964_s21, 4294963200  ;;  %s20_s8 = sadd.s32 1, %s6734_s8   ;;  %s10334_s28 = sld [smem:[#allocation10_spill]] }
 0x4f0   : > { %p17_p9 = scmp.ge.s32.totalorder %s20_s8, 6   ;;  %s10335_s14 = sld [smem:[#allocation11_spill]] }
 0x4f1   : > { %s10336_s30 = sld [smem:[#allocation12_spill]]  ;;  %s10337_s24 = smov %s6710_s25 }
 0x4f2   : > { %s10338_s25 = smov %s6714_s26  ;;  %s10339_s26 = smov %s6850_s19 }
 0x4f3   : > { %s10340_s27 = smov %s6726_s29  ;;  %19 = sbr.rel (!%p17_p9) target bundleno = 5 (0x5), region = 185 }
 0x4f6   : > { %s10341_s29 = smov %s10335_s14 }
 0x4f8   :  { %4969 = vsyncpa [#allocation5], 1 }
 0x4f9   :  { %4971 = vsyncpa [#allocation5 + $0x1], 1 }
 0x4fa   :  { %4972 = vsyncmov [#allocation3] }
 0x4fd   :  { %s4973_s15 = vpop.sfrf %4972 }
 0x4fe   :  { %p5499_p3 = scmp.ne.s32.totalorder %s4973_s15, 0 }
 0x500   :  { %4977 = shalt.err (%p5499_p3)  }
 0x501   :  { %4979 = vsyncmov [#allocation3 + $0x1] }
 0x504   :  { %s4980_s16 = vpop.sfrf %4979 }
 0x505   :  { %p5500_p8 = scmp.ne.s32.totalorder %s4980_s16, 0 }
 0x507   :  { %4984 = shalt.err (%p5500_p8)  }

// kernel: _bottleneck_impl.1
= control target key start
LH: loop header
LB: loop body
LE: loop exit
PB: predicated region body
PF: predicated region fallthrough
CT: control target
= control target key end

     0   :  { %12 = vsyncpa [#allocation5], 0  ;;  %s9766_s0 = inlined_call_operand.vmem [shape: bf16[2,34,24,128], index: 0, kind: input, shape index: {}]   ;;  %s9767_s1 = inlined_call_operand.vmem [shape: bf16[128,128], index: 1, kind: input, shape index: {}]   ;;  %s9768_s2 = inlined_call_operand.vmem [shape: f32[1,128], index: 2, kind: input, shape index: {}]   ;;  %s9769_s3 = inlined_call_operand.vmem [shape: bf16[9,128,128], index: 3, kind: input, shape index: {}]   ;;  %s9770_s4 = inlined_call_operand.vmem [shape: f32[1,128], index: 4, kind: input, shape index: {}]   ;;  %s9771_s5 = inlined_call_operand.vmem [shape: bf16[128,128], index: 5, kind: input, shape index: {}]   ;;  %s9772_s6 = inlined_call_operand.vmem [shape: f32[1,128], index: 6, kind: input, shape index: {}]   ;;  %s9773_s7 = inlined_call_operand.hbm [shape: f32[2,32,16,128], index: 7, kind: output, shape index: {}]  }
   0x1   :  { %14 = vsyncpa [#allocation5 + $0x1], 0  ;;  %s6781_s24 = smov 0   ;;  %s6783_s25 = smov 0  }
   0x2   :  { %s6785_s26 = smov 0   ;;  %s6787_s27 = smov 0  }
   0x3   :  { %s6789_s28 = smov 0   ;;  %s6791_s29 = smov 0  }
   0x4   :  { %s6793_s30 = smov 0   ;;  %s6795_s8 = smov 0  }
   0x5 LB: > { %9869 = sst [smem:[#allocation10_spill]] %s6730_s30  ;;  %s5058_s9 = sadd.s32 4294967295, %s6734_s8   ;;  %s6734_s8 = sphi %s6795_s8, %s20_s8   ;;  %s6730_s30 = sphi %s6793_s30, %s10336_s30   ;;  %s6726_s29 = sphi %s6791_s29, %s10341_s29   ;;  %s6722_s28 = sphi %s6789_s28, %s10334_s28   ;;  %s6718_s27 = sphi %s6787_s27, %s10340_s27   ;;  %s6714_s26 = sphi %s6785_s26, %s10339_s26   ;;  %s6710_s25 = sphi %s6783_s25, %s10338_s25   ;;  %s6706_s24 = sphi %s6781_s24, %s10337_s24  }
   0x6   : > { %s5059_s10 = sadd.s32 4294967294, %s6734_s8   ;;  %s29_s11 = sadd.s32 1, %s6726_s29 }
   0x7   : > { %p30_p0 = scmp.ge.s32.totalorder %s29_s11, 2  ;;  %s32_s12 = sadd.s32 1, %s6730_s30 }
   0x8   : > { %p177_p1 = scmp.ne.s32.totalorder %s6714_s26, %s6710_s25  ;;  %p178_p2 = scmp.eq.s32.totalorder %s5058_s9, 3 }
   0x9   : > { %s10343_s11 = smov (%p30_p0, %s29_s11), 0  ;;  %s10345_s12 = smov (!%p30_p0, %s32_s12), %s6730_s30 }
   0xa   : > { %9870 = sst [smem:[#allocation11_spill]] %s10343_s11  ;;  %s163_s13 = ssub.s32 %s6726_s29, %s10343_s11 }
   0xb   : > { %p6832_p3 = por %p178_p2, %p177_p1  ;;  %p34_p4 = scmp.ge.s32.totalorder %s10345_s12, 2 }
   0xc   : > { %p183_p5 = scmp.ne.s32.totalorder %s6710_s25, %s6706_s24  ;;  %p184_p6 = scmp.eq.s32.totalorder %s5059_s10, 3 }
   0xd   : > { %p5061_p7 = scmp.ge.s32.totalorder %s6734_s8, 1  ;;  %s10347_s12 = smov (%p34_p4, %s10345_s12), 0 }
   0xe   : > { %9872 = sst [smem:[#allocation12_spill]] %s10347_s12  ;;  %p6841_p8 = por %p184_p6, %p183_p5 }
   0xf   : > { %p220_p9 = scmp.lt.s32.totalorder %s6734_s8, 5  ;;  %s162_s16 = ssub.s32 %s6730_s30, %s10347_s12 }
  0x10   : > { %s167_s17 = sadd.s32 1, %s6714_s26  ;;  %s164_s18 = sor.u32 %s163_s13, %s162_s16 }
  0x11   : > { %p221_p10 = pnand %p5061_p7, %p220_p9  ;;  %p165_p11 = scmp.eq.s32.totalorder %s164_s18, 0 }
  0x13   : > { %s6850_s19 = scalar_select %p165_p11, %s6714_s26, %s167_s17  }
  0x14   : > { %224 = sbr.rel (%p221_p10) target bundleno = 1256 (0x4e8), region = 44 }
  0x19   : > { %s9774_s20 = sand.u32 1, %s6710_s25   ;;  %p247_p12 = scmp.lt.s32.totalorder %s6718_s27, 0 }
  0x1a   : > { %s5062_s21 = sshll.u32 %s9774_s20, 8  ;;  %s248_s22 = ssub.s32 0, %s6718_s27 }
  0x1b   : > { %s5063_s23 = smin.u32 %s6718_s27, %s248_s22  ;;  %s6861_s17 = scalar_lea.vmem [#allocation4], %s5062_s21 }
  0x1c   : > { %s250_s9 = sand.u32 1, %s5063_s23   ;;  %p5066_p0 = scmp.ne.s32.totalorder %s6718_s27, 0 }
  0x1d   : > { %s251_s10 = ssub.s32 0, %s250_s9  ;;  %s5501_s18 = smul.u32 (!%p5066_p0), 408, %s6722_s28 }
  0x1e   : > { %s10349_s10 = smov (!%p247_p12, %s251_s10), %s250_s9  ;;  %263 = sbr.rel (%p5066_p0) target bundleno = 52 (0x34), region = 48 }
  0x1f   : > { %p5065_p13 = scmp.lt.s32.totalorder %s10349_s10, 0  ;;  %s257_s13 = sadd.s32 2, %s10349_s10 }
  0x20   : > { %s6869_s23 = scalar_lea.vmem (!%p5066_p0), %s9766_s0, %s5501_s18 }
  0x21   : > { %s10351_s13 = smov (!%p5065_p13, %s257_s13), %s10349_s10 }
  0x22   : > { %s259_s16 = ssub.s32 1, %s10351_s13  ;;  %s5502_s20 = smul.u32 (!%p5066_p0), 216, %s10351_s13 }
  0x23   : > { %v304_v0 = vld [vmem:[%s6869_s23] sm:$0xff]  ;;  %v306_v1 = vld [vmem:[%s6869_s23 + $0x8] sm:$0xff]  ;;  %v308_v2 = vld [vmem:[%s6869_s23 + $0x10] sm:$0xff]  ;;  %s270_s12 = scalar_lea.sflag [#allocation3], %s10351_s13 }
  0x24   : > { %s6874_s21 = scalar_lea.vmem [#allocation2], %s5502_s20  ;;  %v310_v3 = vld [vmem:[%s6869_s23 + $0x18] sm:$0xff]  ;;  %v312_v4 = vld [vmem:[%s6869_s23 + $0x20] sm:$0xff]  ;;  %v314_v5 = vld [vmem:[%s6869_s23 + $0x28] sm:$0xff] }
  0x25   : > { %305 = vst [vmem:[%s6874_s21] sm:$0xff] %v304_v0  ;;  %307 = vst [vmem:[%s6874_s21 + $0x8] sm:$0xff] %v306_v1  ;;  %v316_v6 = vld [vmem:[%s6869_s23 + $0x30] sm:$0xff]  ;;  %v318_v7 = vld [vmem:[%s6869_s23 + $0x38] sm:$0xff] }
  0x26   : > { %309 = vst [vmem:[%s6874_s21 + $0x10] sm:$0xff] %v308_v2  ;;  %311 = vst [vmem:[%s6874_s21 + $0x18] sm:$0xff] %v310_v3  ;;  %v320_v8 = vld [vmem:[%s6869_s23 + $0x40] sm:$0xff]  ;;  %v322_v9 = vld [vmem:[%s6869_s23 + $0x48] sm:$0xff] }
  0x27   : > { %313 = vst [vmem:[%s6874_s21 + $0x20] sm:$0xff] %v312_v4  ;;  %315 = vst [vmem:[%s6874_s21 + $0x28] sm:$0xff] %v314_v5  ;;  %v324_v10 = vld [vmem:[%s6869_s23 + $0x50] sm:$0xff]  ;;  %v326_v11 = vld [vmem:[%s6869_s23 + $0x58] sm:$0xff] }
  0x28   : > { %317 = vst [vmem:[%s6874_s21 + $0x30] sm:$0xff] %v316_v6  ;;  %319 = vst [vmem:[%s6874_s21 + $0x38] sm:$0xff] %v318_v7  ;;  %v328_v12 = vld [vmem:[%s6869_s23 + $0x60] sm:$0xff]  ;;  %v330_v13 = vld [vmem:[%s6869_s23 + $0x68] sm:$0xff] }
  0x29   : > { %321 = vst [vmem:[%s6874_s21 + $0x40] sm:$0xff] %v320_v8  ;;  %323 = vst [vmem:[%s6874_s21 + $0x48] sm:$0xff] %v322_v9  ;;  %v332_v14 = vld [vmem:[%s6869_s23 + $0x70] sm:$0xff]  ;;  %v334_v15 = vld [vmem:[%s6869_s23 + $0x78] sm:$0xff] }
  0x2a   : > { %325 = vst [vmem:[%s6874_s21 + $0x50] sm:$0xff] %v324_v10  ;;  %327 = vst [vmem:[%s6874_s21 + $0x58] sm:$0xff] %v326_v11  ;;  %v336_v16 = vld [vmem:[%s6869_s23 + $0x80] sm:$0xff]  ;;  %v338_v17 = vld [vmem:[%s6869_s23 + $0x88] sm:$0xff] }
  0x2b   : > { %329 = vst [vmem:[%s6874_s21 + $0x60] sm:$0xff] %v328_v12  ;;  %331 = vst [vmem:[%s6874_s21 + $0x68] sm:$0xff] %v330_v13  ;;  %v340_v18 = vld [vmem:[%s6869_s23 + $0x90] sm:$0xff]  ;;  %v342_v19 = vld [vmem:[%s6869_s23 + $0x98] sm:$0xff] }
  0x2c   : > { %333 = vst [vmem:[%s6874_s21 + $0x70] sm:$0xff] %v332_v14  ;;  %335 = vst [vmem:[%s6874_s21 + $0x78] sm:$0xff] %v334_v15  ;;  %v344_v20 = vld [vmem:[%s6869_s23 + $0xa0] sm:$0xff]  ;;  %v346_v21 = vld [vmem:[%s6869_s23 + $0xa8] sm:$0xff] }
  0x2d   : > { %337 = vst [vmem:[%s6874_s21 + $0x80] sm:$0xff] %v336_v16  ;;  %339 = vst [vmem:[%s6874_s21 + $0x88] sm:$0xff] %v338_v17  ;;  %v348_v22 = vld [vmem:[%s6869_s23 + $0xb0] sm:$0xff]  ;;  %v350_v23 = vld [vmem:[%s6869_s23 + $0xb8] sm:$0xff] }
  0x2e   : > { %341 = vst [vmem:[%s6874_s21 + $0x90] sm:$0xff] %v340_v18  ;;  %343 = vst [vmem:[%s6874_s21 + $0x98] sm:$0xff] %v342_v19  ;;  %v352_v24 = vld [vmem:[%s6869_s23 + $0xc0] sm:$0xff]  ;;  %v354_v25 = vld [vmem:[%s6869_s23 + $0xc8] sm:$0xff] }
  0x2f   : > { %345 = vst [vmem:[%s6874_s21 + $0xa0] sm:$0xff] %v344_v20  ;;  %347 = vst [vmem:[%s6874_s21 + $0xa8] sm:$0xff] %v346_v21  ;;  %v356_v26 = vld [vmem:[%s6869_s23 + $0xd0] sm:$0xff] }
  0x30   : > { %349 = vst [vmem:[%s6874_s21 + $0xb0] sm:$0xff] %v348_v22  ;;  %351 = vst [vmem:[%s6874_s21 + $0xb8] sm:$0xff] %v350_v23 }
  0x31   : > { %353 = vst [vmem:[%s6874_s21 + $0xc0] sm:$0xff] %v352_v24  ;;  %355 = vst [vmem:[%s6874_s21 + $0xc8] sm:$0xff] %v354_v25 }
  0x32   : > { %357 = vst [vmem:[%s6874_s21 + $0xd0] sm:$0xff] %v356_v26 }
  0x33   : > { %365 = vsyncadd %s270_s12, 3456 }
  0x34 PF: > { %s366_s20 = sadd.s32 1, %s6718_s27 }
  0x35   : > { %p5069_p1 = scmp.ge.s32.totalorder %s366_s20, 2 }
  0x36   : > { %s4993_s9 = smul.u32 (!%p5069_p1), 48, %s6718_s27  ;;  %s380_s30 = scalar_lea.sflag (!%p5069_p1), [#allocation3], %s259_s16 }
  0x37   : > { %370 = sbr.rel (%p5069_p1) target bundleno = 77 (0x4d), region = 86 }
  0x38   : > { %s4994_s10 = smul.u32 (!%p5069_p1), 102, %s6722_s28 }
  0x39   : > { %s5503_s18 = smul.u32 (!%p5069_p1), 216, %s259_s16 }
  0x3a   : > { %s4995_s22 = sadd.s32 (!%p5069_p1), %s4994_s10, %s4993_s9 }
  0x3b   : > { %s5070_s11 = sshll.u32 (!%p5069_p1), %s4995_s22, 2  ;;  %s6941_s12 = scalar_lea.vmem (!%p5069_p1), [#allocation2], %s5503_s18 }
  0x3c   : > { %s6936_s21 = scalar_lea.vmem %s9766_s0, %s5070_s11 }
  0x3d   : > { %v5072_v27 = vld [vmem:[%s6936_s21 + $0xc0] sm:$0xff]  ;;  %v5073_v28 = vld [vmem:[%s6936_s21 + $0xc8] sm:$0xff]  ;;  %v5074_v29 = vld [vmem:[%s6936_s21 + $0xd0] sm:$0xff] }
  0x3e   : > { %415 = vst [vmem:[%s6941_s12] sm:$0xff] %v5072_v27  ;;  %417 = vst [vmem:[%s6941_s12 + $0x8] sm:$0xff] %v5073_v28  ;;  %v5075_v30 = vld [vmem:[%s6936_s21 + $0xd8] sm:$0xff]  ;;  %v5076_v31 = vld [vmem:[%s6936_s21 + $0xe0] sm:$0xff] }
  0x3f   : > { %419 = vst [vmem:[%s6941_s12 + $0x10] sm:$0xff] %v5074_v29  ;;  %v5077_v32 = vld [vmem:[%s6936_s21 + $0xe8] sm:$0xff]  ;;  %421 = vst [vmem:[%s6941_s12 + $0x18] sm:$0xff] %v5075_v30  ;;  %v5078_v33 = vld [vmem:[%s6936_s21 + $0xf0] sm:$0xff] }
  0x40   : > { %423 = vst [vmem:[%s6941_s12 + $0x20] sm:$0xff] %v5076_v31  ;;  %425 = vst [vmem:[%s6941_s12 + $0x28] sm:$0xff] %v5077_v32  ;;  %v5079_v34 = vld [vmem:[%s6936_s21 + $0xf8] sm:$0xff]  ;;  %v5080_v35 = vld [vmem:[%s6936_s21 + $0x100] sm:$0xff] }
  0x41   : > { %427 = vst [vmem:[%s6941_s12 + $0x30] sm:$0xff] %v5078_v33  ;;  %429 = vst [vmem:[%s6941_s12 + $0x38] sm:$0xff] %v5079_v34  ;;  %v5081_v36 = vld [vmem:[%s6936_s21 + $0x108] sm:$0xff]  ;;  %v5082_v37 = vld [vmem:[%s6936_s21 + $0x110] sm:$0xff] }
  0x42   : > { %431 = vst [vmem:[%s6941_s12 + $0x40] sm:$0xff] %v5080_v35  ;;  %v5083_v38 = vld [vmem:[%s6936_s21 + $0x118] sm:$0xff]  ;;  %433 = vst [vmem:[%s6941_s12 + $0x48] sm:$0xff] %v5081_v36  ;;  %v5084_v39 = vld [vmem:[%s6936_s21 + $0x120] sm:$0xff] }
  0x43   : > { %435 = vst [vmem:[%s6941_s12 + $0x50] sm:$0xff] %v5082_v37  ;;  %437 = vst [vmem:[%s6941_s12 + $0x58] sm:$0xff] %v5083_v38  ;;  %v5085_v40 = vld [vmem:[%s6936_s21 + $0x128] sm:$0xff]  ;;  %v5086_v41 = vld [vmem:[%s6936_s21 + $0x130] sm:$0xff] }
  0x44   : > { %439 = vst [vmem:[%s6941_s12 + $0x60] sm:$0xff] %v5084_v39  ;;  %441 = vst [vmem:[%s6941_s12 + $0x68] sm:$0xff] %v5085_v40  ;;  %v5087_v42 = vld [vmem:[%s6936_s21 + $0x138] sm:$0xff]  ;;  %v5088_v43 = vld [vmem:[%s6936_s21 + $0x140] sm:$0xff] }
  0x45   : > { %443 = vst [vmem:[%s6941_s12 + $0x70] sm:$0xff] %v5086_v41  ;;  %v5089_v44 = vld [vmem:[%s6936_s21 + $0x148] sm:$0xff]  ;;  %445 = vst [vmem:[%s6941_s12 + $0x78] sm:$0xff] %v5087_v42  ;;  %v5090_v45 = vld [vmem:[%s6936_s21 + $0x150] sm:$0xff] }
  0x46   : > { %447 = vst [vmem:[%s6941_s12 + $0x80] sm:$0xff] %v5088_v43  ;;  %449 = vst [vmem:[%s6941_s12 + $0x88] sm:$0xff] %v5089_v44  ;;  %v5091_v46 = vld [vmem:[%s6936_s21 + $0x158] sm:$0xff]  ;;  %v5092_v47 = vld [vmem:[%s6936_s21 + $0x160] sm:$0xff] }
  0x47   : > { %451 = vst [vmem:[%s6941_s12 + $0x90] sm:$0xff] %v5090_v45  ;;  %453 = vst [vmem:[%s6941_s12 + $0x98] sm:$0xff] %v5091_v46  ;;  %v5093_v48 = vld [vmem:[%s6936_s21 + $0x168] sm:$0xff]  ;;  %v5094_v49 = vld [vmem:[%s6936_s21 + $0x170] sm:$0xff] }
  0x48   : > { %455 = vst [vmem:[%s6941_s12 + $0xa0] sm:$0xff] %v5092_v47  ;;  %v5095_v50 = vld [vmem:[%s6936_s21 + $0x178] sm:$0xff]  ;;  %457 = vst [vmem:[%s6941_s12 + $0xa8] sm:$0xff] %v5093_v48  ;;  %v5096_v51 = vld [vmem:[%s6936_s21 + $0x180] sm:$0xff] }
  0x49   : > { %459 = vst [vmem:[%s6941_s12 + $0xb0] sm:$0xff] %v5094_v49  ;;  %461 = vst [vmem:[%s6941_s12 + $0xb8] sm:$0xff] %v5095_v50  ;;  %v5097_v52 = vld [vmem:[%s6936_s21 + $0x188] sm:$0xff]  ;;  %v5098_v53 = vld [vmem:[%s6936_s21 + $0x190] sm:$0xff] }
  0x4a   : > { %463 = vst [vmem:[%s6941_s12 + $0xc0] sm:$0xff] %v5096_v51  ;;  %465 = vst [vmem:[%s6941_s12 + $0xc8] sm:$0xff] %v5097_v52 }
  0x4b   : > { %467 = vst [vmem:[%s6941_s12 + $0xd0] sm:$0xff] %v5098_v53 }
  0x4c   : > { %475 = vsyncadd %s380_s30, 3456 }
  0x4d PF: > { %s5504_s11 = smul.u32 216, %s10351_s13  ;;  %s479_s9 = scalar_lea.sflag [#allocation3], %s10351_s13 }
  0x4f   : > { %s6997_s20 = scalar_lea.vmem [#allocation2], %s5504_s11 }
  0x50   : > { %6698 = dma.done.wait %s479_s9, 3456 }
  0x51   : > { %6699 = vsyncadd %s479_s9, 4294963840  ;;  %v6736_v54 = vmov 0.0   ;;  %vm6737_vm0 = vmmov 0   ;;  %v6476_v55 = vld [vmem:[%s9767_s1 + $0x38] sm:$0xff]   ;;  %v6477_v56 = vld [vmem:[%s9767_s1 + $0x30] sm:$0xff]   ;;  %s5137_s13 = sshll.u32 %s6718_s27, 4 }
  0x52   : > { %5781 = vmatprep.subr.bf16.mxu0 %v6736_v54  ;;  %5797 = vmatprep.mubr.msk.bf16.mxu0 %vm6737_vm0, %v6736_v54  ;;  %v6478_v57 = vld [vmem:[%s9767_s1 + $0x28] sm:$0xff]   ;;  %v6479_v58 = vld [vmem:[%s9767_s1 + $0x20] sm:$0xff]   ;;  %v6480_v59 = vld [vmem:[%s9767_s1 + $0x18] sm:$0xff]   ;;  %vm9780_vm11 = vcmask 1046528   ;;  %vm9778_vm12 = vsmask.f32 7424 }
  0x53   : > { %5782 = vmatpush3.bf16.msra.mxu0 %v6476_v55  ;;  %v6481_v60 = vld [vmem:[%s9767_s1 + $0x10] sm:$0xff]   ;;  %v6482_v61 = vld [vmem:[%s9767_s1 + $0x8] sm:$0xff]   ;;  %v6483_v62 = vld [vmem:[%s9767_s1] sm:$0xff]   ;;  %s5505_s30 = sshll.u32 %s6718_s27, 5  ;;  %s5495_s11 = sshll.u32 %s6722_s28, 6 }
  0x54   : > { %5783 = vmatprep.subr.bf16.mxu0 %v6736_v54  ;;  %v6484_v63 = vld [vmem:[%s6997_s20] sm:$0xff]   ;;  %v487_v0 = vld [vmem:[%s6997_s20 + $0x8] sm:$0xf]  ;;  %v488_v1 = vld [vmem:[%s6997_s20 + $0xc] sm:$0xf]  ;;  %s4945_s9 = sadd.s32 %s5505_s30, %s5495_s11  ;;  %s4948_s28 = sshll.u32 %s6861_s17, 4  ;;  %s9709_s28 = int_to_ptr.vmem [resolvable:$true] %s4948_s28 }
  0x55   : > { %v5103_v2 = vcombine.low %v487_v0, %v488_v1  ;;  %v489_v3 = vld [vmem:[%s6997_s20 + $0x10] sm:$0xf]  ;;  %v490_v4 = vld [vmem:[%s6997_s20 + $0x14] sm:$0xf]  ;;  %v491_v6 = vld [vmem:[%s6997_s20 + $0x18] sm:$0xf] }
  0x56   : > { %v5104_v5 = vcombine.low %v489_v3, %v490_v4  ;;  %v492_v7 = vld [vmem:[%s6997_s20 + $0x1c] sm:$0xf]  ;;  %v493_v9 = vld [vmem:[%s6997_s20 + $0x20] sm:$0xf]  ;;  %v494_v10 = vld [vmem:[%s6997_s20 + $0x24] sm:$0xf] }
  0x57   : > { %5784 = vmatpush3.bf16.msra.mxu0 %v6477_v56  ;;  %v5105_v8 = vcombine.low %v491_v6, %v492_v7  ;;  %v5106_v11 = vcombine.low %v493_v9, %v494_v10  ;;  %v495_v12 = vld [vmem:[%s6997_s20 + $0x28] sm:$0xf]  ;;  %v496_v13 = vld [vmem:[%s6997_s20 + $0x2c] sm:$0xf]  ;;  %v497_v15 = vld [vmem:[%s6997_s20 + $0x30] sm:$0xf] }
  0x58   : > { %5785 = vmatprep.subr.bf16.mxu0 %v6736_v54  ;;  %v5107_v14 = vcombine.low %v495_v12, %v496_v13  ;;  %v498_v16 = vld [vmem:[%s6997_s20 + $0x34] sm:$0xf]  ;;  %v499_v18 = vld [vmem:[%s6997_s20 + $0x38] sm:$0xf]  ;;  %v500_v19 = vld [vmem:[%s6997_s20 + $0x3c] sm:$0xf] }
  0x59   : > { %v5108_v17 = vcombine.low %v497_v15, %v498_v16  ;;  %v5109_v20 = vcombine.low %v499_v18, %v500_v19  ;;  %v501_v21 = vld [vmem:[%s6997_s20 + $0x40] sm:$0xf]  ;;  %v502_v22 = vld [vmem:[%s6997_s20 + $0x44] sm:$0xf]  ;;  %v503_v25 = vld [vmem:[%s6997_s20 + $0x48] sm:$0xf] }
  0x5a   : > { %v5110_v23 = vcombine.low %v501_v21, %v502_v22  ;;  %v6509_v24 = vld [vmem:[%s9769_s3 + $0x78] sm:$0xff]   ;;  %v504_v26 = vld [vmem:[%s6997_s20 + $0x4c] sm:$0xf]  ;;  %v6510_v27 = vld [vmem:[%s9769_s3 + $0x70] sm:$0xff]   ;;  %s5496_s27 = sshll.u32 %s4945_s9, 7  ;;  %s10333_s22 = sand.u32 1, %s6710_s25  }
  0x5b   : > { %5786 = vmatpush3.bf16.msra.mxu0 %v6478_v57  ;;  %5905 = vmatprep.subr.bf16.mxu1 %v6509_v24  ;;  %v5111_v28 = vcombine.low %v503_v25, %v504_v26  ;;  %v505_v29 = vld [vmem:[%s6997_s20 + $0x50] sm:$0xf]  ;;  %v506_v31 = vld [vmem:[%s6997_s20 + $0x54] sm:$0xf]  ;;  %v6513_v32 = vld [vmem:[%s9769_s3 + $0x60] sm:$0xff]   ;;  %v7180_v26 = vstv %s5137_s13  ;;  %s9707_s16 = scalar_lea.hbm %s9773_s7, %s5496_s27  ;;  %s9715_s13 = scalar_lea.sflag [#allocation5], %s10333_s22 }
  0x5c   : > { %5787 = vmatprep.subr.bf16.mxu0 %v6736_v54  ;;  %5906 = vmatpush3.bf16.msra.mxu1 %v6509_v24  ;;  %v6512_v30 = vld [vmem:[%s9769_s3 + $0x68] sm:$0xff]   ;;  %v6514_v33 = vld [vmem:[%s9769_s3 + $0x138] sm:$0xff]   ;;  %v5112_v34 = vcombine.low %v505_v29, %v506_v31  ;;  %v6516_v36 = vld [vmem:[%s9769_s3 + $0x130] sm:$0xff]   ;;  %v1094_v24 = vlaneseq  ;;  %vm1098_vm1 = vcmp.ge.s32.totalorder %v7180_v26, 1  ;;  %vm1116_vm2 = vcmp.le.s32.totalorder %v7180_v26, 32  ;;  %s6640_s23 = scalar_lea.vmem %s9709_s28, 4096 }
  0x5d   : > { %5907 = vmatprep.subr.bf16.mxu1 %v6510_v27  ;;  %v6515_v35 = vld [vmem:[%s9769_s3 + $0x58] sm:$0xff]   ;;  %v6517_v39 = vld [vmem:[%s9769_s3 + $0x50] sm:$0xff]   ;;  %v6518_v40 = vld [vmem:[%s9769_s3 + $0x128] sm:$0xff]   ;;  %p6641_p2 = scmp.ne.s32.totalorder %s9709_s28, %s6640_s23  ;;  %s6738_s21 = smov [#allocation4]  }
  0x5e   : > { %v507_v37 = vld [vmem:[%s6997_s20 + $0x58] sm:$0xf]  ;;  %v508_v38 = vld [vmem:[%s6997_s20 + $0x5c] sm:$0xf]  ;;  %v6519_v42 = vld [vmem:[%s9769_s3 + $0x48] sm:$0xff]  }
  0x5f   : > { %5788 = vmatpush3.bf16.msra.mxu0 %v6479_v58  ;;  %v5113_v41 = vcombine.low %v507_v37, %v508_v38  ;;  %v6520_v43 = vld [vmem:[%s9769_s3 + $0x120] sm:$0xff]   ;;  %v6522_v47 = vld [vmem:[%s9769_s3 + $0x118] sm:$0xff]   ;;  %v6524_v49 = vld [vmem:[%s9769_s3 + $0x110] sm:$0xff]   ;;  %p6642_p4 = pnand %p6641_p2, %p6832_p3 }
  0x60   : > { %5789 = vmatprep.subr.bf16.mxu0 %v6736_v54  ;;  %5908 = vmatpush3.bf16.msra.mxu1 %v6510_v27  ;;  %v509_v44 = vld [vmem:[%s6997_s20 + $0x60] sm:$0xf]  ;;  %v510_v45 = vld [vmem:[%s6997_s20 + $0x64] sm:$0xf]  ;;  %v511_v50 = vld [vmem:[%s6997_s20 + $0x68] sm:$0xf] }
  0x61   : > { %5909 = vmatprep.subr.bf16.mxu1 %v6512_v30  ;;  %v6521_v46 = vld [vmem:[%s9769_s3 + $0x40] sm:$0xff]   ;;  %v5114_v48 = vcombine.low %v509_v44, %v510_v45  ;;  %v6525_v52 = vld [vmem:[%s9769_s3 + $0x108] sm:$0xff]   ;;  %v523_v7 = vld [vmem:[%s6997_s20 + $0x98] sm:$0xf]  ;;  %v1077_v44 = vadd.s32 1, %v7180_v26  ;;  %p6643_p5 = pneg %p6642_p4 }
  0x62   : > { %v512_v51 = vld [vmem:[%s6997_s20 + $0x6c] sm:$0xf]  ;;  %v513_v56 = vld [vmem:[%s6997_s20 + $0x70] sm:$0xf]  ;;  %v514_v57 = vld [vmem:[%s6997_s20 + $0x74] sm:$0xf] }
  0x63   : > { %5790 = vmatpush3.bf16.msra.mxu0 %v6480_v59  ;;  %v5115_v53 = vcombine.low %v511_v50, %v512_v51  ;;  %v6526_v55 = vld [vmem:[%s9769_s3 + $0x100] sm:$0xff]   ;;  %v5116_v58 = vcombine.low %v513_v56, %v514_v57  ;;  %v515_v59 = vld [vmem:[%s6997_s20 + $0x78] sm:$0xf]  ;;  %v521_v4 = vld [vmem:[%s6997_s20 + $0x90] sm:$0xf]  ;;  %vm1099_vm8 = vcmp.ge.s32.totalorder %v1077_v44, 1 }
  0x64   : > { %5791 = vmatprep.subr.bf16.mxu0 %v6736_v54  ;;  %5910 = vmatpush3.bf16.msra.mxu1 %v6512_v30  ;;  %v519_v1 = vld [vmem:[%s6997_s20 + $0x88] sm:$0xf]  ;;  %v525_v10 = vld [vmem:[%s6997_s20 + $0xa0] sm:$0xf]  ;;  %v529_v16 = vld [vmem:[%s6997_s20 + $0xb0] sm:$0xf] }
  0x65   : > { %5911 = vmatprep.subr.bf16.mxu1 %v6513_v32  ;;  %v527_v13 = vld [vmem:[%s6997_s20 + $0xa8] sm:$0xf]  ;;  %v531_v19 = vld [vmem:[%s6997_s20 + $0xb8] sm:$0xf]  ;;  %v533_v22 = vld [vmem:[%s6997_s20 + $0xc0] sm:$0xf] }
  0x66   : > { %v7185_v27 = vld [vmem:[%s9768_s2] ss:$0 sm:$0xff]  ;;  %vm7196_vm3 = vmand %vm1098_vm1, %vm1116_vm2  ;;  %vm1117_vm9 = vcmp.le.s32.totalorder %v1077_v44, 32 }
  0x67   : > { %5792 = vmatpush3.bf16.msra.mxu0 %v6481_v60  ;;  %v516_v60 = vld [vmem:[%s6997_s20 + $0x7c] sm:$0xf]  ;;  %v535_v31 = vld [vmem:[%s6997_s20 + $0xc8] sm:$0xf]  ;;  %vm7230_vm10 = vmand %vm1099_vm8, %vm1117_vm9 }
  0x68   : > { %5793 = vmatprep.subr.bf16.mxu0 %v6736_v54  ;;  %5912 = vmatpush3.bf16.msra.mxu1 %v6513_v32  ;;  %v536_v32 = vld [vmem:[%s6997_s20 + $0xcc] sm:$0xf] }
  0x69   : > { %5913 = vmatprep.subr.bf16.mxu1 %v6515_v35  ;;  %v5127_v37 = vcombine.low %v535_v31, %v536_v32 }
  0x6b   : > { %5794 = vmatpush3.bf16.msra.mxu0 %v6482_v61  ;;  %v5117_v61 = vcombine.low %v515_v59, %v516_v60 }
  0x6c   : > { %5795 = vmatprep.subr.bf16.mxu0 %v6736_v54  ;;  %5914 = vmatpush3.bf16.msra.mxu1 %v6515_v35 }
  0x6d   : > { %5915 = vmatprep.subr.bf16.mxu1 %v6517_v39 }
  0x6f   : > { %5796 = vmatpush3.bf16.msra.mxu0 %v6483_v62  ;;  %v517_v62 = vld [vmem:[%s6997_s20 + $0x80] sm:$0xf] }
  0x70   : > { %6097 = vmatprep.subr.bf16.mxu0 %v6514_v33  ;;  %5916 = vmatpush3.bf16.msra.mxu1 %v6517_v39 }
  0x71   : > { %5917 = vmatprep.subr.bf16.mxu1 %v6519_v42 }
  0x72   : > { %5798 = vmatmul.mubr.bf16.vlgmr.msra.gmra.mxu0 %v6484_v63  ;;  %v518_v63 = vld [vmem:[%s6997_s20 + $0x84] sm:$0xf] }
  0x73   : > { %5801 = vmatprep.mubr.msk.bf16.mxu0 %vm6737_vm0, %v6736_v54  ;;  %6098 = vmatpush3.bf16.msra.mxu0 %v6514_v33  ;;  %v5118_v0 = vcombine.low %v517_v62, %v518_v63 }
  0x74   : > { %6099 = vmatprep.subr.bf16.mxu0 %v6516_v36  ;;  %5918 = vmatpush3.bf16.msra.mxu1 %v6519_v42 }
  0x75   : > { %5919 = vmatprep.subr.bf16.mxu1 %v6521_v46 }
  0x77   : > { %6100 = vmatpush3.bf16.msra.mxu0 %v6516_v36 }
  0x78   : > { %6101 = vmatprep.subr.bf16.mxu0 %v6518_v40  ;;  %5920 = vmatpush3.bf16.msra.mxu1 %v6521_v46 }
  0x7a   : > { %5802 = vmatmul.mubr.bf16.gmra.mxu0 %v5103_v2  ;;  %v520_v2 = vld [vmem:[%s6997_s20 + $0x8c] sm:$0xf] }
  0x7b   : > { %5805 = vmatprep.mubr.msk.bf16.mxu0 %vm6737_vm0, %v6736_v54  ;;  %6102 = vmatpush3.bf16.msra.mxu0 %v6518_v40  ;;  %v5119_v3 = vcombine.low %v519_v1, %v520_v2 }
  0x7c   : > { %6103 = vmatprep.subr.bf16.mxu0 %v6520_v43 }
  0x7f   : > { %6104 = vmatpush3.bf16.msra.mxu0 %v6520_v43 }
  0x80   : > { %6105 = vmatprep.subr.bf16.mxu0 %v6522_v47 }
  0x82   : > { %5806 = vmatmul.mubr.bf16.gmra.mxu0 %v5104_v5  ;;  %v522_v5 = vld [vmem:[%s6997_s20 + $0x94] sm:$0xf] }
  0x83   : > { %5809 = vmatprep.mubr.msk.bf16.mxu0 %vm6737_vm0, %v6736_v54  ;;  %6106 = vmatpush3.bf16.msra.mxu0 %v6522_v47  ;;  %v5120_v6 = vcombine.low %v521_v4, %v522_v5 }
  0x84   : > { %6107 = vmatprep.subr.bf16.mxu0 %v6524_v49 }
  0x87   : > { %6108 = vmatpush3.bf16.msra.mxu0 %v6524_v49 }
  0x88   : > { %6109 = vmatprep.subr.bf16.mxu0 %v6525_v52 }
  0x8a   : > { %5810 = vmatmul.mubr.bf16.gmra.mxu0 %v5105_v8  ;;  %v524_v8 = vld [vmem:[%s6997_s20 + $0x9c] sm:$0xf] }
  0x8b   : > { %5813 = vmatprep.mubr.msk.bf16.mxu0 %vm6737_vm0, %v6736_v54  ;;  %6110 = vmatpush3.bf16.msra.mxu0 %v6525_v52  ;;  %v5121_v9 = vcombine.low %v523_v7, %v524_v8 }
  0x8c   : > { %6111 = vmatprep.subr.bf16.mxu0 %v6526_v55 }
  0x8f   : > { %6112 = vmatpush3.bf16.msra.mxu0 %v6526_v55  ;;  %v6523_v55 = vld [vmem:[%s6997_s20 + $0xd0] sm:$0xff]  }
  0x92   : > { %5814 = vmatmul.mubr.bf16.gmra.mxu0 %v5106_v11  ;;  %v526_v11 = vld [vmem:[%s6997_s20 + $0xa4] sm:$0xf] }
  0x93   : > { %5817 = vmatprep.mubr.msk.bf16.mxu0 %vm6737_vm0, %v6736_v54  ;;  %v5122_v12 = vcombine.low %v525_v10, %v526_v11 }
  0x9a   : > { %5818 = vmatmul.mubr.bf16.gmra.mxu0 %v5107_v14  ;;  %v528_v14 = vld [vmem:[%s6997_s20 + $0xac] sm:$0xf] }
  0x9b   : > { %5821 = vmatprep.mubr.msk.bf16.mxu0 %vm6737_vm0, %v6736_v54  ;;  %v5123_v15 = vcombine.low %v527_v13, %v528_v14 }
  0xa2   : > { %5822 = vmatmul.mubr.bf16.gmra.mxu0 %v5108_v17  ;;  %v530_v17 = vld [vmem:[%s6997_s20 + $0xb4] sm:$0xf] }
  0xa3   : > { %5825 = vmatprep.mubr.msk.bf16.mxu0 %vm6737_vm0, %v6736_v54  ;;  %v5124_v18 = vcombine.low %v529_v16, %v530_v17 }
  0xaa   : > { %5826 = vmatmul.mubr.bf16.gmra.mxu0 %v5109_v20  ;;  %v532_v20 = vld [vmem:[%s6997_s20 + $0xbc] sm:$0xf] }
  0xab   : > { %5829 = vmatprep.mubr.msk.bf16.mxu0 %vm6737_vm0, %v6736_v54  ;;  %v5125_v21 = vcombine.low %v531_v19, %v532_v20  ;;  %v6527_v19 = vld [vmem:[%s9769_s3 + $0x38] sm:$0xff]  }
  0xac   : > { %5953 = vmatprep.subr.bf16.mxu1 %v6527_v19 }
  0xb2   : > { %5830 = vmatmul.mubr.bf16.gmra.mxu0 %v5110_v23  ;;  %v534_v23 = vld [vmem:[%s6997_s20 + $0xc4] sm:$0xf] }
  0xb3   : > { %5833 = vmatprep.mubr.msk.bf16.mxu0 %vm6737_vm0, %v6736_v54  ;;  %v5126_v25 = vcombine.low %v533_v22, %v534_v23 }
  0xba   : > { %5834 = vmatmul.mubr.bf16.gmra.mxu0 %v5111_v28  ;;  %v7187_v28 = vshrl.u32 %v1094_v24, 7 }
  0xbb   : > { %5837 = vmatprep.mubr.msk.bf16.mxu0 %vm6737_vm0, %v6736_v54 }
  0xbc   : > { %vm9781_vm4 = vcmp.ge.s32.totalorder %v7187_v28, 1  ;;  %v7202_v35 = vadd.s32 16, %v7187_v28 }
  0xbd   : > { %vm7209_vm5 = vmand %vm7196_vm3, %vm9781_vm4 }
  0xbe   : > { %vm9779_vm6 = vcmp.le.s32.totalorder %v7202_v35, 16  ;;  %vm7239_vm13 = vmand %vm7230_vm10, %vm9781_vm4 }
  0xbf   : > { %vm1214_vm7 = vmand %vm7196_vm3, %vm9779_vm6 }
  0xc0   : > { %vm1217_vm14 = vmand %vm7230_vm10, %vm9779_vm6 }
  0xc2   : > { %5838 = vmatmul.mubr.bf16.gmra.mxu0 %v5112_v34 }
  0xc3   : > { %5841 = vmatprep.mubr.msk.bf16.mxu0 %vm6737_vm0, %v6736_v54 }
  0xca   : > { %5842 = vmatmul.mubr.bf16.gmra.mxu0 %v5113_v41 }
  0xcb   : > { %5845 = vmatprep.mubr.msk.bf16.mxu0 %vm6737_vm0, %v6736_v54 }
  0xd2   : > { %5846 = vmatmul.mubr.bf16.gmra.mxu0 %v5114_v48 }
  0xd3   : > { %5849 = vmatprep.mubr.msk.bf16.mxu0 %vm6737_vm0, %v6736_v54 }
  0xda   : > { %5850 = vmatmul.mubr.bf16.gmra.mxu0 %v5115_v53 }
  0xdb   : > { %5853 = vmatprep.mubr.msk.bf16.mxu0 %vm6737_vm0, %v6736_v54 }
  0xe2   : > { %5854 = vmatmul.mubr.bf16.gmra.mxu0 %v5116_v58 }
  0xe3   : > { %5857 = vmatprep.mubr.msk.bf16.mxu0 %vm6737_vm0, %v6736_v54 }
  0xea   : > { %5858 = vmatmul.mubr.bf16.gmra.mxu0 %v5117_v61 }
  0xeb   : > { %5861 = vmatprep.mubr.msk.bf16.mxu0 %vm6737_vm0, %v6736_v54 }
  0xf2   : > { %5862 = vmatmul.mubr.bf16.gmra.mxu0 %v5118_v0 }
  0xf3   : > { %5865 = vmatprep.mubr.msk.bf16.mxu0 %vm6737_vm0, %v6736_v54 }
  0xfa   : > { %5866 = vmatmul.mubr.bf16.gmra.mxu0 %v5119_v3 }
  0xfb   : > { %5869 = vmatprep.mubr.msk.bf16.mxu0 %vm6737_vm0, %v6736_v54 }
 0x102   : > { %5870 = vmatmul.mubr.bf16.gmra.mxu0 %v5120_v6 }
 0x103   : > { %5873 = vmatprep.mubr.msk.bf16.mxu0 %vm6737_vm0, %v6736_v54 }
 0x10a   : > { %5874 = vmatmul.mubr.bf16.gmra.mxu0 %v5121_v9 }
 0x10b   : > { %5877 = vmatprep.mubr.msk.bf16.mxu0 %vm6737_vm0, %v6736_v54 }
 0x112   : > { %5878 = vmatmul.mubr.bf16.gmra.mxu0 %v5122_v12  ;;  %v1078_v12 = vadd.s32 2, %v7180_v26 }
 0x113   : > { %5881 = vmatprep.mubr.msk.bf16.mxu0 %vm6737_vm0, %v6736_v54 }
 0x114   : > { %vm1100_vm15 = vcmp.ge.s32.totalorder %v1078_v12, 1 }
 0x11a   : > { %5882 = vmatmul.mubr.bf16.gmra.mxu0 %v5123_v15 }
 0x11b   : > { %5885 = vmatprep.mubr.msk.bf16.mxu0 %vm6737_vm0, %v6736_v54 }
 0x122   : > { %5886 = vmatmul.mubr.bf16.gmra.mxu0 %v5124_v18 }
 0x123   : > { %5889 = vmatprep.mubr.msk.bf16.mxu0 %vm6737_vm0, %v6736_v54 }
 0x12a   : > { %5890 = vmatmul.mubr.bf16.gmra.mxu0 %v5125_v21 }
 0x12b   : > { %5893 = vmatprep.mubr.msk.bf16.mxu0 %vm6737_vm0, %v6736_v54 }
 0x132   : > { %v806_v29 = vpop.f32.mrf.mxu0  ;;  %5894 = vmatmul.mubr.bf16.gmra.mxu0 %v5126_v25 }
 0x133   : > { %v807_v30 = vadd.f32 %v7185_v27, %v806_v29  ;;  %5897 = vmatprep.mubr.msk.bf16.mxu0 %vm6737_vm0, %v6736_v54 }
 0x134   : > { %v5799_v33 = vpop.f32.mrf.mxu0 }
 0x135   : > { %v1021_v38 = vmax.f32 %v807_v30, 0.0 }
 0x136   : > { %v809_v36 = vpop.f32.mrf.mxu0 }
 0x137   : > { %v810_v39 = vadd.f32 %v7185_v27, %v809_v36  ;;  %v1374_v45 = vsel %vm7209_vm5, %v1021_v38, 0.0 }
 0x138   : > { %v5800_v41 = vpop.f32.mrf.mxu0 }
 0x139   : > { %v1022_v42 = vmax.f32 %v810_v39, 0.0 }
 0x13a   : > { %v814_v43 = vpop.f32.mrf.mxu0  ;;  %5898 = vmatmul.mubr.bf16.gmra.mxu0 %v5127_v37 }
 0x13b   : > { %v1375_v46 = vsel %vm7196_vm3, %v1022_v42, 0.0  ;;  %v7219_v47 = vpack.c.bf16 %v1022_v42, %v1021_v38  ;;  %v815_v48 = vadd.f32 %v7185_v27, %v814_v43  ;;  %5901 = vmatprep.mubr.msk.bf16.mxu0 %vm6737_vm0, %v6736_v54  ;;  %vm1118_vm0 = vcmp.le.s32.totalorder %v1078_v12, 32  ;;  %v6569_v54 = vld [vmem:[%s9769_s3 + $0x168] sm:$0xff]  }
 0x13c   : > { %v1428_v49 = vpack.c.bf16 %v1375_v46, %v1374_v45  ;;  %v5803_v50 = vpop.f32.mrf.mxu0  ;;  %vm7263_vm1 = vmand %vm1100_vm15, %vm1118_vm0 }
 0x13d   : > { %v1023_v51 = vmax.f32 %v815_v48, 0.0  ;;  %vm7272_vm2 = vmand %vm7263_vm1, %vm9781_vm4 }
 0x13e   : > { %v817_v52 = vpop.f32.mrf.mxu0  ;;  %v1484_v53 = vshll.u32 %v1428_v49, 16  ;;  %v1482_v63 = vshrl.u32 %v1428_v49, 16  ;;  %v2157_v1 = vrot.slane %v1428_v49, 1 }
 0x13f   : > { %v1376_v56 = vsel %vm1214_vm7, %v1023_v51, 0.0  ;;  %v818_v57 = vadd.f32 %v7185_v27, %v817_v52  ;;  %v1079_v51 = vadd.s32 3, %v7180_v26  ;;  %vm1220_vm7 = vmand %vm7263_vm1, %vm9779_vm6 }
 0x140   : > { %v1429_v58 = vpack.c.bf16 %v1376_v56, %v1376_v56  ;;  %v5804_v59 = vpop.f32.mrf.mxu0  ;;  %v1486_v60 = vrot.slane %v1484_v53, 1 }
 0x141   : > { %v1024_v2 = vmax.f32 %v818_v57, 0.0  ;;  %v6528_v59 = vld [vmem:[%s9769_s3 + $0x30] sm:$0xff]   ;;  %vm1101_vm8 = vcmp.ge.s32.totalorder %v1079_v51, 1  ;;  %vm1119_vm9 = vcmp.le.s32.totalorder %v1079_v51, 32 }
 0x142   : > { %v2158_v61 = vrot.slane %v1429_v58, 1  ;;  %v822_v62 = vpop.f32.mrf.mxu0  ;;  %v1489_v0 = vshll.u32 %v1429_v58, 16  ;;  %5902 = vmatmul.mubr.bf16.gmra.mxu0 %v6523_v55  ;;  %v1487_v6 = vor.u32 %v1486_v60, %v1482_v63 }
 0x143   : > { %v823_v3 = vadd.f32 %v7185_v27, %v822_v62  ;;  %v1377_v13 = vsel %vm7239_vm13, %v1024_v2, 0.0 }
 0x144   : > { %v5807_v5 = vpop.f32.mrf.mxu0  ;;  %v1491_v7 = vrot.slane %v1489_v0, 1  ;;  %v7244_v8 = vsel %vm9780_vm11, %v2157_v1, %v2158_v61 }
 0x145   : > { %9882 = vst [vmem:[#allocation13_spill] sm:$0xff] %v7244_v8  ;;  %v1025_v9 = vmax.f32 %v823_v3, 0.0  ;;  %v6547_v5 = vld [vmem:[%s9769_s3 + $0x98] sm:$0xff]  }
 0x146   : > { %v825_v10 = vpop.f32.mrf.mxu0  ;;  %v1492_v11 = vsel %vm9778_vm12, %v1487_v6, %v1491_v7 }
 0x147   : > { %v1378_v14 = vsel %vm7230_vm10, %v1025_v9, 0.0  ;;  %v7252_v15 = vpack.c.bf16 %v1025_v9, %v1024_v2  ;;  %v826_v16 = vadd.f32 %v7185_v27, %v825_v10  ;;  %5921 = vmatprep.mubr.bf16.mxu1 %v1492_v11  ;;  %v6529_v11 = vld [vmem:[%s9769_s3 + $0x28] sm:$0xff]  }
 0x148   : > { %v1430_v17 = vpack.c.bf16 %v1378_v14, %v1377_v13  ;;  %v5808_v18 = vpop.f32.mrf.mxu0 }
 0x149   : > { %v1026_v20 = vmax.f32 %v826_v16, 0.0 }
 0x14a   : > { %v1496_v21 = vshll.u32 %v1430_v17, 16  ;;  %v830_v22 = vpop.f32.mrf.mxu0  ;;  %v2160_v32 = vrot.slane %v1430_v17, 1  ;;  %v1494_v38 = vshrl.u32 %v1430_v17, 16  ;;  %v6546_v17 = vld [vmem:[%s9769_s3 + $0xa0] sm:$0xff]  }
 0x14b   : > { %v1379_v23 = vsel %vm1217_vm14, %v1026_v20, 0.0  ;;  %v831_v24 = vadd.f32 %v7185_v27, %v830_v22  ;;  %vm7296_vm14 = vmand %vm1101_vm8, %vm1119_vm9 }
 0x14c   : > { %v1431_v25 = vpack.c.bf16 %v1379_v23, %v1379_v23  ;;  %v5811_v29 = vpop.f32.mrf.mxu0  ;;  %v1498_v30 = vrot.slane %v1496_v21, 1  ;;  %vm7308_vm15 = vmand %vm7296_vm14, %vm9781_vm4 }
 0x14d   : > { %v1027_v39 = vmax.f32 %v831_v24, 0.0  ;;  %v1080_v24 = vadd.s32 4, %v7180_v26  ;;  %vm1223_vm0 = vmand %vm7296_vm14, %vm9779_vm6 }
 0x14e   : > { %v1501_v33 = vshll.u32 %v1431_v25, 16  ;;  %v2161_v36 = vrot.slane %v1431_v25, 1  ;;  %v833_v37 = vpop.f32.mrf.mxu0  ;;  %v1499_v45 = vor.u32 %v1498_v30, %v1494_v38 }
 0x14f   : > { %v834_v41 = vadd.f32 %v7185_v27, %v833_v37  ;;  %v1380_v52 = vsel %vm7272_vm2, %v1027_v39, 0.0  ;;  %v6530_v37 = vld [vmem:[%s9769_s3 + $0x20] sm:$0xff]   ;;  %vm1120_vm8 = vcmp.le.s32.totalorder %v1080_v24, 32 }
 0x150   : > { %v1503_v42 = vrot.slane %v1501_v33, 1  ;;  %v5812_v44 = vpop.f32.mrf.mxu0  ;;  %v7277_v46 = vsel %vm9780_vm11, %v2160_v32, %v2161_v36 }
 0x151   : > { %9887 = vst [vmem:[#allocation14_spill] sm:$0xff] %v7277_v46  ;;  %v1028_v48 = vmax.f32 %v834_v41, 0.0 }
 0x152   : > { %v838_v49 = vpop.f32.mrf.mxu0  ;;  %v1504_v50 = vsel %vm9778_vm12, %v1499_v45, %v1503_v42 }
 0x153   : > { %v1381_v53 = vsel %vm7263_vm1, %v1028_v48, 0.0  ;;  %v7285_v55 = vpack.c.bf16 %v1028_v48, %v1027_v39  ;;  %v839_v56 = vadd.f32 %v7185_v27, %v838_v49  ;;  %5922 = vmatmul.mubr.bf16.vlgmr.msra.gmra.mxu1 %v1504_v50  ;;  %6113 = vmatprep.mubr.bf16.mxu0 %v1504_v50  ;;  %v6551_v50 = vld [vmem:[%s9769_s3 + $0x230] sm:$0xff]  }
 0x154   : > { %v1432_v57 = vpack.c.bf16 %v1381_v53, %v1380_v52  ;;  %v5815_v58 = vpop.f32.mrf.mxu0  ;;  %5954 = vmatpush3.bf16.msra.mxu1 %v6527_v19 }
 0x155   : > { %v1029_v60 = vmax.f32 %v839_v56, 0.0  ;;  %5955 = vmatprep.subr.bf16.mxu1 %v6528_v59 }
 0x156   : > { %v1508_v61 = vshll.u32 %v1432_v57, 16  ;;  %v841_v62 = vpop.f32.mrf.mxu0  ;;  %v1506_v10 = vshrl.u32 %v1432_v57, 16  ;;  %v2163_v12 = vrot.slane %v1432_v57, 1 }
 0x157   : > { %v1382_v63 = vsel %vm1220_vm7, %v1029_v60, 0.0  ;;  %v842_v0 = vadd.f32 %v7185_v27, %v841_v62  ;;  %vm1102_vm7 = vcmp.ge.s32.totalorder %v1080_v24, 1 }
 0x158   : > { %v1433_v1 = vpack.c.bf16 %v1382_v63, %v1382_v63  ;;  %v5816_v2 = vpop.f32.mrf.mxu0  ;;  %v1510_v3 = vrot.slane %v1508_v61, 1  ;;  %5956 = vmatpush3.bf16.msra.mxu1 %v6528_v59  ;;  %vm7336_vm9 = vmand %vm1102_vm7, %vm1120_vm8  ;;  %v10035_v61 = vmov 0 }
 0x159   : > { %v1030_v13 = vmax.f32 %v842_v0, 0.0  ;;  %5957 = vmatprep.subr.bf16.mxu1 %v6529_v11  ;;  %vm1226_vm7 = vmand %vm7336_vm9, %vm9779_vm6 }
 0x15a   : > { %v1513_v6 = vshll.u32 %v1433_v1, 16  ;;  %v2164_v7 = vrot.slane %v1433_v1, 1  ;;  %v846_v9 = vpop.f32.mrf.mxu0  ;;  %v1511_v19 = vor.u32 %v1510_v3, %v1506_v10 }
 0x15b   : > { %v847_v14 = vadd.f32 %v7185_v27, %v846_v9  ;;  %v1383_v25 = vsel %vm7308_vm15, %v1030_v13, 0.0 }
 0x15c   : > { %v1515_v16 = vrot.slane %v1513_v6, 1  ;;  %v5819_v18 = vpop.f32.mrf.mxu0  ;;  %v7313_v20 = vsel %vm9780_vm11, %v2163_v12, %v2164_v7  ;;  %5958 = vmatpush3.bf16.msra.mxu1 %v6529_v11  ;;  %v1081_v6 = vadd.s32 5, %v7180_v26 }
 0x15d   : > { %9892 = vst [vmem:[#allocation15_spill] sm:$0xff] %v7313_v20  ;;  %v1031_v21 = vmax.f32 %v847_v14, 0.0  ;;  %5959 = vmatprep.subr.bf16.mxu1 %v6530_v37  ;;  %v6531_v14 = vld [vmem:[%s9769_s3 + $0x18] sm:$0xff]  }
 0x15e   : > { %v849_v22 = vpop.f32.mrf.mxu0  ;;  %v7316_v23 = vsel %vm9778_vm12, %v1511_v19, %v1515_v16  ;;  %v6533_v18 = vld [vmem:[%s9769_s3 + $0x1b8] sm:$0xff]   ;;  %vm1103_vm8 = vcmp.ge.s32.totalorder %v1081_v6, 1 }
 0x15f   : > { %9893 = vst [vmem:[#allocation16_spill] sm:$0xff] %v7316_v23  ;;  %v1384_v29 = vsel %vm7296_vm14, %v1031_v21, 0.0  ;;  %v7323_v30 = vpack.c.bf16 %v1031_v21, %v1030_v13  ;;  %v850_v32 = vadd.f32 %v7185_v27, %v849_v22  ;;  %5925 = vmatprep.mubr.bf16.mxu1 %v7316_v23  ;;  %6114 = vmatmul.mubr.bf16.vlgmr.msra.gmra.mxu0 %v7316_v23 }
 0x160   : > { %v1434_v33 = vpack.c.bf16 %v1384_v29, %v1383_v25  ;;  %v5820_v36 = vpop.f32.mrf.mxu0  ;;  %5960 = vmatpush3.bf16.msra.mxu1 %v6530_v37  ;;  %6193 = vmatprep.subr.bf16.mxu0 %v6533_v18 }
 0x161   : > { %v1032_v38 = vmax.f32 %v850_v32, 0.0  ;;  %5961 = vmatprep.subr.bf16.mxu1 %v6531_v14  ;;  %6194 = vmatpush3.bf16.msra.mxu0 %v6533_v18  ;;  %v6535_v36 = vld [vmem:[%s9769_s3 + $0x1b0] sm:$0xff]  }
 0x162   : > { %v1520_v39 = vshll.u32 %v1434_v33, 16  ;;  %v854_v41 = vpop.f32.mrf.mxu0  ;;  %v1518_v56 = vshrl.u32 %v1434_v33, 16  ;;  %v2166_v57 = vrot.slane %v1434_v33, 1  ;;  %v9900_v33 = vmov 0  ;;  %6195 = vmatprep.subr.bf16.mxu0 %v6535_v36 }
 0x163   : > { %v1385_v42 = vsel %vm1223_vm0, %v1032_v38, 0.0  ;;  %v855_v44 = vadd.f32 %v7185_v27, %v854_v41  ;;  %vm7345_vm0 = vmand %vm7336_vm9, %vm9781_vm4 }
 0x164   : > { %v1435_v45 = vpack.c.bf16 %v1385_v42, %v1385_v42  ;;  %v5823_v48 = vpop.f32.mrf.mxu0  ;;  %v1522_v49 = vrot.slane %v1520_v39, 1  ;;  %5962 = vmatpush3.bf16.msra.mxu1 %v6531_v14  ;;  %v6532_v42 = vld [vmem:[%s9769_s3 + $0x10] sm:$0xff]  }
 0x165   : > { %v1033_v58 = vmax.f32 %v855_v44, 0.0  ;;  %5963 = vmatprep.subr.bf16.mxu1 %v6532_v42  ;;  %6196 = vmatpush3.bf16.msra.mxu0 %v6535_v36 }
 0x166   : > { %v1525_v51 = vshll.u32 %v1435_v45, 16  ;;  %v2167_v52 = vrot.slane %v1435_v45, 1  ;;  %v857_v53 = vpop.f32.mrf.mxu0  ;;  %v1523_v63 = vor.u32 %v1522_v49, %v1518_v56 }
 0x167   : > { %v858_v59 = vadd.f32 %v7185_v27, %v857_v53  ;;  %v1386_v7 = vsel %vm7345_vm0, %v1033_v58, 0.0 }
 0x168   : > { %v1527_v60 = vrot.slane %v1525_v51, 1  ;;  %v5824_v62 = vpop.f32.mrf.mxu0  ;;  %v7350_v0 = vsel %vm9780_vm11, %v2166_v57, %v2167_v52  ;;  %v9902_v51 = vmov 0  ;;  %5964 = vmatpush3.bf16.msra.mxu1 %v6532_v42 }
 0x169   : > { %9898 = vst [vmem:[#allocation17_spill] sm:$0xff] %v7350_v0  ;;  %v1034_v1 = vmax.f32 %v858_v59, 0.0  ;;  %v1082_v62 = vadd.s32 6, %v7180_v26 }
 0x16a   : > { %v862_v2 = vpop.f32.mrf.mxu0  ;;  %v7353_v3 = vsel %vm9778_vm12, %v1523_v63, %v1527_v60  ;;  %vm1121_vm12 = vcmp.le.s32.totalorder %v1081_v6, 32 }
 0x16b   : > { %9899 = vst [vmem:[#allocation18_spill] sm:$0xff] %v7353_v3  ;;  %v1387_v9 = vsel %vm7336_vm9, %v1034_v1, 0.0  ;;  %v7360_v10 = vpack.c.bf16 %v1034_v1, %v1033_v58  ;;  %v863_v11 = vadd.f32 %v7185_v27, %v862_v2  ;;  %5926 = vmatmul.mubr.bf16.gmra.mxu1 %v7353_v3  ;;  %6117 = vmatprep.mubr.bf16.mxu0 %v7353_v3  ;;  %vm7376_vm6 = vmand %vm1103_vm8, %vm1121_vm12  ;;  %v6536_v58 = vld [vmem:[%s9769_s3 + $0x1a8] sm:$0xff]   ;;  %vm9907_vm8 = vcmp.le.s32.totalorder %v7202_v35, 16 }
 0x16c   : > { %v1436_v12 = vpack.c.bf16 %v1387_v9, %v1386_v7  ;;  %v5827_v13 = vpop.f32.mrf.mxu0  ;;  %v9901_v33 = vsel %vm7376_vm6, 4294967295, %v9900_v33  ;;  %vm7391_vm12 = vmand %vm7376_vm6, %vm9781_vm4  ;;  %6197 = vmatprep.subr.bf16.mxu0 %v6536_v58  ;;  %vm1122_vm4 = vcmp.le.s32.totalorder %v1082_v62, 32 }
 0x16d   : > { %v1035_v16 = vmax.f32 %v863_v11, 0.0  ;;  %v9903_v51 = vsel %vm7391_vm12, 4294967295, %v9902_v51  ;;  %v6534_v11 = vld [vmem:[%s9769_s3 + $0x8] sm:$0xff]   ;;  %6198 = vmatpush3.bf16.msra.mxu0 %v6536_v58  ;;  %v6538_v13 = vld [vmem:[%s9769_s3 + $0x1a0] sm:$0xff]   ;;  %v6541_v58 = vld [vmem:[%s9769_s3 + $0x190] sm:$0xff]  }
 0x16e   : > { %v1532_v19 = vshll.u32 %v1436_v12, 16  ;;  %v865_v21 = vpop.f32.mrf.mxu0  ;;  %v1530_v41 = vshrl.u32 %v1436_v12, 16  ;;  %v2169_v44 = vrot.slane %v1436_v12, 1  ;;  %5965 = vmatprep.subr.bf16.mxu1 %v6534_v11  ;;  %6199 = vmatprep.subr.bf16.mxu0 %v6538_v13 }
 0x16f   : > { %v1388_v22 = vsel %vm1226_vm7, %v1035_v16, 0.0  ;;  %v866_v24 = vadd.f32 %v7185_v27, %v865_v21  ;;  %vm9905_vm7 = vsmask.f32 7424  ;;  %5966 = vmatpush3.bf16.msra.mxu1 %v6534_v11 }
 0x170   : > { %v1437_v25 = vpack.c.bf16 %v1388_v22, %v1388_v22  ;;  %v5828_v29 = vpop.f32.mrf.mxu0  ;;  %v1534_v32 = vrot.slane %v1532_v19, 1 }
 0x171   : > { %v1036_v45 = vmax.f32 %v866_v24, 0.0  ;;  %v6537_v29 = vld [vmem:[%s9769_s3] sm:$0xff]   ;;  %6200 = vmatpush3.bf16.msra.mxu0 %v6538_v13  ;;  %v7470_v13 = vld [vmem:[%s9769_s3 + $0xb8] sm:$0xff]  }
 0x172   : > { %v1537_v37 = vshll.u32 %v1437_v25, 16  ;;  %v2170_v38 = vrot.slane %v1437_v25, 1  ;;  %v870_v39 = vpop.f32.mrf.mxu0  ;;  %v1535_v53 = vor.u32 %v1534_v32, %v1530_v41  ;;  %v9908_v25 = vmov 0  ;;  %v6539_v32 = vld [vmem:[%s9769_s3 + $0x198] sm:$0xff]   ;;  %5967 = vmatprep.subr.bf16.mxu1 %v6537_v29 }
 0x173   : > { %v871_v48 = vadd.f32 %v7185_v27, %v870_v39  ;;  %v1389_v63 = vsel %vm7391_vm12, %v1036_v45, 0.0  ;;  %6201 = vmatprep.subr.bf16.mxu0 %v6539_v32  ;;  %5968 = vmatpush3.bf16.msra.mxu1 %v6537_v29 }
 0x174   : > { %v1539_v49 = vrot.slane %v1537_v37, 1  ;;  %v5831_v52 = vpop.f32.mrf.mxu0  ;;  %v7396_v56 = vsel %vm9780_vm11, %v2169_v44, %v2170_v38  ;;  %vm1104_vm11 = vcmp.ge.s32.totalorder %v1082_v62, 1  ;;  %6001 = vmatprep.subr.bf16.mxu1 %v7470_v13 }
 0x175   : > { %9904 = vst [vmem:[#allocation19_spill] sm:$0xff] %v7396_v56  ;;  %v1037_v57 = vmax.f32 %v871_v48, 0.0  ;;  %v9911_v48 = vmov 0  ;;  %6202 = vmatpush3.bf16.msra.mxu0 %v6539_v32 }
 0x176   : > { %v873_v59 = vpop.f32.mrf.mxu0  ;;  %v7402_v60 = vsel %vm9905_vm7, %v1535_v53, %v1539_v49  ;;  %vm1229_vm7 = vmand %vm7376_vm6, %vm9907_vm8  ;;  %6203 = vmatprep.subr.bf16.mxu0 %v6541_v58 }
 0x177   : > { %9906 = vst [vmem:[#allocation20_spill] sm:$0xff] %v7402_v60  ;;  %v1390_v1 = vsel %vm7376_vm6, %v1037_v57, 0.0  ;;  %v7409_v2 = vpack.c.bf16 %v1037_v57, %v1036_v45  ;;  %v874_v6 = vadd.f32 %v7185_v27, %v873_v59  ;;  %5929 = vmatprep.mubr.bf16.mxu1 %v7402_v60  ;;  %6118 = vmatmul.mubr.bf16.gmra.mxu0 %v7402_v60  ;;  %vm7425_vm8 = vmand %vm1104_vm11, %vm1122_vm4  ;;  %vm9910_vm4 = vcmp.ge.s32.totalorder %v7187_v28, 1 }
 0x178   : > { %v1438_v7 = vpack.c.bf16 %v1390_v1, %v1389_v63  ;;  %v5832_v9 = vpop.f32.mrf.mxu0  ;;  %v9909_v25 = vsel %vm7425_vm8, 4294967295, %v9908_v25  ;;  %vm7440_vm11 = vmand %vm7425_vm8, %vm9910_vm4  ;;  %vm9915_vm6 = vsmask.f32 7424  ;;  %v1083_v63 = vadd.s32 7, %v7180_v26 }
 0x179   : > { %v1038_v12 = vmax.f32 %v874_v6, 0.0  ;;  %v9912_v48 = vsel %vm7440_vm11, 4294967295, %v9911_v48  ;;  %6204 = vmatpush3.bf16.msra.mxu0 %v6541_v58 }
 0x17a   : > { %v1544_v14 = vshll.u32 %v1438_v7, 16  ;;  %v878_v16 = vpop.f32.mrf.mxu0  ;;  %v1542_v39 = vshrl.u32 %v1438_v7, 16  ;;  %v2172_v41 = vrot.slane %v1438_v7, 1 }
 0x17b   : > { %v1391_v18 = vsel %vm1229_vm7, %v1038_v12, 0.0  ;;  %v879_v19 = vadd.f32 %v7185_v27, %v878_v16  ;;  %vm9913_vm7 = vcmask 1046528   ;;  %v6542_v16 = vld [vmem:[%s9769_s3 + $0x188] sm:$0xff]  }
 0x17c   : > { %v1439_v21 = vpack.c.bf16 %v1391_v18, %v1391_v18  ;;  %v5835_v22 = vpop.f32.mrf.mxu0  ;;  %v1546_v24 = vrot.slane %v1544_v14, 1  ;;  %6205 = vmatprep.subr.bf16.mxu0 %v6542_v16 }
 0x17d   : > { %v1039_v42 = vmax.f32 %v879_v19, 0.0  ;;  %6206 = vmatpush3.bf16.msra.mxu0 %v6542_v16 }
 0x17e   : > { %v1549_v36 = vshll.u32 %v1439_v21, 16  ;;  %v2173_v37 = vrot.slane %v1439_v21, 1  ;;  %v881_v38 = vpop.f32.mrf.mxu0  ;;  %v1547_v52 = vor.u32 %v1546_v24, %v1542_v39 }
 0x17f   : > { %v882_v44 = vadd.f32 %v7185_v27, %v881_v38  ;;  %v1392_v1 = vsel %vm7440_vm11, %v1039_v42, 0.0  ;;  %vm1123_vm11 = vcmp.le.s32.totalorder %v1083_v63, 32 }
 0x180   : > { %v1551_v45 = vrot.slane %v1549_v36, 1  ;;  %v5836_v49 = vpop.f32.mrf.mxu0  ;;  %v7445_v53 = vsel %vm9913_vm7, %v2172_v41, %v2173_v37  ;;  %vm1105_vm7 = vcmp.ge.s32.totalorder %v1083_v63, 1  ;;  %v9918_v36 = vmov 0  ;;  %v6544_v37 = vld [vmem:[%s9769_s3 + $0x180] sm:$0xff]  }
 0x181   : > { %9914 = vst [vmem:[#allocation21_spill] sm:$0xff] %v7445_v53  ;;  %v1040_v57 = vmax.f32 %v882_v44, 0.0  ;;  %6207 = vmatprep.subr.bf16.mxu0 %v6544_v37 }
 0x182   : > { %v886_v59 = vpop.f32.mrf.mxu0  ;;  %v7451_v62 = vsel %vm9915_vm6, %v1547_v52, %v1551_v45  ;;  %vm9917_vm6 = vcmp.le.s32.totalorder %v7202_v35, 16  ;;  %6208 = vmatpush3.bf16.msra.mxu0 %v6544_v37 }
 0x183   : > { %9916 = vst [vmem:[#allocation22_spill] sm:$0xff] %v7451_v62  ;;  %v1393_v6 = vsel %vm7425_vm8, %v1040_v57, 0.0  ;;  %v7458_v7 = vpack.c.bf16 %v1040_v57, %v1039_v42  ;;  %v887_v9 = vadd.f32 %v7185_v27, %v886_v59  ;;  %5930 = vmatmul.mubr.bf16.gmra.mxu1 %v7451_v62  ;;  %6121 = vmatprep.mubr.bf16.mxu0 %v7451_v62  ;;  %vm1232_vm4 = vmand %vm7425_vm8, %vm9917_vm6  ;;  %v9921_v57 = vmov 0 }
 0x184   : > { %v1440_v11 = vpack.c.bf16 %v1393_v6, %v1392_v1  ;;  %v5839_v12 = vpop.f32.mrf.mxu0  ;;  %vm7477_vm6 = vmand %vm1105_vm7, %vm1123_vm11  ;;  %vm9920_vm11 = vcmp.ge.s32.totalorder %v7187_v28, 1  ;;  %vm9923_vm7 = vcmask 1046528   ;;  %vm9925_vm8 = vsmask.f32 7424 }
 0x185   : > { %v1041_v14 = vmax.f32 %v887_v9, 0.0  ;;  %v9919_v36 = vsel %vm7477_vm6, 4294967295, %v9918_v36 }
 0x186   : > { %v1556_v18 = vshll.u32 %v1440_v11, 16  ;;  %v889_v19 = vpop.f32.mrf.mxu0  ;;  %v1554_v42 = vshrl.u32 %v1440_v11, 16  ;;  %v2175_v44 = vrot.slane %v1440_v11, 1  ;;  %v1084_v11 = vadd.s32 8, %v7180_v26 }
 0x187   : > { %v1394_v21 = vsel %vm1232_vm4, %v1041_v14, 0.0  ;;  %v890_v22 = vadd.f32 %v7185_v27, %v889_v19  ;;  %vm7489_vm4 = vmand %vm7477_vm6, %vm9920_vm11 }
 0x188   : > { %v1441_v24 = vpack.c.bf16 %v1394_v21, %v1394_v21  ;;  %v5840_v29 = vpop.f32.mrf.mxu0  ;;  %v1558_v32 = vrot.slane %v1556_v18, 1  ;;  %v9922_v57 = vsel %vm7489_vm4, 4294967295, %v9921_v57 }
 0x189   : > { %v1042_v45 = vmax.f32 %v890_v22, 0.0 }
 0x18a   : > { %v1561_v38 = vshll.u32 %v1441_v24, 16  ;;  %v2176_v39 = vrot.slane %v1441_v24, 1  ;;  %v894_v41 = vpop.f32.mrf.mxu0  ;;  %v1559_v59 = vor.u32 %v1558_v32, %v1554_v42  ;;  %v9928_v42 = vmov 0 }
 0x18b   : > { %v895_v49 = vadd.f32 %v7185_v27, %v894_v41  ;;  %v1395_v12 = vsel %vm7489_vm4, %v1042_v45, 0.0  ;;  %vm1124_vm4 = vcmp.le.s32.totalorder %v1084_v11, 32 }
 0x18c   : > { %v1563_v52 = vrot.slane %v1561_v38, 1  ;;  %v5843_v58 = vpop.f32.mrf.mxu0  ;;  %v7494_v63 = vsel %vm9923_vm7, %v2175_v44, %v2176_v39  ;;  %vm1106_vm7 = vcmp.ge.s32.totalorder %v1084_v11, 1  ;;  %v9931_v11 = vmov 0 }
 0x18d   : > { %9924 = vst [vmem:[#allocation23_spill] sm:$0xff] %v7494_v63  ;;  %v1043_v1 = vmax.f32 %v895_v49, 0.0  ;;  %vm7514_vm12 = vmand %vm1106_vm7, %vm1124_vm4  ;;  %vm9933_vm4 = vcmask 1046528   ;;  %vm9935_vm7 = vsmask.f32 7424 }
 0x18e   : > { %v897_v6 = vpop.f32.mrf.mxu0  ;;  %v7497_v9 = vsel %vm9925_vm8, %v1559_v59, %v1563_v52  ;;  %vm9927_vm8 = vcmp.le.s32.totalorder %v7202_v35, 16  ;;  %v9929_v42 = vsel %vm7514_vm12, 4294967295, %v9928_v42 }
 0x18f   : > { %9926 = vst [vmem:[#allocation24_spill] sm:$0xff] %v7497_v9  ;;  %v1396_v14 = vsel %vm7477_vm6, %v1043_v1, 0.0  ;;  %v7504_v16 = vpack.c.bf16 %v1043_v1, %v1042_v45  ;;  %v898_v18 = vadd.f32 %v7185_v27, %v897_v6  ;;  %5933 = vmatprep.mubr.bf16.mxu1 %v7497_v9  ;;  %6122 = vmatmul.mubr.bf16.gmra.mxu0 %v7497_v9  ;;  %vm1235_vm11 = vmand %vm7477_vm6, %vm9927_vm8  ;;  %vm9930_vm8 = vcmp.ge.s32.totalorder %v7187_v28, 1 }
 0x190   : > { %v1442_v19 = vpack.c.bf16 %v1396_v14, %v1395_v12  ;;  %v5844_v21 = vpop.f32.mrf.mxu0 }
 0x191   : > { %v1044_v22 = vmax.f32 %v898_v18, 0.0 }
 0x192   : > { %v1568_v24 = vshll.u32 %v1442_v19, 16  ;;  %v902_v29 = vpop.f32.mrf.mxu0  ;;  %v1566_v52 = vshrl.u32 %v1442_v19, 16  ;;  %v2178_v58 = vrot.slane %v1442_v19, 1 }
 0x193   : > { %v1397_v32 = vsel %vm1235_vm11, %v1044_v22, 0.0  ;;  %v903_v37 = vadd.f32 %v7185_v27, %v902_v29  ;;  %vm7523_vm11 = vmand %vm7514_vm12, %vm9930_vm8  ;;  %vm9937_vm8 = vcmp.le.s32.totalorder %v7202_v35, 16 }
 0x194   : > { %v1443_v38 = vpack.c.bf16 %v1397_v32, %v1397_v32  ;;  %v5847_v39 = vpop.f32.mrf.mxu0  ;;  %v1570_v41 = vrot.slane %v1568_v24, 1  ;;  %v9932_v11 = vsel %vm7523_vm11, 4294967295, %v9931_v11  ;;  %v1085_v24 = vadd.s32 9, %v7180_v26 }
 0x195   : > { %v1045_v59 = vmax.f32 %v903_v37, 0.0 }
 0x196   : > { %v1573_v44 = vshll.u32 %v1443_v38, 16  ;;  %v2179_v45 = vrot.slane %v1443_v38, 1  ;;  %v905_v49 = vpop.f32.mrf.mxu0  ;;  %v1571_v14 = vor.u32 %v1570_v41, %v1566_v52 }
 0x197   : > { %v906_v1 = vadd.f32 %v7185_v27, %v905_v49  ;;  %v1398_v29 = vsel %vm7523_vm11, %v1045_v59, 0.0  ;;  %vm1125_vm11 = vcmp.le.s32.totalorder %v1085_v24, 32 }
 0x198   : > { %v1575_v6 = vrot.slane %v1573_v44, 1  ;;  %v5848_v12 = vpop.f32.mrf.mxu0  ;;  %v7528_v18 = vsel %vm9933_vm4, %v2178_v58, %v2179_v45  ;;  %vm1238_vm4 = vmand %vm7514_vm12, %vm9937_vm8  ;;  %vm9940_vm8 = vcmp.ge.s32.totalorder %v7187_v28, 1 }
 0x199   : > { %9934 = vst [vmem:[#allocation25_spill] sm:$0xff] %v7528_v18  ;;  %v1046_v21 = vmax.f32 %v906_v1, 0.0  ;;  %v9938_v12 = vmov 0 }
 0x19a   : > { %v910_v22 = vpop.f32.mrf.mxu0  ;;  %v7531_v19 = vsel %vm9935_vm7, %v1571_v14, %v1575_v6  ;;  %vm1107_vm7 = vcmp.ge.s32.totalorder %v1085_v24, 1  ;;  %v9941_v24 = vmov 0 }
 0x19b   : > { %9936 = vst [vmem:[#allocation26_spill] sm:$0xff] %v7531_v19  ;;  %v1399_v32 = vsel %vm7514_vm12, %v1046_v21, 0.0  ;;  %v7538_v37 = vpack.c.bf16 %v1046_v21, %v1045_v59  ;;  %v911_v38 = vadd.f32 %v7185_v27, %v910_v22  ;;  %5934 = vmatmul.mubr.bf16.gmra.mxu1 %v7531_v19  ;;  %6125 = vmatprep.mubr.bf16.mxu0 %v7531_v19  ;;  %vm7548_vm6 = vmand %vm1107_vm7, %vm1125_vm11  ;;  %vm9943_vm11 = vcmask 1046528  }
 0x19c   : > { %v1444_v39 = vpack.c.bf16 %v1399_v32, %v1398_v29  ;;  %v5851_v41 = vpop.f32.mrf.mxu0  ;;  %v9939_v12 = vsel %vm7548_vm6, 4294967295, %v9938_v12  ;;  %vm9945_vm7 = vsmask.f32 7424 }
 0x19d   : > { %v1047_v44 = vmax.f32 %v911_v38, 0.0 }
 0x19e   : > { %v1580_v45 = vshll.u32 %v1444_v39, 16  ;;  %v913_v49 = vpop.f32.mrf.mxu0  ;;  %v1578_v29 = vshrl.u32 %v1444_v39, 16  ;;  %v2181_v32 = vrot.slane %v1444_v39, 1 }
 0x19f   : > { %v1400_v52 = vsel %vm1238_vm4, %v1047_v44, 0.0  ;;  %v914_v58 = vadd.f32 %v7185_v27, %v913_v49  ;;  %vm7557_vm4 = vmand %vm7548_vm6, %vm9940_vm8  ;;  %vm9947_vm8 = vcmp.le.s32.totalorder %v7202_v35, 16 }
 0x1a0   : > { %v1445_v59 = vpack.c.bf16 %v1400_v52, %v1400_v52  ;;  %v5852_v1 = vpop.f32.mrf.mxu0  ;;  %v1582_v6 = vrot.slane %v1580_v45, 1  ;;  %v9942_v24 = vsel %vm7557_vm4, 4294967295, %v9941_v24 }
 0x1a1   : > { %v1048_v38 = vmax.f32 %v914_v58, 0.0  ;;  %v1086_v58 = vadd.s32 10, %v7180_v26 }
 0x1a2   : > { %v1585_v14 = vshll.u32 %v1445_v59, 16  ;;  %v2182_v21 = vrot.slane %v1445_v59, 1  ;;  %v918_v22 = vpop.f32.mrf.mxu0  ;;  %v1583_v45 = vor.u32 %v1582_v6, %v1578_v29 }
 0x1a3   : > { %v919_v41 = vadd.f32 %v7185_v27, %v918_v22  ;;  %v1401_v1 = vsel %vm7557_vm4, %v1048_v38, 0.0  ;;  %vm1126_vm4 = vcmp.le.s32.totalorder %v1086_v58, 32 }
 0x1a4   : > { %v1587_v19 = vrot.slane %v1585_v14, 1  ;;  %v5855_v44 = vpop.f32.mrf.mxu0  ;;  %v7562_v49 = vsel %vm9943_vm11, %v2181_v32, %v2182_v21  ;;  %vm1241_vm11 = vmand %vm7548_vm6, %vm9947_vm8 }
 0x1a5   : > { %9944 = vst [vmem:[#allocation27_spill] sm:$0xff] %v7562_v49  ;;  %v1049_v52 = vmax.f32 %v919_v41, 0.0 }
 0x1a6   : > { %v921_v59 = vpop.f32.mrf.mxu0  ;;  %v7565_v39 = vsel %vm9945_vm7, %v1583_v45, %v1587_v19  ;;  %vm1108_vm7 = vcmp.ge.s32.totalorder %v1086_v58, 1 }
 0x1a7   : > { %9946 = vst [vmem:[#allocation28_spill] sm:$0xff] %v7565_v39  ;;  %v1402_v14 = vsel %vm7548_vm6, %v1049_v52, 0.0  ;;  %v7572_v22 = vpack.c.bf16 %v1049_v52, %v1048_v38  ;;  %v922_v6 = vadd.f32 %v7185_v27, %v921_v59  ;;  %5937 = vmatprep.mubr.bf16.mxu1 %v7565_v39  ;;  %6126 = vmatmul.mubr.bf16.gmra.mxu0 %v7565_v39  ;;  %vm7582_vm12 = vmand %vm1108_vm7, %vm1126_vm4  ;;  %v9948_v39 = vmov 0 }
 0x1a8   : > { %v1446_v21 = vpack.c.bf16 %v1402_v14, %v1401_v1  ;;  %v5856_v19 = vpop.f32.mrf.mxu0  ;;  %v9949_v39 = vsel %vm7582_vm12, 4294967295, %v9948_v39  ;;  %v7589_v1 = vld [vmem:[%s9769_s3 + $0x238] sm:$0xff]   ;;  %vm9950_vm4 = vcmp.ge.s32.totalorder %v7187_v28, 1  ;;  %vm9955_vm7 = vsmask.f32 7424 }
 0x1a9   : > { %v1050_v29 = vmax.f32 %v922_v6, 0.0  ;;  %6289 = vmatprep.subr.bf16.mxu0 %v7589_v1  ;;  %vm7597_vm8 = vmand %vm7582_vm12, %vm9950_vm4  ;;  %vm9957_vm4 = vcmp.le.s32.totalorder %v7202_v35, 16 }
 0x1aa   : > { %v1592_v32 = vshll.u32 %v1446_v21, 16  ;;  %v926_v41 = vpop.f32.mrf.mxu0  ;;  %v1590_v9 = vshrl.u32 %v1446_v21, 16  ;;  %v2184_v58 = vrot.slane %v1446_v21, 1 }
 0x1ab   : > { %v1403_v38 = vsel %vm1241_vm11, %v1050_v29, 0.0  ;;  %v927_v44 = vadd.f32 %v7185_v27, %v926_v41  ;;  %vm9953_vm11 = vcmask 1046528  }
 0x1ac   : > { %v1447_v45 = vpack.c.bf16 %v1403_v38, %v1403_v38  ;;  %v5859_v52 = vpop.f32.mrf.mxu0  ;;  %v1594_v59 = vrot.slane %v1592_v32, 1  ;;  %v9951_v38 = vmov 0 }
 0x1ad   : > { %v1051_v29 = vmax.f32 %v927_v44, 0.0  ;;  %v9952_v38 = vsel %vm7597_vm8, 4294967295, %v9951_v38 }
 0x1ae   : > { %v1597_v14 = vshll.u32 %v1447_v45, 16  ;;  %v2185_v6 = vrot.slane %v1447_v45, 1  ;;  %v929_v19 = vpop.f32.mrf.mxu0  ;;  %v1595_v62 = vor.u32 %v1594_v59, %v1590_v9 }
 0x1af   : > { %v930_v41 = vadd.f32 %v7185_v27, %v929_v19  ;;  %v1404_v60 = vsel %vm7597_vm8, %v1051_v29, 0.0 }
 0x1b0   : > { %v1599_v32 = vrot.slane %v1597_v14, 1  ;;  %v5860_v52 = vpop.f32.mrf.mxu0  ;;  %v7602_v45 = vsel %vm9953_vm11, %v2184_v58, %v2185_v6  ;;  %v1087_v14 = vadd.s32 11, %v7180_v26  ;;  %vm1244_vm11 = vmand %vm7582_vm12, %vm9957_vm4  ;;  %vm9960_vm4 = vcmp.ge.s32.totalorder %v7187_v28, 1 }
 0x1b1   : > { %9954 = vst [vmem:[#allocation29_spill] sm:$0xff] %v7602_v45  ;;  %v1052_v21 = vmax.f32 %v930_v41, 0.0 }
 0x1b2   : > { %v934_v44 = vpop.f32.mrf.mxu0  ;;  %v7605_v19 = vsel %vm9955_vm7, %v1595_v62, %v1599_v32  ;;  %vm1109_vm7 = vcmp.ge.s32.totalorder %v1087_v14, 1  ;;  %vm1127_vm8 = vcmp.le.s32.totalorder %v1087_v14, 32  ;;  %v9961_v14 = vmov 0 }
 0x1b3   : > { %9956 = vst [vmem:[#allocation30_spill] sm:$0xff] %v7605_v19  ;;  %v1405_v3 = vsel %vm7582_vm12, %v1052_v21, 0.0  ;;  %v7612_v23 = vpack.c.bf16 %v1052_v21, %v1051_v29  ;;  %v935_v9 = vadd.f32 %v7185_v27, %v934_v44  ;;  %5938 = vmatmul.mubr.bf16.gmra.mxu1 %v7605_v19  ;;  %6129 = vmatprep.mubr.bf16.mxu0 %v7605_v19  ;;  %vm7622_vm6 = vmand %vm1109_vm7, %vm1127_vm8  ;;  %v9958_v19 = vmov 0 }
 0x1b4   : > { %v1448_v59 = vpack.c.bf16 %v1405_v3, %v1404_v60  ;;  %v5863_v62 = vpop.f32.mrf.mxu0  ;;  %v9959_v19 = vsel %vm7622_vm6, 4294967295, %v9958_v19  ;;  %vm9963_vm8 = vcmask 1046528   ;;  %vm9965_vm7 = vsmask.f32 7424 }
 0x1b5   : > { %v1053_v6 = vmax.f32 %v935_v9, 0.0 }
 0x1b6   : > { %v1604_v58 = vshll.u32 %v1448_v59, 16  ;;  %v937_v41 = vpop.f32.mrf.mxu0  ;;  %v1602_v49 = vshrl.u32 %v1448_v59, 16  ;;  %v2187_v62 = vrot.slane %v1448_v59, 1 }
 0x1b7   : > { %v1406_v29 = vsel %vm1244_vm11, %v1053_v6, 0.0  ;;  %v938_v32 = vadd.f32 %v7185_v27, %v937_v41  ;;  %vm7631_vm11 = vmand %vm7622_vm6, %vm9960_vm4  ;;  %vm9967_vm4 = vcmp.le.s32.totalorder %v7202_v35, 16 }
 0x1b8   : > { %v1449_v52 = vpack.c.bf16 %v1406_v29, %v1406_v29  ;;  %v5864_v21 = vpop.f32.mrf.mxu0  ;;  %v1606_v44 = vrot.slane %v1604_v58, 1  ;;  %v9962_v14 = vsel %vm7631_vm11, 4294967295, %v9961_v14 }
 0x1b9   : > { %v1054_v9 = vmax.f32 %v938_v32, 0.0 }
 0x1ba   : > { %v1609_v3 = vshll.u32 %v1449_v52, 16  ;;  %v2188_v60 = vrot.slane %v1449_v52, 1  ;;  %v942_v45 = vpop.f32.mrf.mxu0  ;;  %v1607_v58 = vor.u32 %v1606_v44, %v1602_v49 }
 0x1bb   : > { %v943_v18 = vadd.f32 %v7185_v27, %v942_v45  ;;  %v1088_v45 = vadd.s32 12, %v7180_v26  ;;  %v1407_v32 = vsel %vm7631_vm11, %v1054_v9, 0.0 }
 0x1bc   : > { %v1611_v63 = vrot.slane %v1609_v3, 1  ;;  %v5867_v6 = vpop.f32.mrf.mxu0  ;;  %v7636_v41 = vsel %vm9963_vm8, %v2187_v62, %v2188_v60  ;;  %vm1247_vm8 = vmand %vm7622_vm6, %vm9967_vm4  ;;  %vm9970_vm4 = vcmp.ge.s32.totalorder %v7187_v28, 1 }
 0x1bd   : > { %9964 = vst [vmem:[#allocation31_spill] sm:$0xff] %v7636_v41  ;;  %v1055_v29 = vmax.f32 %v943_v18, 0.0  ;;  %vm1128_vm11 = vcmp.le.s32.totalorder %v1088_v45, 32 }
 0x1be   : > { %v945_v52 = vpop.f32.mrf.mxu0  ;;  %v7639_v59 = vsel %vm9965_vm7, %v1607_v58, %v1611_v63  ;;  %vm1110_vm7 = vcmp.ge.s32.totalorder %v1088_v45, 1  ;;  %v9971_v45 = vmov 0 }
 0x1bf   : > { %9966 = vst [vmem:[#allocation32_spill] sm:$0xff] %v7639_v59  ;;  %v1408_v21 = vsel %vm7622_vm6, %v1055_v29, 0.0  ;;  %v7646_v3 = vpack.c.bf16 %v1055_v29, %v1054_v9  ;;  %v946_v49 = vadd.f32 %v7185_v27, %v945_v52  ;;  %5941 = vmatprep.mubr.bf16.mxu1 %v7639_v59  ;;  %6130 = vmatmul.mubr.bf16.gmra.mxu0 %v7639_v59  ;;  %vm7656_vm12 = vmand %vm1110_vm7, %vm1128_vm11  ;;  %v9968_v59 = vmov 0 }
 0x1c0   : > { %v1450_v18 = vpack.c.bf16 %v1408_v21, %v1407_v32  ;;  %v5868_v63 = vpop.f32.mrf.mxu0  ;;  %v9969_v59 = vsel %vm7656_vm12, 4294967295, %v9968_v59  ;;  %vm9973_vm11 = vcmask 1046528   ;;  %vm9975_vm7 = vsmask.f32 7424 }
 0x1c1   : > { %v1056_v44 = vmax.f32 %v946_v49, 0.0 }
 0x1c2   : > { %v1616_v60 = vshll.u32 %v1450_v18, 16  ;;  %v950_v62 = vpop.f32.mrf.mxu0  ;;  %v1614_v53 = vshrl.u32 %v1450_v18, 16  ;;  %v2190_v63 = vrot.slane %v1450_v18, 1 }
 0x1c3   : > { %v1409_v9 = vsel %vm1247_vm8, %v1056_v44, 0.0  ;;  %v951_v6 = vadd.f32 %v7185_v27, %v950_v62  ;;  %vm7665_vm8 = vmand %vm7656_vm12, %vm9970_vm4  ;;  %vm9977_vm4 = vcmp.le.s32.totalorder %v7202_v35, 16 }
 0x1c4   : > { %v1451_v58 = vpack.c.bf16 %v1409_v9, %v1409_v9  ;;  %v5871_v29 = vpop.f32.mrf.mxu0  ;;  %v1618_v52 = vrot.slane %v1616_v60, 1  ;;  %v9972_v45 = vsel %vm7665_vm8, 4294967295, %v9971_v45 }
 0x1c5   : > { %v1057_v49 = vmax.f32 %v951_v6, 0.0 }
 0x1c6   : > { %v1621_v32 = vshll.u32 %v1451_v58, 16  ;;  %v2191_v21 = vrot.slane %v1451_v58, 1  ;;  %v953_v41 = vpop.f32.mrf.mxu0  ;;  %v1619_v60 = vor.u32 %v1618_v52, %v1614_v53  ;;  %v7685_v53 = vld [vmem:[%s9768_s2] ss:$0 sm:$0xff] }
 0x1c7   : > { %v954_v56 = vadd.f32 %v7185_v27, %v953_v41  ;;  %v1089_v27 = vadd.s32 13, %v7180_v26  ;;  %v1410_v41 = vsel %vm7665_vm8, %v1057_v49, 0.0 }
 0x1c8   : > { %v1623_v0 = vrot.slane %v1621_v32, 1  ;;  %v5872_v44 = vpop.f32.mrf.mxu0  ;;  %v7670_v62 = vsel %vm9973_vm11, %v2190_v63, %v2191_v21  ;;  %vm1250_vm11 = vmand %vm7656_vm12, %vm9977_vm4  ;;  %vm9981_vm4 = vcmp.ge.s32.totalorder %v7187_v28, 1 }
 0x1c9   : > { %9974 = vst [vmem:[#allocation33_spill] sm:$0xff] %v7670_v62  ;;  %v1058_v9 = vmax.f32 %v954_v56, 0.0  ;;  %vm1129_vm8 = vcmp.le.s32.totalorder %v1089_v27, 32 }
 0x1ca   : > { %v958_v58 = vpop.f32.mrf.mxu0  ;;  %v7673_v18 = vsel %vm9975_vm7, %v1619_v60, %v1623_v0  ;;  %vm1111_vm7 = vcmp.ge.s32.totalorder %v1089_v27, 1  ;;  %v9982_v27 = vmov 0 }
 0x1cb   : > { %9976 = vst [vmem:[#allocation34_spill] sm:$0xff] %v7673_v18  ;;  %v1411_v6 = vsel %vm7656_vm12, %v1058_v9, 0.0  ;;  %v7680_v29 = vpack.c.bf16 %v1058_v9, %v1057_v49  ;;  %v959_v56 = vadd.f32 %v7685_v53, %v958_v58  ;;  %5942 = vmatmul.mubr.bf16.gmra.mxu1 %v7673_v18  ;;  %6133 = vmatprep.mubr.bf16.mxu0 %v7673_v18  ;;  %vm7695_vm6 = vmand %vm1111_vm7, %vm1129_vm8  ;;  %v9978_v18 = vmov 0 }
 0x1cc   : > { %v1452_v0 = vpack.c.bf16 %v1411_v6, %v1410_v41  ;;  %v5875_v52 = vpop.f32.mrf.mxu0  ;;  %v9979_v18 = vsel %vm7695_vm6, 4294967295, %v9978_v18  ;;  %vm9985_vm8 = vcmask 1046528   ;;  %vm9987_vm7 = vsmask.f32 7424 }
 0x1cd   : > { %v1059_v32 = vmax.f32 %v959_v56, 0.0  ;;  %9980 = vst [vmem:[#allocation35_spill] sm:$0xff] %v9979_v18 }
 0x1ce   : > { %v1628_v21 = vshll.u32 %v1452_v0, 16  ;;  %v961_v63 = vpop.f32.mrf.mxu0  ;;  %v1626_v20 = vshrl.u32 %v1452_v0, 16  ;;  %v2193_v52 = vrot.slane %v1452_v0, 1 }
 0x1cf   : > { %v1412_v49 = vsel %vm1250_vm11, %v1059_v32, 0.0  ;;  %v962_v44 = vadd.f32 %v7685_v53, %v961_v63  ;;  %vm7704_vm11 = vmand %vm7695_vm6, %vm9981_vm4  ;;  %vm9990_vm4 = vcmp.le.s32.totalorder %v7202_v35, 16 }
 0x1d0   : > { %v1453_v60 = vpack.c.bf16 %v1412_v49, %v1412_v49  ;;  %v5876_v9 = vpop.f32.mrf.mxu0  ;;  %v1630_v58 = vrot.slane %v1628_v21, 1  ;;  %v9983_v27 = vsel %vm7704_vm11, 4294967295, %v9982_v27 }
 0x1d1   : > { %v1060_v56 = vmax.f32 %v962_v44, 0.0  ;;  %9984 = vst [vmem:[#allocation36_spill] sm:$0xff] %v9983_v27 }
 0x1d2   : > { %v1633_v41 = vshll.u32 %v1453_v60, 16  ;;  %v2194_v6 = vrot.slane %v1453_v60, 1  ;;  %v966_v62 = vpop.f32.mrf.mxu0  ;;  %v1631_v21 = vor.u32 %v1630_v58, %v1626_v20 }
 0x1d3   : > { %v967_v46 = vadd.f32 %v7685_v53, %v966_v62  ;;  %v1090_v62 = vadd.s32 14, %v7180_v26  ;;  %v1413_v44 = vsel %vm7704_vm11, %v1060_v56, 0.0 }
 0x1d4   : > { %v1635_v8 = vrot.slane %v1633_v41, 1  ;;  %v5879_v32 = vpop.f32.mrf.mxu0  ;;  %v7709_v63 = vsel %vm9985_vm8, %v2193_v52, %v2194_v6  ;;  %vm1253_vm8 = vmand %vm7695_vm6, %vm9990_vm4  ;;  %vm9994_vm4 = vcmp.ge.s32.totalorder %v7187_v28, 1 }
 0x1d5   : > { %9986 = vst [vmem:[#allocation37_spill] sm:$0xff] %v7709_v63  ;;  %v1061_v49 = vmax.f32 %v967_v46, 0.0  ;;  %vm1130_vm11 = vcmp.le.s32.totalorder %v1090_v62, 32 }
 0x1d6   : > { %v969_v60 = vpop.f32.mrf.mxu0  ;;  %v7712_v0 = vsel %vm9987_vm7, %v1631_v21, %v1635_v8  ;;  %vm1112_vm7 = vcmp.ge.s32.totalorder %v1090_v62, 1  ;;  %v9995_v62 = vmov 0 }
 0x1d7   : > { %9988 = vst [vmem:[#allocation38_spill] sm:$0xff] %v7712_v0  ;;  %v1414_v9 = vsel %vm7695_vm6, %v1061_v49, 0.0  ;;  %v7719_v41 = vpack.c.bf16 %v1061_v49, %v1060_v56  ;;  %v970_v20 = vadd.f32 %v7685_v53, %v969_v60  ;;  %5945 = vmatprep.mubr.bf16.mxu1 %v7712_v0  ;;  %6134 = vmatmul.mubr.bf16.gmra.mxu0 %v7712_v0  ;;  %vm7729_vm12 = vmand %vm1112_vm7, %vm1130_vm11  ;;  %v9991_v0 = vmov 0 }
 0x1d8   : > { %v1454_v46 = vpack.c.bf16 %v1414_v9, %v1413_v44  ;;  %v5880_v8 = vpop.f32.mrf.mxu0  ;;  %v9992_v0 = vsel %vm7729_vm12, 4294967295, %v9991_v0  ;;  %vm9998_vm11 = vcmask 1046528   ;;  %vm10000_vm7 = vsmask.f32 7424 }
 0x1d9   : > { %9989 = vst [vmem:[#allocation39_spill] sm:$0xff] %v7719_v41  ;;  %v1062_v58 = vmax.f32 %v970_v20, 0.0  ;;  %9993 = vst [vmem:[#allocation40_spill] sm:$0xff] %v9992_v0 }
 0x1da   : > { %v1640_v6 = vshll.u32 %v1454_v46, 16  ;;  %v974_v52 = vpop.f32.mrf.mxu0  ;;  %v1638_v41 = vshrl.u32 %v1454_v46, 16  ;;  %v2196_v8 = vrot.slane %v1454_v46, 1 }
 0x1db   : > { %v1415_v56 = vsel %vm1253_vm8, %v1062_v58, 0.0  ;;  %v975_v32 = vadd.f32 %v7685_v53, %v974_v52  ;;  %vm7738_vm8 = vmand %vm7729_vm12, %vm9994_vm4  ;;  %vm10003_vm4 = vcmp.le.s32.totalorder %v7202_v35, 16 }
 0x1dc   : > { %v1455_v21 = vpack.c.bf16 %v1415_v56, %v1415_v56  ;;  %v5883_v49 = vpop.f32.mrf.mxu0  ;;  %v1642_v60 = vrot.slane %v1640_v6, 1  ;;  %v9996_v62 = vsel %vm7738_vm8, 4294967295, %v9995_v62 }
 0x1dd   : > { %v1063_v20 = vmax.f32 %v975_v32, 0.0  ;;  %9997 = vst [vmem:[#allocation41_spill] sm:$0xff] %v9996_v62 }
 0x1de   : > { %v1645_v44 = vshll.u32 %v1455_v21, 16  ;;  %v2197_v9 = vrot.slane %v1455_v21, 1  ;;  %v977_v63 = vpop.f32.mrf.mxu0  ;;  %v1643_v6 = vor.u32 %v1642_v60, %v1638_v41 }
 0x1df   : > { %v978_v18 = vadd.f32 %v7685_v53, %v977_v63  ;;  %v1091_v63 = vadd.s32 15, %v7180_v26  ;;  %v1416_v32 = vsel %vm7738_vm8, %v1063_v20, 0.0 }
 0x1e0   : > { %v1647_v27 = vrot.slane %v1645_v44, 1  ;;  %v5884_v58 = vpop.f32.mrf.mxu0  ;;  %v7743_v52 = vsel %vm9998_vm11, %v2196_v8, %v2197_v9  ;;  %vm1256_vm11 = vmand %vm7729_vm12, %vm10003_vm4  ;;  %vm10007_vm4 = vcmp.ge.s32.totalorder %v7187_v28, 1 }
 0x1e1   : > { %9999 = vst [vmem:[#allocation42_spill] sm:$0xff] %v7743_v52  ;;  %v1064_v56 = vmax.f32 %v978_v18, 0.0  ;;  %vm1131_vm8 = vcmp.le.s32.totalorder %v1091_v63, 32 }
 0x1e2   : > { %v982_v21 = vpop.f32.mrf.mxu0  ;;  %v7746_v46 = vsel %vm10000_vm7, %v1643_v6, %v1647_v27  ;;  %vm1113_vm7 = vcmp.ge.s32.totalorder %v1091_v63, 1  ;;  %v10008_v63 = vmov 0 }
 0x1e3   : > { %10001 = vst [vmem:[#allocation43_spill] sm:$0xff] %v7746_v46  ;;  %v1417_v49 = vsel %vm7729_vm12, %v1064_v56, 0.0  ;;  %v7753_v44 = vpack.c.bf16 %v1064_v56, %v1063_v20  ;;  %v983_v41 = vadd.f32 %v7685_v53, %v982_v21  ;;  %5946 = vmatmul.mubr.bf16.gmra.mxu1 %v7746_v46  ;;  %6137 = vmatprep.mubr.bf16.mxu0 %v7746_v46  ;;  %vm7763_vm6 = vmand %vm1113_vm7, %vm1131_vm8  ;;  %v10004_v46 = vmov 0 }
 0x1e4   : > { %v1456_v18 = vpack.c.bf16 %v1417_v49, %v1416_v32  ;;  %v5887_v27 = vpop.f32.mrf.mxu0  ;;  %v10005_v46 = vsel %vm7763_vm6, 4294967295, %v10004_v46  ;;  %vm10010_vm8 = vcmask 1046528   ;;  %vm10012_vm7 = vsmask.f32 7424 }
 0x1e5   : > { %10002 = vst [vmem:[#allocation44_spill] sm:$0xff] %v7753_v44  ;;  %v1065_v60 = vmax.f32 %v983_v41, 0.0  ;;  %10006 = vst [vmem:[#allocation45_spill] sm:$0xff] %v10005_v46 }
 0x1e6   : > { %v1652_v9 = vshll.u32 %v1456_v18, 16  ;;  %v985_v8 = vpop.f32.mrf.mxu0  ;;  %v1650_v44 = vshrl.u32 %v1456_v18, 16  ;;  %v2199_v27 = vrot.slane %v1456_v18, 1 }
 0x1e7   : > { %v1418_v20 = vsel %vm1256_vm11, %v1065_v60, 0.0  ;;  %v986_v58 = vadd.f32 %v7685_v53, %v985_v8  ;;  %vm7772_vm11 = vmand %vm7763_vm6, %vm10007_vm4  ;;  %v1092_v8 = vadd.s32 16, %v7180_v26  ;;  %vm10015_vm4 = vcmp.le.s32.totalorder %v7202_v35, 16 }
 0x1e8   : > { %v1457_v6 = vpack.c.bf16 %v1418_v20, %v1418_v20  ;;  %v5888_v56 = vpop.f32.mrf.mxu0  ;;  %v1654_v21 = vrot.slane %v1652_v9, 1  ;;  %v10009_v63 = vsel %vm7772_vm11, 4294967295, %v10008_v63 }
 0x1e9   : > { %v1066_v41 = vmax.f32 %v986_v58, 0.0 }
 0x1ea   : > { %v1657_v32 = vshll.u32 %v1457_v6, 16  ;;  %v2200_v49 = vrot.slane %v1457_v6, 1  ;;  %v990_v52 = vpop.f32.mrf.mxu0  ;;  %v1655_v9 = vor.u32 %v1654_v21, %v1650_v44 }
 0x1eb   : > { %v991_v0 = vadd.f32 %v7685_v53, %v990_v52  ;;  %v1419_v6 = vsel %vm7772_vm11, %v1066_v41, 0.0  ;;  %vm1132_vm11 = vcmp.le.s32.totalorder %v1092_v8, 32 }
 0x1ec   : > { %v1659_v62 = vrot.slane %v1657_v32, 1  ;;  %v5891_v60 = vpop.f32.mrf.mxu0  ;;  %v7778_v20 = vsel %vm10010_vm8, %v2199_v27, %v2200_v49  ;;  %vm1259_vm8 = vmand %vm7763_vm6, %vm10015_vm4  ;;  %vm10018_vm4 = vcmp.ge.s32.totalorder %v7187_v28, 1 }
 0x1ed   : > { %10011 = vst [vmem:[#allocation46_spill] sm:$0xff] %v7778_v20  ;;  %v1067_v18 = vmax.f32 %v991_v0, 0.0 }
 0x1ee   : > { %v993_v58 = vpop.f32.mrf.mxu0  ;;  %v7781_v52 = vsel %vm10012_vm7, %v1655_v9, %v1659_v62  ;;  %vm1114_vm7 = vcmp.ge.s32.totalorder %v1092_v8, 1  ;;  %v6576_v9 = vld [vmem:[%s9769_s3 + $0x1f0] sm:$0xff]  }
 0x1ef   : > { %10013 = vst [vmem:[#allocation47_spill] sm:$0xff] %v7781_v52  ;;  %v1420_v56 = vsel %vm7763_vm6, %v1067_v18, 0.0  ;;  %v7787_v32 = vpack.c.bf16 %v1067_v18, %v1066_v41  ;;  %v994_v44 = vadd.f32 %v7685_v53, %v993_v58  ;;  %5949 = vmatprep.mubr.bf16.mxu1 %v7781_v52  ;;  %6138 = vmatmul.mubr.bf16.gmra.mxu0 %v7781_v52  ;;  %vm7797_vm12 = vmand %vm1114_vm7, %vm1132_vm11  ;;  %vm10021_vm11 = vcmask 1046528  }
 0x1f0   : > { %v1458_v21 = vpack.c.bf16 %v1420_v56, %v1419_v6  ;;  %v5892_v0 = vpop.f32.mrf.mxu0  ;;  %vm7805_vm6 = vmand %vm7797_vm12, %vm10018_vm4  ;;  %vm10022_vm7 = vsmask.f32 7424  ;;  %vm10024_vm4 = vcmp.le.s32.totalorder %v7202_v35, 16 }
 0x1f1   : > { %10014 = vst [vmem:[#allocation48_spill] sm:$0xff] %v7787_v32  ;;  %v1068_v62 = vmax.f32 %v994_v44, 0.0 }
 0x1f2   : > { %v1664_v49 = vshll.u32 %v1458_v21, 16  ;;  %v998_v27 = vpop.f32.mrf.mxu0  ;;  %v1662_v0 = vshrl.u32 %v1458_v21, 16 }
 0x1f3   : > { %v1421_v41 = vsel %vm1259_vm8, %v1068_v62, 0.0  ;;  %v999_v60 = vadd.f32 %v7685_v53, %v998_v27  ;;  %v2202_v62 = vrot.slane %v1458_v21, 1  ;;  %vm5170_vm8 = vmpackc.low %vm7196_vm3, %vm7209_vm5 }
 0x1f4   : > { %v1459_v18 = vpack.c.bf16 %v1421_v41, %v1421_v41  ;;  %v5895_v58 = vpop.f32.mrf.mxu0  ;;  %v1666_v6 = vrot.slane %v1664_v49, 1  ;;  %vm1262_vm3 = vmand %vm7797_vm12, %vm10024_vm4 }
 0x1f5   : > { %v1069_v56 = vmax.f32 %v999_v60, 0.0  ;;  %vm9839_vm5 = vmpackc.low %vm7230_vm10, %vm7239_vm13 }
 0x1f6   : > { %v1669_v52 = vshll.u32 %v1459_v18, 16  ;;  %v2203_v20 = vrot.slane %v1459_v18, 1  ;;  %v1001_v44 = vpop.f32.mrf.mxu0  ;;  %v1667_v58 = vor.u32 %v1666_v6, %v1662_v0 }
 0x1f7   : > { %v1002_v27 = vadd.f32 %v7685_v53, %v1001_v44  ;;  %v1422_v60 = vsel %vm7805_vm6, %v1069_v56, 0.0 }
 0x1f8   : > { %v1671_v32 = vrot.slane %v1669_v52, 1  ;;  %v5896_v41 = vpop.f32.mrf.mxu0  ;;  %v7811_v49 = vsel %vm10021_vm11, %v2202_v62, %v2203_v20  ;;  %vm7850_vm11 = vmpackc.low %vm7263_vm1, %vm7272_vm2 }
 0x1f9   : > { %v1070_v18 = vmax.f32 %v1002_v27, 0.0  ;;  %vm10027_vm1 = vmmov %vm10022_vm7 }
 0x1fa   : > { %v1006_v46 = vpop.f32.mrf.mxu0  ;;  %v7820_v21 = vsel %vm10022_vm7, %v1667_v58, %v1671_v32  ;;  %v6543_v58 = vld [vmem:[%s9769_s3 + $0xb0] sm:$0xff]   ;;  %vm7884_vm2 = vmpackc.low %vm7296_vm14, %vm7308_vm15  ;;  %vm10033_vm14 = vnez %v9903_v51  ;;  %vm10034_vm15 = vnez %v9901_v33  ;;  %vm10038_vm7 = vnez %v9909_v25  ;;  %v6552_v33 = vld [vmem:[%s9769_s3 + $0x228] sm:$0xff]  }
 0x1fb   : > { %10023 = vst [vmem:[#allocation49_spill] sm:$0xff] %v7820_v21  ;;  %v1423_v52 = vsel %vm7797_vm12, %v1070_v18, 0.0  ;;  %v7824_v6 = vpack.c.bf16 %v1070_v18, %v1069_v56  ;;  %v1007_v20 = vadd.f32 %v7685_v53, %v1006_v46  ;;  %5950 = vmatmul.mubr.bf16.gmra.mxu1 %v7820_v21  ;;  %6141 = vmatprep.mubr.bf16.mxu0 %v7820_v21  ;;  %v6548_v51 = vld [vmem:[%s9769_s3 + $0x90] sm:$0xff]   ;;  %v6550_v25 = vld [vmem:[%s9769_s3 + $0x88] sm:$0xff]  }
 0x1fc   : > { %v7829_v44 = vpack.c.bf16 %v1423_v52, %v1422_v60  ;;  %5969 = vmatprep.mubr.msk.bf16.mxu1 %vm5170_vm8, %v7219_v47  ;;  %v5899_v34 = vpop.f32.mrf.mxu0  ;;  %vm7892_vm8 = vmpackc.low %vm7336_vm9, %vm7345_vm0  ;;  %vm10037_vm0 = vnez %v9912_v48  ;;  %v6554_v48 = vld [vmem:[%s9769_s3 + $0x220] sm:$0xff]  }
 0x1fd   : > { %v1071_v40 = vmax.f32 %v1007_v20, 0.0  ;;  %v6545_v20 = vld [vmem:[%s9769_s3 + $0xa8] sm:$0xff]   ;;  %vm7921_vm9 = vmpackc.low %vm10034_vm15, %vm10033_vm14  ;;  %vm10045_vm15 = vnez %v9932_v11  ;;  %v6557_v11 = vld [vmem:[%s9769_s3 + $0x210] sm:$0xff]  }
 0x1fe   : > { %v2738_v32 = vshrl.u32 %v7829_v44, 16  ;;  %v2740_v56 = vshll.u32 %v7829_v44, 16  ;;  %v7838_v46 = vpop.f32.mrf.mxu0  ;;  %v10036_v61 = vsel %vm7921_vm9, 4294967295, %v10035_v61  ;;  %vm7929_vm4 = vmpackc.low %vm10038_vm7, %vm10037_vm0  ;;  %vm10046_vm0 = vnez %v9929_v42  ;;  %v7989_v42 = vld [vmem:[%s9769_s3 + $0xf8] sm:$0xff]  }
 0x1ff   : > { %v1424_v0 = vsel %vm1262_vm3, %v1071_v40, 0.0  ;;  %vm10041_vm3 = vnez %v9922_v57  ;;  %vm7970_vm7 = vmpackc.low %vm10046_vm0, %vm10045_vm15  ;;  %v6553_v57 = vld [vmem:[%s9769_s3 + $0x80] sm:$0xff]   ;;  %vm10053_vm0 = vnez %v9952_v38  ;;  %v10098_v38 = vld [vmem:[#allocation17_spill] sm:$0xff] }
 0x200   : > { %v2742_v62 = vrot.slane %v2740_v56, 1  ;;  %v7844_v27 = vpack.c.bf16 %v1424_v0, %v1424_v0  ;;  %v5900_v41 = vpop.f32.mrf.mxu0  ;;  %v10031_v56 = vmov 0  ;;  %v10039_v0 = vmov 0 }
 0x201   : > { %v10032_v56 = vsel %vm7892_vm8, 4294967295, %v10031_v56  ;;  %v10040_v0 = vsel %vm7929_vm4, 4294967295, %v10039_v0  ;;  %v1093_v41 = vadd.s32 17, %v7180_v26  ;;  %v10055_v26 = vmov 0 }
 0x202   : > { %v2745_v60 = vshll.u32 %v7844_v27, 16  ;;  %v2743_v18 = vor.u32 %v2742_v62, %v2738_v32  ;;  %v7858_v52 = vpop.f32.mrf.mxu0  ;;  %v10047_v62 = vmov 0 }
 0x203   : > { %5970 = vmatmul.mubr.msk.bf16.vlgmr.msra.gmra.mxu1 %vm9839_vm5, %v7252_v15  ;;  %v10048_v62 = vsel %vm7970_vm7, 4294967295, %v10047_v62  ;;  %vm10054_vm5 = vnez %v9949_v39  ;;  %v1010_v39 = vadd.f32 %v7685_v53, %v7838_v46 }
 0x204   : > { %v2747_v31 = vrot.slane %v2745_v60, 1  ;;  %6002 = vmatpush3.bf16.msra.mxu1 %v7470_v13  ;;  %5973 = vmatprep.mubr.msk.bf16.mxu1 %vm7850_vm11, %v7285_v55  ;;  %v5903_v43 = vpop.f32.mrf.mxu0  ;;  %v1015_v60 = vadd.f32 %v7685_v53, %v7858_v52 }
 0x205   : > { %6003 = vmatprep.subr.bf16.mxu1 %v6543_v58  ;;  %v1072_v46 = vmax.f32 %v1010_v39, 0.0 }
 0x206   : > { %v7874_v34 = vsel %vm10027_vm1, %v2743_v18, %v2747_v31  ;;  %v1017_v40 = vpop.f32.mrf.mxu0  ;;  %vm10042_vm1 = vnez %v9919_v36  ;;  %v6555_v36 = vld [vmem:[%s9769_s3 + $0x218] sm:$0xff]   ;;  %v6560_v31 = vld [vmem:[%s9769_s3 + $0x200] sm:$0xff]   ;;  %v1073_v52 = vmax.f32 %v1015_v60, 0.0 }
 0x207   : > { %10028 = vst [vmem:[#allocation50_spill] sm:$0xff] %v7874_v34  ;;  %6142 = vmatmul.mubr.bf16.gmra.mxu0 %v7874_v34  ;;  %vm7962_vm14 = vmpackc.low %vm10042_vm1, %vm10041_vm3  ;;  %vm10049_vm3 = vnez %v9942_v24  ;;  %vm10050_vm1 = vnez %v9939_v12  ;;  %v1018_v24 = vadd.f32 %v7685_v53, %v1017_v40  ;;  %v6558_v12 = vld [vmem:[%s9769_s3 + $0x208] sm:$0xff]  }
 0x208   : > { %6209 = vmatprep.mubr.msk.bf16.mxu0 %vm7850_vm11, %v7285_v55  ;;  %6004 = vmatpush3.bf16.msra.mxu1 %v6543_v58  ;;  %v5904_v32 = vpop.f32.mrf.mxu0  ;;  %vm8005_vm15 = vmpackc.low %vm10050_vm1, %vm10049_vm3  ;;  %v10051_v58 = vmov 0  ;;  %vm1115_vm3 = vcmp.ge.s32.totalorder %v1093_v41, 1  ;;  %vm1133_vm1 = vcmp.le.s32.totalorder %v1093_v41, 32  ;;  %v10071_v40 = vld [vmem:[#allocation36_spill] sm:$0xff] }
 0x209   : > { %6005 = vmatprep.subr.bf16.mxu1 %v6545_v20  ;;  %v10052_v58 = vsel %vm8005_vm15, 4294967295, %v10051_v58  ;;  %v1074_v18 = vmax.f32 %v1018_v24, 0.0  ;;  %v10073_v32 = vld [vmem:[#allocation35_spill] sm:$0xff] }
 0x20b   : > { %5974 = vmatmul.mubr.msk.bf16.gmra.mxu1 %vm7884_vm2, %v7323_v30 }
 0x20c   : > { %5977 = vmatprep.mubr.msk.bf16.mxu1 %vm7892_vm8, %v7360_v10  ;;  %6006 = vmatpush3.bf16.msra.mxu1 %v6545_v20 }
 0x20d   : > { %6007 = vmatprep.subr.bf16.mxu1 %v6546_v17 }
 0x20f   : > { %6210 = vmatmul.mubr.msk.bf16.vlgmr.msra.gmra.mxu0 %vm7884_vm2, %v7323_v30 }
 0x210   : > { %6213 = vmatprep.mubr.msk.bf16.mxu0 %vm7892_vm8, %v7360_v10  ;;  %6008 = vmatpush3.bf16.msra.mxu1 %v6546_v17 }
 0x211   : > { %6009 = vmatprep.subr.bf16.mxu1 %v6547_v5  ;;  %6290 = vmatpush3.bf16.msra.mxu0 %v7589_v1  ;;  %v10043_v1 = vmov 0 }
 0x212   : > { %6291 = vmatprep.subr.bf16.mxu0 %v6551_v50  ;;  %v10044_v1 = vsel %vm7962_vm14, 4294967295, %v10043_v1 }
 0x213   : > { %5978 = vmatmul.mubr.msk.bf16.gmra.mxu1 %vm7921_vm9, %v7409_v2 }
 0x214   : > { %5981 = vmatprep.mubr.msk.bf16.mxu1 %vm7929_vm4, %v7458_v7  ;;  %6010 = vmatpush3.bf16.msra.mxu1 %v6547_v5 }
 0x215   : > { %6011 = vmatprep.subr.bf16.mxu1 %v6548_v51  ;;  %6292 = vmatpush3.bf16.msra.mxu0 %v6551_v50  ;;  %v10077_v50 = vld [vmem:[#allocation41_spill] sm:$0xff] }
 0x216   : > { %6293 = vmatprep.subr.bf16.mxu0 %v6552_v33 }
 0x217   : > { %6214 = vmatmul.mubr.msk.bf16.gmra.mxu0 %vm7921_vm9, %v7409_v2  ;;  %vm10064_vm9 = vnez %v9972_v45  ;;  %v3011_v45 = vrot.slane %v7844_v27, 1  ;;  %v10079_v27 = vld [vmem:[#allocation40_spill] sm:$0xff] }
 0x218   : > { %6217 = vmatprep.mubr.msk.bf16.mxu0 %vm7929_vm4, %v7458_v7  ;;  %6012 = vmatpush3.bf16.msra.mxu1 %v6548_v51  ;;  %vm8013_vm4 = vmpackc.low %vm10054_vm5, %vm10053_vm0  ;;  %vm10059_vm0 = vcmp.le.s32.totalorder %v7202_v35, 16  ;;  %v10081_v51 = vmov 0 }
 0x219   : > { %6013 = vmatprep.subr.bf16.mxu1 %v6550_v25  ;;  %6294 = vmatpush3.bf16.msra.mxu0 %v6552_v33  ;;  %v10056_v26 = vsel %vm8013_vm4, 4294967295, %v10055_v26  ;;  %vm8030_vm5 = vmand %vm1115_vm3, %vm1133_vm1  ;;  %vm10060_vm3 = vnez %v9962_v14  ;;  %vm10061_vm1 = vnez %v9959_v19  ;;  %v3010_v33 = vrot.slane %v7829_v44, 1  ;;  %v10088_v44 = vld [vmem:[#allocation45_spill] sm:$0xff] }
 0x21a   : > { %6295 = vmatprep.subr.bf16.mxu0 %v6554_v48  ;;  %v6564_v19 = vld [vmem:[%s9769_s3 + $0xd0] sm:$0xff]  }
 0x21b   : > { %5982 = vmatmul.mubr.msk.bf16.gmra.mxu1 %vm7962_vm14, %v7504_v16 }
 0x21c   : > { %5985 = vmatprep.mubr.msk.bf16.mxu1 %vm7970_vm7, %v7538_v37  ;;  %6014 = vmatpush3.bf16.msra.mxu1 %v6550_v25 }
 0x21d   : > { %6015 = vmatprep.subr.bf16.mxu1 %v6553_v57  ;;  %6296 = vmatpush3.bf16.msra.mxu0 %v6554_v48  ;;  %v10083_v48 = vld [vmem:[#allocation39_spill] sm:$0xff] }
 0x21e   : > { %6297 = vmatprep.subr.bf16.mxu0 %v6555_v36 }
 0x21f   : > { %6218 = vmatmul.mubr.msk.bf16.gmra.mxu0 %vm7962_vm14, %v7504_v16  ;;  %vm8053_vm14 = vmpackc.low %vm10061_vm1, %vm10060_vm3  ;;  %vm10078_vm1 = vnez %v10077_v50  ;;  %v6565_v50 = vld [vmem:[%s9769_s3 + $0xc8] sm:$0xff]  }
 0x220   : > { %6221 = vmatprep.mubr.msk.bf16.mxu0 %vm7970_vm7, %v7538_v37  ;;  %6016 = vmatpush3.bf16.msra.mxu1 %v6553_v57  ;;  %vm1265_vm7 = vmand %vm8030_vm5, %vm10059_vm0  ;;  %vm10065_vm0 = vnez %v9969_v59  ;;  %v1426_v59 = vsel %vm8030_vm5, %v1073_v52, 0.0 }
 0x221   : > { %6298 = vmatpush3.bf16.msra.mxu0 %v6555_v36  ;;  %6049 = vmatprep.subr.bf16.mxu1 %v7989_v42  ;;  %vm8061_vm8 = vmpackc.low %vm10065_vm0, %vm10064_vm9  ;;  %v1427_v43 = vsel %vm1265_vm7, %v1074_v18, 0.0  ;;  %vm10072_vm9 = vnez %v10071_v40  ;;  %vm10080_vm0 = vnez %v10079_v27  ;;  %v6561_v40 = vld [vmem:[%s9769_s3 + $0xe8] sm:$0xff]   ;;  %v8187_v27 = vpop.f32.mrf.mxu1 }
 0x222   : > { %6299 = vmatprep.subr.bf16.mxu0 %v6557_v11 }
 0x223   : > { %5986 = vmatmul.mubr.msk.bf16.gmra.mxu1 %vm8005_vm15, %v7572_v22 }
 0x224   : > { %5989 = vmatprep.mubr.msk.bf16.mxu1 %vm8013_vm4, %v7612_v23 }
 0x225   : > { %6300 = vmatpush3.bf16.msra.mxu0 %v6557_v11  ;;  %v10085_v11 = vld [vmem:[#allocation44_spill] sm:$0xff] }
 0x226   : > { %6301 = vmatprep.subr.bf16.mxu0 %v6558_v12 }
 0x227   : > { %6222 = vmatmul.mubr.msk.bf16.gmra.mxu0 %vm8005_vm15, %v7572_v22  ;;  %vm8102_vm15 = vmpackc.low %vm10080_vm0, %vm10078_vm1  ;;  %vm10087_vm1 = vnez %v10009_v63  ;;  %vm10089_vm0 = vnez %v10088_v44  ;;  %v10104_v44 = vld [vmem:[#allocation29_spill] sm:$0xff] }
 0x228   : > { %6225 = vmatprep.mubr.msk.bf16.mxu0 %vm8013_vm4, %v7612_v23  ;;  %vm10068_vm4 = vcmp.ge.s32.totalorder %v7187_v28, 1  ;;  %v1463_v28 = vpack.c.bf16 %v1427_v43, %v1427_v43  ;;  %v10082_v51 = vsel %vm8102_vm15, 4294967295, %v10081_v51 }
 0x229   : > { %6302 = vmatpush3.bf16.msra.mxu0 %v6558_v12  ;;  %vm8069_vm3 = vmand %vm8030_vm5, %vm10068_vm4  ;;  %vm10074_vm4 = vnez %v10073_v32  ;;  %v10100_v32 = vld [vmem:[#allocation21_spill] sm:$0xff] }
 0x22a   : > { %6303 = vmatprep.subr.bf16.mxu0 %v6560_v31  ;;  %v1425_v14 = vsel %vm8069_vm3, %v1072_v46, 0.0  ;;  %vm8094_vm7 = vmpackc.low %vm10074_vm4, %vm10072_vm9  ;;  %v3804_v5 = vrot.slane %v1463_v28, 1  ;;  %vm10084_vm9 = vcmask 1046528   ;;  %v3538_v41 = vshll.u32 %v1463_v28, 16 }
 0x22b   : > { %5990 = vmatmul.mubr.msk.bf16.gmra.mxu1 %vm8053_vm14, %v7646_v3  ;;  %v1462_v20 = vpack.c.bf16 %v1426_v59, %v1425_v14  ;;  %v8111_v57 = vsel %vm10084_vm9, %v3010_v33, %v3011_v45  ;;  %vm10086_vm4 = vmmov %vm10084_vm9  ;;  %v10093_v14 = vld [vmem:[#allocation13_spill] sm:$0xff]  ;;  %v5432_v28 = vpack.c.bf16 %v1073_v52, %v1072_v46  ;;  %v10096_v45 = vld [vmem:[#allocation14_spill] sm:$0xff] }
 0x22c   : > { %5993 = vmatprep.mubr.msk.bf16.mxu1 %vm8061_vm8, %v7680_v29  ;;  %vm8129_vm9 = vmpackc.low %vm10089_vm0, %vm10087_vm1  ;;  %v3540_v18 = vrot.slane %v3538_v41, 1  ;;  %v6559_v59 = vld [vmem:[%s9769_s3 + $0xf0] sm:$0xff]   ;;  %v6562_v46 = vld [vmem:[%s9769_s3 + $0xe0] sm:$0xff]   ;;  %v8194_v41 = vpop.f32.mrf.mxu1  ;;  %vm10120_vm1 = vnez %v10052_v58  ;;  %vm10124_vm0 = vnez %v10056_v26 }
 0x22d   : > { %6304 = vmatpush3.bf16.msra.mxu0 %v6560_v31  ;;  %v3533_v25 = vshll.u32 %v1462_v20, 16  ;;  %v3803_v36 = vrot.slane %v1462_v20, 1  ;;  %v3531_v12 = vshrl.u32 %v1462_v20, 16  ;;  %v10092_v31 = vld [vmem:[#allocation48_spill] sm:$0xff]  ;;  %v10097_v20 = vld [vmem:[#allocation15_spill] sm:$0xff] }
 0x22e   : > { %v10099_v52 = vld [vmem:[#allocation19_spill] sm:$0xff] }
 0x22f   : > { %6226 = vmatmul.mubr.msk.bf16.gmra.mxu0 %vm8053_vm14, %v7646_v3  ;;  %v8117_v24 = vsel %vm10086_vm4, %v3803_v36, %v3804_v5  ;;  %v3535_v39 = vrot.slane %v3533_v25, 1  ;;  %vm5311_vm4 = vmpackc.low %vm7797_vm12, %vm7805_vm6  ;;  %v10101_v5 = vld [vmem:[#allocation23_spill] sm:$0xff]  ;;  %v10102_v25 = vld [vmem:[#allocation25_spill] sm:$0xff]  ;;  %vm4168_vm12 = vsmask.f32 3328 }
 0x230   : > { %6229 = vmatprep.mubr.msk.bf16.mxu0 %vm8061_vm8, %v7680_v29  ;;  %v6566_v33 = vld [vmem:[%s9769_s3 + $0xc0] sm:$0xff]   ;;  %vm4169_vm6 = vsmask.f32 7440 }
 0x231   : > { %v3536_v43 = vor.u32 %v3535_v39, %v3531_v12  ;;  %v10103_v36 = vld [vmem:[#allocation27_spill] sm:$0xff]  ;;  %v6567_v12 = vld [vmem:[%s9769_s3 + $0x178] sm:$0xff]   ;;  %v8201_v39 = vpop.f32.mrf.mxu1 }
 0x233   : > { %5994 = vmatmul.mubr.msk.bf16.gmra.mxu1 %vm8094_vm7, %v10083_v48 }
 0x234   : > { %5997 = vmatprep.mubr.msk.bf16.mxu1 %vm8102_vm15, %v10085_v11 }
 0x237   : > { %6230 = vmatmul.mubr.msk.bf16.gmra.mxu0 %vm8094_vm7, %v10083_v48 }
 0x238   : > { %6233 = vmatprep.mubr.msk.bf16.mxu0 %vm8102_vm15, %v10085_v11  ;;  %vm10094_vm15 = vsmask.f32 7424 }
 0x239   : > { %v8142_v63 = vsel %vm10094_vm15, %v3536_v43, %v3540_v18  ;;  %vm5431_vm15 = vmpackc.low %vm8030_vm5, %vm8069_vm3  ;;  %v10105_v18 = vld [vmem:[#allocation31_spill] sm:$0xff]  ;;  %v8205_v43 = vpop.f32.mrf.mxu1  ;;  %vm10119_vm3 = vnez %v10048_v62 }
 0x23a   : > { %10095 = vst [vmem:[#allocation36_spill] sm:$0xff] %v8142_v63  ;;  %vm10112_vm5 = vmpackc.low %vm7230_vm10, %vm7239_vm13  ;;  %vm10113_vm10 = vnez %v10032_v56  ;;  %vm10114_vm13 = vnez %v10036_v61  ;;  %v6573_v56 = vld [vmem:[%s9769_s3 + $0x148] sm:$0xff]   ;;  %v8291_v61 = vpop.f32.mrf.mxu0 }
 0x23b   : > { %5998 = vmatmul.mubr.msk.bf16.gmra.mxu1 %vm8129_vm9, %v10092_v31  ;;  %10117 = vst [vmem:[#allocation40_spill] sm:$0xff] %v8291_v61 }
 0x23c   : > { %6017 = vmatprep.mubr.bf16.mxu1 %v10093_v14  ;;  %v8207_v14 = vpop.f32.mrf.mxu1 }
 0x23f   : > { %6234 = vmatmul.mubr.msk.bf16.gmra.mxu0 %vm8129_vm9, %v10092_v31 }
 0x240   : > { %6237 = vmatprep.mubr.msk.bf16.mxu0 %vm5311_vm4, %v7824_v6 }
 0x243   : > { %6018 = vmatmul.mubr.bf16.vlgmr.msra.gmra.mxu1 %v10096_v45 }
 0x244   : > { %6050 = vmatpush3.bf16.msra.mxu1 %v7989_v42  ;;  %6021 = vmatprep.mubr.bf16.mxu1 %v10097_v20  ;;  %v6563_v42 = vld [vmem:[%s9769_s3 + $0xd8] sm:$0xff]  }
 0x245   : > { %6051 = vmatprep.subr.bf16.mxu1 %v6559_v59 }
 0x247   : > { %6238 = vmatmul.mubr.msk.bf16.gmra.mxu0 %vm5431_vm15, %v5432_v28  ;;  %v10106_v28 = vld [vmem:[#allocation33_spill] sm:$0xff] }
 0x248   : > { %6305 = vmatprep.mubr.bf16.mxu0 %v10097_v20  ;;  %6052 = vmatpush3.bf16.msra.mxu1 %v6559_v59  ;;  %v8211_v59 = vpop.f32.mrf.mxu1 }
 0x249   : > { %6053 = vmatprep.subr.bf16.mxu1 %v6561_v40 }
 0x24b   : > { %6022 = vmatmul.mubr.bf16.gmra.mxu1 %v10098_v38 }
 0x24c   : > { %6025 = vmatprep.mubr.bf16.mxu1 %v10099_v52  ;;  %6054 = vmatpush3.bf16.msra.mxu1 %v6561_v40  ;;  %v10107_v40 = vld [vmem:[#allocation37_spill] sm:$0xff] }
 0x24d   : > { %6055 = vmatprep.subr.bf16.mxu1 %v6562_v46 }
 0x24f   : > { %6306 = vmatmul.mubr.bf16.vlgmr.msra.gmra.mxu0 %v10098_v38 }
 0x250   : > { %6309 = vmatprep.mubr.bf16.mxu0 %v10099_v52  ;;  %6056 = vmatpush3.bf16.msra.mxu1 %v6562_v46  ;;  %v8215_v46 = vpop.f32.mrf.mxu1 }
 0x251   : > { %6057 = vmatprep.subr.bf16.mxu1 %v6563_v42 }
 0x253   : > { %6026 = vmatmul.mubr.bf16.gmra.mxu1 %v10100_v32 }
 0x254   : > { %6029 = vmatprep.mubr.bf16.mxu1 %v10101_v5  ;;  %6058 = vmatpush3.bf16.msra.mxu1 %v6563_v42  ;;  %v8219_v42 = vpop.f32.mrf.mxu1 }
 0x255   : > { %6059 = vmatprep.subr.bf16.mxu1 %v6564_v19 }
 0x257   : > { %6310 = vmatmul.mubr.bf16.gmra.mxu0 %v10100_v32 }
 0x258   : > { %6313 = vmatprep.mubr.bf16.mxu0 %v10101_v5  ;;  %6060 = vmatpush3.bf16.msra.mxu1 %v6564_v19  ;;  %v10108_v19 = vld [vmem:[#allocation42_spill] sm:$0xff] }
 0x259   : > { %6061 = vmatprep.subr.bf16.mxu1 %v6565_v50 }
 0x25b   : > { %6030 = vmatmul.mubr.bf16.gmra.mxu1 %v10102_v25 }
 0x25c   : > { %6033 = vmatprep.mubr.bf16.mxu1 %v10103_v36  ;;  %6062 = vmatpush3.bf16.msra.mxu1 %v6565_v50  ;;  %v10109_v50 = vld [vmem:[#allocation46_spill] sm:$0xff] }
 0x25d   : > { %6063 = vmatprep.subr.bf16.mxu1 %v6566_v33 }
 0x25f   : > { %6314 = vmatmul.mubr.bf16.gmra.mxu0 %v10102_v25 }
 0x260   : > { %6317 = vmatprep.mubr.bf16.mxu0 %v10103_v36  ;;  %6064 = vmatpush3.bf16.msra.mxu1 %v6566_v33  ;;  %v8223_v33 = vpop.f32.mrf.mxu1 }
 0x261   : > { %6145 = vmatprep.subr.bf16.mxu1 %v6567_v12  ;;  %10110 = vst [vmem:[#allocation35_spill] sm:$0xff] %v8223_v33 }
 0x262   : > { %v8227_v63 = vpop.f32.mrf.mxu1 }
 0x263   : > { %6034 = vmatmul.mubr.bf16.gmra.mxu1 %v10104_v44  ;;  %10111 = vst [vmem:[#allocation41_spill] sm:$0xff] %v8227_v63  ;;  %v6568_v63 = vld [vmem:[%s9769_s3 + $0x170] sm:$0xff]  }
 0x264   : > { %6037 = vmatprep.mubr.bf16.mxu1 %v10105_v18  ;;  %v8236_v34 = vpop.f32.mrf.mxu1 }
 0x266   : > { %v8240_v21 = vpop.f32.mrf.mxu1 }
 0x267   : > { %6318 = vmatmul.mubr.bf16.gmra.mxu0 %v10104_v44 }
 0x268   : > { %6321 = vmatprep.mubr.bf16.mxu0 %v10105_v18  ;;  %v8245_v33 = vpop.f32.mrf.mxu1 }
 0x26a   : > { %v8256_v4 = vpop.f32.mrf.mxu1 }
 0x26b   : > { %6038 = vmatmul.mubr.bf16.gmra.mxu1 %v10106_v28 }
 0x26c   : > { %6041 = vmatprep.mubr.bf16.mxu1 %v10107_v40 }
 0x26f   : > { %6322 = vmatmul.mubr.bf16.gmra.mxu0 %v10106_v28 }
 0x270   : > { %6325 = vmatprep.mubr.bf16.mxu0 %v10107_v40 }
 0x273   : > { %6042 = vmatmul.mubr.bf16.gmra.mxu1 %v10108_v19 }
 0x274   : > { %6045 = vmatprep.mubr.bf16.mxu1 %v10109_v50 }
 0x277   : > { %6326 = vmatmul.mubr.bf16.gmra.mxu0 %v10108_v19 }
 0x278   : > { %6329 = vmatprep.mubr.bf16.mxu0 %v10109_v50 }
 0x27b   : > { %6046 = vmatmul.mubr.bf16.gmra.mxu1 %v7811_v49 }
 0x27c   : > { %6065 = vmatprep.mubr.msk.bf16.mxu1 %vm10112_vm5, %v7252_v15  ;;  %v6570_v15 = vld [vmem:[%s9769_s3 + $0x160] sm:$0xff]  }
 0x27f   : > { %6330 = vmatmul.mubr.bf16.gmra.mxu0 %v7811_v49 }
 0x280   : > { %6333 = vmatprep.mubr.bf16.mxu0 %v8111_v57 }
 0x283   : > { %6066 = vmatmul.mubr.msk.bf16.vlgmr.msra.gmra.mxu1 %vm7850_vm11, %v7285_v55  ;;  %v8262_v55 = vpop.f32.mrf.mxu1  ;;  %vm10115_vm11 = vnez %v10040_v0  ;;  %v8298_v0 = vpop.f32.mrf.mxu0 }
 0x284   : > { %6146 = vmatpush3.bf16.msra.mxu1 %v6567_v12  ;;  %6069 = vmatprep.mubr.msk.bf16.mxu1 %vm7884_vm2, %v7323_v30  ;;  %v6571_v30 = vld [vmem:[%s9769_s3 + $0x158] sm:$0xff]   ;;  %vm10116_vm2 = vnez %v10044_v1  ;;  %10118 = vst [vmem:[#allocation39_spill] sm:$0xff] %v8298_v0 }
 0x285   : > { %6147 = vmatprep.subr.bf16.mxu1 %v6568_v63  ;;  %v8273_v47 = vpop.f32.mrf.mxu1  ;;  %v6575_v1 = vld [vmem:[%s9769_s3 + $0x1f8] sm:$0xff]  }
 0x287   : > { %6334 = vmatmul.mubr.bf16.gmra.mxu0 %v8117_v24  ;;  %v8275_v13 = vpop.f32.mrf.mxu1 }
 0x288   : > { %6148 = vmatpush3.bf16.msra.mxu1 %v6568_v63  ;;  %v8311_v63 = vpop.f32.mrf.mxu0 }
 0x289   : > { %6149 = vmatprep.subr.bf16.mxu1 %v6569_v54  ;;  %10122 = vst [vmem:[#allocation45_spill] sm:$0xff] %v8311_v63 }
 0x28a   : > { %v8315_v62 = vpop.f32.mrf.mxu0 }
 0x28b   : > { %6070 = vmatmul.mubr.msk.bf16.gmra.mxu1 %vm10113_vm10, %v7360_v10  ;;  %v6572_v10 = vld [vmem:[%s9769_s3 + $0x150] sm:$0xff]   ;;  %10123 = vst [vmem:[#allocation48_spill] sm:$0xff] %v8315_v62 }
 0x28c   : > { %6073 = vmatprep.mubr.msk.bf16.mxu1 %vm10114_vm13, %v7409_v2  ;;  %6150 = vmatpush3.bf16.msra.mxu1 %v6569_v54  ;;  %v8286_v2 = vpop.f32.mrf.mxu1 }
 0x28d   : > { %6151 = vmatprep.subr.bf16.mxu1 %v6570_v15 }
 0x28e   : > { %v8293_v24 = vpop.f32.mrf.mxu1 }
 0x290   : > { %6152 = vmatpush3.bf16.msra.mxu1 %v6570_v15 }
 0x291   : > { %6153 = vmatprep.subr.bf16.mxu1 %v6571_v30 }
 0x293   : > { %6074 = vmatmul.mubr.msk.bf16.gmra.mxu1 %vm10115_vm11, %v7458_v7  ;;  %v6574_v7 = vld [vmem:[%s9769_s3 + $0x140] sm:$0xff]  }
 0x294   : > { %6077 = vmatprep.mubr.msk.bf16.mxu1 %vm10116_vm2, %v7504_v16  ;;  %6154 = vmatpush3.bf16.msra.mxu1 %v6571_v30  ;;  %v8306_v16 = vpop.f32.mrf.mxu1 }
 0x295   : > { %6155 = vmatprep.subr.bf16.mxu1 %v6572_v10  ;;  %10121 = vst [vmem:[#allocation44_spill] sm:$0xff] %v8306_v16 }
 0x296   : > { %v8313_v12 = vpop.f32.mrf.mxu1 }
 0x298   : > { %6156 = vmatpush3.bf16.msra.mxu1 %v6572_v10 }
 0x299   : > { %6157 = vmatprep.subr.bf16.mxu1 %v6573_v56 }
 0x29b   : > { %6078 = vmatmul.mubr.msk.bf16.gmra.mxu1 %vm10119_vm3, %v7538_v37  ;;  %v8317_v37 = vpop.f32.mrf.mxu1 }
 0x29c   : > { %6081 = vmatprep.mubr.msk.bf16.mxu1 %vm10120_vm1, %v7572_v22  ;;  %6158 = vmatpush3.bf16.msra.mxu1 %v6573_v56  ;;  %v8325_v22 = vpop.f32.mrf.mxu0 }
 0x29d   : > { %6159 = vmatprep.subr.bf16.mxu1 %v6574_v7  ;;  %10125 = vst [vmem:[#allocation13_spill] sm:$0xff] %v8325_v22  ;;  %v8327_v58 = vpop.f32.mrf.mxu1 }
 0x29e   : > { %v8329_v54 = vpop.f32.mrf.mxu0 }
 0x29f   : > { %10126 = vst [vmem:[#allocation14_spill] sm:$0xff] %v8329_v54  ;;  %v8331_v15 = vpop.f32.mrf.mxu1 }
 0x2a0   : > { %6160 = vmatpush3.bf16.msra.mxu1 %v6574_v7  ;;  %10127 = vst [vmem:[#allocation15_spill] sm:$0xff] %v8331_v15 }
 0x2a1   : > { %6241 = vmatprep.subr.bf16.mxu1 %v6575_v1 }
 0x2a3   : > { %6082 = vmatmul.mubr.msk.bf16.gmra.mxu1 %vm10124_vm0, %v7612_v23  ;;  %v8339_v23 = vpop.f32.mrf.mxu0  ;;  %v8341_v26 = vpop.f32.mrf.mxu1 }
 0x2a4   : > { %6085 = vmatprep.mubr.msk.bf16.mxu1 %vm8053_vm14, %v7646_v3  ;;  %10128 = vst [vmem:[#allocation17_spill] sm:$0xff] %v8339_v23  ;;  %vm10131_vm14 = vnez %v10082_v51 }
 0x2a5   : > { %v8343_v3 = vpop.f32.mrf.mxu0  ;;  %v8345_v53 = vpop.f32.mrf.mxu1 }
 0x2a6   : > { %10129 = vst [vmem:[#allocation19_spill] sm:$0xff] %v8343_v3 }
 0x2a7   : > { %v8347_v30 = vpop.f32.mrf.mxu0 }
 0x2a8   : > { %10130 = vst [vmem:[#allocation21_spill] sm:$0xff] %v8347_v30 }
 0x2a9   : > { %v8357_v35 = vpop.f32.mrf.mxu0 }
 0x2aa   : > { %10132 = vst [vmem:[#allocation23_spill] sm:$0xff] %v8357_v35 }
 0x2ab   : > { %6086 = vmatmul.mubr.msk.bf16.gmra.mxu1 %vm8061_vm8, %v7680_v29  ;;  %v8355_v29 = vpop.f32.mrf.mxu1  ;;  %vm8881_vm8 = vmor %vm4168_vm12, %vm4169_vm6 }
 0x2ac   : > { %6089 = vmatprep.mubr.msk.bf16.mxu1 %vm8094_vm7, %v10083_v48  ;;  %v8361_v48 = vpop.f32.mrf.mxu0 }
 0x2ad   : > { %v8359_v17 = vpop.f32.mrf.mxu1  ;;  %10133 = vst [vmem:[#allocation25_spill] sm:$0xff] %v8361_v48 }
 0x2b3   : > { %6090 = vmatmul.mubr.msk.bf16.gmra.mxu1 %vm10131_vm14, %v10085_v11  ;;  %v8374_v11 = vpop.f32.mrf.mxu0 }
 0x2b4   : > { %6093 = vmatprep.mubr.msk.bf16.mxu1 %vm8129_vm9, %v10092_v31  ;;  %10134 = vst [vmem:[#allocation27_spill] sm:$0xff] %v8374_v11 }
 0x2b5   : > { %v8378_v31 = vpop.f32.mrf.mxu0 }
 0x2b6   : > { %10135 = vst [vmem:[#allocation29_spill] sm:$0xff] %v8378_v31 }
 0x2b7   : > { %v8389_v8 = vpop.f32.mrf.mxu0 }
 0x2b8   : > { %10136 = vst [vmem:[#allocation31_spill] sm:$0xff] %v8389_v8 }
 0x2b9   : > { %v8398_v48 = vpop.f32.mrf.mxu0 }
 0x2ba   : > { %10137 = vst [vmem:[#allocation33_spill] sm:$0xff] %v8398_v48 }
 0x2bb   : > { %v8363_v10 = vpop.f32.mrf.mxu1  ;;  %6094 = vmatmul.mubr.msk.bf16.gmra.mxu1 %vm5311_vm4, %v7824_v6 }
 0x2bc   : > { %6161 = vmatprep.mubr.bf16.mxu1 %v10096_v45  ;;  %v6577_v45 = vld [vmem:[%s9769_s3 + $0x1e8] sm:$0xff]  }
 0x2bd   : > { %v8372_v51 = vpop.f32.mrf.mxu1 }
 0x2bf   : > { %v8376_v60 = vpop.f32.mrf.mxu1 }
 0x2c1   : > { %v8380_v56 = vpop.f32.mrf.mxu1 }
 0x2c3   : > { %v8385_v7 = vpop.f32.mrf.mxu1  ;;  %6162 = vmatmul.mubr.bf16.vlgmr.msra.gmra.mxu1 %v10097_v20  ;;  %v6578_v20 = vld [vmem:[%s9769_s3 + $0x1e0] sm:$0xff]  }
 0x2c4   : > { %6242 = vmatpush3.bf16.msra.mxu1 %v6575_v1  ;;  %6165 = vmatprep.mubr.bf16.mxu1 %v10098_v38  ;;  %v8409_v1 = vpop.f32.mrf.mxu0 }
 0x2c5   : > { %v8391_v6 = vpop.f32.mrf.mxu1  ;;  %6243 = vmatprep.subr.bf16.mxu1 %v6576_v9  ;;  %10138 = vst [vmem:[#allocation37_spill] sm:$0xff] %v8409_v1 }
 0x2c6   : > { %v8416_v63 = vpop.f32.mrf.mxu0 }
 0x2c7   : > { %v8396_v11 = vpop.f32.mrf.mxu1  ;;  %10139 = vst [vmem:[#allocation42_spill] sm:$0xff] %v8416_v63 }
 0x2c8   : > { %6244 = vmatpush3.bf16.msra.mxu1 %v6576_v9  ;;  %v6579_v9 = vld [vmem:[%s9769_s3 + $0x1d8] sm:$0xff]  }
 0x2c9   : > { %v8400_v3 = vpop.f32.mrf.mxu1  ;;  %6245 = vmatprep.subr.bf16.mxu1 %v6577_v45 }
 0x2cb   : > { %v8405_v38 = vpop.f32.mrf.mxu1  ;;  %6166 = vmatmul.mubr.bf16.gmra.mxu1 %v10099_v52  ;;  %v6580_v52 = vld [vmem:[%s9769_s3 + $0x1d0] sm:$0xff]  }
 0x2cc   : > { %6169 = vmatprep.mubr.bf16.mxu1 %v10100_v32  ;;  %6246 = vmatpush3.bf16.msra.mxu1 %v6577_v45  ;;  %v8425_v32 = vpop.f32.mrf.mxu0 }
 0x2cd   : > { %v8411_v62 = vpop.f32.mrf.mxu1  ;;  %6247 = vmatprep.subr.bf16.mxu1 %v6578_v20  ;;  %10140 = vst [vmem:[#allocation46_spill] sm:$0xff] %v8425_v32 }
 0x2ce   : > { %v8436_v63 = vpop.f32.mrf.mxu0 }
 0x2cf   : > { %v8418_v48 = vpop.f32.mrf.mxu1  ;;  %10141 = vst [vmem:[#allocation51_spill] sm:$0xff] %v8436_v63 }
 0x2d0   : > { %6248 = vmatpush3.bf16.msra.mxu1 %v6578_v20  ;;  %v6581_v20 = vld [vmem:[%s9769_s3 + $0x1c8] sm:$0xff]  }
 0x2d1   : > { %v8420_v8 = vpop.f32.mrf.mxu1  ;;  %6249 = vmatprep.subr.bf16.mxu1 %v6579_v9 }
 0x2d3   : > { %v8427_v45 = vpop.f32.mrf.mxu1  ;;  %6170 = vmatmul.mubr.bf16.gmra.mxu1 %v10101_v5  ;;  %v6582_v5 = vld [vmem:[%s9769_s3 + $0x1c0] sm:$0xff]  }
 0x2d4   : > { %6173 = vmatprep.mubr.bf16.mxu1 %v10102_v25  ;;  %6250 = vmatpush3.bf16.msra.mxu1 %v6579_v9  ;;  %v8445_v25 = vpop.f32.mrf.mxu0 }
 0x2d5   : > { %v8431_v1 = vpop.f32.mrf.mxu1  ;;  %6251 = vmatprep.subr.bf16.mxu1 %v6580_v52  ;;  %10142 = vst [vmem:[#allocation52_spill] sm:$0xff] %v8445_v25 }
 0x2d6   : > { %v8451_v63 = vpop.f32.mrf.mxu0 }
 0x2d7   : > { %v8438_v31 = vpop.f32.mrf.mxu1  ;;  %10143 = vst [vmem:[#allocation53_spill] sm:$0xff] %v8451_v63 }
 0x2d8   : > { %6252 = vmatpush3.bf16.msra.mxu1 %v6580_v52  ;;  %v8457_v30 = vpop.f32.mrf.mxu0 }
 0x2d9   : > { %v8440_v32 = vpop.f32.mrf.mxu1  ;;  %6253 = vmatprep.subr.bf16.mxu1 %v6581_v20  ;;  %10144 = vst [vmem:[#allocation54_spill] sm:$0xff] %v8457_v30 }
 0x2db   : > { %v8447_v9 = vpop.f32.mrf.mxu1  ;;  %6174 = vmatmul.mubr.bf16.gmra.mxu1 %v10103_v36  ;;  %v8465_v36 = vpop.f32.mrf.mxu0 }
 0x2dc   : > { %6177 = vmatprep.mubr.bf16.mxu1 %v10104_v44  ;;  %6254 = vmatpush3.bf16.msra.mxu1 %v6581_v20  ;;  %10145 = vst [vmem:[#allocation55_spill] sm:$0xff] %v8465_v36 }
 0x2dd   : > { %v8453_v35 = vpop.f32.mrf.mxu1  ;;  %6255 = vmatprep.subr.bf16.mxu1 %v6582_v5  ;;  %v8471_v63 = vpop.f32.mrf.mxu0 }
 0x2de   : > { %10146 = vst [vmem:[#allocation56_spill] sm:$0xff] %v8471_v63 }
 0x2df   : > { %v8455_v52 = vpop.f32.mrf.mxu1 }
 0x2e0   : > { %6256 = vmatpush3.bf16.msra.mxu1 %v6582_v5  ;;  %v8475_v5 = vpop.f32.mrf.mxu0 }
 0x2e1   : > { %v8459_v23 = vpop.f32.mrf.mxu1  ;;  %10148 = vst [vmem:[#allocation58_spill] sm:$0xff] %v8475_v5 }
 0x2e3   : > { %v8461_v25 = vpop.f32.mrf.mxu1  ;;  %6178 = vmatmul.mubr.bf16.gmra.mxu1 %v10105_v18 }
 0x2e4   : > { %6181 = vmatprep.mubr.bf16.mxu1 %v10106_v28  ;;  %v8483_v28 = vpop.f32.mrf.mxu0 }
 0x2e5   : > { %v8467_v44 = vpop.f32.mrf.mxu1  ;;  %10149 = vst [vmem:[#allocation59_spill] sm:$0xff] %v8483_v28 }
 0x2e6   : > { %v8489_v0 = vpop.f32.mrf.mxu0 }
 0x2e7   : > { %v8469_v20 = vpop.f32.mrf.mxu1  ;;  %10151 = vst [vmem:[#allocation61_spill] sm:$0xff] %v8489_v0 }
 0x2e9   : > { %v8473_v54 = vpop.f32.mrf.mxu1 }
 0x2ea   : > { %10147 = vst [vmem:[#allocation57_spill] sm:$0xff] %v8473_v54 }
 0x2eb   : > { %v8477_v30 = vpop.f32.mrf.mxu1  ;;  %6182 = vmatmul.mubr.bf16.gmra.mxu1 %v10107_v40  ;;  %v8497_v40 = vpop.f32.mrf.mxu0 }
 0x2ec   : > { %6185 = vmatprep.mubr.bf16.mxu1 %v10108_v19  ;;  %10152 = vst [vmem:[#allocation62_spill] sm:$0xff] %v8497_v40 }
 0x2ed   : > { %v8481_v18 = vpop.f32.mrf.mxu1  ;;  %v8501_v61 = vpop.f32.mrf.mxu0 }
 0x2ee   : > { %10153 = vst [vmem:[#allocation63_spill] sm:$0xff] %v8501_v61 }
 0x2ef   : > { %v8485_v36 = vpop.f32.mrf.mxu1 }
 0x2f1   : > { %v8487_v22 = vpop.f32.mrf.mxu1 }
 0x2f2   : > { %10150 = vst [vmem:[#allocation60_spill] sm:$0xff] %v8487_v22 }
 0x2f3   : > { %v8491_v63 = vpop.f32.mrf.mxu1  ;;  %6186 = vmatmul.mubr.bf16.gmra.mxu1 %v10109_v50  ;;  %v10154_v50 = vld [vmem:[#allocation16_spill] sm:$0xff] }
 0x2f4   : > { %6189 = vmatprep.mubr.bf16.mxu1 %v7811_v49  ;;  %v8511_v49 = vpop.f32.mrf.mxu0 }
 0x2f5   : > { %v8495_v5 = vpop.f32.mrf.mxu1  ;;  %10155 = vst [vmem:[#allocation16_spill] sm:$0xff] %v8511_v49  ;;  %v10158_v49 = vld [vmem:[#allocation20_spill] sm:$0xff] }
 0x2f7   : > { %v8499_v19 = vpop.f32.mrf.mxu1 }
 0x2f9   : > { %v2096_v28 = vpop.f32.mrf.mxu1 }
 0x2fa   : > { %v8504_v15 = vadd.f32 %v2096_v28, %v8359_v17  ;;  %v8519_v17 = vpop.f32.mrf.mxu0 }
 0x2fb   : > { %v5999_v22 = vpop.f32.mrf.mxu1  ;;  %6190 = vmatmul.mubr.bf16.gmra.mxu1 %v8111_v57  ;;  %10156 = vst [vmem:[#allocation64_spill] sm:$0xff] %v8519_v17  ;;  %v2006_v57 = vadd.f32 %v8385_v7, %v8187_v27  ;;  %v2009_v17 = vadd.f32 %v8396_v11, %v8201_v39  ;;  %v2001_v7 = vadd.f32 %v8400_v3, %v8205_v43 }
 0x2fc   : > { %v8508_v0 = vadd.f32 %v5999_v22, %v8363_v10  ;;  %6257 = vmatprep.mubr.bf16.mxu1 %v10154_v50  ;;  %v10157_v50 = vld [vmem:[#allocation18_spill] sm:$0xff]  ;;  %v2014_v39 = vadd.f32 %v8411_v62, %v8211_v59  ;;  %v10162_v62 = vld [vmem:[#allocation35_spill] sm:$0xff] }
 0x2fd   : > { %v2109_v54 = vpop.f32.mrf.mxu1 }
 0x2fe   : > { %v8514_v40 = vadd.f32 %v2109_v54, %v8372_v51  ;;  %v1998_v54 = vadd.f32 %v8391_v6, %v8194_v41  ;;  %v2022_v6 = vadd.f32 %v8405_v38, %v8207_v14  ;;  %v2017_v38 = vadd.f32 %v8420_v8, %v8219_v42 }
 0x2ff   : > { %v6000_v16 = vpop.f32.mrf.mxu1 }
 0x300   : > { %v8517_v61 = vadd.f32 %v6000_v16, %v8376_v60  ;;  %v8532_v16 = vpop.f32.mrf.mxu0 }
 0x301   : > { %v2112_v28 = vpop.f32.mrf.mxu1  ;;  %10159 = vst [vmem:[#allocation18_spill] sm:$0xff] %v8532_v16 }
 0x302   : > { %v8524_v22 = vadd.f32 %v2112_v28, %v8380_v56 }
 0x303   : > { %v6019_v10 = vpop.f32.mrf.mxu1  ;;  %6258 = vmatmul.mubr.bf16.vlgmr.msra.gmra.mxu1 %v10157_v50  ;;  %v8542_v50 = vpop.f32.mrf.mxu0 }
 0x304   : > { %v8529_v51 = vadd.f32 %v6019_v10, %v2006_v57  ;;  %6261 = vmatprep.mubr.bf16.mxu1 %v10158_v49  ;;  %v10160_v10 = vld [vmem:[#allocation22_spill] sm:$0xff] }
 0x305   : > { %v2320_v60 = vpop.f32.mrf.mxu1  ;;  %v8554_v43 = vpop.f32.mrf.mxu0 }
 0x306   : > { %v8536_v27 = vadd.f32 %v2320_v60, %v1998_v54  ;;  %v10161_v54 = vld [vmem:[#allocation24_spill] sm:$0xff] }
 0x307   : > { %v6020_v56 = vpop.f32.mrf.mxu1 }
 0x308   : > { %v8540_v28 = vadd.f32 %v6020_v56, %v2009_v17  ;;  %v2025_v17 = vadd.f32 %v8418_v48, %v8215_v46  ;;  %v10164_v46 = vld [vmem:[#allocation41_spill] sm:$0xff] }
 0x309   : > { %v2323_v41 = vpop.f32.mrf.mxu1  ;;  %v2030_v48 = vadd.f32 %v8431_v1, %v10164_v46  ;;  %v10167_v46 = vld [vmem:[#allocation32_spill] sm:$0xff] }
 0x30a   : > { %v8546_v49 = vadd.f32 %v2323_v41, %v2001_v7  ;;  %v8564_v7 = vpop.f32.mrf.mxu0  ;;  %v2038_v41 = vadd.f32 %v8427_v45, %v10162_v62  ;;  %v2054_v62 = vadd.f32 %v8447_v9, %v8245_v33  ;;  %v2049_v9 = vadd.f32 %v8459_v23, %v8273_v47  ;;  %v6583_v47 = vld [vmem:[%s9771_s5 + $0x38] sm:$0xff]  }
 0x30b   : > { %v6023_v57 = vpop.f32.mrf.mxu1  ;;  %6262 = vmatmul.mubr.bf16.gmra.mxu1 %v10160_v10  ;;  %v10163_v10 = vld [vmem:[#allocation26_spill] sm:$0xff]  ;;  %6385 = vmatprep.subr.bf16.mxu1 %v6583_v47 }
 0x30c   : > { %v8551_v11 = vadd.f32 %v6023_v57, %v2022_v6  ;;  %6265 = vmatprep.mubr.bf16.mxu1 %v10161_v54  ;;  %v10165_v54 = vld [vmem:[#allocation28_spill] sm:$0xff]  ;;  %v8576_v42 = vpop.f32.mrf.mxu0  ;;  %6337 = vmatprep.subr.bf16.mxu0 %v6583_v47 }
 0x30d   : > { %v2336_v3 = vpop.f32.mrf.mxu1  ;;  %6393 = vmatpush3.bf16.msra.mxu1 %v6583_v47  ;;  %6338 = vmatpush3.bf16.msra.mxu0 %v6583_v47  ;;  %v10175_v47 = vld [vmem:[#allocation49_spill] sm:$0xff] }
 0x30e   : > { %v8558_v60 = vadd.f32 %v2336_v3, %v2014_v39  ;;  %v2041_v3 = vadd.f32 %v8438_v31, %v8236_v34  ;;  %v2046_v34 = vadd.f32 %v8453_v35, %v8256_v4  ;;  %v2070_v35 = vadd.f32 %v8461_v25, %v8275_v13 }
 0x30f   : > { %v6024_v14 = vpop.f32.mrf.mxu1  ;;  %v2073_v13 = vadd.f32 %v8469_v20, %v8293_v24  ;;  %v2078_v24 = vadd.f32 %v8481_v18, %v8317_v37 }
 0x310   : > { %v8562_v56 = vadd.f32 %v6024_v14, %v2025_v17  ;;  %v2033_v14 = vadd.f32 %v8440_v32, %v8240_v21 }
 0x311   : > { %v2339_v59 = vpop.f32.mrf.mxu1 }
 0x312   : > { %v8568_v6 = vadd.f32 %v2339_v59, %v2017_v38  ;;  %v8586_v59 = vpop.f32.mrf.mxu0 }
 0x313   : > { %v6027_v57 = vpop.f32.mrf.mxu1  ;;  %6266 = vmatmul.mubr.bf16.gmra.mxu1 %v10163_v10  ;;  %v10166_v10 = vld [vmem:[#allocation30_spill] sm:$0xff] }
 0x314   : > { %v8573_v39 = vadd.f32 %v6027_v57, %v2038_v41  ;;  %6269 = vmatprep.mubr.bf16.mxu1 %v10165_v54  ;;  %v8598_v21 = vpop.f32.mrf.mxu0 }
 0x315   : > { %v2352_v8 = vpop.f32.mrf.mxu1 }
 0x316   : > { %v8580_v17 = vadd.f32 %v2352_v8, %v2030_v48  ;;  %v2057_v48 = vadd.f32 %v8455_v52, %v8262_v55  ;;  %v2062_v55 = vadd.f32 %v8467_v44, %v8286_v2 }
 0x317   : > { %v6028_v45 = vpop.f32.mrf.mxu1 }
 0x318   : > { %v8584_v38 = vadd.f32 %v6028_v45, %v2041_v3  ;;  %v8608_v3 = vpop.f32.mrf.mxu0 }
 0x319   : > { %v2355_v1 = vpop.f32.mrf.mxu1 }
 0x31a   : > { %v8590_v41 = vadd.f32 %v2355_v1, %v2033_v14  ;;  %v10168_v1 = vld [vmem:[#allocation34_spill] sm:$0xff]  ;;  %v8623_v23 = vpop.f32.mrf.mxu0 }
 0x31b   : > { %v6031_v57 = vpop.f32.mrf.mxu1  ;;  %6270 = vmatmul.mubr.bf16.gmra.mxu1 %v10166_v10  ;;  %10170 = vst [vmem:[#allocation20_spill] sm:$0xff] %v8623_v23  ;;  %v10205_v23 = vld [vmem:[#allocation17_spill] sm:$0xff] }
 0x31c   : > { %v8595_v31 = vadd.f32 %v6031_v57, %v2054_v62  ;;  %6273 = vmatprep.mubr.bf16.mxu1 %v10167_v46  ;;  %v10169_v62 = vld [vmem:[#allocation38_spill] sm:$0xff]  ;;  %v8631_v44 = vpop.f32.mrf.mxu0  ;;  %v2086_v46 = vadd.f32 %v8477_v30, %v8313_v12  ;;  %v2089_v12 = vadd.f32 %v8485_v36, %v8327_v58  ;;  %v2094_v58 = vadd.f32 %v8495_v5, %v8345_v53 }
 0x31d   : > { %v2368_v32 = vpop.f32.mrf.mxu1  ;;  %10171 = vst [vmem:[#allocation22_spill] sm:$0xff] %v8631_v44 }
 0x31e   : > { %v8602_v54 = vadd.f32 %v2368_v32, %v2046_v34 }
 0x31f   : > { %v6032_v33 = vpop.f32.mrf.mxu1 }
 0x320   : > { %v8606_v8 = vadd.f32 %v6032_v33, %v2057_v48  ;;  %v10172_v48 = vld [vmem:[#allocation43_spill] sm:$0xff] }
 0x321   : > { %v2371_v4 = vpop.f32.mrf.mxu1  ;;  %v10173_v33 = vld [vmem:[#allocation47_spill] sm:$0xff] }
 0x322   : > { %v8612_v45 = vadd.f32 %v2371_v4, %v2049_v9  ;;  %v6584_v9 = vld [vmem:[%s9771_s5 + $0x30] sm:$0xff]   ;;  %v8646_v4 = vpop.f32.mrf.mxu0 }
 0x323   : > { %v6035_v14 = vpop.f32.mrf.mxu1  ;;  %6274 = vmatmul.mubr.bf16.gmra.mxu1 %v10168_v1  ;;  %6386 = vmatprep.subr.bf16.mxu1 %v6584_v9 }
 0x324   : > { %v8617_v52 = vadd.f32 %v6035_v14, %v2070_v35  ;;  %6277 = vmatprep.mubr.bf16.mxu1 %v10169_v62  ;;  %6339 = vmatprep.subr.bf16.mxu0 %v6584_v9  ;;  %v8654_v18 = vpop.f32.mrf.mxu0 }
 0x325   : > { %v2384_v57 = vpop.f32.mrf.mxu1  ;;  %6394 = vmatpush3.bf16.msra.mxu1 %v6584_v9  ;;  %6340 = vmatpush3.bf16.msra.mxu0 %v6584_v9  ;;  %10174 = vst [vmem:[#allocation24_spill] sm:$0xff] %v8654_v18 }
 0x326   : > { %v8627_v25 = vadd.f32 %v2384_v57, %v2062_v55  ;;  %v2102_v55 = vadd.f32 %v8491_v63, %v8341_v26  ;;  %v10176_v57 = vld [vmem:[#allocation50_spill] sm:$0xff]  ;;  %v2105_v63 = vadd.f32 %v8499_v19, %v8355_v29  ;;  %v6586_v29 = vld [vmem:[%s9771_s5 + $0x20] sm:$0xff]  }
 0x327   : > { %v6036_v10 = vpop.f32.mrf.mxu1 }
 0x328   : > { %v8629_v2 = vadd.f32 %v6036_v10, %v2073_v13  ;;  %v6585_v13 = vld [vmem:[%s9771_s5 + $0x28] sm:$0xff]   ;;  %v8669_v10 = vpop.f32.mrf.mxu0 }
 0x329   : > { %v8633_v34 = vpop.f32.mrf.mxu1  ;;  %10177 = vst [vmem:[#allocation35_spill] sm:$0xff] %v8669_v10  ;;  %6387 = vmatprep.subr.bf16.mxu1 %v6585_v13  ;;  %6341 = vmatprep.subr.bf16.mxu0 %v6585_v13  ;;  %v10188_v10 = vld [vmem:[#allocation44_spill] sm:$0xff] }
 0x32a   : > { %6395 = vmatpush3.bf16.msra.mxu1 %v6585_v13  ;;  %6342 = vmatpush3.bf16.msra.mxu0 %v6585_v13  ;;  %v8677_v5 = vpop.f32.mrf.mxu0 }
 0x32b   : > { %v6039_v32 = vpop.f32.mrf.mxu1  ;;  %6278 = vmatmul.mubr.bf16.gmra.mxu1 %v10172_v48  ;;  %10178 = vst [vmem:[#allocation26_spill] sm:$0xff] %v8677_v5  ;;  %6388 = vmatprep.subr.bf16.mxu1 %v6586_v29 }
 0x32c   : > { %v8640_v20 = vadd.f32 %v6039_v32, %v2086_v46  ;;  %6281 = vmatprep.mubr.bf16.mxu1 %v10173_v33  ;;  %v10179_v33 = vld [vmem:[#allocation36_spill] sm:$0xff]  ;;  %v8688_v19 = vpop.f32.mrf.mxu0  ;;  %6343 = vmatprep.subr.bf16.mxu0 %v6586_v29 }
 0x32d   : > { %v2400_v35 = vpop.f32.mrf.mxu1 }
 0x32e   : > { %v8650_v30 = vadd.f32 %v2400_v35, %v2078_v24  ;;  %6396 = vmatpush3.bf16.msra.mxu1 %v6586_v29  ;;  %6344 = vmatpush3.bf16.msra.mxu0 %v6586_v29 }
 0x32f   : > { %v6040_v14 = vpop.f32.mrf.mxu1 }
 0x330   : > { %v8652_v37 = vadd.f32 %v6040_v14, %v2089_v12 }
 0x331   : > { %v8656_v1 = vpop.f32.mrf.mxu1 }
 0x333   : > { %v6043_v62 = vpop.f32.mrf.mxu1  ;;  %6282 = vmatmul.mubr.bf16.gmra.mxu1 %v10175_v47 }
 0x334   : > { %v8663_v36 = vadd.f32 %v6043_v62, %v2102_v55  ;;  %6285 = vmatprep.mubr.bf16.mxu1 %v10176_v57 }
 0x335   : > { %v2416_v46 = vpop.f32.mrf.mxu1 }
 0x336   : > { %v8673_v26 = vadd.f32 %v2416_v46, %v2094_v58 }
 0x337   : > { %v6044_v32 = vpop.f32.mrf.mxu1 }
 0x338   : > { %v8675_v53 = vadd.f32 %v6044_v32, %v2105_v63 }
 0x339   : > { %v8679_v48 = vpop.f32.mrf.mxu1 }
 0x33b   : > { %v6047_v24 = vpop.f32.mrf.mxu1  ;;  %6286 = vmatmul.mubr.bf16.gmra.mxu1 %v10179_v33 }
 0x33c   : > { %v8683_v9 = vadd.f32 %v6047_v24, %v8508_v0  ;;  %v8696_v0 = vpop.f32.mrf.mxu0 }
 0x33d   : > { %v2432_v35 = vpop.f32.mrf.mxu1 }
 0x33e   : > { %v8691_v12 = vadd.f32 %v2432_v35, %v8514_v40  ;;  %v6587_v40 = vld [vmem:[%s9771_s5 + $0x18] sm:$0xff]   ;;  %v8706_v57 = vpop.f32.mrf.mxu0 }
 0x33f   : > { %v6048_v14 = vpop.f32.mrf.mxu1  ;;  %10180 = vst [vmem:[#allocation41_spill] sm:$0xff] %v8706_v57  ;;  %6389 = vmatprep.subr.bf16.mxu1 %v6587_v40  ;;  %6345 = vmatprep.subr.bf16.mxu0 %v6587_v40 }
 0x340   : > { %v8694_v55 = vadd.f32 %v6048_v14, %v8517_v61  ;;  %6397 = vmatpush3.bf16.msra.mxu1 %v6587_v40  ;;  %6346 = vmatpush3.bf16.msra.mxu0 %v6587_v40  ;;  %v8717_v32 = vpop.f32.mrf.mxu0 }
 0x341   : > { %v8698_v62 = vpop.f32.mrf.mxu1  ;;  %10181 = vst [vmem:[#allocation28_spill] sm:$0xff] %v8717_v32 }
 0x342   : > { %v8727_v29 = vpop.f32.mrf.mxu0 }
 0x343   : > { %v6067_v47 = vpop.f32.mrf.mxu1 }
 0x344   : > { %v8701_v58 = vadd.f32 %v6067_v47, %v8529_v51  ;;  %v6588_v51 = vld [vmem:[%s9771_s5 + $0x10] sm:$0xff]  }
 0x345   : > { %v2578_v13 = vpop.f32.mrf.mxu1  ;;  %6347 = vmatprep.subr.bf16.mxu0 %v6588_v51  ;;  %6390 = vmatprep.subr.bf16.mxu1 %v6588_v51 }
 0x346   : > { %v8709_v46 = vadd.f32 %v2578_v13, %v8536_v27  ;;  %6348 = vmatpush3.bf16.msra.mxu0 %v6588_v51  ;;  %6398 = vmatpush3.bf16.msra.mxu1 %v6588_v51  ;;  %v8738_v13 = vpop.f32.mrf.mxu0 }
 0x347   : > { %v6068_v61 = vpop.f32.mrf.mxu1 }
 0x348   : > { %v8712_v63 = vadd.f32 %v6068_v61, %v8540_v28  ;;  %v6589_v28 = vld [vmem:[%s9771_s5 + $0x8] sm:$0xff]  }
 0x349   : > { %v8719_v24 = vpop.f32.mrf.mxu1  ;;  %6349 = vmatprep.subr.bf16.mxu0 %v6589_v28  ;;  %6391 = vmatprep.subr.bf16.mxu1 %v6589_v28 }
 0x34a   : > { %6350 = vmatpush3.bf16.msra.mxu0 %v6589_v28  ;;  %6399 = vmatpush3.bf16.msra.mxu1 %v6589_v28 }
 0x34b   : > { %v6071_v27 = vpop.f32.mrf.mxu1 }
 0x34c   : > { %v8722_v33 = vadd.f32 %v6071_v27, %v8551_v11  ;;  %v6590_v11 = vld [vmem:[%s9771_s5] sm:$0xff]   ;;  %v8745_v27 = vpop.f32.mrf.mxu0 }
 0x34d   : > { %v2594_v35 = vpop.f32.mrf.mxu1  ;;  %6351 = vmatprep.subr.bf16.mxu0 %v6590_v11  ;;  %6392 = vmatprep.subr.bf16.mxu1 %v6590_v11  ;;  %10182 = vst [vmem:[#allocation30_spill] sm:$0xff] %v8745_v27 }
 0x34e   : > { %v8730_v14 = vadd.f32 %v2594_v35, %v8558_v60  ;;  %6352 = vmatpush3.bf16.msra.mxu0 %v6590_v11  ;;  %6400 = vmatpush3.bf16.msra.mxu1 %v6590_v11  ;;  %v8753_v16 = vpop.f32.mrf.mxu0 }
 0x34f   : > { %v6072_v47 = vpop.f32.mrf.mxu1  ;;  %10184 = vst [vmem:[#allocation34_spill] sm:$0xff] %v8753_v16 }
 0x350   : > { %v8733_v40 = vadd.f32 %v6072_v47, %v8562_v56 }
 0x351   : > { %v8740_v61 = vpop.f32.mrf.mxu1 }
 0x353   : > { %v6075_v60 = vpop.f32.mrf.mxu1 }
 0x354   : > { %v8743_v51 = vadd.f32 %v6075_v60, %v8573_v39  ;;  %v8761_v60 = vpop.f32.mrf.mxu0 }
 0x355   : > { %v2610_v56 = vpop.f32.mrf.mxu1 }
 0x356   : > { %v8748_v28 = vadd.f32 %v2610_v56, %v8580_v17 }
 0x357   : > { %v6076_v35 = vpop.f32.mrf.mxu1 }
 0x358   : > { %v8751_v47 = vadd.f32 %v6076_v35, %v8584_v38  ;;  %v8769_v35 = vpop.f32.mrf.mxu0 }
 0x359   : > { %v2613_v32 = vpop.f32.mrf.mxu1 }
 0x35a   : > { %10183 = vst [vmem:[#allocation32_spill] sm:$0xff] %v8751_v47  ;;  %v8756_v57 = vadd.f32 %v2613_v32, %v8590_v41  ;;  %v2983_v47 = vadd.f32 %v10205_v23, %v8733_v40  ;;  %v10211_v23 = vld [vmem:[#allocation21_spill] sm:$0xff] }
 0x35b   : > { %v6079_v11 = vpop.f32.mrf.mxu1  ;;  %v2986_v40 = vadd.f32 %v10211_v23, %v8743_v51  ;;  %v10215_v23 = vld [vmem:[#allocation29_spill] sm:$0xff] }
 0x35c   : > { %10185 = vst [vmem:[#allocation38_spill] sm:$0xff] %v8756_v57  ;;  %v8759_v39 = vadd.f32 %v6079_v11, %v8595_v31  ;;  %v8777_v11 = vpop.f32.mrf.mxu0 }
 0x35d   : > { %v2626_v27 = vpop.f32.mrf.mxu1  ;;  %10187 = vst [vmem:[#allocation47_spill] sm:$0xff] %v8777_v11 }
 0x35e   : > { %v8764_v17 = vadd.f32 %v2626_v27, %v8602_v54  ;;  %v10189_v54 = vld [vmem:[#allocation57_spill] sm:$0xff] }
 0x35f   : > { %v6080_v56 = vpop.f32.mrf.mxu1  ;;  %v2065_v27 = vadd.f32 %v10189_v54, %v10188_v10 }
 0x360   : > { %v8767_v38 = vadd.f32 %v6080_v56, %v8606_v8 }
 0x361   : > { %v2629_v16 = vpop.f32.mrf.mxu1  ;;  %v2464_v56 = vadd.f32 %v8633_v34, %v2065_v27 }
 0x362   : > { %v8772_v41 = vadd.f32 %v2629_v16, %v8612_v45  ;;  %v8788_v16 = vpop.f32.mrf.mxu0 }
 0x363   : > { %v6083_v32 = vpop.f32.mrf.mxu1  ;;  %10190 = vst [vmem:[#allocation49_spill] sm:$0xff] %v8788_v16 }
 0x364   : > { %10186 = vst [vmem:[#allocation43_spill] sm:$0xff] %v8772_v41  ;;  %v8775_v31 = vadd.f32 %v6083_v32, %v8617_v52  ;;  %v8795_v41 = vpop.f32.mrf.mxu0 }
 0x365   : > { %v2642_v5 = vpop.f32.mrf.mxu1 }
 0x366   : > { %v8782_v18 = vadd.f32 %v2642_v5, %v8627_v25  ;;  %v10192_v25 = vld [vmem:[#allocation15_spill] sm:$0xff]  ;;  %v10193_v5 = vld [vmem:[#allocation60_spill] sm:$0xff] }
 0x367   : > { %v6084_v8 = vpop.f32.mrf.mxu1  ;;  %v2081_v54 = vadd.f32 %v10193_v5, %v10192_v25 }
 0x368   : > { %v8786_v44 = vadd.f32 %v6084_v8, %v8629_v2 }
 0x369   : > { %v2645_v45 = vpop.f32.mrf.mxu1  ;;  %v2468_v27 = vadd.f32 %v8656_v1, %v2081_v54 }
 0x36a   : > { %v8790_v52 = vadd.f32 %v2645_v45, %v2464_v56  ;;  %v8806_v56 = vpop.f32.mrf.mxu0 }
 0x36b   : > { %v6087_v32 = vpop.f32.mrf.mxu1 }
 0x36c   : > { %10191 = vst [vmem:[#allocation50_spill] sm:$0xff] %v8790_v52  ;;  %v8793_v11 = vadd.f32 %v6087_v32, %v8640_v20  ;;  %v8813_v52 = vpop.f32.mrf.mxu0 }
 0x36d   : > { %v2658_v10 = vpop.f32.mrf.mxu1  ;;  %10195 = vst [vmem:[#allocation44_spill] sm:$0xff] %v8813_v52 }
 0x36e   : > { %v8800_v34 = vadd.f32 %v2658_v10, %v8650_v30  ;;  %v8823_v5 = vpop.f32.mrf.mxu0 }
 0x36f   : > { %v6088_v2 = vpop.f32.mrf.mxu1  ;;  %10196 = vst [vmem:[#allocation57_spill] sm:$0xff] %v8823_v5 }
 0x370   : > { %v8804_v8 = vadd.f32 %v6088_v2, %v8652_v37  ;;  %v2472_v37 = vadd.f32 %v8679_v48, %v8504_v15 }
 0x371   : > { %v2661_v45 = vpop.f32.mrf.mxu1 }
 0x372   : > { %v8808_v20 = vadd.f32 %v2661_v45, %v2468_v27  ;;  %v8830_v45 = vpop.f32.mrf.mxu0 }
 0x373   : > { %v6091_v32 = vpop.f32.mrf.mxu1 }
 0x374   : > { %10194 = vst [vmem:[#allocation36_spill] sm:$0xff] %v8808_v20  ;;  %v8811_v16 = vadd.f32 %v6091_v32, %v8663_v36 }
 0x375   : > { %v2674_v25 = vpop.f32.mrf.mxu1 }
 0x376   : > { %v8816_v30 = vadd.f32 %v2674_v25, %v8673_v26  ;;  %v8840_v25 = vpop.f32.mrf.mxu0 }
 0x377   : > { %v6092_v10 = vpop.f32.mrf.mxu1 }
 0x378   : > { %v8821_v1 = vadd.f32 %v6092_v10, %v8675_v53  ;;  %v2476_v53 = vadd.f32 %v8698_v62, %v8524_v22  ;;  %v8850_v52 = vpop.f32.mrf.mxu0  ;;  %v6592_v62 = vld [vmem:[%s6997_s20 + $0x18] sm:$0xf] }
 0x379   : > { %v2677_v54 = vpop.f32.mrf.mxu1 }
 0x37a   : > { %v8825_v2 = vadd.f32 %v2677_v54, %v2472_v37 }
 0x37b   : > { %v6095_v36 = vpop.f32.mrf.mxu1 }
 0x37c   : > { %10197 = vst [vmem:[#allocation15_spill] sm:$0xff] %v8825_v2  ;;  %v8828_v27 = vadd.f32 %v6095_v36, %v8683_v9  ;;  %v10199_v9 = vld [vmem:[#allocation40_spill] sm:$0xff]  ;;  %v4199_v2 = vshll.u32 %v6592_v62, 16 }
 0x37d   : > { %v2690_v26 = vpop.f32.mrf.mxu1  ;;  %v2978_v54 = vadd.f32 %v10199_v9, %v8701_v58  ;;  %10201 = vst [vmem:[#allocation40_spill] sm:$0xff] %v8850_v52  ;;  %v8858_v58 = vpop.f32.mrf.mxu0  ;;  %v10202_v9 = vld [vmem:[#allocation13_spill] sm:$0xff]  ;;  %v10204_v52 = vld [vmem:[#allocation14_spill] sm:$0xff] }
 0x37e   : > { %v8833_v32 = vadd.f32 %v2690_v26, %v8691_v12  ;;  %v10200_v12 = vld [vmem:[#allocation39_spill] sm:$0xff] }
 0x37f   : > { %v6096_v15 = vpop.f32.mrf.mxu1  ;;  %v2976_v26 = vadd.f32 %v10200_v12, %v8709_v46  ;;  %v8865_v12 = vld [vmem:[%s6997_s20 + $0x1c] sm:$0xf] }
 0x380   : > { %v8838_v48 = vadd.f32 %v6096_v15, %v8694_v55  ;;  %v4196_v15 = vshrl.u32 %v6592_v62, 16  ;;  %10203 = vst [vmem:[#allocation39_spill] sm:$0xff] %v8865_v12 }
 0x381   : > { %v2693_v10 = vpop.f32.mrf.mxu1 }
 0x382   : > { %v8842_v37 = vadd.f32 %v2693_v10, %v2476_v53  ;;  %v4198_v46 = vrot.slane %v4196_v15, 4 }
 0x383   : > { %v6163_v36 = vpop.f32.mrf.mxu1 }
 0x384   : > { %10198 = vst [vmem:[#allocation60_spill] sm:$0xff] %v8842_v37  ;;  %v8846_v5 = vadd.f32 %v6163_v36, %v2978_v54  ;;  %v2982_v54 = vadd.f32 %v10202_v9, %v8722_v33  ;;  %v4201_v36 = vrot.slane %v4199_v2, 5 }
 0x385   : > { %v3113_v22 = vpop.f32.mrf.mxu1 }
 0x386   : > { %v3240_v55 = vadd.f32 %v3113_v22, %v2976_v26  ;;  %v4205_v26 = vshll.u32 %v8865_v12, 16  ;;  %v4202_v15 = vor.u32 %v4201_v36, %v4198_v46  ;;  %v10212_v46 = vld [vmem:[#allocation23_spill] sm:$0xff] }
 0x387   : > { %v8853_v20 = vpop.f32.mrf.mxu1  ;;  %v2984_v36 = vadd.f32 %v10212_v46, %v8748_v28  ;;  %v10216_v28 = vld [vmem:[#allocation31_spill] sm:$0xff] }
 0x388   : > { %v8856_v53 = vadd.f32 %v8554_v43, %v3240_v55  ;;  %v2980_v43 = vadd.f32 %v10204_v52, %v8730_v14  ;;  %v8872_v55 = vpop.f32.mrf.mxu0  ;;  %v8876_v33 = vrot.slane %v4205_v26, 5  ;;  %v2988_v46 = vadd.f32 %v10216_v28, %v8764_v17 }
 0x389   : > { %v8860_v10 = vpop.f32.mrf.mxu1 }
 0x38a   : > { %10206 = vst [vmem:[#allocation13_spill] sm:$0xff] %v8876_v33  ;;  %v8885_v14 = vpop.f32.mrf.mxu0 }
 0x38b   : > { %v6167_v22 = vpop.f32.mrf.mxu1 }
 0x38c   : > { %v8868_v62 = vadd.f32 %v6167_v22, %v2982_v54  ;;  %v10207_v22 = vmov 0 }
 0x38d   : > { %v3129_v37 = vpop.f32.mrf.mxu1  ;;  %v10208_v22 = vsel %vm8881_vm8, 4294967295, %v10207_v22 }
 0x38e   : > { %v3244_v57 = vadd.f32 %v3129_v37, %v2980_v43  ;;  %10209 = vst [vmem:[#allocation14_spill] sm:$0xff] %v10208_v22  ;;  %v8889_v37 = vrot.slane %v4202_v15, 4  ;;  %v8904_v43 = vpop.f32.mrf.mxu0 }
 0x38f   : > { %v6168_v2 = vpop.f32.mrf.mxu1 }
 0x390   : > { %v3247_v9 = vadd.f32 %v6168_v2, %v2983_v47  ;;  %v8879_v54 = vadd.f32 %v8598_v21, %v3244_v57  ;;  %10210 = vst [vmem:[#allocation17_spill] sm:$0xff] %v8889_v37  ;;  %v8911_v51 = vpop.f32.mrf.mxu0 }
 0x391   : > { %v8887_v52 = vpop.f32.mrf.mxu1 }
 0x392   : > { %v8894_v26 = vadd.f32 %v8608_v3, %v3247_v9  ;;  %v8921_v37 = vpop.f32.mrf.mxu0 }
 0x393   : > { %v6171_v47 = vpop.f32.mrf.mxu1 }
 0x394   : > { %v8900_v57 = vadd.f32 %v6171_v47, %v2986_v40  ;;  %v2990_v40 = vadd.f32 %v10215_v23, %v8759_v39  ;;  %v10219_v23 = vld [vmem:[#allocation42_spill] sm:$0xff] }
 0x395   : > { %v3145_v2 = vpop.f32.mrf.mxu1 }
 0x396   : > { %v3248_v15 = vadd.f32 %v3145_v2, %v2984_v36 }
 0x397   : > { %v8906_v12 = vpop.f32.mrf.mxu1 }
 0x398   : > { %v8909_v3 = vadd.f32 %v8646_v4, %v3248_v15  ;;  %v10217_v4 = vld [vmem:[#allocation33_spill] sm:$0xff] }
 0x399   : > { %v8913_v9 = vpop.f32.mrf.mxu1  ;;  %v2991_v15 = vadd.f32 %v10217_v4, %v8767_v38  ;;  %v10220_v38 = vld [vmem:[#allocation46_spill] sm:$0xff] }
 0x39a   : > { %10213 = vst [vmem:[#allocation21_spill] sm:$0xff] %v8909_v3  ;;  %10214 = vst [vmem:[#allocation23_spill] sm:$0xff] %v8913_v9  ;;  %v8928_v9 = vpop.f32.mrf.mxu0 }
 0x39b   : > { %v6175_v47 = vpop.f32.mrf.mxu1 }
 0x39c   : > { %v8917_v21 = vadd.f32 %v6175_v47, %v2990_v40  ;;  %v2994_v40 = vadd.f32 %v10219_v23, %v8775_v31  ;;  %v10223_v23 = vld [vmem:[#allocation53_spill] sm:$0xff] }
 0x39d   : > { %v3161_v36 = vpop.f32.mrf.mxu1 }
 0x39e   : > { %v3252_v2 = vadd.f32 %v3161_v36, %v2988_v46  ;;  %v2992_v46 = vadd.f32 %v10220_v38, %v8782_v18 }
 0x39f   : > { %v6176_v22 = vpop.f32.mrf.mxu1 }
 0x3a0   : > { %v3255_v33 = vadd.f32 %v6176_v22, %v2991_v15  ;;  %v8926_v3 = vadd.f32 %v8688_v19, %v3252_v2  ;;  %v8941_v22 = vpop.f32.mrf.mxu0  ;;  %v10221_v2 = vld [vmem:[#allocation51_spill] sm:$0xff] }
 0x3a1   : > { %v8930_v39 = vpop.f32.mrf.mxu1  ;;  %v2995_v4 = vadd.f32 %v10221_v2, %v8786_v44  ;;  %v10224_v44 = vld [vmem:[#allocation54_spill] sm:$0xff]  ;;  %v10225_v2 = vld [vmem:[#allocation55_spill] sm:$0xff] }
 0x3a2   : > { %10218 = vst [vmem:[#allocation29_spill] sm:$0xff] %v8926_v3  ;;  %v8935_v17 = vadd.f32 %v8696_v0, %v3255_v33  ;;  %v8948_v0 = vpop.f32.mrf.mxu0 }
 0x3a3   : > { %v6179_v47 = vpop.f32.mrf.mxu1 }
 0x3a4   : > { %v8937_v28 = vadd.f32 %v6179_v47, %v2994_v40  ;;  %v2998_v40 = vadd.f32 %v10223_v23, %v8793_v11  ;;  %v10227_v23 = vld [vmem:[#allocation58_spill] sm:$0xff] }
 0x3a5   : > { %v3177_v19 = vpop.f32.mrf.mxu1 }
 0x3a6   : > { %v3256_v36 = vadd.f32 %v3177_v19, %v2992_v46  ;;  %v2996_v46 = vadd.f32 %v10224_v44, %v8800_v34  ;;  %v8961_v19 = vpop.f32.mrf.mxu0 }
 0x3a7   : > { %v6180_v15 = vpop.f32.mrf.mxu1 }
 0x3a8   : > { %v3259_v3 = vadd.f32 %v6180_v15, %v2995_v4  ;;  %v8946_v31 = vadd.f32 %v8727_v29, %v3256_v36  ;;  %v2999_v4 = vadd.f32 %v10225_v2, %v8804_v8  ;;  %v10228_v8 = vld [vmem:[#allocation59_spill] sm:$0xff]  ;;  %v10229_v2 = vld [vmem:[#allocation61_spill] sm:$0xff] }
 0x3a9   : > { %v8950_v33 = vpop.f32.mrf.mxu1 }
 0x3aa   : > { %10222 = vst [vmem:[#allocation31_spill] sm:$0xff] %v8946_v31  ;;  %v8955_v18 = vadd.f32 %v8738_v13, %v3259_v3  ;;  %v8968_v13 = vpop.f32.mrf.mxu0 }
 0x3ab   : > { %v6183_v47 = vpop.f32.mrf.mxu1 }
 0x3ac   : > { %v8957_v38 = vadd.f32 %v6183_v47, %v2998_v40  ;;  %v3002_v40 = vadd.f32 %v10227_v23, %v8811_v16  ;;  %v10230_v23 = vld [vmem:[#allocation63_spill] sm:$0xff] }
 0x3ad   : > { %v3193_v29 = vpop.f32.mrf.mxu1 }
 0x3ae   : > { %v3260_v36 = vadd.f32 %v3193_v29, %v2996_v46  ;;  %v3000_v46 = vadd.f32 %v10228_v8, %v8816_v30  ;;  %v8981_v29 = vpop.f32.mrf.mxu0 }
 0x3af   : > { %v6184_v15 = vpop.f32.mrf.mxu1 }
 0x3b0   : > { %v3263_v31 = vadd.f32 %v6184_v15, %v2999_v4  ;;  %v8966_v11 = vadd.f32 %v8761_v60, %v3260_v36  ;;  %v3003_v4 = vadd.f32 %v10229_v2, %v8821_v1  ;;  %v10232_v1 = vld [vmem:[#allocation16_spill] sm:$0xff] }
 0x3b1   : > { %v8970_v3 = vpop.f32.mrf.mxu1 }
 0x3b2   : > { %10226 = vst [vmem:[#allocation33_spill] sm:$0xff] %v8966_v11  ;;  %v8975_v34 = vadd.f32 %v8769_v35, %v3263_v31  ;;  %v8988_v35 = vpop.f32.mrf.mxu0 }
 0x3b3   : > { %v6187_v47 = vpop.f32.mrf.mxu1 }
 0x3b4   : > { %v8977_v44 = vadd.f32 %v6187_v47, %v3002_v40  ;;  %v3006_v40 = vadd.f32 %v10230_v23, %v8828_v27 }
 0x3b5   : > { %v3209_v60 = vpop.f32.mrf.mxu1 }
 0x3b6   : > { %v3264_v36 = vadd.f32 %v3209_v60, %v3000_v46  ;;  %v3004_v46 = vadd.f32 %v10232_v1, %v8833_v32  ;;  %v9001_v60 = vpop.f32.mrf.mxu0 }
 0x3b7   : > { %v6188_v15 = vpop.f32.mrf.mxu1 }
 0x3b8   : > { %v3267_v11 = vadd.f32 %v6188_v15, %v3003_v4  ;;  %v8986_v16 = vadd.f32 %v8795_v41, %v3264_v36  ;;  %v2706_v36 = vadd.f32 %v8719_v24, %v8546_v49  ;;  %v10233_v4 = vld [vmem:[#allocation64_spill] sm:$0xff]  ;;  %v3500_v24 = vadd.f32 %v8542_v50, %v8846_v5  ;;  %v9034_v50 = vld [vmem:[%s9770_s4] ss:$0 sm:$0xff] }
 0x3b9   : > { %v8990_v31 = vpop.f32.mrf.mxu1  ;;  %v3007_v15 = vadd.f32 %v10233_v4, %v8838_v48 }
 0x3ba   : > { %v8995_v30 = vadd.f32 %v8806_v56, %v3267_v11  ;;  %v10234_v56 = vld [vmem:[#allocation45_spill] sm:$0xff] }
 0x3bb   : > { %v6191_v47 = vpop.f32.mrf.mxu1  ;;  %v2979_v11 = vadd.f32 %v10234_v56, %v8712_v63 }
 0x3bc   : > { %v8997_v8 = vadd.f32 %v6191_v47, %v3006_v40  ;;  %v9012_v47 = vpop.f32.mrf.mxu0 }
 0x3bd   : > { %v3225_v41 = vpop.f32.mrf.mxu1  ;;  %v3243_v1 = vadd.f32 %v8853_v20, %v2979_v11  ;;  %v3504_v11 = vadd.f32 %v8586_v59, %v8868_v62  ;;  %v10237_v59 = vld [vmem:[#allocation32_spill] sm:$0xff]  ;;  %v10238_v62 = vld [vmem:[#allocation25_spill] sm:$0xff] }
 0x3be   : > { %10231 = vst [vmem:[#allocation42_spill] sm:$0xff] %v8997_v8  ;;  %v3268_v2 = vadd.f32 %v3225_v41, %v3004_v46  ;;  %v10235_v8 = vld [vmem:[#allocation48_spill] sm:$0xff] }
 0x3bf   : > { %v6192_v27 = vpop.f32.mrf.mxu1  ;;  %v2977_v49 = vadd.f32 %v10235_v8, %v2706_v36  ;;  %v3501_v36 = vadd.f32 %v8564_v7, %v3243_v1 }
 0x3c0   : > { %v3271_v23 = vadd.f32 %v6192_v27, %v3007_v15  ;;  %v9010_v40 = vadd.f32 %v8830_v45, %v3268_v2  ;;  %v9024_v45 = vpop.f32.mrf.mxu0  ;;  %v2710_v2 = vadd.f32 %v8740_v61, %v8568_v6  ;;  %v10236_v6 = vld [vmem:[#allocation19_spill] sm:$0xff] }
 0x3c1   : > { %v9014_v32 = vpop.f32.mrf.mxu1  ;;  %v3241_v63 = vadd.f32 %v8860_v10, %v2977_v49 }
 0x3c2   : > { %v9021_v48 = vadd.f32 %v8840_v25, %v3271_v23  ;;  %v9038_v27 = vpop.f32.mrf.mxu0  ;;  %v2981_v61 = vadd.f32 %v10236_v6, %v2710_v2  ;;  %v10240_v6 = vld [vmem:[#allocation38_spill] sm:$0xff] }
 0x3c3   : > { %v6259_v46 = vpop.f32.mrf.mxu1  ;;  %v3499_v15 = vadd.f32 %v8576_v42, %v3241_v63 }
 0x3c4   : > { %v3771_v41 = vadd.f32 %v6259_v46, %v3500_v24  ;;  %v3245_v23 = vadd.f32 %v8887_v52, %v2981_v61  ;;  %v9049_v46 = vpop.f32.mrf.mxu0  ;;  %v2987_v52 = vadd.f32 %v10238_v62, %v10237_v59  ;;  %v10241_v61 = vld [vmem:[#allocation27_spill] sm:$0xff]  ;;  %v10245_v62 = vld [vmem:[#allocation24_spill] sm:$0xff] }
 0x3c5   : > { %v3642_v4 = vpop.f32.mrf.mxu1 }
 0x3c6   : > { %v4035_v20 = vadd.f32 %v8858_v58, %v3771_v41  ;;  %v3769_v8 = vadd.f32 %v3642_v4, %v8856_v53 }
 0x3c7   : > { %v6260_v5 = vpop.f32.mrf.mxu1 }
 0x3c8   : > { %v4033_v25 = vadd.f32 %v8872_v55, %v3769_v8  ;;  %v3772_v10 = vadd.f32 %v6260_v5, %v3501_v36  ;;  %v4074_v53 = vadd.f32 %v9034_v50, %v4035_v20 }
 0x3c9   : > { %v3645_v58 = vpop.f32.mrf.mxu1 }
 0x3ca   : > { %v4036_v7 = vadd.f32 %v8885_v14, %v3772_v10  ;;  %v3770_v56 = vadd.f32 %v3645_v58, %v3499_v15  ;;  %v4072_v55 = vadd.f32 %v9034_v50, %v4033_v25  ;;  %v4106_v41 = vmax.f32 %v4074_v53, 0.0  ;;  %v9057_v15 = vpop.f32.mrf.mxu0 }
 0x3cb   : > { %v6263_v1 = vpop.f32.mrf.mxu1  ;;  %v2985_v58 = vadd.f32 %v10241_v61, %v10240_v6 }
 0x3cc   : > { %v4075_v42 = vadd.f32 %v9034_v50, %v4036_v7  ;;  %v4034_v49 = vadd.f32 %v8904_v43, %v3770_v56  ;;  %v3775_v24 = vadd.f32 %v6263_v1, %v3504_v11  ;;  %v4104_v36 = vmax.f32 %v4072_v55, 0.0  ;;  %v10239_v43 = vld [vmem:[#allocation20_spill] sm:$0xff] }
 0x3cd   : > { %v3658_v63 = vpop.f32.mrf.mxu1  ;;  %v3503_v10 = vadd.f32 %v10239_v43, %v3245_v23  ;;  %v3251_v56 = vadd.f32 %v8906_v12, %v2987_v52 }
 0x3ce   : > { %v4107_v2 = vmax.f32 %v4075_v42, 0.0  ;;  %v4073_v14 = vadd.f32 %v9034_v50, %v4034_v49  ;;  %v3773_v4 = vadd.f32 %v3658_v63, %v8879_v54  ;;  %v4039_v20 = vadd.f32 %v8911_v51, %v3775_v24  ;;  %v10242_v51 = vld [vmem:[#allocation22_spill] sm:$0xff]  ;;  %v10243_v24 = vld [vmem:[#allocation23_spill] sm:$0xff] }
 0x3cf   : > { %v6264_v8 = vpop.f32.mrf.mxu1  ;;  %v3508_v1 = vadd.f32 %v10242_v51, %v8900_v57  ;;  %v3249_v63 = vadd.f32 %v10243_v24, %v2985_v58  ;;  %v3509_v52 = vadd.f32 %v10245_v62, %v3251_v56  ;;  %v10248_v58 = vld [vmem:[#allocation37_spill] sm:$0xff] }
 0x3d0   : > { %v4137_v5 = vpack.c.bf16 %v4107_v2, %v4106_v41  ;;  %v4105_v25 = vmax.f32 %v4073_v14, 0.0  ;;  %v4037_v53 = vadd.f32 %v8921_v37, %v3773_v4  ;;  %v3776_v54 = vadd.f32 %v6264_v8, %v8894_v26  ;;  %v9070_v26 = vpop.f32.mrf.mxu0 }
 0x3d1   : > { %v3661_v7 = vpop.f32.mrf.mxu1  ;;  %v4078_v42 = vadd.f32 %v9034_v50, %v4039_v20 }
 0x3d2   : > { %v3774_v11 = vadd.f32 %v3661_v7, %v3503_v10  ;;  %v4136_v55 = vpack.c.bf16 %v4105_v25, %v4104_v36  ;;  %v4040_v23 = vadd.f32 %v8928_v9, %v3776_v54  ;;  %v4076_v12 = vadd.f32 %v9034_v50, %v4037_v53  ;;  %v10244_v9 = vld [vmem:[#allocation21_spill] sm:$0xff]  ;;  %v10246_v10 = vld [vmem:[#allocation35_spill] sm:$0xff]  ;;  %v9080_v61 = vpop.f32.mrf.mxu0 }
 0x3d3   : > { %v6267_v49 = vpop.f32.mrf.mxu1  ;;  %v4110_v20 = vmax.f32 %v4078_v42, 0.0  ;;  %v3507_v6 = vadd.f32 %v10246_v10, %v3249_v63 }
 0x3d4   : > { %v4038_v41 = vadd.f32 %v8941_v22, %v3774_v11  ;;  %v3779_v37 = vadd.f32 %v6267_v49, %v3508_v1  ;;  %6353 = vmatprep.mubr.bf16.mxu0 %v4136_v55  ;;  %v4079_v2 = vadd.f32 %v9034_v50, %v4040_v23  ;;  %v4108_v54 = vmax.f32 %v4076_v12, 0.0  ;;  %v10249_v1 = vld [vmem:[#allocation26_spill] sm:$0xff] }
 0x3d5   : > { %v3674_v14 = vpop.f32.mrf.mxu1  ;;  %6354 = vmatmul.mubr.bf16.vlgmr.msra.gmra.mxu0 %v4137_v5  ;;  %v10247_v5 = vld [vmem:[#allocation43_spill] sm:$0xff]  ;;  %v3512_v55 = vadd.f32 %v10249_v1, %v8917_v21  ;;  %v10250_v21 = vld [vmem:[#allocation29_spill] sm:$0xff] }
 0x3d6   : > { %v4077_v57 = vadd.f32 %v9034_v50, %v4038_v41  ;;  %v4043_v4 = vadd.f32 %v8948_v0, %v3779_v37  ;;  %v3777_v59 = vadd.f32 %v3674_v14, %v10244_v9  ;;  %v4111_v22 = vmax.f32 %v4079_v2, 0.0  ;;  %v9092_v37 = vpop.f32.mrf.mxu0 }
 0x3d7   : > { %v6268_v8 = vpop.f32.mrf.mxu1  ;;  %v2989_v53 = vadd.f32 %v10248_v58, %v10247_v5  ;;  %v10254_v5 = vld [vmem:[#allocation28_spill] sm:$0xff] }
 0x3d8   : > { %v4109_v36 = vmax.f32 %v4077_v57, 0.0  ;;  %v4041_v25 = vadd.f32 %v8961_v19, %v3777_v59  ;;  %v3780_v43 = vadd.f32 %v6268_v8, %v3509_v52  ;;  %v4139_v0 = vpack.c.bf16 %v4111_v22, %v4110_v20  ;;  %v10251_v52 = vld [vmem:[#allocation41_spill] sm:$0xff]  ;;  %v9098_v20 = vpop.f32.mrf.mxu0 }
 0x3d9   : > { %v3677_v7 = vpop.f32.mrf.mxu1  ;;  %v4082_v11 = vadd.f32 %v9034_v50, %v4043_v4  ;;  %v3253_v19 = vadd.f32 %v8930_v39, %v2989_v53 }
 0x3da   : > { %v4044_v56 = vadd.f32 %v8968_v13, %v3780_v43  ;;  %v3778_v51 = vadd.f32 %v3677_v7, %v3507_v6  ;;  %v4138_v23 = vpack.c.bf16 %v4109_v36, %v4108_v54  ;;  %v4080_v49 = vadd.f32 %v9034_v50, %v4041_v25  ;;  %v10252_v25 = vld [vmem:[#allocation50_spill] sm:$0xff]  ;;  %v10253_v43 = vld [vmem:[#allocation52_spill] sm:$0xff] }
 0x3db   : > { %v6271_v42 = vpop.f32.mrf.mxu1  ;;  %v4114_v13 = vmax.f32 %v4082_v11, 0.0  ;;  %v2993_v10 = vadd.f32 %v10253_v43, %v10252_v25 }
 0x3dc   : > { %v4083_v24 = vadd.f32 %v9034_v50, %v4044_v56  ;;  %v4042_v63 = vadd.f32 %v8981_v29, %v3778_v51  ;;  %v3783_v41 = vadd.f32 %v6271_v42, %v3512_v55  ;;  %6357 = vmatprep.mubr.bf16.mxu0 %v4138_v23  ;;  %v4112_v9 = vmax.f32 %v4080_v49, 0.0 }
 0x3dd   : > { %v3690_v12 = vpop.f32.mrf.mxu1  ;;  %6358 = vmatmul.mubr.bf16.gmra.mxu0 %v4139_v0  ;;  %v3511_v29 = vadd.f32 %v10251_v52, %v3253_v19  ;;  %v3257_v7 = vadd.f32 %v8950_v33, %v2993_v10  ;;  %v10255_v19 = vld [vmem:[#allocation31_spill] sm:$0xff] }
 0x3de   : > { %v4115_v2 = vmax.f32 %v4083_v24, 0.0  ;;  %v4081_v14 = vadd.f32 %v9034_v50, %v4042_v63  ;;  %v3781_v57 = vadd.f32 %v3690_v12, %v10250_v21  ;;  %v4047_v39 = vadd.f32 %v8988_v35, %v3783_v41  ;;  %v10256_v63 = vld [vmem:[#allocation30_spill] sm:$0xff] }
 0x3df   : > { %v6272_v4 = vpop.f32.mrf.mxu1  ;;  %v3516_v35 = vadd.f32 %v10254_v5, %v8937_v28  ;;  %v3515_v41 = vadd.f32 %v10256_v63, %v3257_v7  ;;  %v10260_v5 = vld [vmem:[#allocation33_spill] sm:$0xff] }
 0x3e0   : > { %v4141_v59 = vpack.c.bf16 %v4115_v2, %v4114_v13  ;;  %v4113_v62 = vmax.f32 %v4081_v14, 0.0  ;;  %v4045_v22 = vadd.f32 %v9001_v60, %v3781_v57  ;;  %v3784_v8 = vadd.f32 %v6272_v4, %v8935_v17  ;;  %v3989_v17 = vpop.f32.mrf.mxu0  ;;  %v10257_v13 = vld [vmem:[#allocation36_spill] sm:$0xff] }
 0x3e1   : > { %v3693_v36 = vpop.f32.mrf.mxu1  ;;  %v4086_v53 = vadd.f32 %v9034_v50, %v4047_v39  ;;  %v10258_v2 = vld [vmem:[#allocation56_spill] sm:$0xff] }
 0x3e2   : > { %v3782_v6 = vadd.f32 %v3693_v36, %v3511_v29  ;;  %v4140_v58 = vpack.c.bf16 %v4113_v62, %v4112_v9  ;;  %v4048_v54 = vadd.f32 %v9012_v47, %v3784_v8  ;;  %v4084_v56 = vadd.f32 %v9034_v50, %v4045_v22  ;;  %v6331_v12 = vpop.f32.mrf.mxu0 }
 0x3e3   : > { %v6275_v0 = vpop.f32.mrf.mxu1  ;;  %v4118_v42 = vmax.f32 %v4086_v53, 0.0  ;;  %v2997_v14 = vadd.f32 %v10258_v2, %v10257_v13 }
 0x3e4   : > { %v4046_v60 = vadd.f32 %v9024_v45, %v3782_v6  ;;  %v3787_v11 = vadd.f32 %v6275_v0, %v3516_v35  ;;  %6361 = vmatprep.mubr.bf16.mxu1 %v4140_v58  ;;  %v4087_v51 = vadd.f32 %v9034_v50, %v4048_v54  ;;  %v4116_v21 = vmax.f32 %v4084_v56, 0.0  ;;  %v4002_v25 = vpop.f32.mrf.mxu0  ;;  %v10261_v0 = vld [vmem:[#allocation47_spill] sm:$0xff] }
 0x3e5   : > { %v3706_v1 = vpop.f32.mrf.mxu1  ;;  %6362 = vmatmul.mubr.bf16.vlgmr.msra.gmra.mxu1 %v4141_v59  ;;  %v10259_v59 = vld [vmem:[#allocation34_spill] sm:$0xff] }
 0x3e6   : > { %v4085_v28 = vadd.f32 %v9034_v50, %v4046_v60  ;;  %v4051_v55 = vadd.f32 %v9038_v27, %v3787_v11  ;;  %v3785_v47 = vadd.f32 %v3706_v1, %v10255_v19  ;;  %v4119_v23 = vmax.f32 %v4087_v51, 0.0  ;;  %v10262_v51 = vld [vmem:[#allocation15_spill] sm:$0xff]  ;;  %v10263_v1 = vld [vmem:[#allocation62_spill] sm:$0xff]  ;;  %v10264_v19 = vld [vmem:[#allocation49_spill] sm:$0xff] }
 0x3e7   : > { %v6276_v33 = vpop.f32.mrf.mxu1  ;;  %v3520_v62 = vadd.f32 %v10259_v59, %v8957_v38  ;;  %v10267_v59 = vld [vmem:[#allocation18_spill] sm:$0xff] }
 0x3e8   : > { %v4117_v49 = vmax.f32 %v4085_v28, 0.0  ;;  %v4049_v45 = vadd.f32 %v9049_v46, %v3785_v47  ;;  %v3788_v24 = vadd.f32 %v6276_v33, %v8955_v18  ;;  %v4143_v57 = vpack.c.bf16 %v4119_v23, %v4118_v42 }
 0x3e9   : > { %v3709_v39 = vpop.f32.mrf.mxu1  ;;  %v4090_v27 = vadd.f32 %v9034_v50, %v4051_v55  ;;  %v3261_v46 = vadd.f32 %v8970_v3, %v2997_v14  ;;  %v3001_v28 = vadd.f32 %v10263_v1, %v10262_v51  ;;  %v3524_v47 = vadd.f32 %v10264_v19, %v8977_v44 }
 0x3ea   : > { %v4052_v4 = vadd.f32 %v9057_v15, %v3788_v24  ;;  %v3786_v9 = vadd.f32 %v3709_v39, %v3515_v41  ;;  %v4142_v52 = vpack.c.bf16 %v4117_v49, %v4116_v21  ;;  %v4088_v29 = vadd.f32 %v9034_v50, %v4049_v45 }
 0x3eb   : > { %v6279_v18 = vpop.f32.mrf.mxu1  ;;  %v4122_v10 = vmax.f32 %v4090_v27, 0.0  ;;  %v3519_v7 = vadd.f32 %v10261_v0, %v3261_v46  ;;  %v3265_v49 = vadd.f32 %v8990_v31, %v3001_v28  ;;  %v10265_v27 = vld [vmem:[#allocation44_spill] sm:$0xff] }
 0x3ec   : > { %v4091_v22 = vadd.f32 %v9034_v50, %v4052_v4  ;;  %v4050_v8 = vadd.f32 %v9070_v26, %v3786_v9  ;;  %v3791_v36 = vadd.f32 %v6279_v18, %v3520_v62  ;;  %6365 = vmatprep.mubr.bf16.mxu1 %v4142_v52  ;;  %v4120_v58 = vmax.f32 %v4088_v29, 0.0  ;;  %v6332_v26 = vpop.f32.mrf.mxu0  ;;  %v10266_v9 = vld [vmem:[#allocation60_spill] sm:$0xff] }
 0x3ed   : > { %v3722_v43 = vpop.f32.mrf.mxu1  ;;  %6366 = vmatmul.mubr.bf16.gmra.mxu1 %v4143_v57  ;;  %v3523_v4 = vadd.f32 %v10265_v27, %v3265_v49  ;;  %v3005_v62 = vadd.f32 %v10267_v59, %v10266_v9  ;;  %v6597_v9 = vld [vmem:[%s6997_s20 + $0x30] sm:$0xf] }
 0x3ee   : > { %v4123_v15 = vmax.f32 %v4091_v22, 0.0  ;;  %v4089_v6 = vadd.f32 %v9034_v50, %v4050_v8  ;;  %v3789_v38 = vadd.f32 %v3722_v43, %v10260_v5  ;;  %v4055_v3 = vadd.f32 %v9080_v61, %v3791_v36  ;;  %v10268_v22 = vld [vmem:[#allocation42_spill] sm:$0xff]  ;;  %v10269_v8 = vld [vmem:[#allocation57_spill] sm:$0xff] }
 0x3ef   : > { %v6280_v35 = vpop.f32.mrf.mxu1  ;;  %v3528_v36 = vadd.f32 %v10269_v8, %v10268_v22  ;;  %v4244_v59 = vshrl.u32 %v6597_v9, 16 }
 0x3f0   : > { %v4145_v53 = vpack.c.bf16 %v4123_v15, %v4122_v10  ;;  %v4121_v54 = vmax.f32 %v4089_v6, 0.0  ;;  %v4053_v60 = vadd.f32 %v9092_v37, %v3789_v38  ;;  %v3792_v11 = vadd.f32 %v6280_v35, %v8975_v34  ;;  %v4005_v34 = vpop.f32.mrf.mxu0 }
 0x3f1   : > { %v3725_v56 = vpop.f32.mrf.mxu1  ;;  %v4094_v42 = vadd.f32 %v9034_v50, %v4055_v3 }
 0x3f2   : > { %v3790_v55 = vadd.f32 %v3725_v56, %v3519_v7  ;;  %v4144_v61 = vpack.c.bf16 %v4121_v54, %v4120_v58  ;;  %v4056_v23 = vadd.f32 %v9098_v20, %v3792_v11  ;;  %v4092_v24 = vadd.f32 %v9034_v50, %v4053_v60  ;;  %v6335_v14 = vpop.f32.mrf.mxu0 }
 0x3f3   : > { %v6283_v33 = vpop.f32.mrf.mxu1  ;;  %v4126_v20 = vmax.f32 %v4094_v42, 0.0 }
 0x3f4   : > { %v4054_v45 = vadd.f32 %v3989_v17, %v3790_v55  ;;  %v3795_v37 = vadd.f32 %v6283_v33, %v3524_v47  ;;  %6369 = vmatprep.mubr.bf16.mxu1 %v4144_v61  ;;  %v4095_v63 = vadd.f32 %v9034_v50, %v4056_v23  ;;  %v4124_v46 = vmax.f32 %v4092_v24, 0.0  ;;  %v4018_v43 = vpop.f32.mrf.mxu0 }
 0x3f5   : > { %v3738_v41 = vpop.f32.mrf.mxu1  ;;  %6370 = vmatmul.mubr.bf16.gmra.mxu1 %v4145_v53 }
 0x3f6   : > { %v4093_v13 = vadd.f32 %v9034_v50, %v4054_v45  ;;  %v4059_v44 = vadd.f32 %v6331_v12, %v3795_v37  ;;  %v3793_v2 = vadd.f32 %v3738_v41, %v8986_v16  ;;  %v4127_v21 = vmax.f32 %v4095_v63, 0.0  ;;  %v6336_v0 = vpop.f32.mrf.mxu0 }
 0x3f7   : > { %v6284_v57 = vpop.f32.mrf.mxu1 }
 0x3f8   : > { %v4125_v31 = vmax.f32 %v4093_v13, 0.0  ;;  %v4057_v17 = vadd.f32 %v4002_v25, %v3793_v2  ;;  %v3796_v39 = vadd.f32 %v6284_v57, %v8995_v30  ;;  %v4147_v18 = vpack.c.bf16 %v4127_v21, %v4126_v20  ;;  %v4021_v61 = vpop.f32.mrf.mxu0  ;;  %v6594_v13 = vld [vmem:[%s6997_s20 + $0xc] sm:$0xf]  ;;  %v6595_v57 = vld [vmem:[%s6997_s20 + $0x10] sm:$0xf] }
 0x3f9   : > { %v3741_v52 = vpop.f32.mrf.mxu1  ;;  %v4098_v12 = vadd.f32 %v9034_v50, %v4059_v44  ;;  %v3269_v25 = vadd.f32 %v9014_v32, %v3005_v62  ;;  %v4172_v44 = vshrl.u32 %v6594_v13, 16  ;;  %v4175_v2 = vshll.u32 %v6594_v13, 16 }
 0x3fa   : > { %v4060_v16 = vadd.f32 %v6332_v26, %v3796_v39  ;;  %v3794_v29 = vadd.f32 %v3741_v52, %v3523_v4  ;;  %v4146_v30 = vpack.c.bf16 %v4125_v31, %v4124_v46  ;;  %v4096_v15 = vadd.f32 %v9034_v50, %v4057_v17  ;;  %v10270_v26 = vld [vmem:[#allocation40_spill] sm:$0xff]  ;;  %v6596_v39 = vld [vmem:[%s6997_s20 + $0x20] sm:$0xf]  ;;  %v6599_v52 = vld [vmem:[%s6997_s20 + $0x24] sm:$0xf] }
 0x3fb   : > { %v6287_v10 = vpop.f32.mrf.mxu1  ;;  %v4130_v35 = vmax.f32 %v4098_v12, 0.0  ;;  %v3527_v60 = vadd.f32 %v10270_v26, %v3269_v25  ;;  %v4177_v21 = vrot.slane %v4175_v2, 5  ;;  %v4181_v31 = vshll.u32 %v6595_v57, 16  ;;  %v6598_v46 = vld [vmem:[%s6997_s20 + $0x14] sm:$0xf] }
 0x3fc   : > { %v4099_v6 = vadd.f32 %v9034_v50, %v4060_v16  ;;  %v4058_v5 = vadd.f32 %v4005_v34, %v3794_v29  ;;  %v3799_v38 = vadd.f32 %v6287_v10, %v3528_v36  ;;  %6373 = vmatprep.mubr.bf16.mxu1 %v4146_v30  ;;  %v4128_v11 = vmax.f32 %v4096_v15, 0.0 }
 0x3fd   : > { %v3754_v3 = vpop.f32.mrf.mxu1  ;;  %6374 = vmatmul.mubr.bf16.gmra.mxu1 %v4147_v18  ;;  %v4185_v17 = vshrl.u32 %v6595_v57, 16  ;;  %v4215_v27 = vshll.u32 %v6596_v39, 16  ;;  %v4247_v62 = vshll.u32 %v6597_v9, 16  ;;  %v4191_v18 = vshll.u32 %v6598_v46, 16  ;;  %v6607_v39 = vld [vmem:[%s6997_s20 + $0x40] sm:$0xf] }
 0x3fe   : > { %v4131_v58 = vmax.f32 %v4099_v6, 0.0  ;;  %v4097_v53 = vadd.f32 %v9034_v50, %v4058_v5  ;;  %v3797_v54 = vadd.f32 %v3754_v3, %v9010_v40  ;;  %v4063_v7 = vadd.f32 %v6335_v14, %v3799_v38  ;;  %v10271_v14 = vld [vmem:[#allocation39_spill] sm:$0xff]  ;;  %v10272_v5 = vld [vmem:[#allocation13_spill] sm:$0xff] }
 0x3ff   : > { %v6288_v32 = vpop.f32.mrf.mxu1  ;;  %v4209_v20 = vshrl.u32 %v10271_v14, 16  ;;  %v4220_v12 = vshrl.u32 %v6599_v52, 16  ;;  %v9170_v16 = vrot.slane %v4181_v31, 5  ;;  %v4187_v29 = vrot.slane %v4185_v17, 4 }
 0x400   : > { %v4149_v56 = vpack.c.bf16 %v4131_v58, %v4130_v35  ;;  %v4129_v51 = vmax.f32 %v4097_v53, 0.0  ;;  %v4061_v1 = vadd.f32 %v4018_v43, %v3797_v54  ;;  %v3800_v28 = vadd.f32 %v6288_v32, %v9021_v48  ;;  %v6600_v43 = vld [vmem:[%s6997_s20 + $0x34] sm:$0xf]  ;;  %v6601_v58 = vld [vmem:[%s6997_s20 + $0x28] sm:$0xf] }
 0x401   : > { %v3757_v55 = vpop.f32.mrf.mxu1  ;;  %v4102_v42 = vadd.f32 %v9034_v50, %v4063_v7  ;;  %v4211_v4 = vrot.slane %v4209_v20, 4  ;;  %v4223_v22 = vshll.u32 %v6599_v52, 16  ;;  %v9172_v36 = vrot.slane %v4215_v27, 5 }
 0x402   : > { %v3798_v19 = vadd.f32 %v3757_v55, %v3527_v60  ;;  %v4148_v47 = vpack.c.bf16 %v4129_v51, %v4128_v11  ;;  %v4064_v40 = vadd.f32 %v6336_v0, %v3800_v28  ;;  %v4100_v23 = vadd.f32 %v9034_v50, %v4061_v1  ;;  %v6602_v51 = vld [vmem:[%s6997_s20 + $0x38] sm:$0xf]  ;;  %v6603_v28 = vld [vmem:[%s6997_s20 + $0x48] sm:$0xf] }
 0x403   : > { %v4134_v37 = vmax.f32 %v4102_v42, 0.0  ;;  %v4253_v25 = vshll.u32 %v6600_v43, 16  ;;  %v4257_v10 = vshrl.u32 %v6600_v43, 16  ;;  %v4246_v30 = vrot.slane %v4244_v59, 4 }
 0x404   : > { %v4062_v33 = vadd.f32 %v4021_v61, %v3798_v19  ;;  %6377 = vmatprep.mubr.bf16.mxu1 %v4148_v47  ;;  %v4103_v49 = vadd.f32 %v9034_v50, %v4064_v40  ;;  %v4132_v34 = vmax.f32 %v4100_v23, 0.0  ;;  %v4249_v15 = vrot.slane %v4247_v62, 5 }
 0x405   : > { %6378 = vmatmul.mubr.bf16.gmra.mxu1 %v4149_v56  ;;  %v4212_v38 = vor.u32 %v4211_v4, %v10272_v5  ;;  %v9178_v3 = vrot.slane %v4191_v18, 5  ;;  %v4222_v35 = vrot.slane %v4220_v12, 4  ;;  %v4229_v53 = vshll.u32 %v6601_v58, 16  ;;  %v6608_v12 = vld [vmem:[%s6997_s20 + $0x50] sm:$0xf] }
 0x406   : > { %v4101_v45 = vadd.f32 %v9034_v50, %v4062_v33  ;;  %v4135_v48 = vmax.f32 %v4103_v49, 0.0  ;;  %v4174_v50 = vrot.slane %v4172_v44, 4  ;;  %v4233_v54 = vshrl.u32 %v6601_v58, 16  ;;  %v6604_v33 = vld [vmem:[%s6997_s20 + $0x2c] sm:$0xf] }
 0x407   : > { %v4225_v0 = vrot.slane %v4223_v22, 5  ;;  %v9185_v26 = vrot.slane %v4212_v38, 4  ;;  %v4188_v60 = vor.u32 %v4187_v29, %v9170_v16  ;;  %v9188_v11 = vrot.slane %v4253_v25, 5  ;;  %v6606_v44 = vld [vmem:[%s6997_s20 + $0x4c] sm:$0xf] }
 0x408   : > { %v4133_v24 = vmax.f32 %v4101_v45, 0.0  ;;  %v4151_v63 = vpack.c.bf16 %v4135_v48, %v4134_v37  ;;  %v4178_v8 = vor.u32 %v4177_v21, %v4174_v50  ;;  %v4259_v56 = vrot.slane %v4257_v10, 4  ;;  %v6605_v45 = vld [vmem:[%s6997_s20 + $0x3c] sm:$0xf]  ;;  %v6609_v22 = vld [vmem:[%s6997_s20 + $0x60] sm:$0xf] }
 0x409   : > { %v4263_v1 = vshll.u32 %v6602_v51, 16  ;;  %v4292_v55 = vshrl.u32 %v6603_v28, 16  ;;  %v4295_v19 = vshll.u32 %v6603_v28, 16  ;;  %v9196_v61 = vrot.slane %v4188_v60, 4  ;;  %v6629_v50 = vld [vmem:[%s6997_s20 + $0x9c] sm:$0xf] }
 0x40a   : > { %v4150_v41 = vpack.c.bf16 %v4133_v24, %v4132_v34  ;;  %v9175_v6 = vrot.slane %v4178_v8, 4  ;;  %v4250_v42 = vor.u32 %v4249_v15, %v4246_v30  ;;  %v9198_v40 = vrot.slane %v4229_v53, 5  ;;  %v6611_v53 = vld [vmem:[%s6997_s20 + $0x54] sm:$0xf] }
 0x40b   : > { %v4235_v23 = vrot.slane %v4233_v54, 4  ;;  %v4239_v49 = vshll.u32 %v6604_v33, 16  ;;  %v4268_v37 = vshrl.u32 %v6605_v45, 16  ;;  %v4271_v48 = vshll.u32 %v6605_v45, 16 }
 0x40c   : > { %6381 = vmatprep.mubr.bf16.mxu1 %v4150_v41  ;;  %v9206_v24 = vrot.slane %v4250_v42, 4  ;;  %v9208_v41 = vrot.slane %v4263_v1, 5  ;;  %v4294_v13 = vrot.slane %v4292_v55, 4  ;;  %v4301_v2 = vshll.u32 %v6606_v44, 16  ;;  %v6612_v55 = vld [vmem:[%s6997_s20 + $0x64] sm:$0xf] }
 0x40d   : > { %6382 = vmatmul.mubr.bf16.gmra.mxu1 %v4151_v63  ;;  %v4226_v63 = vor.u32 %v4225_v0, %v4222_v35  ;;  %v4305_v14 = vshrl.u32 %v6606_v44, 16  ;;  %v4297_v20 = vrot.slane %v4295_v19, 5  ;;  %v4260_v57 = vor.u32 %v4259_v56, %v9188_v11  ;;  %v6610_v35 = vld [vmem:[%s6997_s20 + $0x44] sm:$0xf] }
 0x40e   : > { %v9218_v31 = vrot.slane %v4239_v49, 5  ;;  %v4270_v17 = vrot.slane %v4268_v37, 4  ;;  %v4277_v27 = vshll.u32 %v6607_v39, 16  ;;  %v4281_v4 = vshrl.u32 %v6607_v39, 16 }
 0x40f   : > { %v9215_v21 = vrot.slane %v4226_v63, 4  ;;  %v4273_v9 = vrot.slane %v4271_v48, 5  ;;  %v9225_v62 = vrot.slane %v4260_v57, 4  ;;  %v4236_v46 = vor.u32 %v4235_v23, %v9198_v40  ;;  %v6613_v63 = vld [vmem:[%s6997_s20 + $0x58] sm:$0xf] }
 0x410   : > { %v9228_v18 = vrot.slane %v4301_v2, 5  ;;  %v4307_v52 = vrot.slane %v4305_v14, 4  ;;  %v4311_v29 = vshll.u32 %v6608_v12, 16  ;;  %v4340_v8 = vshrl.u32 %v6609_v22, 16 }
 0x411   : > { %v4343_v43 = vshll.u32 %v6609_v22, 16  ;;  %v9236_v10 = vrot.slane %v4236_v46, 4  ;;  %v4298_v30 = vor.u32 %v4297_v20, %v4294_v13  ;;  %v9238_v15 = vrot.slane %v4277_v27, 5  ;;  %v6614_v27 = vld [vmem:[%s6997_s20 + $0x68] sm:$0xf] }
 0x412   : > { %v4283_v38 = vrot.slane %v4281_v4, 4  ;;  %v4287_v58 = vshll.u32 %v6610_v35, 16  ;;  %v4316_v54 = vshrl.u32 %v6611_v53, 16  ;;  %v4319_v0 = vshll.u32 %v6611_v53, 16  ;;  %v6617_v35 = vld [vmem:[%s6997_s20 + $0x6c] sm:$0xf] }
 0x413   : > { %v9246_v56 = vrot.slane %v4298_v30, 4  ;;  %v4274_v51 = vor.u32 %v4273_v9, %v4270_v17  ;;  %v9248_v1 = vrot.slane %v4311_v29, 5  ;;  %v4342_v28 = vrot.slane %v4340_v8, 4  ;;  %v6615_v9 = vld [vmem:[%s6997_s20 + $0x78] sm:$0xf] }
 0x414   : > { %v4349_v19 = vshll.u32 %v6612_v55, 16  ;;  %v4353_v42 = vshrl.u32 %v6612_v55, 16  ;;  %v4345_v23 = vrot.slane %v4343_v43, 5  ;;  %v4308_v45 = vor.u32 %v4307_v52, %v9228_v18  ;;  %v6616_v30 = vld [vmem:[%s6997_s20 + $0x5c] sm:$0xf] }
 0x415   : > { %v9255_v49 = vrot.slane %v4274_v51, 4  ;;  %v9258_v37 = vrot.slane %v4287_v58, 5  ;;  %v4318_v48 = vrot.slane %v4316_v54, 4  ;;  %v4325_v13 = vshll.u32 %v6613_v63, 16 }
 0x416   : > { %v4329_v44 = vshrl.u32 %v6613_v63, 16  ;;  %v4321_v2 = vrot.slane %v4319_v0, 5  ;;  %v9265_v20 = vrot.slane %v4308_v45, 4  ;;  %v4284_v57 = vor.u32 %v4283_v38, %v9238_v15  ;;  %v6623_v63 = vld [vmem:[%s6997_s20 + $0x84] sm:$0xf] }
 0x417   : > { %v9268_v17 = vrot.slane %v4349_v19, 5  ;;  %v4355_v39 = vrot.slane %v4353_v42, 4  ;;  %v4359_v4 = vshll.u32 %v6614_v27, 16  ;;  %v4388_v46 = vshrl.u32 %v6615_v9, 16  ;;  %v6618_v19 = vld [vmem:[%s6997_s20 + $0x7c] sm:$0xf] }
 0x418   : > { %v4391_v52 = vshll.u32 %v6615_v9, 16  ;;  %v9276_v29 = vrot.slane %v4284_v57, 4  ;;  %v4346_v22 = vor.u32 %v4345_v23, %v4342_v28  ;;  %v9278_v8 = vrot.slane %v4325_v13, 5 }
 0x419   : > { %v4331_v43 = vrot.slane %v4329_v44, 4  ;;  %v4335_v38 = vshll.u32 %v6616_v30, 16  ;;  %v4364_v58 = vshrl.u32 %v6617_v35, 16  ;;  %v4367_v53 = vshll.u32 %v6617_v35, 16 }
 0x41a   : > { %v9286_v0 = vrot.slane %v4346_v22, 4  ;;  %v4322_v51 = vor.u32 %v4321_v2, %v4318_v48  ;;  %v9288_v55 = vrot.slane %v4359_v4, 5  ;;  %v4390_v28 = vrot.slane %v4388_v46, 4  ;;  %v6619_v2 = vld [vmem:[%s6997_s20 + $0x70] sm:$0xf] }
 0x41b   : > { %v4397_v42 = vshll.u32 %v6618_v19, 16  ;;  %v4401_v23 = vshrl.u32 %v6618_v19, 16  ;;  %v4393_v45 = vrot.slane %v4391_v52, 5  ;;  %v4356_v44 = vor.u32 %v4355_v39, %v9268_v17 }
 0x41c   : > { %v9295_v13 = vrot.slane %v4322_v51, 4  ;;  %v9298_v57 = vrot.slane %v4335_v38, 5  ;;  %v4366_v48 = vrot.slane %v4364_v58, 4  ;;  %v4373_v27 = vshll.u32 %v6619_v2, 16  ;;  %v6620_v38 = vld [vmem:[%s6997_s20 + $0x80] sm:$0xf] }
 0x41d   : > { %v4377_v4 = vshrl.u32 %v6619_v2, 16  ;;  %v4369_v9 = vrot.slane %v4367_v53, 5  ;;  %v9305_v52 = vrot.slane %v4356_v44, 4  ;;  %v4332_v22 = vor.u32 %v4331_v43, %v9278_v8  ;;  %v6621_v58 = vld [vmem:[%s6997_s20 + $0x90] sm:$0xf] }
 0x41e   : > { %v9308_v30 = vrot.slane %v4397_v42, 5  ;;  %v4403_v39 = vrot.slane %v4401_v23, 4  ;;  %v4407_v35 = vshll.u32 %v6620_v38, 16  ;;  %v4436_v51 = vshrl.u32 %v6621_v58, 16  ;;  %v6622_v43 = vld [vmem:[%s6997_s20 + $0x74] sm:$0xf] }
 0x41f   : > { %v4439_v19 = vshll.u32 %v6621_v58, 16  ;;  %v9316_v2 = vrot.slane %v4332_v22, 4  ;;  %v4394_v44 = vor.u32 %v4393_v45, %v4390_v28  ;;  %v9318_v46 = vrot.slane %v4373_v27, 5  ;;  %v6624_v45 = vld [vmem:[%s6997_s20 + $0x94] sm:$0xf] }
 0x420   : > { %v4383_v42 = vshll.u32 %v6622_v43, 16  ;;  %v4412_v23 = vshrl.u32 %v6623_v63, 16  ;;  %v4415_v54 = vshll.u32 %v6623_v63, 16  ;;  %v4379_v38 = vrot.slane %v4377_v4, 4 }
 0x421   : > { %v9326_v12 = vrot.slane %v4394_v44, 4  ;;  %v4370_v53 = vor.u32 %v4369_v9, %v4366_v48  ;;  %v9328_v22 = vrot.slane %v4407_v35, 5  ;;  %v4438_v28 = vrot.slane %v4436_v51, 4  ;;  %v6625_v35 = vld [vmem:[%s6997_s20 + $0x88] sm:$0xf] }
 0x422   : > { %v4445_v27 = vshll.u32 %v6624_v45, 16  ;;  %v4449_v14 = vshrl.u32 %v6624_v45, 16  ;;  %v4441_v43 = vrot.slane %v4439_v19, 5  ;;  %v4404_v44 = vor.u32 %v4403_v39, %v9308_v30 }
 0x423   : > { %10274 = vst [vmem:[#allocation46_spill] sm:$0xff] %v9328_v22  ;;  %v9335_v4 = vrot.slane %v4370_v53, 4  ;;  %v9338_v58 = vrot.slane %v4383_v42, 5  ;;  %v4414_v48 = vrot.slane %v4412_v23, 4  ;;  %v4417_v9 = vrot.slane %v4415_v54, 5 }
 0x424   : > { %v4421_v51 = vshll.u32 %v6625_v35, 16  ;;  %v4425_v45 = vshrl.u32 %v6625_v35, 16  ;;  %v9345_v63 = vrot.slane %v4404_v44, 4  ;;  %v4380_v53 = vor.u32 %v4379_v38, %v9318_v46  ;;  %v6626_v42 = vld [vmem:[%s6997_s20 + $0x98] sm:$0xf] }
 0x425   : > { %10275 = vst [vmem:[#allocation51_spill] sm:$0xff] %v9338_v58  ;;  %v9348_v33 = vrot.slane %v4445_v27, 5  ;;  %v4451_v39 = vrot.slane %v4449_v14, 4  ;;  %v4455_v23 = vshll.u32 %v6626_v42, 16  ;;  %v6627_v54 = vld [vmem:[%s6997_s20 + $0xa8] sm:$0xf]  ;;  %v4442_v44 = vor.u32 %v4441_v43, %v4438_v28 }
 0x426   : > { %v4484_v60 = vshrl.u32 %v6627_v54, 16  ;;  %v4487_v25 = vshll.u32 %v6627_v54, 16  ;;  %v9356_v19 = vrot.slane %v4380_v53, 4  ;;  %v9358_v59 = vrot.slane %v4421_v51, 5  ;;  %v6628_v38 = vld [vmem:[%s6997_s20 + $0x8c] sm:$0xf] }
 0x427   : > { %10276 = vst [vmem:[#allocation53_spill] sm:$0xff] %v9348_v33  ;;  %v4431_v27 = vshll.u32 %v6628_v38, 16  ;;  %v4460_v14 = vshrl.u32 %v6629_v50, 16  ;;  %v4463_v34 = vshll.u32 %v6629_v50, 16  ;;  %v4427_v42 = vrot.slane %v4425_v45, 4 }
 0x428   : > { %10277 = vst [vmem:[#allocation54_spill] sm:$0xff] %v9356_v19  ;;  %10278 = vst [vmem:[#allocation55_spill] sm:$0xff] %v9358_v59  ;;  %v9366_v47 = vrot.slane %v4442_v44, 4  ;;  %v4418_v35 = vor.u32 %v4417_v9, %v4414_v48  ;;  %v9368_v53 = vrot.slane %v4455_v23, 5  ;;  %v4486_v28 = vrot.slane %v4484_v60, 4 }
 0x429   : > { %v6630_v43 = vld [vmem:[%s6997_s20 + $0xac] sm:$0xf]  ;;  %v4489_v38 = vrot.slane %v4487_v25, 5  ;;  %v4452_v44 = vor.u32 %v4451_v39, %v9348_v33  ;;  %v9378_v54 = vrot.slane %v4431_v27, 5  ;;  %v4462_v48 = vrot.slane %v4460_v14, 4 }
 0x42a   : > { %10279 = vst [vmem:[#allocation58_spill] sm:$0xff] %v9366_v47  ;;  %10280 = vst [vmem:[#allocation59_spill] sm:$0xff] %v9368_v53  ;;  %v4493_v51 = vshll.u32 %v6630_v43, 16  ;;  %v4497_v32 = vshrl.u32 %v6630_v43, 16  ;;  %v9375_v45 = vrot.slane %v4418_v35, 4  ;;  %v4465_v9 = vrot.slane %v4463_v34, 5 }
 0x42b   : > { %10282 = vst [vmem:[#allocation63_spill] sm:$0xff] %v9378_v54  ;;  %v6631_v60 = vld [vmem:[%s6997_s20 + $0xa0] sm:$0xf]  ;;  %v9385_v50 = vrot.slane %v4452_v44, 4  ;;  %v4428_v35 = vor.u32 %v4427_v42, %v9358_v59  ;;  %v6632_v27 = vld [vmem:[%s6997_s20 + $0xb0] sm:$0xf]  ;;  %v4490_v44 = vor.u32 %v4489_v38, %v4486_v28 }
 0x42c   : > { %10281 = vst [vmem:[#allocation61_spill] sm:$0xff] %v9375_v45  ;;  %v4469_v23 = vshll.u32 %v6631_v60, 16  ;;  %v4473_v43 = vshrl.u32 %v6631_v60, 16  ;;  %v9388_v47 = vrot.slane %v4493_v51, 5  ;;  %v4499_v39 = vrot.slane %v4497_v32, 4 }
 0x42d   : > { %v4503_v14 = vshll.u32 %v6632_v27, 16  ;;  %v6633_v34 = vld [vmem:[%s6997_s20 + $0xc0] sm:$0xf]  ;;  %v9396_v25 = vrot.slane %v4428_v35, 4  ;;  %v6634_v42 = vld [vmem:[%s6997_s20 + $0xa4] sm:$0xf]  ;;  %v4466_v60 = vor.u32 %v4465_v9, %v4462_v48 }
 0x42e   : > { %10283 = vst [vmem:[#allocation16_spill] sm:$0xff] %v9388_v47  ;;  %v4532_v33 = vshrl.u32 %v6633_v34, 16  ;;  %v4535_v58 = vshll.u32 %v6633_v34, 16  ;;  %v9398_v45 = vrot.slane %v4469_v23, 5  ;;  %v4479_v51 = vshll.u32 %v6634_v42, 16 }
 0x42f   : > { %v6635_v59 = vld [vmem:[%s6997_s20 + $0xb4] sm:$0xf]  ;;  %v4475_v27 = vrot.slane %v4473_v43, 4  ;;  %v9406_v22 = vrot.slane %v4490_v44, 4  ;;  %v9408_v35 = vrot.slane %v4503_v14, 5  ;;  %v9415_v43 = vrot.slane %v4466_v60, 4 }
 0x430   : > { %v4508_v32 = vshrl.u32 %v6635_v59, 16  ;;  %v4511_v19 = vshll.u32 %v6635_v59, 16  ;;  %v4534_v28 = vrot.slane %v4532_v33, 4  ;;  %v6636_v38 = vld [vmem:[%s6997_s20 + $0xc4] sm:$0xf]  ;;  %v4537_v42 = vrot.slane %v4535_v58, 5 }
 0x431   : > { %10284 = vst [vmem:[#allocation64_spill] sm:$0xff] %v9406_v22  ;;  %v4541_v23 = vshll.u32 %v6636_v38, 16  ;;  %v4545_v53 = vshrl.u32 %v6636_v38, 16  ;;  %10285 = vst [vmem:[#allocation45_spill] sm:$0xff] %v9415_v43  ;;  %v4500_v34 = vor.u32 %v4499_v39, %v9388_v47  ;;  %v9418_v44 = vrot.slane %v4479_v51, 5 }
 0x432   : > { %v4510_v48 = vrot.slane %v4508_v32, 4  ;;  %v4513_v9 = vrot.slane %v4511_v19, 5  ;;  %v6637_v33 = vld [vmem:[%s6997_s20 + $0xb8] sm:$0xf]  ;;  %v4476_v60 = vor.u32 %v4475_v27, %v9398_v45  ;;  %v6638_v51 = vld [vmem:[%s6997_s20 + $0xc8] sm:$0xf] }
 0x433   : > { %v4517_v14 = vshll.u32 %v6637_v33, 16  ;;  %v4521_v54 = vshrl.u32 %v6637_v33, 16  ;;  %v9425_v38 = vrot.slane %v4500_v34, 4  ;;  %v9428_v59 = vrot.slane %v4541_v23, 5  ;;  %v6639_v58 = vld [vmem:[%s6997_s20 + $0xbc] sm:$0xf] }
 0x434   : > { %v4547_v39 = vrot.slane %v4545_v53, 4  ;;  %v4551_v47 = vshll.u32 %v6638_v51, 16  ;;  %v9435_v32 = vrot.slane %v4476_v60, 4  ;;  %v4538_v33 = vor.u32 %v4537_v42, %v4534_v28  ;;  %s6644_s20 = sshll.u32 %s6738_s21, 4  ;;  %s6645_s20 = int_to_ptr.vmem [resolvable:$false] %s6644_s20 }
 0x435   : > { %v9437_v22 = vrot.slane %v4517_v14, 5  ;;  %v4527_v34 = vshll.u32 %v6639_v58, 16  ;;  %v4523_v43 = vrot.slane %v4521_v54, 4  ;;  %v4514_v23 = vor.u32 %v4513_v9, %v4510_v48  ;;  %s6646_s12 = scalar_lea.vmem %s6645_s20, 8192  ;;  %p6647_p6 = scmp.lt.s32.totalorder %s9709_s28, %s6645_s20 }
 0x436   : > { %v9444_v27 = vrot.slane %v4538_v33, 4  ;;  %v9446_v51 = vrot.slane %v4551_v47, 5  ;;  %v4548_v14 = vor.u32 %v4547_v39, %v9428_v59  ;;  %v9477_v33 = vld [vmem:[%s9772_s6] ss:$0 sm:$0xff]  ;;  %v10289_v39 = vsel %vm8881_vm8, %v9175_v6, %v9170_v16  ;;  %p6648_p7 = scmp.lt.s32.totalorder %s6646_s12, %s6640_s23 }
 0x437   : > { %v9452_v42 = vrot.slane %v4514_v23, 4  ;;  %v9455_v54 = vrot.slane %v4527_v34, 5  ;;  %v4524_v47 = vor.u32 %v4523_v43, %v9437_v22  ;;  %v10287_v43 = vld [vmem:[#allocation17_spill] sm:$0xff]  ;;  %v4587_v48 = vunpack.c.l.bf16 %v10289_v39 }
 0x438   : > { %v9461_v60 = vrot.slane %v4548_v14, 4  ;;  %v10288_v34 = vsel %vm8881_vm8, %v10287_v43, %v10272_v5  ;;  %v10290_v5 = vsel %vm8881_vm8, %v9185_v26, %v9172_v36  ;;  %v10291_v16 = vsel %vm8881_vm8, %v9196_v61, %v9178_v3  ;;  %p6649_p9 = por %p6648_p7, %p6647_p6 }
 0x439   : > { %10286 = vst [vmem:[#allocation48_spill] sm:$0xff] %v9455_v54  ;;  %v9468_v9 = vrot.slane %v4524_v47, 4  ;;  %v4589_v23 = vunpack.c.l.bf16 %v10288_v34  ;;  %v4590_v43 = vunpack.c.l.bf16 %v10290_v5  ;;  %v4588_v6 = vunpack.c.l.bf16 %v10291_v16 }
 0x43a   : > { %v10292_v26 = vsel %vm8881_vm8, %v9206_v24, %v9188_v11  ;;  %v10293_v61 = vsel %vm8881_vm8, %v9215_v21, %v9198_v40  ;;  %v10294_v24 = vsel %vm8881_vm8, %v9225_v62, %v9208_v41  ;;  %v10295_v21 = vsel %vm8881_vm8, %v9236_v10, %v9218_v31  ;;  %p6650_p10 = pnand %p6649_p9, %p6643_p5 }
 0x43b   : > { %v10296_v41 = vsel %vm8881_vm8, %v9246_v56, %v9228_v18  ;;  %v10297_v31 = vsel %vm8881_vm8, %v9255_v49, %v9238_v15 }
 0x43c   : > { %v4597_v62 = vunpack.c.l.bf16 %v10296_v41  ;;  %v4595_v10 = vunpack.c.l.bf16 %v10297_v31 }
 0x495   : > { %v6355_v14 = vpop.f32.mrf.mxu0 }
 0x496   : > { %v4717_v47 = vadd.f32 %v6355_v14, %v9477_v33 }
 0x497   : > { %v4708_v58 = vpop.f32.mrf.mxu0 }
 0x498   : > { %v4837_v28 = vadd.f32 %v4717_v47, %v4589_v23  ;;  %v4709_v53 = vadd.f32 %v9477_v33, %v4708_v58 }
 0x499   : > { %v6356_v34 = vpop.f32.mrf.mxu0 }
 0x49a   : > { %v4869_v19 = vmax.f32 %v4837_v28, 0.0  ;;  %v4835_v14 = vadd.f32 %v4709_v53, %v4587_v48  ;;  %v4720_v54 = vadd.f32 %v6356_v34, %v9477_v33  ;;  %v4593_v53 = vunpack.c.l.bf16 %v10292_v26 }
 0x49b   : > { %v4711_v39 = vpop.f32.mrf.mxu0  ;;  %v4594_v34 = vunpack.c.l.bf16 %v10294_v24 }
 0x49c   : > { %4901 = vst [vmem:[%s6861_s17 + $0x10] sm:$0xff] %v4869_v19  ;;  %v4867_v58 = vmax.f32 %v4835_v14, 0.0  ;;  %v4838_v23 = vadd.f32 %v4720_v54, %v4590_v43  ;;  %v4712_v36 = vadd.f32 %v9477_v33, %v4711_v39  ;;  %v4591_v19 = vunpack.c.l.bf16 %v10293_v61 }
 0x49d   : > { %v6359_v47 = vpop.f32.mrf.mxu0  ;;  %v4592_v39 = vunpack.c.l.bf16 %v10295_v21  ;;  %v10298_v61 = vsel %vm8881_vm8, %v9265_v20, %v9248_v1 }
 0x49e   : > { %4899 = vst [vmem:[%s6861_s17] sm:$0xff] %v4867_v58  ;;  %v4870_v28 = vmax.f32 %v4838_v23, 0.0  ;;  %v4836_v48 = vadd.f32 %v4712_v36, %v4588_v6  ;;  %v4733_v3 = vadd.f32 %v6359_v47, %v9477_v33 }
 0x49f   : > { %v4724_v5 = vpop.f32.mrf.mxu0 }
 0x4a0   : > { %4902 = vst [vmem:[%s6861_s17 + $0x18] sm:$0xff] %v4870_v28  ;;  %v4868_v54 = vmax.f32 %v4836_v48, 0.0  ;;  %v4841_v43 = vadd.f32 %v4733_v3, %v4593_v53  ;;  %v4725_v11 = vadd.f32 %v9477_v33, %v4724_v5 }
 0x4a1   : > { %v6360_v14 = vpop.f32.mrf.mxu0 }
 0x4a2   : > { %4900 = vst [vmem:[%s6861_s17 + $0x8] sm:$0xff] %v4868_v54  ;;  %v4873_v16 = vmax.f32 %v4841_v43, 0.0  ;;  %v4839_v6 = vadd.f32 %v4725_v11, %v4591_v19  ;;  %v4736_v40 = vadd.f32 %v6360_v14, %v9477_v33  ;;  %v4598_v19 = vunpack.c.l.bf16 %v10298_v61 }
 0x4a3   : > { %v4727_v58 = vpop.f32.mrf.mxu0  ;;  %v10299_v11 = vsel %vm8881_vm8, %v9276_v29, %v9258_v37  ;;  %v10301_v29 = vsel %vm8881_vm8, %v9295_v13, %v9278_v8  ;;  %v10303_v13 = vsel %vm8881_vm8, %v9316_v2, %v9298_v57  ;;  %v10305_v2 = vsel %vm8881_vm8, %v9335_v4, %v9318_v46  ;;  %v10308_v4 = vld [vmem:[#allocation54_spill] sm:$0xff] }
 0x4a4   : > { %4905 = vst [vmem:[%s6861_s17 + $0x30] sm:$0xff] %v4873_v16  ;;  %v4871_v23 = vmax.f32 %v4839_v6, 0.0  ;;  %v4842_v36 = vadd.f32 %v4736_v40, %v4594_v34  ;;  %v4728_v26 = vadd.f32 %v9477_v33, %v4727_v58  ;;  %v4596_v24 = vunpack.c.l.bf16 %v10299_v11 }
 0x4a5   : > { %v6363_v53 = vpop.f32.mrf.mxu1  ;;  %v10300_v16 = vsel %vm8881_vm8, %v9286_v0, %v9268_v17  ;;  %v4599_v58 = vunpack.c.l.bf16 %v10301_v29  ;;  %v10302_v0 = vsel %vm8881_vm8, %v9305_v52, %v9288_v55  ;;  %v4600_v31 = vunpack.c.l.bf16 %v10303_v13 }
 0x4a6   : > { %v4749_v28 = vadd.f32 %v6363_v53, %v9477_v33  ;;  %4903 = vst [vmem:[%s6861_s17 + $0x20] sm:$0xff] %v4871_v23  ;;  %v4874_v18 = vmax.f32 %v4842_v36, 0.0  ;;  %v4840_v56 = vadd.f32 %v4728_v26, %v4592_v39  ;;  %v4601_v6 = vunpack.c.l.bf16 %v10300_v16 }
 0x4a7   : > { %v4740_v48 = vpop.f32.mrf.mxu1  ;;  %v4602_v36 = vunpack.c.l.bf16 %v10302_v0  ;;  %v10304_v52 = vsel %vm8881_vm8, %v9326_v12, %v9308_v30  ;;  %v10306_v30 = vld [vmem:[#allocation46_spill] sm:$0xff]  ;;  %v10315_v0 = vld [vmem:[#allocation55_spill] sm:$0xff] }
 0x4a8   : > { %v4845_v47 = vadd.f32 %v4749_v28, %v4597_v62  ;;  %v4741_v3 = vadd.f32 %v9477_v33, %v4740_v48  ;;  %4906 = vst [vmem:[%s6861_s17 + $0x38] sm:$0xff] %v4874_v18  ;;  %v4872_v54 = vmax.f32 %v4840_v56, 0.0  ;;  %v4605_v48 = vunpack.c.l.bf16 %v10304_v52 }
 0x4a9   : > { %v6364_v15 = vpop.f32.mrf.mxu1 }
 0x4aa   : > { %v4877_v49 = vmax.f32 %v4845_v47, 0.0  ;;  %v4843_v5 = vadd.f32 %v4741_v3, %v4595_v10  ;;  %v4752_v43 = vadd.f32 %v6364_v15, %v9477_v33  ;;  %4904 = vst [vmem:[%s6861_s17 + $0x28] sm:$0xff] %v4872_v54 }
 0x4ab   : > { %v4743_v34 = vpop.f32.mrf.mxu1 }
 0x4ac   : > { %4909 = vst [vmem:[%s6861_s17 + $0x50] sm:$0xff] %v4877_v49  ;;  %v4875_v1 = vmax.f32 %v4843_v5, 0.0  ;;  %v4846_v20 = vadd.f32 %v4752_v43, %v4598_v19  ;;  %v4744_v14 = vadd.f32 %v9477_v33, %v4743_v34  ;;  %v4603_v19 = vunpack.c.l.bf16 %v10305_v2 }
 0x4ad   : > { %v6367_v39 = vpop.f32.mrf.mxu1  ;;  %v10307_v5 = vsel %vm8881_vm8, %v9345_v63, %v10306_v30 }
 0x4ae   : > { %4907 = vst [vmem:[%s6861_s17 + $0x40] sm:$0xff] %v4875_v1  ;;  %v4878_v40 = vmax.f32 %v4846_v20, 0.0  ;;  %v4844_v21 = vadd.f32 %v4744_v14, %v4596_v24  ;;  %v4765_v37 = vadd.f32 %v6367_v39, %v9477_v33  ;;  %v4606_v43 = vunpack.c.l.bf16 %v10307_v5  ;;  %v10309_v1 = vld [vmem:[#allocation51_spill] sm:$0xff]  ;;  %v10312_v39 = vld [vmem:[#allocation53_spill] sm:$0xff] }
 0x4af   : > { %v4756_v62 = vpop.f32.mrf.mxu1  ;;  %v10310_v20 = vsel %vm8881_vm8, %v10308_v4, %v10309_v1 }
 0x4b0   : > { %4910 = vst [vmem:[%s6861_s17 + $0x58] sm:$0xff] %v4878_v40  ;;  %v4876_v41 = vmax.f32 %v4844_v21, 0.0  ;;  %v4849_v23 = vadd.f32 %v4765_v37, %v4601_v6  ;;  %v4757_v17 = vadd.f32 %v9477_v33, %v4756_v62  ;;  %v4604_v14 = vunpack.c.l.bf16 %v10310_v20  ;;  %v10311_v21 = vld [vmem:[#allocation58_spill] sm:$0xff] }
 0x4b1   : > { %v6368_v26 = vpop.f32.mrf.mxu1  ;;  %v10313_v37 = vsel %vm8881_vm8, %v10311_v21, %v10312_v39  ;;  %v10327_v21 = vsel %vm8881_vm8, %v9435_v32, %v9418_v44  ;;  %v10329_v32 = vsel %vm8881_vm8, %v9452_v42, %v9437_v22 }
 0x4b2   : > { %4908 = vst [vmem:[%s6861_s17 + $0x48] sm:$0xff] %v4876_v41  ;;  %v4881_v53 = vmax.f32 %v4849_v23, 0.0  ;;  %v4847_v28 = vadd.f32 %v4757_v17, %v4599_v58  ;;  %v4768_v8 = vadd.f32 %v6368_v26, %v9477_v33  ;;  %v4609_v29 = vunpack.c.l.bf16 %v10313_v37  ;;  %v10314_v17 = vld [vmem:[#allocation61_spill] sm:$0xff] }
 0x4b3   : > { %v4759_v10 = vpop.f32.mrf.mxu1  ;;  %v4612_v39 = vunpack.c.l.bf16 %v10327_v21 }
 0x4b4   : > { %4913 = vst [vmem:[%s6861_s17 + $0x70] sm:$0xff] %v4881_v53  ;;  %v4879_v18 = vmax.f32 %v4847_v28, 0.0  ;;  %v4850_v56 = vadd.f32 %v4768_v8, %v4602_v36  ;;  %v4760_v55 = vadd.f32 %v9477_v33, %v4759_v10  ;;  %v10316_v36 = vsel %vm8881_vm8, %v10314_v17, %v10315_v0 }
 0x4b5   : > { %v6371_v47 = vpop.f32.mrf.mxu1  ;;  %v4607_v26 = vunpack.c.l.bf16 %v10316_v36  ;;  %v4615_v0 = vunpack.c.l.bf16 %v10329_v32 }
 0x4b6   : > { %4911 = vst [vmem:[%s6861_s17 + $0x60] sm:$0xff] %v4879_v18  ;;  %v4882_v3 = vmax.f32 %v4850_v56, 0.0  ;;  %v4848_v61 = vadd.f32 %v4760_v55, %v4600_v31  ;;  %v4781_v57 = vadd.f32 %v6371_v47, %v9477_v33  ;;  %v10317_v31 = vld [vmem:[#allocation59_spill] sm:$0xff] }
 0x4b7   : > { %v4772_v54 = vpop.f32.mrf.mxu1  ;;  %v10318_v10 = vsel %vm8881_vm8, %v9385_v50, %v10317_v31  ;;  %v10319_v47 = vld [vmem:[#allocation63_spill] sm:$0xff]  ;;  %v10331_v31 = vld [vmem:[#allocation48_spill] sm:$0xff] }
 0x4b8   : > { %4914 = vst [vmem:[%s6861_s17 + $0x78] sm:$0xff] %v4882_v3  ;;  %v4880_v15 = vmax.f32 %v4848_v61, 0.0  ;;  %v4853_v49 = vadd.f32 %v4781_v57, %v4605_v48  ;;  %v4773_v12 = vadd.f32 %v9477_v33, %v4772_v54  ;;  %v4610_v18 = vunpack.c.l.bf16 %v10318_v10  ;;  %v10321_v54 = vld [vmem:[#allocation64_spill] sm:$0xff] }
 0x4b9   : > { %v6372_v11 = vpop.f32.mrf.mxu1  ;;  %v10320_v3 = vsel %vm8881_vm8, %v9396_v25, %v10319_v47  ;;  %v10332_v10 = vsel %vm8881_vm8, %v9468_v9, %v10331_v31 }
 0x4ba   : > { %4912 = vst [vmem:[%s6861_s17 + $0x68] sm:$0xff] %v4880_v15  ;;  %v4885_v24 = vmax.f32 %v4853_v49, 0.0  ;;  %v4851_v34 = vadd.f32 %v4773_v12, %v4603_v19  ;;  %v4784_v46 = vadd.f32 %v6372_v11, %v9477_v33  ;;  %v4608_v61 = vunpack.c.l.bf16 %v10320_v3  ;;  %v10322_v15 = vld [vmem:[#allocation16_spill] sm:$0xff]  ;;  %v10324_v11 = vld [vmem:[#allocation45_spill] sm:$0xff] }
 0x4bb   : > { %v4775_v16 = vpop.f32.mrf.mxu1  ;;  %v10323_v49 = vsel %vm8881_vm8, %v10321_v54, %v10322_v15 }
 0x4bc   : > { %4917 = vst [vmem:[%s6861_s17 + $0x90] sm:$0xff] %v4885_v24  ;;  %v4883_v6 = vmax.f32 %v4851_v34, 0.0  ;;  %v4854_v40 = vadd.f32 %v4784_v46, %v4606_v43  ;;  %v4776_v63 = vadd.f32 %v9477_v33, %v4775_v16  ;;  %v4613_v12 = vunpack.c.l.bf16 %v10323_v49 }
 0x4bd   : > { %v6375_v58 = vpop.f32.mrf.mxu1  ;;  %v10325_v24 = vsel %vm8881_vm8, %v10324_v11, %v9398_v45 }
 0x4be   : > { %4915 = vst [vmem:[%s6861_s17 + $0x80] sm:$0xff] %v4883_v6  ;;  %v4886_v41 = vmax.f32 %v4854_v40, 0.0  ;;  %v4852_v62 = vadd.f32 %v4776_v63, %v4604_v14  ;;  %v4797_v23 = vadd.f32 %v6375_v58, %v9477_v33  ;;  %v4611_v34 = vunpack.c.l.bf16 %v10325_v24 }
 0x4bf   : > { %v4788_v53 = vpop.f32.mrf.mxu1  ;;  %v10326_v14 = vsel %vm8881_vm8, %v9425_v38, %v9408_v35  ;;  %v10328_v58 = vsel %vm8881_vm8, %v9444_v27, %v9428_v59 }
 0x4c0   : > { %4918 = vst [vmem:[%s6861_s17 + $0x98] sm:$0xff] %v4886_v41  ;;  %v4884_v28 = vmax.f32 %v4852_v62, 0.0  ;;  %v4857_v8 = vadd.f32 %v4797_v23, %v4609_v29  ;;  %v4789_v13 = vadd.f32 %v9477_v33, %v4788_v53  ;;  %v4614_v16 = vunpack.c.l.bf16 %v10326_v14 }
 0x4c1   : > { %v6376_v56 = vpop.f32.mrf.mxu1  ;;  %v4617_v41 = vunpack.c.l.bf16 %v10328_v58  ;;  %v10330_v53 = vsel %vm8881_vm8, %v9461_v60, %v9446_v51 }
 0x4c2   : > { %4916 = vst [vmem:[%s6861_s17 + $0x88] sm:$0xff] %v4884_v28  ;;  %v4889_v55 = vmax.f32 %v4857_v8, 0.0  ;;  %v4855_v52 = vadd.f32 %v4789_v13, %v4607_v26  ;;  %v4800_v48 = vadd.f32 %v6376_v56, %v9477_v33  ;;  %v4618_v28 = vunpack.c.l.bf16 %v10330_v53 }
 0x4c3   : > { %v4791_v57 = vpop.f32.mrf.mxu1 }
 0x4c4   : > { %4921 = vst [vmem:[%s6861_s17 + $0xb0] sm:$0xff] %v4889_v55  ;;  %v4887_v2 = vmax.f32 %v4855_v52, 0.0  ;;  %v4858_v19 = vadd.f32 %v4800_v48, %v4610_v18  ;;  %v4792_v50 = vadd.f32 %v9477_v33, %v4791_v57  ;;  %v4616_v18 = vunpack.c.l.bf16 %v10332_v10 }
 0x4c5   : > { %v6379_v30 = vpop.f32.mrf.mxu1 }
 0x4c6   : > { %4919 = vst [vmem:[%s6861_s17 + $0xa0] sm:$0xff] %v4887_v2  ;;  %v4890_v5 = vmax.f32 %v4858_v19, 0.0  ;;  %v4856_v43 = vadd.f32 %v4792_v50, %v4608_v61  ;;  %v4813_v25 = vadd.f32 %v6379_v30, %v9477_v33 }
 0x4c7   : > { %v4804_v46 = vpop.f32.mrf.mxu1 }
 0x4c8   : > { %4922 = vst [vmem:[%s6861_s17 + $0xb8] sm:$0xff] %v4890_v5  ;;  %v4888_v4 = vmax.f32 %v4856_v43, 0.0  ;;  %v4861_v1 = vadd.f32 %v4813_v25, %v4613_v12  ;;  %v4805_v20 = vadd.f32 %v9477_v33, %v4804_v46 }
 0x4c9   : > { %v6380_v6 = vpop.f32.mrf.mxu1 }
 0x4ca   : > { %4920 = vst [vmem:[%s6861_s17 + $0xa8] sm:$0xff] %v4888_v4  ;;  %v4893_v40 = vmax.f32 %v4861_v1, 0.0  ;;  %v4859_v63 = vadd.f32 %v4805_v20, %v4611_v34  ;;  %v4816_v45 = vadd.f32 %v6380_v6, %v9477_v33 }
 0x4cb   : > { %v4807_v37 = vpop.f32.mrf.mxu1 }
 0x4cc   : > { %4925 = vst [vmem:[%s6861_s17 + $0xd0] sm:$0xff] %v4893_v40  ;;  %v4891_v29 = vmax.f32 %v4859_v63, 0.0  ;;  %v4862_v35 = vadd.f32 %v4816_v45, %v4614_v16  ;;  %v4808_v38 = vadd.f32 %v9477_v33, %v4807_v37 }
 0x4cd   : > { %v6383_v62 = vpop.f32.mrf.mxu1 }
 0x4ce   : > { %4923 = vst [vmem:[%s6861_s17 + $0xc0] sm:$0xff] %v4891_v29  ;;  %v4894_v23 = vmax.f32 %v4862_v35, 0.0  ;;  %v4860_v17 = vadd.f32 %v4808_v38, %v4612_v39  ;;  %v4829_v44 = vadd.f32 %v6383_v62, %v9477_v33 }
 0x4cf   : > { %v4820_v36 = vpop.f32.mrf.mxu1 }
 0x4d0   : > { %4926 = vst [vmem:[%s6861_s17 + $0xd8] sm:$0xff] %v4894_v23  ;;  %v4892_v59 = vmax.f32 %v4860_v17, 0.0  ;;  %v4865_v27 = vadd.f32 %v4829_v44, %v4617_v41  ;;  %v4821_v26 = vadd.f32 %v9477_v33, %v4820_v36 }
 0x4d1   : > { %v6384_v8 = vpop.f32.mrf.mxu1 }
 0x4d2   : > { %4924 = vst [vmem:[%s6861_s17 + $0xc8] sm:$0xff] %v4892_v59  ;;  %v4897_v22 = vmax.f32 %v4865_v27, 0.0  ;;  %v4863_v42 = vadd.f32 %v4821_v26, %v4615_v0  ;;  %v4832_v13 = vadd.f32 %v6384_v8, %v9477_v33 }
 0x4d3   : > { %v4823_v56 = vpop.f32.mrf.mxu1 }
 0x4d4   : > { %4929 = vst [vmem:[%s6861_s17 + $0xf0] sm:$0xff] %v4897_v22  ;;  %v4895_v51 = vmax.f32 %v4863_v42, 0.0  ;;  %v4866_v60 = vadd.f32 %v4832_v13, %v4618_v28  ;;  %v4824_v55 = vadd.f32 %v9477_v33, %v4823_v56 }
 0x4d6   : > { %4927 = vst [vmem:[%s6861_s17 + $0xe0] sm:$0xff] %v4895_v51  ;;  %v4898_v52 = vmax.f32 %v4866_v60, 0.0  ;;  %v4864_v48 = vadd.f32 %v4824_v55, %v4616_v18 }
 0x4d8   : > { %4930 = vst [vmem:[%s6861_s17 + $0xf8] sm:$0xff] %v4898_v52  ;;  %v4896_v7 = vmax.f32 %v4864_v48, 0.0 }
 0x4da   : > { %4928 = vst [vmem:[%s6861_s17 + $0xe8] sm:$0xff] %v4896_v7 }
 0x4db   : > { %6653 = shalt.err (!%p6650_p10)
}
 0x4dc   : > { %s6654_s17 = scalar_lea.hbm %s9707_s16, 4096  ;;  %s6658_s9 = scalar_lea.hbm %s9773_s7, 16384 }
 0x4dd   : > { %p6655_p11 = scmp.ne.s32.totalorder %s9707_s16, %s6654_s17  ;;  %p6659_p0 = scmp.lt.s32.totalorder %s9707_s16, %s9773_s7 }
 0x4de   : > { %p6660_p1 = scmp.lt.s32.totalorder %s6658_s9, %s6654_s17 }
 0x4df   : > { %p6656_p12 = pnand %p6655_p11, %p6832_p3 }
 0x4e0   : > { %p6661_p2 = por %p6660_p1, %p6659_p0 }
 0x4e1   : > { %p6657_p13 = pneg %p6656_p12 }
 0x4e3   : > { %p6662_p4 = pnand %p6661_p2, %p6657_p13 }
 0x4e5   : > { %6665 = shalt.err (!%p6662_p4)
}
 0x4e6   : > { %s6739_s18 = smov 128   ;;  %s6740_s22 = smov 8  }
 0x4e7   : > { %6401 = dma.vmem_to_hbm [thread:$0]  (%p6832_p3), %s9709_s28, 4096, %s9707_s16, %s9715_s13, %s6739_s18, %s6739_s18, %s6740_s22  }
 0x4e8 PF: > { %p6407_p5 = scmp.ge.s32.totalorder %s6734_s8, 2  ;;  %s4963_s23 = sand.u32 1, %s6706_s24  }
 0x4e9   : > { %s4964_s21 = scalar_lea.sflag [#allocation5], %s4963_s23 }
 0x4ea   : > { %p6404_p6 = pnand %p6407_p5, %p6841_p8 }
 0x4ec   : > { %p6405_p7 = pneg %p6404_p6 }
 0x4ee   : > { %6701 = dma.done.wait (%p6405_p7), %s4964_s21, 4096  }
 0x4ef   : > { %6703 = vsyncadd (%p6405_p7), %s4964_s21, 4294963200  ;;  %s20_s8 = sadd.s32 1, %s6734_s8   ;;  %s10334_s28 = sld [smem:[#allocation10_spill]] }
 0x4f0   : > { %p17_p9 = scmp.ge.s32.totalorder %s20_s8, 6   ;;  %s10335_s14 = sld [smem:[#allocation11_spill]] }
 0x4f1   : > { %s10336_s30 = sld [smem:[#allocation12_spill]]  ;;  %s10337_s24 = smov %s6710_s25 }
 0x4f2   : > { %s10338_s25 = smov %s6714_s26  ;;  %s10339_s26 = smov %s6850_s19 }
 0x4f3   : > { %s10340_s27 = smov %s6726_s29  ;;  %19 = sbr.rel (!%p17_p9) target bundleno = 5 (0x5), region = 185 }
 0x4f6   : > { %s10341_s29 = smov %s10335_s14 }
 0x4f8   :  { %4969 = vsyncpa [#allocation5], 1 }
 0x4f9   :  { %4971 = vsyncpa [#allocation5 + $0x1], 1 }
 0x4fa   :  { %4972 = vsyncmov [#allocation3] }
 0x4fd   :  { %s4973_s15 = vpop.sfrf %4972 }
 0x4fe   :  { %p5499_p3 = scmp.ne.s32.totalorder %s4973_s15, 0 }
 0x500   :  { %4977 = shalt.err (%p5499_p3)  }
 0x501   :  { %4979 = vsyncmov [#allocation3 + $0x1] }
 0x504   :  { %s4980_s16 = vpop.sfrf %4979 }
 0x505   :  { %p5500_p8 = scmp.ne.s32.totalorder %s4980_s16, 0 }
 0x507   :  { %4984 = shalt.err (%p5500_p8)  }

</bundles_post_ra>
